<compile_context>
chip_gen: v7x
topology: tpu7x:2x2x1
jax: 0.10.0
libtpu: 0.0.40
codegen_flags: <defaults>
</compile_context>

<pallas_src>
import jax
import jax.numpy as jnp
from jax.experimental import pallas as pl
from jax.experimental.pallas import tpu as pltpu


def _denoising_kernel(x_ref,
                      b0, a0, w00,
                      b1, a1, w10, w11,
                      b2, a2, w20, w21, w22,
                      b3, a3, w30, w31, w32, w33,
                      out_ref, pad_ref, patch_ref):
    """Whole DenoisingBlock for one image, entirely in VMEM."""
    H, W, cin = x_ref.shape
    inner = w00.shape[1]          # out channels of conv_0/1/2
    oc_out = w33.shape[1]         # out channels of conv_3 (== cin)
    hw = H * W
    f32 = jnp.float32

    # Zero the staging pad once per image: its 1-pixel border supplies the
    # conv zero-padding for every segment; only the interior is ever rewritten
    # (and only channels [0:cs) of the current segment are ever read back).
    pad_ref[...] = jnp.zeros_like(pad_ref)

    def im2col(seg, cs):
        """Scatter one channel segment's 9 shifted taps into the patch matrix
        and return the (H*W, 9*cs) value (aligned prefix read)."""
        pad_ref[1:H + 1, 1:W + 1, 0:cs] = seg
        for ky in range(3):
            for kx in range(3):
                tap = pad_ref[ky:ky + H, kx:kx + W, 0:cs]          # (H, W, cs)
                c0 = (ky * 3 + kx) * cs
                patch_ref[:, c0:c0 + cs] = tap.reshape(hw, cs)
        return patch_ref[:, 0:9 * cs]

    def mm(p, w_ref):
        return jnp.dot(p, w_ref[...], preferred_element_type=f32)

    def prelu(y, a_ref):
        return jnp.where(y >= 0, y, a_ref[...] * y)                # f32, VPU

    x = x_ref[...]

    # --- segment 0: x contributes to all four convs -------------------------
    p = im2col(x, cin)
    acc0 = b0[...] + mm(p, w00)
    acc1 = b1[...] + mm(p, w10)
    acc2 = b2[...] + mm(p, w20)
    acc3 = b3[...] + mm(p, w30)

    # --- segment 1: out_0 contributes to convs 1..3 -------------------------
    y0 = prelu(acc0, a0)                                            # (hw, inner)
    p = im2col(y0.reshape(H, W, inner).astype(pad_ref.dtype), inner)
    acc1 = acc1 + mm(p, w11)
    acc2 = acc2 + mm(p, w21)
    acc3 = acc3 + mm(p, w31)

    # --- segment 2: out_1 contributes to convs 2..3 -------------------------
    y1 = prelu(acc1, a1)
    p = im2col(y1.reshape(H, W, inner).astype(pad_ref.dtype), inner)
    acc2 = acc2 + mm(p, w22)
    acc3 = acc3 + mm(p, w32)

    # --- segment 3: out_2 contributes to conv 3 ------------------------------
    y2 = prelu(acc2, a2)
    p = im2col(y2.reshape(H, W, inner).astype(pad_ref.dtype), inner)
    acc3 = acc3 + mm(p, w33)

    # --- conv_3 activation + residual add ------------------------------------
    y3 = prelu(acc3, a3)                                            # (hw, oc_out)
    out_ref[...] = (y3.reshape(H, W, oc_out)
                    + x.astype(f32)).astype(out_ref.dtype)


def denoising_block(x, weights, biases, alphas, *, nhwc=False,
                    compute_dtype=jnp.float32):
    """Fused forward pass of DenoisingBlock.

    x       : [N, C, H, W] (NCHW, PyTorch layout) or [N, H, W, C] if nhwc=True
    weights : list of 4 conv weights in PyTorch layout [OC_l, IC_l, 3, 3]
    biases  : list of 4 bias vectors [OC_l]
    alphas  : list of 4 per-channel PReLU slopes [OC_l]
    returns : same layout as the input.
    """
    if nhwc:
        x_nhwc = x
        N, H, W, cin = x.shape
    else:
        N, cin, H, W = x.shape
        x_nhwc = jnp.transpose(x, (0, 2, 3, 1))   # single layout pass (skippable)

    inner = weights[0].shape[0]
    oc_out = weights[3].shape[0]
    assert oc_out == cin, "residual add requires out_channels == in_channels"
    seg_w = [cin, inner, inner, inner]            # widths of [x|out0|out1|out2]
    for l in range(4):
        assert weights[l].shape[1] == sum(seg_w[:l + 1])
        assert tuple(weights[l].shape[2:]) == (3, 3)

    def seg_blocks(w, n_seg):
        """OIHW conv weight -> per-segment im2col weight blocks (9*cs, OC),
        row order = (ky, kx, channel-within-segment), matching the kernel."""
        blocks, off = [], 0
        oc = w.shape[0]
        for s in range(n_seg):
            cs = seg_w[s]
            blk = jnp.transpose(w[:, off:off + cs], (2, 3, 1, 0))   # (3,3,cs,oc)
            blocks.append(blk.reshape(9 * cs, oc).astype(compute_dtype))
            off += cs
        return blocks

    wblk = [seg_blocks(jnp.asarray(weights[l]), l + 1) for l in range(4)]
    b_rows = [jnp.asarray(b).reshape(1, -1).astype(jnp.float32) for b in biases]
    a_rows = [jnp.asarray(a).reshape(1, -1).astype(jnp.float32) for a in alphas]
    x_in = x_nhwc.astype(compute_dtype)

    def full_spec(arr):
        shape = arr.shape
        return pl.BlockSpec(shape, lambda n, _r=len(shape): (0,) * _r)

    flat_params, param_specs = [], []
    for l in range(4):
        layer_params = [b_rows[l], a_rows[l]] + wblk[l]
        flat_params += layer_params
        param_specs += [full_spec(p) for p in layer_params]

    max_seg = max(cin, inner)
    out_nhwc = pl.pallas_call(
        _denoising_kernel,
        out_shape=jax.ShapeDtypeStruct((N, H, W, oc_out), x.dtype),
        grid_spec=pltpu.PrefetchScalarGridSpec(
            num_scalar_prefetch=0,
            grid=(N,),
            in_specs=[pl.BlockSpec((None, H, W, cin),
                                   lambda n: (n, 0, 0, 0))] + param_specs,
            out_specs=pl.BlockSpec((None, H, W, oc_out),
                                   lambda n: (n, 0, 0, 0)),
            scratch_shapes=[
                pltpu.VMEM((H + 2, W + 2, max_seg), compute_dtype),   # pad staging
                pltpu.VMEM((H * W, 9 * max_seg), compute_dtype),      # im2col patch
            ],
        ),
        compiler_params=pltpu.CompilerParams(
            dimension_semantics=("parallel",)),
    )(x_in, *flat_params)

    if nhwc:
        return out_nhwc
    return jnp.transpose(out_nhwc, (0, 3, 1, 2))


def _reference(x, weights, biases, alphas):
    """Pure-JAX reference mirroring the PyTorch forward, for validation."""
    def conv(v, w, b):
        y = jax.lax.conv_general_dilated(
            v, w, window_strides=(1, 1), padding=((1, 1), (1, 1)),
            dimension_numbers=("NCHW", "OIHW", "NCHW"),
            precision=jax.lax.Precision.HIGHEST)
        return y + b.reshape(1, -1, 1, 1)

    def prelu(y, a):
        a = a.reshape(1, -1, 1, 1)
        return jnp.where(y >= 0, y, a * y)

    out0 = prelu(conv(x, weights[0], biases[0]), alphas[0])
    cat0 = jnp.concatenate([x, out0], axis=1)
    out1 = prelu(conv(cat0, weights[1], biases[1]), alphas[1])
    cat1 = jnp.concatenate([cat0, out1], axis=1)
    out2 = prelu(conv(cat1, weights[2], biases[2]), alphas[2])
    cat2 = jnp.concatenate([cat1, out2], axis=1)
    out3 = prelu(conv(cat2, weights[3], biases[3]), alphas[3])
    return out3 + x


if __name__ == "__main__":
    key = jax.random.PRNGKey(0)
    keys = jax.random.split(key, 16)

    N, C, H, W = 2, 4, 16, 16
    INNER = 8
    OUT = C                                   # residual add requires OUT == C

    in_chs = [C, C + INNER, C + 2 * INNER, C + 3 * INNER]
    out_chs = [INNER, INNER, INNER, OUT]

    x = jax.random.normal(keys[0], (N, C, H, W), dtype=jnp.float32)
    weights, biases, alphas = [], [], []
    for l in range(4):
        weights.append(0.1 * jax.random.normal(
            keys[1 + 3 * l], (out_chs[l], in_chs[l], 3, 3), dtype=jnp.float32))
        biases.append(0.1 * jax.random.normal(
            keys[2 + 3 * l], (out_chs[l],), dtype=jnp.float32))
        alphas.append(jax.random.uniform(
            keys[3 + 3 * l], (out_chs[l],), dtype=jnp.float32,
            minval=0.1, maxval=0.4))

    out = denoising_block(x, weights, biases, alphas)
    out = jax.block_until_ready(out)

    ref = _reference(x, weights, biases, alphas)
    assert out.shape == (N, OUT, H, W), out.shape
    max_err = float(jnp.max(jnp.abs(out - ref)))
    assert jnp.allclose(out, ref, atol=2e-3, rtol=2e-3), max_err

    print("KERNEL_OK")
</pallas_src>

<mosaic_0001>
module attributes {stable_mosaic.version = 11 : i64} {
  func.func @_denoising_kernel(%arg0: i32, %arg1: memref<1x16x16x4xf32, #tpu.memory_space<vmem>>, %arg2: memref<1x8xf32, #tpu.memory_space<vmem>>, %arg3: memref<1x8xf32, #tpu.memory_space<vmem>>, %arg4: memref<36x8xf32, #tpu.memory_space<vmem>>, %arg5: memref<1x8xf32, #tpu.memory_space<vmem>>, %arg6: memref<1x8xf32, #tpu.memory_space<vmem>>, %arg7: memref<36x8xf32, #tpu.memory_space<vmem>>, %arg8: memref<72x8xf32, #tpu.memory_space<vmem>>, %arg9: memref<1x8xf32, #tpu.memory_space<vmem>>, %arg10: memref<1x8xf32, #tpu.memory_space<vmem>>, %arg11: memref<36x8xf32, #tpu.memory_space<vmem>>, %arg12: memref<72x8xf32, #tpu.memory_space<vmem>>, %arg13: memref<72x8xf32, #tpu.memory_space<vmem>>, %arg14: memref<1x4xf32, #tpu.memory_space<vmem>>, %arg15: memref<1x4xf32, #tpu.memory_space<vmem>>, %arg16: memref<36x4xf32, #tpu.memory_space<vmem>>, %arg17: memref<72x4xf32, #tpu.memory_space<vmem>>, %arg18: memref<72x4xf32, #tpu.memory_space<vmem>>, %arg19: memref<72x4xf32, #tpu.memory_space<vmem>>, %arg20: memref<1x16x16x4xf32, #tpu.memory_space<vmem>>, %arg21: memref<18x18x8xf32, #tpu.memory_space<vmem>>, %arg22: memref<256x72xf32, #tpu.memory_space<vmem>>) attributes {dimension_semantics = [#tpu.dimension_semantics<parallel>], iteration_bounds = array<i64: 2>, scalar_prefetch = 0 : i64, scratch_operands = 2 : i64, tpu.core_type = #tpu.core_type<tc>, window_params = [{transform_indices = @transform_0, window_bounds = array<i64: 1, 16, 16, 4>}, {pipeline_mode = #tpu.pipeline_mode<synchronous>, transform_indices = @transform_1, window_bounds = array<i64: 1, 8>}, {pipeline_mode = #tpu.pipeline_mode<synchronous>, transform_indices = @transform_2, window_bounds = array<i64: 1, 8>}, {pipeline_mode = #tpu.pipeline_mode<synchronous>, transform_indices = @transform_3, window_bounds = array<i64: 36, 8>}, {pipeline_mode = #tpu.pipeline_mode<synchronous>, transform_indices = @transform_4, window_bounds = array<i64: 1, 8>}, {pipeline_mode = #tpu.pipeline_mode<synchronous>, transform_indices = @transform_5, window_bounds = array<i64: 1, 8>}, {pipeline_mode = #tpu.pipeline_mode<synchronous>, transform_indices = @transform_6, window_bounds = array<i64: 36, 8>}, {pipeline_mode = #tpu.pipeline_mode<synchronous>, transform_indices = @transform_7, window_bounds = array<i64: 72, 8>}, {pipeline_mode = #tpu.pipeline_mode<synchronous>, transform_indices = @transform_8, window_bounds = array<i64: 1, 8>}, {pipeline_mode = #tpu.pipeline_mode<synchronous>, transform_indices = @transform_9, window_bounds = array<i64: 1, 8>}, {pipeline_mode = #tpu.pipeline_mode<synchronous>, transform_indices = @transform_10, window_bounds = array<i64: 36, 8>}, {pipeline_mode = #tpu.pipeline_mode<synchronous>, transform_indices = @transform_11, window_bounds = array<i64: 72, 8>}, {pipeline_mode = #tpu.pipeline_mode<synchronous>, transform_indices = @transform_12, window_bounds = array<i64: 72, 8>}, {pipeline_mode = #tpu.pipeline_mode<synchronous>, transform_indices = @transform_13, window_bounds = array<i64: 1, 4>}, {pipeline_mode = #tpu.pipeline_mode<synchronous>, transform_indices = @transform_14, window_bounds = array<i64: 1, 4>}, {pipeline_mode = #tpu.pipeline_mode<synchronous>, transform_indices = @transform_15, window_bounds = array<i64: 36, 4>}, {pipeline_mode = #tpu.pipeline_mode<synchronous>, transform_indices = @transform_16, window_bounds = array<i64: 72, 4>}, {pipeline_mode = #tpu.pipeline_mode<synchronous>, transform_indices = @transform_17, window_bounds = array<i64: 72, 4>}, {pipeline_mode = #tpu.pipeline_mode<synchronous>, transform_indices = @transform_18, window_bounds = array<i64: 72, 4>}, {transform_indices = @transform_19, window_bounds = array<i64: 1, 16, 16, 4>}]} {
    %cst = arith.constant 0.000000e+00 : f32
    %0 = vector.broadcast %cst : f32 to vector<18x18x8xf32>
    %c0 = arith.constant 0 : index
    %c0_0 = arith.constant 0 : index
    %c0_1 = arith.constant 0 : index
    %1 = vector.load %arg21[%c0, %c0_0, %c0_1] : memref<18x18x8xf32, #tpu.memory_space<vmem>>, vector<18x18x8xf32>
    tpu.vector_store %arg21[%c0, %c0_0, %c0_1], %0 {strides = array<i32>} : memref<18x18x8xf32, #tpu.memory_space<vmem>>, vector<18x18x8xf32>,
    %c0_2 = arith.constant 0 : index
    %c0_3 = arith.constant 0 : index
    %c0_4 = arith.constant 0 : index
    %c0_5 = arith.constant 0 : index
    %2 = vector.load %arg1[%c0_2, %c0_3, %c0_4, %c0_5] : memref<1x16x16x4xf32, #tpu.memory_space<vmem>>, vector<1x16x16x4xf32>
    %3 = vector.shape_cast %2 : vector<1x16x16x4xf32> to vector<16x16x4xf32>
    %c1 = arith.constant 1 : index
    %c1_6 = arith.constant 1 : index
    %c0_7 = arith.constant 0 : index
    %4 = vector.load %arg21[%c1, %c1_6, %c0_7] : memref<18x18x8xf32, #tpu.memory_space<vmem>>, vector<16x16x4xf32>
    tpu.vector_store %arg21[%c1, %c1_6, %c0_7], %3 {strides = array<i32>} : memref<18x18x8xf32, #tpu.memory_space<vmem>>, vector<16x16x4xf32>,
    %c0_8 = arith.constant 0 : index
    %c0_9 = arith.constant 0 : index
    %c0_10 = arith.constant 0 : index
    %5 = vector.load %arg21[%c0_8, %c0_9, %c0_10] : memref<18x18x8xf32, #tpu.memory_space<vmem>>, vector<16x16x4xf32>
    %6 = vector.shape_cast %5 : vector<16x16x4xf32> to vector<256x4xf32>
    %c0_11 = arith.constant 0 : index
    %c0_12 = arith.constant 0 : index
    %7 = vector.load %arg22[%c0_11, %c0_12] : memref<256x72xf32, #tpu.memory_space<vmem>>, vector<256x4xf32>
    tpu.vector_store %arg22[%c0_11, %c0_12], %6 {strides = array<i32>} : memref<256x72xf32, #tpu.memory_space<vmem>>, vector<256x4xf32>,
    %c0_13 = arith.constant 0 : index
    %c1_14 = arith.constant 1 : index
    %c0_15 = arith.constant 0 : index
    %8 = vector.load %arg21[%c0_13, %c1_14, %c0_15] : memref<18x18x8xf32, #tpu.memory_space<vmem>>, vector<16x16x4xf32>
    %9 = vector.shape_cast %8 : vector<16x16x4xf32> to vector<256x4xf32>
    %c0_16 = arith.constant 0 : index
    %c4 = arith.constant 4 : index
    %10 = vector.load %arg22[%c0_16, %c4] : memref<256x72xf32, #tpu.memory_space<vmem>>, vector<256x4xf32>
    tpu.vector_store %arg22[%c0_16, %c4], %9 {strides = array<i32>} : memref<256x72xf32, #tpu.memory_space<vmem>>, vector<256x4xf32>,
    %c0_17 = arith.constant 0 : index
    %c2 = arith.constant 2 : index
    %c0_18 = arith.constant 0 : index
    %11 = vector.load %arg21[%c0_17, %c2, %c0_18] : memref<18x18x8xf32, #tpu.memory_space<vmem>>, vector<16x16x4xf32>
    %12 = vector.shape_cast %11 : vector<16x16x4xf32> to vector<256x4xf32>
    %c0_19 = arith.constant 0 : index
    %c8 = arith.constant 8 : index
    %13 = vector.load %arg22[%c0_19, %c8] : memref<256x72xf32, #tpu.memory_space<vmem>>, vector<256x4xf32>
    tpu.vector_store %arg22[%c0_19, %c8], %12 {strides = array<i32>} : memref<256x72xf32, #tpu.memory_space<vmem>>, vector<256x4xf32>,
    %c1_20 = arith.constant 1 : index
    %c0_21 = arith.constant 0 : index
    %c0_22 = arith.constant 0 : index
    %14 = vector.load %arg21[%c1_20, %c0_21, %c0_22] : memref<18x18x8xf32, #tpu.memory_space<vmem>>, vector<16x16x4xf32>
    %15 = vector.shape_cast %14 : vector<16x16x4xf32> to vector<256x4xf32>
    %c0_23 = arith.constant 0 : index
    %c12 = arith.constant 12 : index
    %16 = vector.load %arg22[%c0_23, %c12] : memref<256x72xf32, #tpu.memory_space<vmem>>, vector<256x4xf32>
    tpu.vector_store %arg22[%c0_23, %c12], %15 {strides = array<i32>} : memref<256x72xf32, #tpu.memory_space<vmem>>, vector<256x4xf32>,
    %c1_24 = arith.constant 1 : index
    %c1_25 = arith.constant 1 : index
    %c0_26 = arith.constant 0 : index
    %17 = vector.load %arg21[%c1_24, %c1_25, %c0_26] : memref<18x18x8xf32, #tpu.memory_space<vmem>>, vector<16x16x4xf32>
    %18 = vector.shape_cast %17 : vector<16x16x4xf32> to vector<256x4xf32>
    %c0_27 = arith.constant 0 : index
    %c16 = arith.constant 16 : index
    %19 = vector.load %arg22[%c0_27, %c16] : memref<256x72xf32, #tpu.memory_space<vmem>>, vector<256x4xf32>
    tpu.vector_store %arg22[%c0_27, %c16], %18 {strides = array<i32>} : memref<256x72xf32, #tpu.memory_space<vmem>>, vector<256x4xf32>,
    %c1_28 = arith.constant 1 : index
    %c2_29 = arith.constant 2 : index
    %c0_30 = arith.constant 0 : index
    %20 = vector.load %arg21[%c1_28, %c2_29, %c0_30] : memref<18x18x8xf32, #tpu.memory_space<vmem>>, vector<16x16x4xf32>
    %21 = vector.shape_cast %20 : vector<16x16x4xf32> to vector<256x4xf32>
    %c0_31 = arith.constant 0 : index
    %c20 = arith.constant 20 : index
    %22 = vector.load %arg22[%c0_31, %c20] : memref<256x72xf32, #tpu.memory_space<vmem>>, vector<256x4xf32>
    tpu.vector_store %arg22[%c0_31, %c20], %21 {strides = array<i32>} : memref<256x72xf32, #tpu.memory_space<vmem>>, vector<256x4xf32>,
    %c2_32 = arith.constant 2 : index
    %c0_33 = arith.constant 0 : index
    %c0_34 = arith.constant 0 : index
    %23 = vector.load %arg21[%c2_32, %c0_33, %c0_34] : memref<18x18x8xf32, #tpu.memory_space<vmem>>, vector<16x16x4xf32>
    %24 = vector.shape_cast %23 : vector<16x16x4xf32> to vector<256x4xf32>
    %c0_35 = arith.constant 0 : index
    %c24 = arith.constant 24 : index
    %25 = vector.load %arg22[%c0_35, %c24] : memref<256x72xf32, #tpu.memory_space<vmem>>, vector<256x4xf32>
    tpu.vector_store %arg22[%c0_35, %c24], %24 {strides = array<i32>} : memref<256x72xf32, #tpu.memory_space<vmem>>, vector<256x4xf32>,
    %c2_36 = arith.constant 2 : index
    %c1_37 = arith.constant 1 : index
    %c0_38 = arith.constant 0 : index
    %26 = vector.load %arg21[%c2_36, %c1_37, %c0_38] : memref<18x18x8xf32, #tpu.memory_space<vmem>>, vector<16x16x4xf32>
    %27 = vector.shape_cast %26 : vector<16x16x4xf32> to vector<256x4xf32>
    %c0_39 = arith.constant 0 : index
    %c28 = arith.constant 28 : index
    %28 = vector.load %arg22[%c0_39, %c28] : memref<256x72xf32, #tpu.memory_space<vmem>>, vector<256x4xf32>
    tpu.vector_store %arg22[%c0_39, %c28], %27 {strides = array<i32>} : memref<256x72xf32, #tpu.memory_space<vmem>>, vector<256x4xf32>,
    %c2_40 = arith.constant 2 : index
    %c2_41 = arith.constant 2 : index
    %c0_42 = arith.constant 0 : index
    %29 = vector.load %arg21[%c2_40, %c2_41, %c0_42] : memref<18x18x8xf32, #tpu.memory_space<vmem>>, vector<16x16x4xf32>
    %30 = vector.shape_cast %29 : vector<16x16x4xf32> to vector<256x4xf32>
    %c0_43 = arith.constant 0 : index
    %c32 = arith.constant 32 : index
    %31 = vector.load %arg22[%c0_43, %c32] : memref<256x72xf32, #tpu.memory_space<vmem>>, vector<256x4xf32>
    tpu.vector_store %arg22[%c0_43, %c32], %30 {strides = array<i32>} : memref<256x72xf32, #tpu.memory_space<vmem>>, vector<256x4xf32>,
    %c0_44 = arith.constant 0 : index
    %c0_45 = arith.constant 0 : index
    %32 = vector.load %arg22[%c0_44, %c0_45] : memref<256x72xf32, #tpu.memory_space<vmem>>, vector<256x36xf32>
    %c0_46 = arith.constant 0 : index
    %c0_47 = arith.constant 0 : index
    %33 = vector.load %arg2[%c0_46, %c0_47] : memref<1x8xf32, #tpu.memory_space<vmem>>, vector<1x8xf32>
    %c0_48 = arith.constant 0 : index
    %c0_49 = arith.constant 0 : index
    %34 = vector.load %arg4[%c0_48, %c0_49] : memref<36x8xf32, #tpu.memory_space<vmem>>, vector<36x8xf32>
    %cst_50 = arith.constant dense<0.000000e+00> : vector<256x8xf32>
    %35 = tpu.matmul %32, %34, %cst_50 {dimension_numbers = #tpu.dot_dimension_numbers<[1], [0], [0], [1], [0, 0, 1, 1], [], []>} : vector<256x36xf32>, vector<36x8xf32>, vector<256x8xf32> -> vector<256x8xf32>
    %36 = vector.broadcast %33 : vector<1x8xf32> to vector<256x8xf32>
    %37 = arith.addf %36, %35 : vector<256x8xf32>
    %c0_51 = arith.constant 0 : index
    %c0_52 = arith.constant 0 : index
    %38 = vector.load %arg5[%c0_51, %c0_52] : memref<1x8xf32, #tpu.memory_space<vmem>>, vector<1x8xf32>
    %c0_53 = arith.constant 0 : index
    %c0_54 = arith.constant 0 : index
    %39 = vector.load %arg7[%c0_53, %c0_54] : memref<36x8xf32, #tpu.memory_space<vmem>>, vector<36x8xf32>
    %cst_55 = arith.constant dense<0.000000e+00> : vector<256x8xf32>
    %40 = tpu.matmul %32, %39, %cst_55 {dimension_numbers = #tpu.dot_dimension_numbers<[1], [0], [0], [1], [0, 0, 1, 1], [], []>} : vector<256x36xf32>, vector<36x8xf32>, vector<256x8xf32> -> vector<256x8xf32>
    %41 = vector.broadcast %38 : vector<1x8xf32> to vector<256x8xf32>
    %42 = arith.addf %41, %40 : vector<256x8xf32>
    %c0_56 = arith.constant 0 : index
    %c0_57 = arith.constant 0 : index
    %43 = vector.load %arg9[%c0_56, %c0_57] : memref<1x8xf32, #tpu.memory_space<vmem>>, vector<1x8xf32>
    %c0_58 = arith.constant 0 : index
    %c0_59 = arith.constant 0 : index
    %44 = vector.load %arg11[%c0_58, %c0_59] : memref<36x8xf32, #tpu.memory_space<vmem>>, vector<36x8xf32>
    %cst_60 = arith.constant dense<0.000000e+00> : vector<256x8xf32>
    %45 = tpu.matmul %32, %44, %cst_60 {dimension_numbers = #tpu.dot_dimension_numbers<[1], [0], [0], [1], [0, 0, 1, 1], [], []>} : vector<256x36xf32>, vector<36x8xf32>, vector<256x8xf32> -> vector<256x8xf32>
    %46 = vector.broadcast %43 : vector<1x8xf32> to vector<256x8xf32>
    %47 = arith.addf %46, %45 : vector<256x8xf32>
    %c0_61 = arith.constant 0 : index
    %c0_62 = arith.constant 0 : index
    %48 = vector.load %arg14[%c0_61, %c0_62] : memref<1x4xf32, #tpu.memory_space<vmem>>, vector<1x4xf32>
    %c0_63 = arith.constant 0 : index
    %c0_64 = arith.constant 0 : index
    %49 = vector.load %arg16[%c0_63, %c0_64] : memref<36x4xf32, #tpu.memory_space<vmem>>, vector<36x4xf32>
    %cst_65 = arith.constant dense<0.000000e+00> : vector<256x4xf32>
    %50 = tpu.matmul %32, %49, %cst_65 {dimension_numbers = #tpu.dot_dimension_numbers<[1], [0], [0], [1], [0, 0, 1, 1], [], []>} : vector<256x36xf32>, vector<36x4xf32>, vector<256x4xf32> -> vector<256x4xf32>
    %51 = vector.broadcast %48 : vector<1x4xf32> to vector<256x4xf32>
    %52 = arith.addf %51, %50 : vector<256x4xf32>
    %cst_66 = arith.constant 0.000000e+00 : f32
    %53 = vector.broadcast %cst_66 : f32 to vector<256x8xf32>
    %54 = arith.cmpf oge, %37, %53 : vector<256x8xf32>
    %c0_67 = arith.constant 0 : index
    %c0_68 = arith.constant 0 : index
    %55 = vector.load %arg3[%c0_67, %c0_68] : memref<1x8xf32, #tpu.memory_space<vmem>>, vector<1x8xf32>
    %56 = vector.broadcast %55 : vector<1x8xf32> to vector<256x8xf32>
    %57 = arith.mulf %56, %37 : vector<256x8xf32>
    %58 = arith.select %54, %37, %57 : vector<256x8xi1>, vector<256x8xf32>
    %59 = vector.shape_cast %58 : vector<256x8xf32> to vector<16x16x8xf32>
    %c1_69 = arith.constant 1 : index
    %c1_70 = arith.constant 1 : index
    %c0_71 = arith.constant 0 : index
    %60 = vector.load %arg21[%c1_69, %c1_70, %c0_71] : memref<18x18x8xf32, #tpu.memory_space<vmem>>, vector<16x16x8xf32>
    tpu.vector_store %arg21[%c1_69, %c1_70, %c0_71], %59 {strides = array<i32>} : memref<18x18x8xf32, #tpu.memory_space<vmem>>, vector<16x16x8xf32>,
    %c0_72 = arith.constant 0 : index
    %c0_73 = arith.constant 0 : index
    %c0_74 = arith.constant 0 : index
    %61 = vector.load %arg21[%c0_72, %c0_73, %c0_74] : memref<18x18x8xf32, #tpu.memory_space<vmem>>, vector<16x16x8xf32>
    %62 = vector.shape_cast %61 : vector<16x16x8xf32> to vector<256x8xf32>
    %c0_75 = arith.constant 0 : index
    %c0_76 = arith.constant 0 : index
    %63 = vector.load %arg22[%c0_75, %c0_76] : memref<256x72xf32, #tpu.memory_space<vmem>>, vector<256x8xf32>
    tpu.vector_store %arg22[%c0_75, %c0_76], %62 {strides = array<i32>} : memref<256x72xf32, #tpu.memory_space<vmem>>, vector<256x8xf32>,
    %c0_77 = arith.constant 0 : index
    %c1_78 = arith.constant 1 : index
    %c0_79 = arith.constant 0 : index
    %64 = vector.load %arg21[%c0_77, %c1_78, %c0_79] : memref<18x18x8xf32, #tpu.memory_space<vmem>>, vector<16x16x8xf32>
    %65 = vector.shape_cast %64 : vector<16x16x8xf32> to vector<256x8xf32>
    %c0_80 = arith.constant 0 : index
    %c8_81 = arith.constant 8 : index
    %66 = vector.load %arg22[%c0_80, %c8_81] : memref<256x72xf32, #tpu.memory_space<vmem>>, vector<256x8xf32>
    tpu.vector_store %arg22[%c0_80, %c8_81], %65 {strides = array<i32>} : memref<256x72xf32, #tpu.memory_space<vmem>>, vector<256x8xf32>,
    %c0_82 = arith.constant 0 : index
    %c2_83 = arith.constant 2 : index
    %c0_84 = arith.constant 0 : index
    %67 = vector.load %arg21[%c0_82, %c2_83, %c0_84] : memref<18x18x8xf32, #tpu.memory_space<vmem>>, vector<16x16x8xf32>
    %68 = vector.shape_cast %67 : vector<16x16x8xf32> to vector<256x8xf32>
    %c0_85 = arith.constant 0 : index
    %c16_86 = arith.constant 16 : index
    %69 = vector.load %arg22[%c0_85, %c16_86] : memref<256x72xf32, #tpu.memory_space<vmem>>, vector<256x8xf32>
    tpu.vector_store %arg22[%c0_85, %c16_86], %68 {strides = array<i32>} : memref<256x72xf32, #tpu.memory_space<vmem>>, vector<256x8xf32>,
    %c1_87 = arith.constant 1 : index
    %c0_88 = arith.constant 0 : index
    %c0_89 = arith.constant 0 : index
    %70 = vector.load %arg21[%c1_87, %c0_88, %c0_89] : memref<18x18x8xf32, #tpu.memory_space<vmem>>, vector<16x16x8xf32>
    %71 = vector.shape_cast %70 : vector<16x16x8xf32> to vector<256x8xf32>
    %c0_90 = arith.constant 0 : index
    %c24_91 = arith.constant 24 : index
    %72 = vector.load %arg22[%c0_90, %c24_91] : memref<256x72xf32, #tpu.memory_space<vmem>>, vector<256x8xf32>
    tpu.vector_store %arg22[%c0_90, %c24_91], %71 {strides = array<i32>} : memref<256x72xf32, #tpu.memory_space<vmem>>, vector<256x8xf32>,
    %c1_92 = arith.constant 1 : index
    %c1_93 = arith.constant 1 : index
    %c0_94 = arith.constant 0 : index
    %73 = vector.load %arg21[%c1_92, %c1_93, %c0_94] : memref<18x18x8xf32, #tpu.memory_space<vmem>>, vector<16x16x8xf32>
    %74 = vector.shape_cast %73 : vector<16x16x8xf32> to vector<256x8xf32>
    %c0_95 = arith.constant 0 : index
    %c32_96 = arith.constant 32 : index
    %75 = vector.load %arg22[%c0_95, %c32_96] : memref<256x72xf32, #tpu.memory_space<vmem>>, vector<256x8xf32>
    tpu.vector_store %arg22[%c0_95, %c32_96], %74 {strides = array<i32>} : memref<256x72xf32, #tpu.memory_space<vmem>>, vector<256x8xf32>,
    %c1_97 = arith.constant 1 : index
    %c2_98 = arith.constant 2 : index
    %c0_99 = arith.constant 0 : index
    %76 = vector.load %arg21[%c1_97, %c2_98, %c0_99] : memref<18x18x8xf32, #tpu.memory_space<vmem>>, vector<16x16x8xf32>
    %77 = vector.shape_cast %76 : vector<16x16x8xf32> to vector<256x8xf32>
    %c0_100 = arith.constant 0 : index
    %c40 = arith.constant 40 : index
    %78 = vector.load %arg22[%c0_100, %c40] : memref<256x72xf32, #tpu.memory_space<vmem>>, vector<256x8xf32>
    tpu.vector_store %arg22[%c0_100, %c40], %77 {strides = array<i32>} : memref<256x72xf32, #tpu.memory_space<vmem>>, vector<256x8xf32>,
    %c2_101 = arith.constant 2 : index
    %c0_102 = arith.constant 0 : index
    %c0_103 = arith.constant 0 : index
    %79 = vector.load %arg21[%c2_101, %c0_102, %c0_103] : memref<18x18x8xf32, #tpu.memory_space<vmem>>, vector<16x16x8xf32>
    %80 = vector.shape_cast %79 : vector<16x16x8xf32> to vector<256x8xf32>
    %c0_104 = arith.constant 0 : index
    %c48 = arith.constant 48 : index
    %81 = vector.load %arg22[%c0_104, %c48] : memref<256x72xf32, #tpu.memory_space<vmem>>, vector<256x8xf32>
    tpu.vector_store %arg22[%c0_104, %c48], %80 {strides = array<i32>} : memref<256x72xf32, #tpu.memory_space<vmem>>, vector<256x8xf32>,
    %c2_105 = arith.constant 2 : index
    %c1_106 = arith.constant 1 : index
    %c0_107 = arith.constant 0 : index
    %82 = vector.load %arg21[%c2_105, %c1_106, %c0_107] : memref<18x18x8xf32, #tpu.memory_space<vmem>>, vector<16x16x8xf32>
    %83 = vector.shape_cast %82 : vector<16x16x8xf32> to vector<256x8xf32>
    %c0_108 = arith.constant 0 : index
    %c56 = arith.constant 56 : index
    %84 = vector.load %arg22[%c0_108, %c56] : memref<256x72xf32, #tpu.memory_space<vmem>>, vector<256x8xf32>
    tpu.vector_store %arg22[%c0_108, %c56], %83 {strides = array<i32>} : memref<256x72xf32, #tpu.memory_space<vmem>>, vector<256x8xf32>,
    %c2_109 = arith.constant 2 : index
    %c2_110 = arith.constant 2 : index
    %c0_111 = arith.constant 0 : index
    %85 = vector.load %arg21[%c2_109, %c2_110, %c0_111] : memref<18x18x8xf32, #tpu.memory_space<vmem>>, vector<16x16x8xf32>
    %86 = vector.shape_cast %85 : vector<16x16x8xf32> to vector<256x8xf32>
    %c0_112 = arith.constant 0 : index
    %c64 = arith.constant 64 : index
    %87 = vector.load %arg22[%c0_112, %c64] : memref<256x72xf32, #tpu.memory_space<vmem>>, vector<256x8xf32>
    tpu.vector_store %arg22[%c0_112, %c64], %86 {strides = array<i32>} : memref<256x72xf32, #tpu.memory_space<vmem>>, vector<256x8xf32>,
    %c0_113 = arith.constant 0 : index
    %c0_114 = arith.constant 0 : index
    %88 = vector.load %arg22[%c0_113, %c0_114] : memref<256x72xf32, #tpu.memory_space<vmem>>, vector<256x72xf32>
    %c0_115 = arith.constant 0 : index
    %c0_116 = arith.constant 0 : index
    %89 = vector.load %arg8[%c0_115, %c0_116] : memref<72x8xf32, #tpu.memory_space<vmem>>, vector<72x8xf32>
    %cst_117 = arith.constant dense<0.000000e+00> : vector<256x8xf32>
    %90 = tpu.matmul %88, %89, %cst_117 {dimension_numbers = #tpu.dot_dimension_numbers<[1], [0], [0], [1], [0, 0, 1, 1], [], []>} : vector<256x72xf32>, vector<72x8xf32>, vector<256x8xf32> -> vector<256x8xf32>
    %91 = arith.addf %42, %90 : vector<256x8xf32>
    %c0_118 = arith.constant 0 : index
    %c0_119 = arith.constant 0 : index
    %92 = vector.load %arg12[%c0_118, %c0_119] : memref<72x8xf32, #tpu.memory_space<vmem>>, vector<72x8xf32>
    %cst_120 = arith.constant dense<0.000000e+00> : vector<256x8xf32>
    %93 = tpu.matmul %88, %92, %cst_120 {dimension_numbers = #tpu.dot_dimension_numbers<[1], [0], [0], [1], [0, 0, 1, 1], [], []>} : vector<256x72xf32>, vector<72x8xf32>, vector<256x8xf32> -> vector<256x8xf32>
    %94 = arith.addf %47, %93 : vector<256x8xf32>
    %c0_121 = arith.constant 0 : index
    %c0_122 = arith.constant 0 : index
    %95 = vector.load %arg17[%c0_121, %c0_122] : memref<72x4xf32, #tpu.memory_space<vmem>>, vector<72x4xf32>
    %cst_123 = arith.constant dense<0.000000e+00> : vector<256x4xf32>
    %96 = tpu.matmul %88, %95, %cst_123 {dimension_numbers = #tpu.dot_dimension_numbers<[1], [0], [0], [1], [0, 0, 1, 1], [], []>} : vector<256x72xf32>, vector<72x4xf32>, vector<256x4xf32> -> vector<256x4xf32>
    %97 = arith.addf %52, %96 : vector<256x4xf32>
    %cst_124 = arith.constant 0.000000e+00 : f32
    %98 = vector.broadcast %cst_124 : f32 to vector<256x8xf32>
    %99 = arith.cmpf oge, %91, %98 : vector<256x8xf32>
    %c0_125 = arith.constant 0 : index
    %c0_126 = arith.constant 0 : index
    %100 = vector.load %arg6[%c0_125, %c0_126] : memref<1x8xf32, #tpu.memory_space<vmem>>, vector<1x8xf32>
    %101 = vector.broadcast %100 : vector<1x8xf32> to vector<256x8xf32>
    %102 = arith.mulf %101, %91 : vector<256x8xf32>
    %103 = arith.select %99, %91, %102 : vector<256x8xi1>, vector<256x8xf32>
    %104 = vector.shape_cast %103 : vector<256x8xf32> to vector<16x16x8xf32>
    %c1_127 = arith.constant 1 : index
    %c1_128 = arith.constant 1 : index
    %c0_129 = arith.constant 0 : index
    %105 = vector.load %arg21[%c1_127, %c1_128, %c0_129] : memref<18x18x8xf32, #tpu.memory_space<vmem>>, vector<16x16x8xf32>
    tpu.vector_store %arg21[%c1_127, %c1_128, %c0_129], %104 {strides = array<i32>} : memref<18x18x8xf32, #tpu.memory_space<vmem>>, vector<16x16x8xf32>,
    %c0_130 = arith.constant 0 : index
    %c0_131 = arith.constant 0 : index
    %c0_132 = arith.constant 0 : index
    %106 = vector.load %arg21[%c0_130, %c0_131, %c0_132] : memref<18x18x8xf32, #tpu.memory_space<vmem>>, vector<16x16x8xf32>
    %107 = vector.shape_cast %106 : vector<16x16x8xf32> to vector<256x8xf32>
    %c0_133 = arith.constant 0 : index
    %c0_134 = arith.constant 0 : index
    %108 = vector.load %arg22[%c0_133, %c0_134] : memref<256x72xf32, #tpu.memory_space<vmem>>, vector<256x8xf32>
    tpu.vector_store %arg22[%c0_133, %c0_134], %107 {strides = array<i32>} : memref<256x72xf32, #tpu.memory_space<vmem>>, vector<256x8xf32>,
    %c0_135 = arith.constant 0 : index
    %c1_136 = arith.constant 1 : index
    %c0_137 = arith.constant 0 : index
    %109 = vector.load %arg21[%c0_135, %c1_136, %c0_137] : memref<18x18x8xf32, #tpu.memory_space<vmem>>, vector<16x16x8xf32>
    %110 = vector.shape_cast %109 : vector<16x16x8xf32> to vector<256x8xf32>
    %c0_138 = arith.constant 0 : index
    %c8_139 = arith.constant 8 : index
    %111 = vector.load %arg22[%c0_138, %c8_139] : memref<256x72xf32, #tpu.memory_space<vmem>>, vector<256x8xf32>
    tpu.vector_store %arg22[%c0_138, %c8_139], %110 {strides = array<i32>} : memref<256x72xf32, #tpu.memory_space<vmem>>, vector<256x8xf32>,
    %c0_140 = arith.constant 0 : index
    %c2_141 = arith.constant 2 : index
    %c0_142 = arith.constant 0 : index
    %112 = vector.load %arg21[%c0_140, %c2_141, %c0_142] : memref<18x18x8xf32, #tpu.memory_space<vmem>>, vector<16x16x8xf32>
    %113 = vector.shape_cast %112 : vector<16x16x8xf32> to vector<256x8xf32>
    %c0_143 = arith.constant 0 : index
    %c16_144 = arith.constant 16 : index
    %114 = vector.load %arg22[%c0_143, %c16_144] : memref<256x72xf32, #tpu.memory_space<vmem>>, vector<256x8xf32>
    tpu.vector_store %arg22[%c0_143, %c16_144], %113 {strides = array<i32>} : memref<256x72xf32, #tpu.memory_space<vmem>>, vector<256x8xf32>,
    %c1_145 = arith.constant 1 : index
    %c0_146 = arith.constant 0 : index
    %c0_147 = arith.constant 0 : index
    %115 = vector.load %arg21[%c1_145, %c0_146, %c0_147] : memref<18x18x8xf32, #tpu.memory_space<vmem>>, vector<16x16x8xf32>
    %116 = vector.shape_cast %115 : vector<16x16x8xf32> to vector<256x8xf32>
    %c0_148 = arith.constant 0 : index
    %c24_149 = arith.constant 24 : index
    %117 = vector.load %arg22[%c0_148, %c24_149] : memref<256x72xf32, #tpu.memory_space<vmem>>, vector<256x8xf32>
    tpu.vector_store %arg22[%c0_148, %c24_149], %116 {strides = array<i32>} : memref<256x72xf32, #tpu.memory_space<vmem>>, vector<256x8xf32>,
    %c1_150 = arith.constant 1 : index
    %c1_151 = arith.constant 1 : index
    %c0_152 = arith.constant 0 : index
    %118 = vector.load %arg21[%c1_150, %c1_151, %c0_152] : memref<18x18x8xf32, #tpu.memory_space<vmem>>, vector<16x16x8xf32>
    %119 = vector.shape_cast %118 : vector<16x16x8xf32> to vector<256x8xf32>
    %c0_153 = arith.constant 0 : index
    %c32_154 = arith.constant 32 : index
    %120 = vector.load %arg22[%c0_153, %c32_154] : memref<256x72xf32, #tpu.memory_space<vmem>>, vector<256x8xf32>
    tpu.vector_store %arg22[%c0_153, %c32_154], %119 {strides = array<i32>} : memref<256x72xf32, #tpu.memory_space<vmem>>, vector<256x8xf32>,
    %c1_155 = arith.constant 1 : index
    %c2_156 = arith.constant 2 : index
    %c0_157 = arith.constant 0 : index
    %121 = vector.load %arg21[%c1_155, %c2_156, %c0_157] : memref<18x18x8xf32, #tpu.memory_space<vmem>>, vector<16x16x8xf32>
    %122 = vector.shape_cast %121 : vector<16x16x8xf32> to vector<256x8xf32>
    %c0_158 = arith.constant 0 : index
    %c40_159 = arith.constant 40 : index
    %123 = vector.load %arg22[%c0_158, %c40_159] : memref<256x72xf32, #tpu.memory_space<vmem>>, vector<256x8xf32>
    tpu.vector_store %arg22[%c0_158, %c40_159], %122 {strides = array<i32>} : memref<256x72xf32, #tpu.memory_space<vmem>>, vector<256x8xf32>,
    %c2_160 = arith.constant 2 : index
    %c0_161 = arith.constant 0 : index
    %c0_162 = arith.constant 0 : index
    %124 = vector.load %arg21[%c2_160, %c0_161, %c0_162] : memref<18x18x8xf32, #tpu.memory_space<vmem>>, vector<16x16x8xf32>
    %125 = vector.shape_cast %124 : vector<16x16x8xf32> to vector<256x8xf32>
    %c0_163 = arith.constant 0 : index
    %c48_164 = arith.constant 48 : index
    %126 = vector.load %arg22[%c0_163, %c48_164] : memref<256x72xf32, #tpu.memory_space<vmem>>, vector<256x8xf32>
    tpu.vector_store %arg22[%c0_163, %c48_164], %125 {strides = array<i32>} : memref<256x72xf32, #tpu.memory_space<vmem>>, vector<256x8xf32>,
    %c2_165 = arith.constant 2 : index
    %c1_166 = arith.constant 1 : index
    %c0_167 = arith.constant 0 : index
    %127 = vector.load %arg21[%c2_165, %c1_166, %c0_167] : memref<18x18x8xf32, #tpu.memory_space<vmem>>, vector<16x16x8xf32>
    %128 = vector.shape_cast %127 : vector<16x16x8xf32> to vector<256x8xf32>
    %c0_168 = arith.constant 0 : index
    %c56_169 = arith.constant 56 : index
    %129 = vector.load %arg22[%c0_168, %c56_169] : memref<256x72xf32, #tpu.memory_space<vmem>>, vector<256x8xf32>
    tpu.vector_store %arg22[%c0_168, %c56_169], %128 {strides = array<i32>} : memref<256x72xf32, #tpu.memory_space<vmem>>, vector<256x8xf32>,
    %c2_170 = arith.constant 2 : index
    %c2_171 = arith.constant 2 : index
    %c0_172 = arith.constant 0 : index
    %130 = vector.load %arg21[%c2_170, %c2_171, %c0_172] : memref<18x18x8xf32, #tpu.memory_space<vmem>>, vector<16x16x8xf32>
    %131 = vector.shape_cast %130 : vector<16x16x8xf32> to vector<256x8xf32>
    %c0_173 = arith.constant 0 : index
    %c64_174 = arith.constant 64 : index
    %132 = vector.load %arg22[%c0_173, %c64_174] : memref<256x72xf32, #tpu.memory_space<vmem>>, vector<256x8xf32>
    tpu.vector_store %arg22[%c0_173, %c64_174], %131 {strides = array<i32>} : memref<256x72xf32, #tpu.memory_space<vmem>>, vector<256x8xf32>,
    %c0_175 = arith.constant 0 : index
    %c0_176 = arith.constant 0 : index
    %133 = vector.load %arg22[%c0_175, %c0_176] : memref<256x72xf32, #tpu.memory_space<vmem>>, vector<256x72xf32>
    %c0_177 = arith.constant 0 : index
    %c0_178 = arith.constant 0 : index
    %134 = vector.load %arg13[%c0_177, %c0_178] : memref<72x8xf32, #tpu.memory_space<vmem>>, vector<72x8xf32>
    %cst_179 = arith.constant dense<0.000000e+00> : vector<256x8xf32>
    %135 = tpu.matmul %133, %134, %cst_179 {dimension_numbers = #tpu.dot_dimension_numbers<[1], [0], [0], [1], [0, 0, 1, 1], [], []>} : vector<256x72xf32>, vector<72x8xf32>, vector<256x8xf32> -> vector<256x8xf32>
    %136 = arith.addf %94, %135 : vector<256x8xf32>
    %c0_180 = arith.constant 0 : index
    %c0_181 = arith.constant 0 : index
    %137 = vector.load %arg18[%c0_180, %c0_181] : memref<72x4xf32, #tpu.memory_space<vmem>>, vector<72x4xf32>
    %cst_182 = arith.constant dense<0.000000e+00> : vector<256x4xf32>
    %138 = tpu.matmul %133, %137, %cst_182 {dimension_numbers = #tpu.dot_dimension_numbers<[1], [0], [0], [1], [0, 0, 1, 1], [], []>} : vector<256x72xf32>, vector<72x4xf32>, vector<256x4xf32> -> vector<256x4xf32>
    %139 = arith.addf %97, %138 : vector<256x4xf32>
    %cst_183 = arith.constant 0.000000e+00 : f32
    %140 = vector.broadcast %cst_183 : f32 to vector<256x8xf32>
    %141 = arith.cmpf oge, %136, %140 : vector<256x8xf32>
    %c0_184 = arith.constant 0 : index
    %c0_185 = arith.constant 0 : index
    %142 = vector.load %arg10[%c0_184, %c0_185] : memref<1x8xf32, #tpu.memory_space<vmem>>, vector<1x8xf32>
    %143 = vector.broadcast %142 : vector<1x8xf32> to vector<256x8xf32>
    %144 = arith.mulf %143, %136 : vector<256x8xf32>
    %145 = arith.select %141, %136, %144 : vector<256x8xi1>, vector<256x8xf32>
    %146 = vector.shape_cast %145 : vector<256x8xf32> to vector<16x16x8xf32>
    %c1_186 = arith.constant 1 : index
    %c1_187 = arith.constant 1 : index
    %c0_188 = arith.constant 0 : index
    %147 = vector.load %arg21[%c1_186, %c1_187, %c0_188] : memref<18x18x8xf32, #tpu.memory_space<vmem>>, vector<16x16x8xf32>
    tpu.vector_store %arg21[%c1_186, %c1_187, %c0_188], %146 {strides = array<i32>} : memref<18x18x8xf32, #tpu.memory_space<vmem>>, vector<16x16x8xf32>,
    %c0_189 = arith.constant 0 : index
    %c0_190 = arith.constant 0 : index
    %c0_191 = arith.constant 0 : index
    %148 = vector.load %arg21[%c0_189, %c0_190, %c0_191] : memref<18x18x8xf32, #tpu.memory_space<vmem>>, vector<16x16x8xf32>
    %149 = vector.shape_cast %148 : vector<16x16x8xf32> to vector<256x8xf32>
    %c0_192 = arith.constant 0 : index
    %c0_193 = arith.constant 0 : index
    %150 = vector.load %arg22[%c0_192, %c0_193] : memref<256x72xf32, #tpu.memory_space<vmem>>, vector<256x8xf32>
    tpu.vector_store %arg22[%c0_192, %c0_193], %149 {strides = array<i32>} : memref<256x72xf32, #tpu.memory_space<vmem>>, vector<256x8xf32>,
    %c0_194 = arith.constant 0 : index
    %c1_195 = arith.constant 1 : index
    %c0_196 = arith.constant 0 : index
    %151 = vector.load %arg21[%c0_194, %c1_195, %c0_196] : memref<18x18x8xf32, #tpu.memory_space<vmem>>, vector<16x16x8xf32>
    %152 = vector.shape_cast %151 : vector<16x16x8xf32> to vector<256x8xf32>
    %c0_197 = arith.constant 0 : index
    %c8_198 = arith.constant 8 : index
    %153 = vector.load %arg22[%c0_197, %c8_198] : memref<256x72xf32, #tpu.memory_space<vmem>>, vector<256x8xf32>
    tpu.vector_store %arg22[%c0_197, %c8_198], %152 {strides = array<i32>} : memref<256x72xf32, #tpu.memory_space<vmem>>, vector<256x8xf32>,
    %c0_199 = arith.constant 0 : index
    %c2_200 = arith.constant 2 : index
    %c0_201 = arith.constant 0 : index
    %154 = vector.load %arg21[%c0_199, %c2_200, %c0_201] : memref<18x18x8xf32, #tpu.memory_space<vmem>>, vector<16x16x8xf32>
    %155 = vector.shape_cast %154 : vector<16x16x8xf32> to vector<256x8xf32>
    %c0_202 = arith.constant 0 : index
    %c16_203 = arith.constant 16 : index
    %156 = vector.load %arg22[%c0_202, %c16_203] : memref<256x72xf32, #tpu.memory_space<vmem>>, vector<256x8xf32>
    tpu.vector_store %arg22[%c0_202, %c16_203], %155 {strides = array<i32>} : memref<256x72xf32, #tpu.memory_space<vmem>>, vector<256x8xf32>,
    %c1_204 = arith.constant 1 : index
    %c0_205 = arith.constant 0 : index
    %c0_206 = arith.constant 0 : index
    %157 = vector.load %arg21[%c1_204, %c0_205, %c0_206] : memref<18x18x8xf32, #tpu.memory_space<vmem>>, vector<16x16x8xf32>
    %158 = vector.shape_cast %157 : vector<16x16x8xf32> to vector<256x8xf32>
    %c0_207 = arith.constant 0 : index
    %c24_208 = arith.constant 24 : index
    %159 = vector.load %arg22[%c0_207, %c24_208] : memref<256x72xf32, #tpu.memory_space<vmem>>, vector<256x8xf32>
    tpu.vector_store %arg22[%c0_207, %c24_208], %158 {strides = array<i32>} : memref<256x72xf32, #tpu.memory_space<vmem>>, vector<256x8xf32>,
    %c1_209 = arith.constant 1 : index
    %c1_210 = arith.constant 1 : index
    %c0_211 = arith.constant 0 : index
    %160 = vector.load %arg21[%c1_209, %c1_210, %c0_211] : memref<18x18x8xf32, #tpu.memory_space<vmem>>, vector<16x16x8xf32>
    %161 = vector.shape_cast %160 : vector<16x16x8xf32> to vector<256x8xf32>
    %c0_212 = arith.constant 0 : index
    %c32_213 = arith.constant 32 : index
    %162 = vector.load %arg22[%c0_212, %c32_213] : memref<256x72xf32, #tpu.memory_space<vmem>>, vector<256x8xf32>
    tpu.vector_store %arg22[%c0_212, %c32_213], %161 {strides = array<i32>} : memref<256x72xf32, #tpu.memory_space<vmem>>, vector<256x8xf32>,
    %c1_214 = arith.constant 1 : index
    %c2_215 = arith.constant 2 : index
    %c0_216 = arith.constant 0 : index
    %163 = vector.load %arg21[%c1_214, %c2_215, %c0_216] : memref<18x18x8xf32, #tpu.memory_space<vmem>>, vector<16x16x8xf32>
    %164 = vector.shape_cast %163 : vector<16x16x8xf32> to vector<256x8xf32>
    %c0_217 = arith.constant 0 : index
    %c40_218 = arith.constant 40 : index
    %165 = vector.load %arg22[%c0_217, %c40_218] : memref<256x72xf32, #tpu.memory_space<vmem>>, vector<256x8xf32>
    tpu.vector_store %arg22[%c0_217, %c40_218], %164 {strides = array<i32>} : memref<256x72xf32, #tpu.memory_space<vmem>>, vector<256x8xf32>,
    %c2_219 = arith.constant 2 : index
    %c0_220 = arith.constant 0 : index
    %c0_221 = arith.constant 0 : index
    %166 = vector.load %arg21[%c2_219, %c0_220, %c0_221] : memref<18x18x8xf32, #tpu.memory_space<vmem>>, vector<16x16x8xf32>
    %167 = vector.shape_cast %166 : vector<16x16x8xf32> to vector<256x8xf32>
    %c0_222 = arith.constant 0 : index
    %c48_223 = arith.constant 48 : index
    %168 = vector.load %arg22[%c0_222, %c48_223] : memref<256x72xf32, #tpu.memory_space<vmem>>, vector<256x8xf32>
    tpu.vector_store %arg22[%c0_222, %c48_223], %167 {strides = array<i32>} : memref<256x72xf32, #tpu.memory_space<vmem>>, vector<256x8xf32>,
    %c2_224 = arith.constant 2 : index
    %c1_225 = arith.constant 1 : index
    %c0_226 = arith.constant 0 : index
    %169 = vector.load %arg21[%c2_224, %c1_225, %c0_226] : memref<18x18x8xf32, #tpu.memory_space<vmem>>, vector<16x16x8xf32>
    %170 = vector.shape_cast %169 : vector<16x16x8xf32> to vector<256x8xf32>
    %c0_227 = arith.constant 0 : index
    %c56_228 = arith.constant 56 : index
    %171 = vector.load %arg22[%c0_227, %c56_228] : memref<256x72xf32, #tpu.memory_space<vmem>>, vector<256x8xf32>
    tpu.vector_store %arg22[%c0_227, %c56_228], %170 {strides = array<i32>} : memref<256x72xf32, #tpu.memory_space<vmem>>, vector<256x8xf32>,
    %c2_229 = arith.constant 2 : index
    %c2_230 = arith.constant 2 : index
    %c0_231 = arith.constant 0 : index
    %172 = vector.load %arg21[%c2_229, %c2_230, %c0_231] : memref<18x18x8xf32, #tpu.memory_space<vmem>>, vector<16x16x8xf32>
    %173 = vector.shape_cast %172 : vector<16x16x8xf32> to vector<256x8xf32>
    %c0_232 = arith.constant 0 : index
    %c64_233 = arith.constant 64 : index
    %174 = vector.load %arg22[%c0_232, %c64_233] : memref<256x72xf32, #tpu.memory_space<vmem>>, vector<256x8xf32>
    tpu.vector_store %arg22[%c0_232, %c64_233], %173 {strides = array<i32>} : memref<256x72xf32, #tpu.memory_space<vmem>>, vector<256x8xf32>,
    %c0_234 = arith.constant 0 : index
    %c0_235 = arith.constant 0 : index
    %175 = vector.load %arg22[%c0_234, %c0_235] : memref<256x72xf32, #tpu.memory_space<vmem>>, vector<256x72xf32>
    %c0_236 = arith.constant 0 : index
    %c0_237 = arith.constant 0 : index
    %176 = vector.load %arg19[%c0_236, %c0_237] : memref<72x4xf32, #tpu.memory_space<vmem>>, vector<72x4xf32>
    %cst_238 = arith.constant dense<0.000000e+00> : vector<256x4xf32>
    %177 = tpu.matmul %175, %176, %cst_238 {dimension_numbers = #tpu.dot_dimension_numbers<[1], [0], [0], [1], [0, 0, 1, 1], [], []>} : vector<256x72xf32>, vector<72x4xf32>, vector<256x4xf32> -> vector<256x4xf32>
    %178 = arith.addf %139, %177 : vector<256x4xf32>
    %cst_239 = arith.constant 0.000000e+00 : f32
    %179 = vector.broadcast %cst_239 : f32 to vector<256x4xf32>
    %180 = arith.cmpf oge, %178, %179 : vector<256x4xf32>
    %c0_240 = arith.constant 0 : index
    %c0_241 = arith.constant 0 : index
    %181 = vector.load %arg15[%c0_240, %c0_241] : memref<1x4xf32, #tpu.memory_space<vmem>>, vector<1x4xf32>
    %182 = vector.broadcast %181 : vector<1x4xf32> to vector<256x4xf32>
    %183 = arith.mulf %182, %178 : vector<256x4xf32>
    %184 = arith.select %180, %178, %183 : vector<256x4xi1>, vector<256x4xf32>
    %185 = vector.shape_cast %184 : vector<256x4xf32> to vector<16x16x4xf32>
    %186 = arith.addf %185, %3 : vector<16x16x4xf32>
    %c0_242 = arith.constant 0 : index
    %c0_243 = arith.constant 0 : index
    %c0_244 = arith.constant 0 : index
    %c0_245 = arith.constant 0 : index
    %187 = vector.load %arg20[%c0_242, %c0_243, %c0_244, %c0_245] : memref<1x16x16x4xf32, #tpu.memory_space<vmem>>, vector<1x16x16x4xf32>
    %188 = vector.shape_cast %187 : vector<1x16x16x4xf32> to vector<16x16x4xf32>
    %189 = vector.shape_cast %186 : vector<16x16x4xf32> to vector<1x16x16x4xf32>
    tpu.vector_store %arg20[%c0_242, %c0_243, %c0_244, %c0_245], %189 {strides = array<i32>} : memref<1x16x16x4xf32, #tpu.memory_space<vmem>>, vector<1x16x16x4xf32>,
    return
  }
  func.func @transform_0(%arg0: i32) -> (i32, i32, i32, i32) {
    %c0_i32 = arith.constant 0 : i32
    %c0_i32_0 = arith.constant 0 : i32
    %c0_i32_1 = arith.constant 0 : i32
    %c0_i32_2 = arith.constant 0 : i32
    return %arg0, %c0_i32, %c0_i32_0, %c0_i32_1 : i32, i32, i32, i32
  }
  func.func @transform_1(%arg0: i32) -> (i32, i32) {
    %c0_i32 = arith.constant 0 : i32
    %c0_i32_0 = arith.constant 0 : i32
    %c0_i32_1 = arith.constant 0 : i32
    return %c0_i32, %c0_i32_0 : i32, i32
  }
  func.func @transform_2(%arg0: i32) -> (i32, i32) {
    %c0_i32 = arith.constant 0 : i32
    %c0_i32_0 = arith.constant 0 : i32
    %c0_i32_1 = arith.constant 0 : i32
    return %c0_i32, %c0_i32_0 : i32, i32
  }
  func.func @transform_3(%arg0: i32) -> (i32, i32) {
    %c0_i32 = arith.constant 0 : i32
    %c0_i32_0 = arith.constant 0 : i32
    %c0_i32_1 = arith.constant 0 : i32
    return %c0_i32, %c0_i32_0 : i32, i32
  }
  func.func @transform_4(%arg0: i32) -> (i32, i32) {
    %c0_i32 = arith.constant 0 : i32
    %c0_i32_0 = arith.constant 0 : i32
    %c0_i32_1 = arith.constant 0 : i32
    return %c0_i32, %c0_i32_0 : i32, i32
  }
  func.func @transform_5(%arg0: i32) -> (i32, i32) {
    %c0_i32 = arith.constant 0 : i32
    %c0_i32_0 = arith.constant 0 : i32
    %c0_i32_1 = arith.constant 0 : i32
    return %c0_i32, %c0_i32_0 : i32, i32
  }
  func.func @transform_6(%arg0: i32) -> (i32, i32) {
    %c0_i32 = arith.constant 0 : i32
    %c0_i32_0 = arith.constant 0 : i32
    %c0_i32_1 = arith.constant 0 : i32
    return %c0_i32, %c0_i32_0 : i32, i32
  }
  func.func @transform_7(%arg0: i32) -> (i32, i32) {
    %c0_i32 = arith.constant 0 : i32
    %c0_i32_0 = arith.constant 0 : i32
    %c0_i32_1 = arith.constant 0 : i32
    return %c0_i32, %c0_i32_0 : i32, i32
  }
  func.func @transform_8(%arg0: i32) -> (i32, i32) {
    %c0_i32 = arith.constant 0 : i32
    %c0_i32_0 = arith.constant 0 : i32
    %c0_i32_1 = arith.constant 0 : i32
    return %c0_i32, %c0_i32_0 : i32, i32
  }
  func.func @transform_9(%arg0: i32) -> (i32, i32) {
    %c0_i32 = arith.constant 0 : i32
    %c0_i32_0 = arith.constant 0 : i32
    %c0_i32_1 = arith.constant 0 : i32
    return %c0_i32, %c0_i32_0 : i32, i32
  }
  func.func @transform_10(%arg0: i32) -> (i32, i32) {
    %c0_i32 = arith.constant 0 : i32
    %c0_i32_0 = arith.constant 0 : i32
    %c0_i32_1 = arith.constant 0 : i32
    return %c0_i32, %c0_i32_0 : i32, i32
  }
  func.func @transform_11(%arg0: i32) -> (i32, i32) {
    %c0_i32 = arith.constant 0 : i32
    %c0_i32_0 = arith.constant 0 : i32
    %c0_i32_1 = arith.constant 0 : i32
    return %c0_i32, %c0_i32_0 : i32, i32
  }
  func.func @transform_12(%arg0: i32) -> (i32, i32) {
    %c0_i32 = arith.constant 0 : i32
    %c0_i32_0 = arith.constant 0 : i32
    %c0_i32_1 = arith.constant 0 : i32
    return %c0_i32, %c0_i32_0 : i32, i32
  }
  func.func @transform_13(%arg0: i32) -> (i32, i32) {
    %c0_i32 = arith.constant 0 : i32
    %c0_i32_0 = arith.constant 0 : i32
    %c0_i32_1 = arith.constant 0 : i32
    return %c0_i32, %c0_i32_0 : i32, i32
  }
  func.func @transform_14(%arg0: i32) -> (i32, i32) {
    %c0_i32 = arith.constant 0 : i32
    %c0_i32_0 = arith.constant 0 : i32
    %c0_i32_1 = arith.constant 0 : i32
    return %c0_i32, %c0_i32_0 : i32, i32
  }
  func.func @transform_15(%arg0: i32) -> (i32, i32) {
    %c0_i32 = arith.constant 0 : i32
    %c0_i32_0 = arith.constant 0 : i32
    %c0_i32_1 = arith.constant 0 : i32
    return %c0_i32, %c0_i32_0 : i32, i32
  }
  func.func @transform_16(%arg0: i32) -> (i32, i32) {
    %c0_i32 = arith.constant 0 : i32
    %c0_i32_0 = arith.constant 0 : i32
    %c0_i32_1 = arith.constant 0 : i32
    return %c0_i32, %c0_i32_0 : i32, i32
  }
  func.func @transform_17(%arg0: i32) -> (i32, i32) {
    %c0_i32 = arith.constant 0 : i32
    %c0_i32_0 = arith.constant 0 : i32
    %c0_i32_1 = arith.constant 0 : i32
    return %c0_i32, %c0_i32_0 : i32, i32
  }
  func.func @transform_18(%arg0: i32) -> (i32, i32) {
    %c0_i32 = arith.constant 0 : i32
    %c0_i32_0 = arith.constant 0 : i32
    %c0_i32_1 = arith.constant 0 : i32
    return %c0_i32, %c0_i32_0 : i32, i32
  }
  func.func @transform_19(%arg0: i32) -> (i32, i32, i32, i32) {
    %c0_i32 = arith.constant 0 : i32
    %c0_i32_0 = arith.constant 0 : i32
    %c0_i32_1 = arith.constant 0 : i32
    %c0_i32_2 = arith.constant 0 : i32
    return %arg0, %c0_i32, %c0_i32_0, %c0_i32_1 : i32, i32, i32, i32
  }
}

</mosaic_0001>

<bundles_post_ra>
// kernel: tpu_custom_call.1
= control target key start
LH: loop header
LB: loop body
LE: loop exit
PB: predicated region body
PF: predicated region fallthrough
CT: control target
= control target key end

     0   :  { %s18241_s0 = inlined_call_operand.vmem [shape: f32[2,16,16,4], index: 0, kind: input, shape index: {}]   ;;  %s18242_s1 = inlined_call_operand.vmem [shape: f32[1,8], index: 1, kind: input, shape index: {}]   ;;  %s18243_s2 = inlined_call_operand.vmem [shape: f32[1,8], index: 2, kind: input, shape index: {}]   ;;  %s18244_s3 = inlined_call_operand.vmem [shape: f32[36,8], index: 3, kind: input, shape index: {}]   ;;  %s18245_s4 = inlined_call_operand.vmem [shape: f32[1,8], index: 4, kind: input, shape index: {}]   ;;  %s18246_s5 = inlined_call_operand.vmem [shape: f32[1,8], index: 5, kind: input, shape index: {}]   ;;  %s18247_s6 = inlined_call_operand.vmem [shape: f32[36,8], index: 6, kind: input, shape index: {}]   ;;  %s18248_s7 = inlined_call_operand.vmem [shape: f32[72,8], index: 7, kind: input, shape index: {}]   ;;  %s18249_s8 = inlined_call_operand.vmem [shape: f32[1,8], index: 8, kind: input, shape index: {}]   ;;  %s18250_s9 = inlined_call_operand.vmem [shape: f32[1,8], index: 9, kind: input, shape index: {}]   ;;  %s18251_s10 = inlined_call_operand.vmem [shape: f32[36,8], index: 10, kind: input, shape index: {}]   ;;  %s18252_s11 = inlined_call_operand.vmem [shape: f32[72,8], index: 11, kind: input, shape index: {}]   ;;  %s18253_s12 = inlined_call_operand.vmem [shape: f32[72,8], index: 12, kind: input, shape index: {}]   ;;  %s18254_s13 = inlined_call_operand.vmem [shape: f32[1,4], index: 13, kind: input, shape index: {}]   ;;  %s18255_s14 = inlined_call_operand.vmem [shape: f32[1,4], index: 14, kind: input, shape index: {}]   ;;  %s18256_s15 = inlined_call_operand.vmem [shape: f32[36,4], index: 15, kind: input, shape index: {}]   ;;  %s18257_s16 = inlined_call_operand.vmem [shape: f32[72,4], index: 16, kind: input, shape index: {}]   ;;  %s18258_s17 = inlined_call_operand.vmem [shape: f32[72,4], index: 17, kind: input, shape index: {}]   ;;  %s18259_s18 = inlined_call_operand.vmem [shape: f32[72,4], index: 18, kind: input, shape index: {}]   ;;  %s18260_s19 = inlined_call_operand.vmem [shape: f32[2,16,16,4], index: 19, kind: output, shape index: {}]  }
   0x1   :  { %18395 = sst [smem:[#allocation96_spill]] %s18241_s0  ;;  %s12893_s0 = smov 0  }
   0x2   :  { %18396 = sst [smem:[#allocation97_spill]] %s18242_s1 }
   0x3   :  { %18397 = sst [smem:[#allocation98_spill]] %s18243_s2 }
   0x4   :  { %18398 = sst [smem:[#allocation99_spill]] %s18244_s3 }
   0x5 LB: > { %s10968_s30 = sadd.s32 4294967295, %s12778_s0   ;;  %p10972_p0 = scmp.ge.s32.totalorder %s12778_s0, 1  ;;  %s12778_s0 = sphi %s12893_s0, %s29_s0  }
   0x6   : > { %p537_p1 = scmp.lt.s32.totalorder %s12778_s0, 3 }
   0x8   : > { %p538_p2 = pnand %p10972_p0, %p537_p1 }
   0xa   : > { %541 = sbr.rel (%p538_p2) target bundleno = 3280 (0xcd0), region = 96 }
  0x11   : > { %vm603_vm0 = vcmask 64512   ;;  %p12903_p3 = scmp.lt.s32.totalorder %s10968_s30, 1  ;;  %vm606_vm1 = vcmask 58368   ;;  %v12780_v0 = vmov 0.0   ;;  %vm692_vm2 = vcmask 31744   ;;  %s18400_s2 = sld [smem:[#allocation96_spill]] }
  0x12   : > { %604 = vst.msk [vmem:[#allocation2] sm:$0xff] %vm603_vm0, %v12780_v0  ;;  %605 = vst.msk [vmem:[#allocation2 + $0x8] sm:$0xff] %vm603_vm0, %v12780_v0  ;;  %s12781_s24 = smov 4   ;;  %s12782_s25 = smov 8   ;;  %vm949_vm3 = vcmask 64544   ;;  %vm1142_vm4 = vcmask 97344  }
  0x13   : > { %608 = vst.msk [vmem:[#allocation2 + $0x18] sm:$0xff] %vm603_vm0, %v12780_v0  ;;  %609 = vst.msk [vmem:[#allocation2 + $0x20] sm:$0xff] %vm603_vm0, %v12780_v0  ;;  %s18716_s30 = smov (!%p12903_p3, %s10968_s30), 1  ;;  %s12783_s3 = smov 12   ;;  %vm1335_vm5 = vcmask 130144   ;;  %vm1528_vm6 = vcmask 162944  }
  0x14   : > { %611 = vst.msk [vmem:[#allocation2 + $0x30] sm:$0xff] %vm603_vm0, %v12780_v0  ;;  %612 = vst.msk [vmem:[#allocation2 + $0x38] sm:$0xff] %vm603_vm0, %v12780_v0  ;;  %s18324_s21 = sshll.u32 %s18716_s30, 8  ;;  %s18391_s26 = smov 16   ;;  %vm1721_vm7 = vcmask 195744   ;;  %vm1915_vm8 = vcmask 228544  }
  0x15   : > { %614 = vst.msk [vmem:[#allocation2 + $0x48] sm:$0xff] %vm603_vm0, %v12780_v0  ;;  %615 = vst.msk [vmem:[#allocation2 + $0x50] sm:$0xff] %vm603_vm0, %v12780_v0  ;;  %s12785_s27 = smov 20   ;;  %s18389_s28 = smov 24   ;;  %vm2469_vm9 = vcmask 1043456   ;;  %vm2108_vm10 = vcmask 261344  }
  0x16   : > { %617 = vst.msk [vmem:[#allocation2 + $0x60] sm:$0xff] %vm603_vm0, %v12780_v0  ;;  %618 = vst.msk [vmem:[#allocation2 + $0x68] sm:$0xff] %vm603_vm0, %v12780_v0  ;;  %s12787_s29 = smov 28   ;;  %s18493_s22 = sld [smem:[#allocation99_spill]]  ;;  %vm2301_vm11 = vcmask 294144   ;;  %vm2372_vm12 = vcmask 293888  }
  0x17   : > { %620 = vst.msk [vmem:[#allocation2 + $0x78] sm:$0xff] %vm603_vm0, %v12780_v0  ;;  %621 = vst.msk [vmem:[#allocation2 + $0x80] sm:$0xff] %vm603_vm0, %v12780_v0  ;;  %s12973_s23 = scalar_lea.vmem %s18400_s2, %s18324_s21  ;;  %vm3911_vm13 = vcmask 130112   ;;  %s18494_s2 = sld [smem:[#allocation97_spill]] }
  0x18   : > { %623 = vst.msk [vmem:[#allocation2 + $0x90] sm:$0xff] %vm603_vm0, %v12780_v0  ;;  %624 = vst.msk [vmem:[#allocation2 + $0x98] sm:$0xff] %vm603_vm0, %v12780_v0  ;;  %v12976_v1 = vld [vmem:[%s12973_s23] sm:$0xff]  ;;  %v12979_v2 = vld [vmem:[%s12973_s23 + $0x8] sm:$0xff]  ;;  %s18676_s1 = smov 48   ;;  %s18681_s21 = smov 64  }
  0x19   : > { %626 = vst.msk [vmem:[#allocation2 + $0xa8] sm:$0xff] %vm603_vm0, %v12780_v0  ;;  %627 = vst.msk [vmem:[#allocation2 + $0xb0] sm:$0xff] %vm603_vm0, %v12780_v0  ;;  %v12982_v3 = vld [vmem:[%s12973_s23 + $0x10] sm:$0xff]  ;;  %v12991_v4 = vld [vmem:[%s12973_s23 + $0x18] sm:$0xff] }
  0x1a   : > { %629 = vst.msk [vmem:[#allocation2 + $0xc0] sm:$0xff] %vm603_vm0, %v12780_v0  ;;  %630 = vst.msk [vmem:[#allocation2 + $0xc8] sm:$0xff] %vm603_vm0, %v12780_v0  ;;  %v12994_v5 = vld [vmem:[%s12973_s23 + $0x20] sm:$0xff]  ;;  %v12997_v6 = vld [vmem:[%s12973_s23 + $0x28] sm:$0xff] }
  0x1b   : > { %632 = vst.msk [vmem:[#allocation2 + $0xd8] sm:$0xff] %vm603_vm0, %v12780_v0  ;;  %633 = vst.msk [vmem:[#allocation2 + $0xe0] sm:$0xff] %vm603_vm0, %v12780_v0  ;;  %v789_v7 = vld [vmem:[#allocation2 + $0x1] sm:$0xff]  ;;  %v13006_v9 = vld [vmem:[%s12973_s23 + $0x30] sm:$0xff] }
  0x1c   : > { %635 = vst.msk [vmem:[#allocation2 + $0xf0] sm:$0xff] %vm603_vm0, %v12780_v0  ;;  %636 = vst.msk [vmem:[#allocation2 + $0xf8] sm:$0xff] %vm603_vm0, %v12780_v0  ;;  %853 = vrot.lane.b32.xlu0 %v789_v7, %s12781_s24  ;;  %v13012_v10 = vld [vmem:[%s12973_s23 + $0x38] sm:$0xff]  ;;  %v13015_v11 = vld [vmem:[%s12973_s23 + $0x40] sm:$0xff] }
  0x1d   : > { %638 = vst.msk [vmem:[#allocation2 + $0x108] sm:$0xff] %vm603_vm0, %v12780_v0  ;;  %639 = vst.msk [vmem:[#allocation2 + $0x110] sm:$0xff] %vm603_vm0, %v12780_v0  ;;  %v13018_v12 = vld [vmem:[%s12973_s23 + $0x48] sm:$0xff]  ;;  %v13027_v13 = vld [vmem:[%s12973_s23 + $0x50] sm:$0xff] }
  0x1e   : > { %641 = vst.msk [vmem:[#allocation2 + $0x120] sm:$0xff] %vm603_vm0, %v12780_v0  ;;  %642 = vst.msk [vmem:[#allocation2 + $0x128] sm:$0xff] %vm603_vm0, %v12780_v0  ;;  %v13030_v14 = vld [vmem:[%s12973_s23 + $0x58] sm:$0xff]  ;;  %v13033_v15 = vld [vmem:[%s12973_s23 + $0x60] sm:$0xff] }
  0x1f   : > { %644 = vst.msk [vmem:[#allocation2 + $0x138] sm:$0xff] %vm603_vm0, %v12780_v0  ;;  %645 = vst.msk [vmem:[#allocation2 + $0x140] sm:$0xff] %vm603_vm0, %v12780_v0  ;;  %v13042_v16 = vld [vmem:[%s12973_s23 + $0x68] sm:$0xff]  ;;  %v13045_v17 = vld [vmem:[%s12973_s23 + $0x70] sm:$0xff] }
  0x20   : > { %647 = vst.msk [vmem:[#allocation2 + $0x150] sm:$0xff] %vm603_vm0, %v12780_v0  ;;  %648 = vst.msk [vmem:[#allocation2 + $0x158] sm:$0xff] %vm603_vm0, %v12780_v0  ;;  %v13048_v18 = vld [vmem:[%s12973_s23 + $0x78] sm:$0xff]  ;;  %v13057_v19 = vld [vmem:[%s12973_s23 + $0x80] sm:$0xff] }
  0x21   : > { %650 = vst.msk [vmem:[#allocation2 + $0x168] sm:$0xff] %vm603_vm0, %v12780_v0  ;;  %651 = vst.msk [vmem:[#allocation2 + $0x170] sm:$0xff] %vm603_vm0, %v12780_v0  ;;  %v13060_v20 = vld [vmem:[%s12973_s23 + $0x88] sm:$0xff]  ;;  %v13063_v21 = vld [vmem:[%s12973_s23 + $0x90] sm:$0xff] }
  0x22   : > { %653 = vst.msk [vmem:[#allocation2 + $0x180] sm:$0xff] %vm603_vm0, %v12780_v0  ;;  %654 = vst.msk [vmem:[#allocation2 + $0x188] sm:$0xff] %vm603_vm0, %v12780_v0  ;;  %v13073_v22 = vld [vmem:[%s12973_s23 + $0x98] sm:$0xff]  ;;  %v13076_v23 = vld [vmem:[%s12973_s23 + $0xa0] sm:$0xff] }
  0x23   : > { %656 = vst.msk [vmem:[#allocation2 + $0x198] sm:$0xff] %vm603_vm0, %v12780_v0  ;;  %657 = vst.msk [vmem:[#allocation2 + $0x1a0] sm:$0xff] %vm603_vm0, %v12780_v0  ;;  %v13079_v24 = vld [vmem:[%s12973_s23 + $0xa8] sm:$0xff]  ;;  %v13096_v28 = vld [vmem:[%s12973_s23 + $0xb0] sm:$0xff] }
  0x24   : > { %607 = vst.msk [vmem:[#allocation2 + $0x10] sm:$0x3] %vm606_vm1, %v12780_v0  ;;  %610 = vst.msk [vmem:[#allocation2 + $0x28] sm:$0x3] %vm606_vm1, %v12780_v0  ;;  %v13099_v29 = vld [vmem:[%s12973_s23 + $0xb8] sm:$0xff]  ;;  %v13118_v33 = vld [vmem:[%s12973_s23 + $0xc0] sm:$0xff] }
  0x25   : > { %613 = vst.msk [vmem:[#allocation2 + $0x40] sm:$0x3] %vm606_vm1, %v12780_v0  ;;  %616 = vst.msk [vmem:[#allocation2 + $0x58] sm:$0x3] %vm606_vm1, %v12780_v0  ;;  %v13121_v34 = vld [vmem:[%s12973_s23 + $0xc8] sm:$0xff]  ;;  %v13124_v35 = vld [vmem:[%s12973_s23 + $0xd0] sm:$0xff] }
  0x26   : > { %619 = vst.msk [vmem:[#allocation2 + $0x70] sm:$0x3] %vm606_vm1, %v12780_v0  ;;  %622 = vst.msk [vmem:[#allocation2 + $0x88] sm:$0x3] %vm606_vm1, %v12780_v0  ;;  %v13135_v36 = vld [vmem:[%s12973_s23 + $0xd8] sm:$0xff]  ;;  %v13138_v37 = vld [vmem:[%s12973_s23 + $0xe0] sm:$0xff] }
  0x27   : > { %625 = vst.msk [vmem:[#allocation2 + $0xa0] sm:$0x3] %vm606_vm1, %v12780_v0  ;;  %628 = vst.msk [vmem:[#allocation2 + $0xb8] sm:$0x3] %vm606_vm1, %v12780_v0  ;;  %v13141_v38 = vld [vmem:[%s12973_s23 + $0xe8] sm:$0xff]  ;;  %v725_v45 = vld [vmem:[#allocation2] sm:$0xff] }
  0x28   : > { %631 = vst.msk [vmem:[#allocation2 + $0xd0] sm:$0x3] %vm606_vm1, %v12780_v0  ;;  %634 = vst.msk [vmem:[#allocation2 + $0xe8] sm:$0x3] %vm606_vm1, %v12780_v0  ;;  %v726_v48 = vld [vmem:[#allocation2 + $0x8] sm:$0xff] }
  0x29   : > { %637 = vst.msk [vmem:[#allocation2 + $0x100] sm:$0x3] %vm606_vm1, %v12780_v0  ;;  %640 = vst.msk [vmem:[#allocation2 + $0x118] sm:$0x3] %vm606_vm1, %v12780_v0 }
  0x2a   : > { %643 = vst.msk [vmem:[#allocation2 + $0x130] sm:$0x3] %vm606_vm1, %v12780_v0  ;;  %646 = vst.msk [vmem:[#allocation2 + $0x148] sm:$0x3] %vm606_vm1, %v12780_v0 }
  0x2b   : > { %649 = vst.msk [vmem:[#allocation2 + $0x160] sm:$0x3] %vm606_vm1, %v12780_v0  ;;  %652 = vst.msk [vmem:[#allocation2 + $0x178] sm:$0x3] %vm606_vm1, %v12780_v0  ;;  %v790_v8 = vld [vmem:[#allocation2 + $0x9] sm:$0xff] }
  0x2c   : > { %655 = vst.msk [vmem:[#allocation2 + $0x190] sm:$0x3] %vm606_vm1, %v12780_v0  ;;  %658 = vst.msk [vmem:[#allocation2 + $0x1a8] sm:$0x3] %vm606_vm1, %v12780_v0  ;;  %855 = vrot.lane.b32.xlu0 %v790_v8, %s12781_s24 }
  0x2d   : > { %18401 = vst [vmem:[#allocation4_spill] sm:$0xff] %v12976_v1  ;;  %18402 = vst [vmem:[#allocation5_spill] sm:$0xff] %v12979_v2 }
  0x2e   : > { %18403 = vst [vmem:[#allocation6_spill] sm:$0xff] %v12982_v3  ;;  %693 = vst.msk [vmem:[#allocation2 + $0x19] sm:$0xff] %vm692_vm2, %v12976_v1 }
  0x2f   : > { %694 = vst.msk [vmem:[#allocation2 + $0x21] sm:$0xff] %vm692_vm2, %v12979_v2  ;;  %695 = vst.msk [vmem:[#allocation2 + $0x31] sm:$0xff] %vm692_vm2, %v12982_v3 }
  0x30   : > { %18404 = vst [vmem:[#allocation7_spill] sm:$0xff] %v12991_v4  ;;  %18405 = vst [vmem:[#allocation8_spill] sm:$0xff] %v12994_v5 }
  0x31   : > { %18406 = vst [vmem:[#allocation9_spill] sm:$0xff] %v12997_v6  ;;  %696 = vst.msk [vmem:[#allocation2 + $0x39] sm:$0xff] %vm692_vm2, %v12991_v4  ;;  %v982_v4 = vld [vmem:[#allocation2 + $0x2] sm:$0xff] }
  0x32   : > { %697 = vst.msk [vmem:[#allocation2 + $0x49] sm:$0xff] %vm692_vm2, %v12994_v5  ;;  %698 = vst.msk [vmem:[#allocation2 + $0x51] sm:$0xff] %vm692_vm2, %v12997_v6  ;;  %v13361_v6 = vld [vmem:[%s12973_s23 + $0xf8] sm:$0xff] }
  0x33   : > { %18407 = vst [vmem:[#allocation10_spill] sm:$0xff] %v13006_v9  ;;  %699 = vst.msk [vmem:[#allocation2 + $0x61] sm:$0xff] %vm692_vm2, %v13006_v9 }
  0x34   : > { %18408 = vst [vmem:[#allocation11_spill] sm:$0xff] %v13012_v10  ;;  %18409 = vst [vmem:[#allocation12_spill] sm:$0xff] %v13015_v11 }
  0x35   : > { %18410 = vst [vmem:[#allocation13_spill] sm:$0xff] %v13018_v12  ;;  %700 = vst.msk [vmem:[#allocation2 + $0x69] sm:$0xff] %vm692_vm2, %v13012_v10  ;;  %v13081_v25 = vld [vmem:[#allocation2 + $0x19] sm:$0xff]  ;;  %v13356_v10 = vld [vmem:[%s12973_s23 + $0xf0] sm:$0xff]  ;;  %s18387_s23 = smov 32  }
  0x36   : > { %701 = vst.msk [vmem:[#allocation2 + $0x79] sm:$0xff] %vm692_vm2, %v13015_v11  ;;  %702 = vst.msk [vmem:[#allocation2 + $0x81] sm:$0xff] %vm692_vm2, %v13018_v12  ;;  %v13083_v26 = vld [vmem:[#allocation2 + $0x31] sm:$0xff]  ;;  %857 = vrot.lane.b32.xlu1 %v13081_v25, %s12781_s24  ;;  %v13093_v27 = vld [vmem:[#allocation2 + $0x21] sm:$0xff] }
  0x37   : > { %18411 = vst [vmem:[#allocation14_spill] sm:$0xff] %v13027_v13  ;;  %18412 = vst [vmem:[#allocation15_spill] sm:$0xff] %v13030_v14  ;;  %861 = vrot.lane.b32.xlu0 %v13083_v26, %s12781_s24  ;;  %v13173_v46 = vld [vmem:[#allocation2 + $0x18] sm:$0xff]  ;;  %v13183_v49 = vld [vmem:[#allocation2 + $0x20] sm:$0xff] }
  0x38   : > { %18413 = vst [vmem:[#allocation16_spill] sm:$0xff] %v13033_v15  ;;  %703 = vst.msk [vmem:[#allocation2 + $0x91] sm:$0xff] %vm692_vm2, %v13027_v13  ;;  %v13111_v31 = vld [vmem:[#allocation2 + $0x39] sm:$0xff]  ;;  %v13189_v51 = vld [vmem:[#allocation2 + $0x30] sm:$0xff] }
  0x39   : > { %704 = vst.msk [vmem:[#allocation2 + $0x99] sm:$0xff] %vm692_vm2, %v13030_v14  ;;  %705 = vst.msk [vmem:[#allocation2 + $0xa9] sm:$0xff] %vm692_vm2, %v13033_v15  ;;  %v13107_v30 = vld [vmem:[#allocation2 + $0x49] sm:$0xff]  ;;  %v13143_v39 = vld [vmem:[#allocation2 + $0x51] sm:$0xff] }
  0x3a   : > { %18414 = vst [vmem:[#allocation17_spill] sm:$0xff] %v13042_v16  ;;  %18415 = vst [vmem:[#allocation18_spill] sm:$0xff] %v13045_v17  ;;  %859 = vrot.lane.b32.xlu1 %v13093_v27, %s12781_s24  ;;  %v13115_v32 = vld [vmem:[#allocation2 + $0x61] sm:$0xff]  ;;  %v13191_v52 = vld [vmem:[#allocation2 + $0x38] sm:$0xff] }
  0x3b   : > { %18416 = vst [vmem:[#allocation19_spill] sm:$0xff] %v13048_v18  ;;  %706 = vst.msk [vmem:[#allocation2 + $0xb1] sm:$0xff] %vm692_vm2, %v13042_v16  ;;  %865 = vrot.lane.b32.xlu0 %v13107_v30, %s12781_s24  ;;  %v13201_v54 = vld [vmem:[#allocation2 + $0x48] sm:$0xff]  ;;  %v13203_v55 = vld [vmem:[#allocation2 + $0x50] sm:$0xff] }
  0x3c   : > { %707 = vst.msk [vmem:[#allocation2 + $0xc1] sm:$0xff] %vm692_vm2, %v13045_v17  ;;  %708 = vst.msk [vmem:[#allocation2 + $0xc9] sm:$0xff] %vm692_vm2, %v13048_v18  ;;  %v13157_v41 = vld [vmem:[#allocation2 + $0x69] sm:$0xff]  ;;  %v13211_v57 = vld [vmem:[#allocation2 + $0x60] sm:$0xff] }
  0x3d   : > { %18417 = vst [vmem:[#allocation20_spill] sm:$0xff] %v13057_v19  ;;  %18418 = vst [vmem:[#allocation21_spill] sm:$0xff] %v13060_v20  ;;  %v13153_v40 = vld [vmem:[#allocation2 + $0x79] sm:$0xff]  ;;  %v13165_v43 = vld [vmem:[#allocation2 + $0x81] sm:$0xff] }
  0x3e   : > { %18419 = vst [vmem:[#allocation22_spill] sm:$0xff] %v13063_v21  ;;  %709 = vst.msk [vmem:[#allocation2 + $0xd9] sm:$0xff] %vm692_vm2, %v13057_v19  ;;  %863 = vrot.lane.b32.xlu1 %v13111_v31, %s12781_s24  ;;  %v13213_v58 = vld [vmem:[#allocation2 + $0x68] sm:$0xff]  ;;  %v13215_v59 = vld [vmem:[#allocation2 + $0x78] sm:$0xff] }
  0x3f   : > { %710 = vst.msk [vmem:[#allocation2 + $0xe1] sm:$0xff] %vm692_vm2, %v13060_v20  ;;  %711 = vst.msk [vmem:[#allocation2 + $0xf1] sm:$0xff] %vm692_vm2, %v13063_v21  ;;  %869 = vrot.lane.b32.xlu0 %v13115_v32, %s12781_s24  ;;  %v13161_v42 = vld [vmem:[#allocation2 + $0x91] sm:$0xff]  ;;  %v13225_v60 = vld [vmem:[#allocation2 + $0x80] sm:$0xff] }
  0x40   : > { %18420 = vst [vmem:[#allocation23_spill] sm:$0xff] %v13073_v22  ;;  %18421 = vst [vmem:[#allocation24_spill] sm:$0xff] %v13076_v23  ;;  %v13169_v44 = vld [vmem:[#allocation2 + $0xa9] sm:$0xff]  ;;  %v13175_v47 = vld [vmem:[#allocation2 + $0x99] sm:$0xff] }
  0x41   : > { %18422 = vst [vmem:[#allocation25_spill] sm:$0xff] %v13079_v24  ;;  %712 = vst.msk [vmem:[#allocation2 + $0xf9] sm:$0xff] %vm692_vm2, %v13073_v22  ;;  %v13227_v61 = vld [vmem:[#allocation2 + $0x90] sm:$0xff]  ;;  %v13229_v62 = vld [vmem:[#allocation2 + $0x98] sm:$0xff] }
  0x42   : > { %713 = vst.msk [vmem:[#allocation2 + $0x109] sm:$0xff] %vm692_vm2, %v13076_v23  ;;  %714 = vst.msk [vmem:[#allocation2 + $0x111] sm:$0xff] %vm692_vm2, %v13079_v24  ;;  %867 = vrot.lane.b32.xlu1 %v13143_v39, %s12781_s24  ;;  %v13195_v53 = vld [vmem:[#allocation2 + $0xb1] sm:$0xff]  ;;  %v13239_v0 = vld [vmem:[#allocation2 + $0xa8] sm:$0xff] }
  0x43   : > { %18423 = vst [vmem:[#allocation26_spill] sm:$0xff] %v13096_v28  ;;  %18424 = vst [vmem:[#allocation27_spill] sm:$0xff] %v13099_v29  ;;  %873 = vrot.lane.b32.xlu0 %v13153_v40, %s12781_s24  ;;  %v13185_v50 = vld [vmem:[#allocation2 + $0xc1] sm:$0xff]  ;;  %v13231_v63 = vld [vmem:[#allocation2 + $0xc9] sm:$0xff] }
  0x44   : > { %715 = vst.msk [vmem:[#allocation2 + $0x121] sm:$0xff] %vm692_vm2, %v13096_v28  ;;  %716 = vst.msk [vmem:[#allocation2 + $0x129] sm:$0xff] %vm692_vm2, %v13099_v29  ;;  %v13241_v7 = vld [vmem:[#allocation2 + $0xb0] sm:$0xff]  ;;  %v13243_v8 = vld [vmem:[#allocation2 + $0xc0] sm:$0xff] }
  0x45   : > { %18425 = vst [vmem:[#allocation28_spill] sm:$0xff] %v13118_v33  ;;  %18426 = vst [vmem:[#allocation29_spill] sm:$0xff] %v13121_v34  ;;  %v13205_v56 = vld [vmem:[#allocation2 + $0xd9] sm:$0xff] }
  0x46   : > { %18427 = vst [vmem:[#allocation30_spill] sm:$0xff] %v13124_v35  ;;  %717 = vst.msk [vmem:[#allocation2 + $0x139] sm:$0xff] %vm692_vm2, %v13118_v33  ;;  %871 = vrot.lane.b32.xlu1 %v13157_v41, %s12781_s24  ;;  %v13291_v23 = vld [vmem:[#allocation2 + $0xe1] sm:$0xff]  ;;  %v13384_v2 = vld [vmem:[#allocation2 + $0x32] sm:$0xff] }
  0x47   : > { %718 = vst.msk [vmem:[#allocation2 + $0x141] sm:$0xff] %vm692_vm2, %v13121_v34  ;;  %719 = vst.msk [vmem:[#allocation2 + $0x151] sm:$0xff] %vm692_vm2, %v13124_v35  ;;  %877 = vrot.lane.b32.xlu0 %v13161_v42, %s12781_s24  ;;  %v13281_v34 = vld [vmem:[#allocation2 + $0xf1] sm:$0xff] }
  0x48   : > { %18428 = vst [vmem:[#allocation31_spill] sm:$0xff] %v13135_v36  ;;  %18429 = vst [vmem:[#allocation32_spill] sm:$0xff] %v13138_v37  ;;  %v13267_v35 = vld [vmem:[#allocation2 + $0xf8] sm:$0xff] }
  0x49   : > { %18430 = vst [vmem:[#allocation33_spill] sm:$0xff] %v13141_v38  ;;  %720 = vst.msk [vmem:[#allocation2 + $0x159] sm:$0xff] %vm692_vm2, %v13135_v36  ;;  %v13269_v36 = vld [vmem:[#allocation2 + $0x108] sm:$0xff]  ;;  %v13279_v33 = vld [vmem:[#allocation2 + $0x110] sm:$0xff] }
  0x4a   : > { %721 = vst.msk [vmem:[#allocation2 + $0x169] sm:$0xff] %vm692_vm2, %v13138_v37  ;;  %722 = vst.msk [vmem:[#allocation2 + $0x171] sm:$0xff] %vm692_vm2, %v13141_v38  ;;  %875 = vrot.lane.b32.xlu1 %v13165_v43, %s12781_s24  ;;  %v13257_v37 = vld [vmem:[#allocation2 + $0xe0] sm:$0xff]  ;;  %v13265_v38 = vld [vmem:[#allocation2 + $0xf0] sm:$0xff] }
  0x4b   : > { %757 = vst.msk [vmem:[#allocation3] sm:$0xff] %vm692_vm2, %v725_v45  ;;  %759 = vst.msk [vmem:[#allocation3 + $0x10] sm:$0xff] %vm692_vm2, %v13173_v46  ;;  %881 = vrot.lane.b32.xlu0 %v13169_v44, %s12781_s24  ;;  %v13253_v45 = vld [vmem:[#allocation2 + $0xc8] sm:$0xff]  ;;  %v13287_v28 = vld [vmem:[#allocation2 + $0x120] sm:$0xff] }
  0x4c   : > { %758 = vst.msk [vmem:[#allocation3 + $0x8] sm:$0xff] %vm692_vm2, %v726_v48  ;;  %760 = vst.msk [vmem:[#allocation3 + $0x18] sm:$0xff] %vm692_vm2, %v13183_v49  ;;  %v13255_v48 = vld [vmem:[#allocation2 + $0xd8] sm:$0xff]  ;;  %v13289_v29 = vld [vmem:[#allocation2 + $0x128] sm:$0xff] }
  0x4d   : > { %761 = vst.msk [vmem:[#allocation3 + $0x20] sm:$0xff] %vm692_vm2, %v13189_v51  ;;  %762 = vst.msk [vmem:[#allocation3 + $0x28] sm:$0xff] %vm692_vm2, %v13191_v52  ;;  %v13299_v24 = vld [vmem:[#allocation2 + $0x109] sm:$0xff]  ;;  %v13303_v21 = vld [vmem:[#allocation2 + $0x138] sm:$0xff] }
  0x4e   : > { %879 = vrot.lane.b32.xlu1 %v13175_v47, %s12781_s24  ;;  %763 = vst.msk [vmem:[#allocation3 + $0x30] sm:$0xff] %vm692_vm2, %v13201_v54  ;;  %764 = vst.msk [vmem:[#allocation3 + $0x38] sm:$0xff] %vm692_vm2, %v13203_v55  ;;  %v13305_v22 = vld [vmem:[#allocation2 + $0x140] sm:$0xff]  ;;  %v13319_v17 = vld [vmem:[#allocation2 + $0x150] sm:$0xff] }
  0x4f   : > { %885 = vrot.lane.b32.xlu0 %v13185_v50, %s12781_s24  ;;  %765 = vst.msk [vmem:[#allocation3 + $0x40] sm:$0xff] %vm692_vm2, %v13211_v57  ;;  %766 = vst.msk [vmem:[#allocation3 + $0x48] sm:$0xff] %vm692_vm2, %v13213_v58  ;;  %v13307_v19 = vld [vmem:[#allocation2 + $0xf9] sm:$0xff]  ;;  %v13315_v20 = vld [vmem:[#allocation2 + $0x121] sm:$0xff] }
  0x50   : > { %767 = vst.msk [vmem:[#allocation3 + $0x50] sm:$0xff] %vm692_vm2, %v13215_v59  ;;  %768 = vst.msk [vmem:[#allocation3 + $0x58] sm:$0xff] %vm692_vm2, %v13225_v60  ;;  %v13321_v18 = vld [vmem:[#allocation2 + $0x158] sm:$0xff]  ;;  %v13339_v11 = vld [vmem:[#allocation2 + $0x129] sm:$0xff] }
  0x51   : > { %769 = vst.msk [vmem:[#allocation3 + $0x60] sm:$0xff] %vm692_vm2, %v13227_v61  ;;  %770 = vst.msk [vmem:[#allocation3 + $0x68] sm:$0xff] %vm692_vm2, %v13229_v62  ;;  %v13323_v15 = vld [vmem:[#allocation2 + $0x111] sm:$0xff]  ;;  %v13331_v16 = vld [vmem:[#allocation2 + $0x139] sm:$0xff] }
  0x52   : > { %883 = vrot.lane.b32.xlu1 %v13195_v53, %s12781_s24  ;;  %771 = vst.msk [vmem:[#allocation3 + $0x70] sm:$0xff] %vm692_vm2, %v13239_v0  ;;  %772 = vst.msk [vmem:[#allocation3 + $0x78] sm:$0xff] %vm692_vm2, %v13241_v7  ;;  %v13335_v13 = vld [vmem:[#allocation2 + $0x168] sm:$0xff]  ;;  %v13337_v14 = vld [vmem:[#allocation2 + $0x170] sm:$0xff] }
  0x53   : > { %773 = vst.msk [vmem:[#allocation3 + $0x80] sm:$0xff] %vm692_vm2, %v13243_v8  ;;  %774 = vst.msk [vmem:[#allocation3 + $0x88] sm:$0xff] %vm692_vm2, %v13253_v45  ;;  %889 = vrot.lane.b32.xlu0 %v13205_v56, %s12781_s24  ;;  %v13347_v12 = vld [vmem:[#allocation2 + $0x151] sm:$0xff]  ;;  %v13351_v9 = vld [vmem:[#allocation2 + $0x141] sm:$0xff] }
  0x54   : > { %775 = vst.msk [vmem:[#allocation3 + $0x90] sm:$0xff] %vm692_vm2, %v13255_v48  ;;  %776 = vst.msk [vmem:[#allocation3 + $0x98] sm:$0xff] %vm692_vm2, %v13257_v37  ;;  %v13358_v5 = vld [vmem:[#allocation2 + $0x169] sm:$0xff]  ;;  %v13369_v3 = vld [vmem:[#allocation2 + $0x159] sm:$0xff] }
  0x55   : > { %777 = vst.msk [vmem:[#allocation3 + $0xa0] sm:$0xff] %vm692_vm2, %v13265_v38  ;;  %778 = vst.msk [vmem:[#allocation3 + $0xa8] sm:$0xff] %vm692_vm2, %v13267_v35  ;;  %v13375_v1 = vld [vmem:[#allocation2 + $0x171] sm:$0xff] }
  0x56   : > { %779 = vst.msk [vmem:[#allocation3 + $0xb0] sm:$0xff] %vm692_vm2, %v13269_v36  ;;  %780 = vst.msk [vmem:[#allocation3 + $0xb8] sm:$0xff] %vm692_vm2, %v13279_v33  ;;  %887 = vrot.lane.b32.xlu1 %v13231_v63, %s12781_s24 }
  0x57   : > { %781 = vst.msk [vmem:[#allocation3 + $0xc0] sm:$0xff] %vm692_vm2, %v13287_v28  ;;  %782 = vst.msk [vmem:[#allocation3 + $0xc8] sm:$0xff] %vm692_vm2, %v13289_v29  ;;  %893 = vrot.lane.b32.xlu0 %v13281_v34, %s12781_s24 }
  0x58   : > { %783 = vst.msk [vmem:[#allocation3 + $0xd0] sm:$0xff] %vm692_vm2, %v13303_v21  ;;  %784 = vst.msk [vmem:[#allocation3 + $0xd8] sm:$0xff] %vm692_vm2, %v13305_v22 }
  0x59   : > { %785 = vst.msk [vmem:[#allocation3 + $0xe0] sm:$0xff] %vm692_vm2, %v13319_v17  ;;  %786 = vst.msk [vmem:[#allocation3 + $0xe8] sm:$0xff] %vm692_vm2, %v13321_v18 }
  0x5a   : > { %891 = vrot.lane.b32.xlu1 %v13291_v23, %s12781_s24  ;;  %787 = vst.msk [vmem:[#allocation3 + $0xf0] sm:$0xff] %vm692_vm2, %v13335_v13  ;;  %788 = vst.msk [vmem:[#allocation3 + $0xf8] sm:$0xff] %vm692_vm2, %v13337_v14 }
  0x5b   : > { %897 = vrot.lane.b32.xlu0 %v13299_v24, %s12781_s24  ;;  %18431 = vst [vmem:[#allocation34_spill] sm:$0xff] %v13351_v9  ;;  %18432 = vst [vmem:[#allocation35_spill] sm:$0xff] %v13356_v10 }
  0x5c   : > { %18433 = vst [vmem:[#allocation36_spill] sm:$0xff] %v13358_v5  ;;  %18434 = vst [vmem:[#allocation37_spill] sm:$0xff] %v13361_v6 }
  0x5d   : > { %723 = vst.msk [vmem:[#allocation2 + $0x181] sm:$0xff] %vm692_vm2, %v13356_v10  ;;  %724 = vst.msk [vmem:[#allocation2 + $0x189] sm:$0xff] %vm692_vm2, %v13361_v6  ;;  %v13378_v10 = vld [vmem:[#allocation2 + $0x1a] sm:$0xff]  ;;  %v983_v6 = vld [vmem:[#allocation2 + $0xa] sm:$0xff] }
  0x5e   : > { %895 = vrot.lane.b32.xlu1 %v13307_v19, %s12781_s24  ;;  %18435 = vst [vmem:[#allocation38_spill] sm:$0xff] %v13369_v3  ;;  %18436 = vst [vmem:[#allocation39_spill] sm:$0xff] %v13375_v1 }
  0x5f   : > { %901 = vrot.lane.b32.xlu0 %v13315_v20, %s12781_s24  ;;  %18437 = vst [vmem:[#allocation40_spill] sm:$0xff] %v13378_v10  ;;  %18438 = vst [vmem:[#allocation41_spill] sm:$0xff] %v13384_v2 }
  0x62   : > { %899 = vrot.lane.b32.xlu1 %v13323_v15, %s12781_s24 }
  0x63   : > { %905 = vrot.lane.b32.xlu0 %v13331_v16, %s12781_s24 }
  0x66   : > { %903 = vrot.lane.b32.xlu1 %v13339_v11, %s12781_s24 }
  0x67   : > { %909 = vrot.lane.b32.xlu0 %v13347_v12, %s12781_s24 }
  0x6a   : > { %907 = vrot.lane.b32.xlu1 %v13351_v9, %s12781_s24 }
  0x6b   : > { %913 = vrot.lane.b32.xlu0 %v13358_v5, %s12781_s24  ;;  %v13387_v5 = vld [vmem:[#allocation2 + $0x22] sm:$0xff] }
  0x6c   : > { %18439 = vst [vmem:[#allocation42_spill] sm:$0xff] %v13387_v5 }
  0x6e   : > { %911 = vrot.lane.b32.xlu1 %v13369_v3, %s12781_s24  ;;  %v13391_v3 = vld [vmem:[#allocation2 + $0x4a] sm:$0xff] }
  0x6f   : > { %1046 = vrot.lane.b32.xlu0 %v982_v4, %s12782_s25  ;;  %18440 = vst [vmem:[#allocation43_spill] sm:$0xff] %v13391_v3  ;;  %v13395_v4 = vld [vmem:[#allocation2 + $0x3a] sm:$0xff] }
  0x70   : > { %18441 = vst [vmem:[#allocation44_spill] sm:$0xff] %v13395_v4 }
  0x72   : > { %915 = vrot.lane.b32.xlu1 %v13375_v1, %s12781_s24  ;;  %v13475_v1 = vld [vmem:[#allocation2 + $0x12a] sm:$0xff]  ;;  %s18495_s24 = sld [smem:[#allocation98_spill]] }
  0x73   : > { %1050 = vrot.lane.b32.xlu0 %v13378_v10, %s12782_s25  ;;  %v13399_v10 = vld [vmem:[#allocation2 + $0x62] sm:$0xff]  ;;  %18461 = vst [vmem:[#allocation64_spill] sm:$0xff] %v13475_v1 }
  0x74   : > { %18442 = vst [vmem:[#allocation45_spill] sm:$0xff] %v13399_v10 }
  0x76   : > { %1048 = vrot.lane.b32.xlu1 %v983_v6, %s12782_s25  ;;  %v13403_v6 = vld [vmem:[#allocation2 + $0x52] sm:$0xff] }
  0x77   : > { %1054 = vrot.lane.b32.xlu0 %v13384_v2, %s12782_s25  ;;  %18443 = vst [vmem:[#allocation46_spill] sm:$0xff] %v13403_v6  ;;  %v13407_v2 = vld [vmem:[#allocation2 + $0x7a] sm:$0xff] }
  0x78   : > { %18444 = vst [vmem:[#allocation47_spill] sm:$0xff] %v13407_v2 }
  0x7a   : > { %1052 = vrot.lane.b32.xlu1 %v13387_v5, %s12782_s25  ;;  %v13411_v5 = vld [vmem:[#allocation2 + $0x6a] sm:$0xff] }
  0x7b   : > { %1058 = vrot.lane.b32.xlu0 %v13391_v3, %s12782_s25  ;;  %18445 = vst [vmem:[#allocation48_spill] sm:$0xff] %v13411_v5  ;;  %v13415_v3 = vld [vmem:[#allocation2 + $0x92] sm:$0xff] }
  0x7c   : > { %18446 = vst [vmem:[#allocation49_spill] sm:$0xff] %v13415_v3 }
  0x7e   : > { %1056 = vrot.lane.b32.xlu1 %v13395_v4, %s12782_s25  ;;  %v13419_v4 = vld [vmem:[#allocation2 + $0x82] sm:$0xff] }
  0x7f   : > { %1062 = vrot.lane.b32.xlu0 %v13399_v10, %s12782_s25  ;;  %18447 = vst [vmem:[#allocation50_spill] sm:$0xff] %v13419_v4  ;;  %v13423_v10 = vld [vmem:[#allocation2 + $0xaa] sm:$0xff] }
  0x80   : > { %18448 = vst [vmem:[#allocation51_spill] sm:$0xff] %v13423_v10 }
  0x82   : > { %1060 = vrot.lane.b32.xlu1 %v13403_v6, %s12782_s25  ;;  %v13427_v6 = vld [vmem:[#allocation2 + $0x9a] sm:$0xff] }
  0x83   : > { %1066 = vrot.lane.b32.xlu0 %v13407_v2, %s12782_s25  ;;  %18449 = vst [vmem:[#allocation52_spill] sm:$0xff] %v13427_v6  ;;  %v13431_v2 = vld [vmem:[#allocation2 + $0xc2] sm:$0xff] }
  0x84   : > { %18450 = vst [vmem:[#allocation53_spill] sm:$0xff] %v13431_v2 }
  0x86   : > { %1064 = vrot.lane.b32.xlu1 %v13411_v5, %s12782_s25  ;;  %v13435_v5 = vld [vmem:[#allocation2 + $0xb2] sm:$0xff] }
  0x87   : > { %1070 = vrot.lane.b32.xlu0 %v13415_v3, %s12782_s25  ;;  %18451 = vst [vmem:[#allocation54_spill] sm:$0xff] %v13435_v5  ;;  %v13439_v3 = vld [vmem:[#allocation2 + $0xda] sm:$0xff] }
  0x88   : > { %18452 = vst [vmem:[#allocation55_spill] sm:$0xff] %v13439_v3 }
  0x8a   : > { %1068 = vrot.lane.b32.xlu1 %v13419_v4, %s12782_s25  ;;  %v13443_v4 = vld [vmem:[#allocation2 + $0xca] sm:$0xff] }
  0x8b   : > { %1074 = vrot.lane.b32.xlu0 %v13423_v10, %s12782_s25  ;;  %18453 = vst [vmem:[#allocation56_spill] sm:$0xff] %v13443_v4  ;;  %v13447_v10 = vld [vmem:[#allocation2 + $0xf2] sm:$0xff] }
  0x8c   : > { %18454 = vst [vmem:[#allocation57_spill] sm:$0xff] %v13447_v10 }
  0x8e   : > { %1072 = vrot.lane.b32.xlu1 %v13427_v6, %s12782_s25  ;;  %v13451_v6 = vld [vmem:[#allocation2 + $0xe2] sm:$0xff] }
  0x8f   : > { %1078 = vrot.lane.b32.xlu0 %v13431_v2, %s12782_s25  ;;  %18455 = vst [vmem:[#allocation58_spill] sm:$0xff] %v13451_v6  ;;  %v13455_v2 = vld [vmem:[#allocation2 + $0x10a] sm:$0xff] }
  0x90   : > { %18456 = vst [vmem:[#allocation59_spill] sm:$0xff] %v13455_v2 }
  0x92   : > { %1076 = vrot.lane.b32.xlu1 %v13435_v5, %s12782_s25  ;;  %v13459_v5 = vld [vmem:[#allocation2 + $0xfa] sm:$0xff] }
  0x93   : > { %1082 = vrot.lane.b32.xlu0 %v13439_v3, %s12782_s25  ;;  %18457 = vst [vmem:[#allocation60_spill] sm:$0xff] %v13459_v5  ;;  %v13463_v3 = vld [vmem:[#allocation2 + $0x122] sm:$0xff] }
  0x94   : > { %18458 = vst [vmem:[#allocation61_spill] sm:$0xff] %v13463_v3 }
  0x96   : > { %1080 = vrot.lane.b32.xlu1 %v13443_v4, %s12782_s25  ;;  %v13467_v4 = vld [vmem:[#allocation2 + $0x112] sm:$0xff] }
  0x97   : > { %1086 = vrot.lane.b32.xlu0 %v13447_v10, %s12782_s25  ;;  %18459 = vst [vmem:[#allocation62_spill] sm:$0xff] %v13467_v4  ;;  %v13471_v10 = vld [vmem:[#allocation2 + $0x13a] sm:$0xff] }
  0x98   : > { %18460 = vst [vmem:[#allocation63_spill] sm:$0xff] %v13471_v10 }
  0x9a   : > { %1084 = vrot.lane.b32.xlu1 %v13451_v6, %s12782_s25  ;;  %v854_v6 = vpop.permute.xlu0 %853 }
  0x9b   : > { %1090 = vrot.lane.b32.xlu0 %v13455_v2, %s12782_s25  ;;  %950 = vst.msk [vmem:[#allocation3] sm:$0xff] %vm949_vm3, %v854_v6  ;;  %v13484_v2 = vld [vmem:[#allocation2 + $0x142] sm:$0xff]  ;;  %v13490_v6 = vld [vmem:[#allocation2 + $0x16a] sm:$0xff] }
  0x9c   : > { %18462 = vst [vmem:[#allocation65_spill] sm:$0xff] %v13484_v2 }
  0x9e   : > { %1088 = vrot.lane.b32.xlu1 %v13459_v5, %s12782_s25  ;;  %v13480_v5 = vld [vmem:[#allocation2 + $0x152] sm:$0xff] }
  0x9f   : > { %1094 = vrot.lane.b32.xlu0 %v13463_v3, %s12782_s25  ;;  %v856_v3 = vpop.permute.xlu0 %855 }
  0xa0   : > { %951 = vst.msk [vmem:[#allocation3 + $0x8] sm:$0xff] %vm949_vm3, %v856_v3 }
  0xa2   : > { %1092 = vrot.lane.b32.xlu1 %v13467_v4, %s12782_s25  ;;  %v13494_v4 = vld [vmem:[#allocation2 + $0x15a] sm:$0xff] }
  0xa3   : > { %1098 = vrot.lane.b32.xlu0 %v13471_v10, %s12782_s25 }
  0xa6   : > { %1096 = vrot.lane.b32.xlu1 %v13475_v1, %s12782_s25 }
  0xa7   : > { %1102 = vrot.lane.b32.xlu0 %v13480_v5, %s12782_s25 }
  0xa8   : > { %v858_v9 = vpop.permute.xlu1 %857 }
  0xa9   : > { %952 = vst.msk [vmem:[#allocation3 + $0x10] sm:$0xff] %vm949_vm3, %v858_v9  ;;  %v862_v10 = vpop.permute.xlu0 %861  ;;  %v13502_v9 = vld [vmem:[#allocation2 + $0x172] sm:$0xff] }
  0xaa   : > { %1100 = vrot.lane.b32.xlu1 %v13484_v2, %s12782_s25  ;;  %954 = vst.msk [vmem:[#allocation3 + $0x20] sm:$0xff] %vm949_vm3, %v862_v10 }
  0xab   : > { %1106 = vrot.lane.b32.xlu0 %v13490_v6, %s12782_s25 }
  0xac   : > { %v860_v1 = vpop.permute.xlu1 %859 }
  0xad   : > { %953 = vst.msk [vmem:[#allocation3 + $0x18] sm:$0xff] %vm949_vm3, %v860_v1  ;;  %v866_v3 = vpop.permute.xlu0 %865 }
  0xae   : > { %1104 = vrot.lane.b32.xlu1 %v13494_v4, %s12782_s25  ;;  %956 = vst.msk [vmem:[#allocation3 + $0x30] sm:$0xff] %vm949_vm3, %v866_v3 }
  0xaf   : > { %1239 = vrot.lane.b32.xlu0 %v13173_v46, %s12783_s3 }
  0xb0   : > { %v864_v2 = vpop.permute.xlu1 %863 }
  0xb1   : > { %955 = vst.msk [vmem:[#allocation3 + $0x28] sm:$0xff] %vm949_vm3, %v864_v2  ;;  %v870_v10 = vpop.permute.xlu0 %869 }
  0xb2   : > { %1108 = vrot.lane.b32.xlu1 %v13502_v9, %s12782_s25  ;;  %958 = vst.msk [vmem:[#allocation3 + $0x40] sm:$0xff] %vm949_vm3, %v870_v10 }
  0xb3   : > { %1243 = vrot.lane.b32.xlu0 %v13189_v51, %s12783_s3 }
  0xb4   : > { %v868_v1 = vpop.permute.xlu1 %867 }
  0xb5   : > { %957 = vst.msk [vmem:[#allocation3 + $0x38] sm:$0xff] %vm949_vm3, %v868_v1  ;;  %v874_v3 = vpop.permute.xlu0 %873 }
  0xb6   : > { %1241 = vrot.lane.b32.xlu1 %v13183_v49, %s12783_s3  ;;  %960 = vst.msk [vmem:[#allocation3 + $0x50] sm:$0xff] %vm949_vm3, %v874_v3 }
  0xb7   : > { %1247 = vrot.lane.b32.xlu0 %v13201_v54, %s12783_s3 }
  0xb8   : > { %v872_v46 = vpop.permute.xlu1 %871 }
  0xb9   : > { %959 = vst.msk [vmem:[#allocation3 + $0x48] sm:$0xff] %vm949_vm3, %v872_v46  ;;  %v878_v2 = vpop.permute.xlu0 %877 }
  0xba   : > { %1245 = vrot.lane.b32.xlu1 %v13191_v52, %s12783_s3  ;;  %962 = vst.msk [vmem:[#allocation3 + $0x60] sm:$0xff] %vm949_vm3, %v878_v2 }
  0xbb   : > { %1251 = vrot.lane.b32.xlu0 %v13211_v57, %s12783_s3 }
  0xbc   : > { %v876_v10 = vpop.permute.xlu1 %875 }
  0xbd   : > { %961 = vst.msk [vmem:[#allocation3 + $0x58] sm:$0xff] %vm949_vm3, %v876_v10  ;;  %v882_v49 = vpop.permute.xlu0 %881 }
  0xbe   : > { %1249 = vrot.lane.b32.xlu1 %v13203_v55, %s12783_s3  ;;  %964 = vst.msk [vmem:[#allocation3 + $0x70] sm:$0xff] %vm949_vm3, %v882_v49 }
  0xbf   : > { %1255 = vrot.lane.b32.xlu0 %v13215_v59, %s12783_s3 }
  0xc0   : > { %v880_v1 = vpop.permute.xlu1 %879 }
  0xc1   : > { %963 = vst.msk [vmem:[#allocation3 + $0x68] sm:$0xff] %vm949_vm3, %v880_v1  ;;  %v886_v3 = vpop.permute.xlu0 %885 }
  0xc2   : > { %1253 = vrot.lane.b32.xlu1 %v13213_v58, %s12783_s3  ;;  %966 = vst.msk [vmem:[#allocation3 + $0x80] sm:$0xff] %vm949_vm3, %v886_v3 }
  0xc3   : > { %1259 = vrot.lane.b32.xlu0 %v13227_v61, %s12783_s3 }
  0xc4   : > { %v884_v46 = vpop.permute.xlu1 %883 }
  0xc5   : > { %965 = vst.msk [vmem:[#allocation3 + $0x78] sm:$0xff] %vm949_vm3, %v884_v46  ;;  %v890_v2 = vpop.permute.xlu0 %889 }
  0xc6   : > { %1257 = vrot.lane.b32.xlu1 %v13225_v60, %s12783_s3  ;;  %968 = vst.msk [vmem:[#allocation3 + $0x90] sm:$0xff] %vm949_vm3, %v890_v2 }
  0xc7   : > { %1263 = vrot.lane.b32.xlu0 %v13239_v0, %s12783_s3 }
  0xc8   : > { %v888_v10 = vpop.permute.xlu1 %887 }
  0xc9   : > { %967 = vst.msk [vmem:[#allocation3 + $0x88] sm:$0xff] %vm949_vm3, %v888_v10  ;;  %v894_v49 = vpop.permute.xlu0 %893 }
  0xca   : > { %1261 = vrot.lane.b32.xlu1 %v13229_v62, %s12783_s3  ;;  %970 = vst.msk [vmem:[#allocation3 + $0xa0] sm:$0xff] %vm949_vm3, %v894_v49 }
  0xcb   : > { %1267 = vrot.lane.b32.xlu0 %v13243_v8, %s12783_s3 }
  0xcc   : > { %v892_v1 = vpop.permute.xlu1 %891 }
  0xcd   : > { %969 = vst.msk [vmem:[#allocation3 + $0x98] sm:$0xff] %vm949_vm3, %v892_v1  ;;  %v898_v3 = vpop.permute.xlu0 %897 }
  0xce   : > { %1265 = vrot.lane.b32.xlu1 %v13241_v7, %s12783_s3  ;;  %972 = vst.msk [vmem:[#allocation3 + $0xb0] sm:$0xff] %vm949_vm3, %v898_v3 }
  0xcf   : > { %1271 = vrot.lane.b32.xlu0 %v13255_v48, %s12783_s3 }
  0xd0   : > { %v896_v46 = vpop.permute.xlu1 %895 }
  0xd1   : > { %971 = vst.msk [vmem:[#allocation3 + $0xa8] sm:$0xff] %vm949_vm3, %v896_v46  ;;  %v902_v2 = vpop.permute.xlu0 %901 }
  0xd2   : > { %1269 = vrot.lane.b32.xlu1 %v13253_v45, %s12783_s3  ;;  %974 = vst.msk [vmem:[#allocation3 + $0xc0] sm:$0xff] %vm949_vm3, %v902_v2 }
  0xd3   : > { %1275 = vrot.lane.b32.xlu0 %v13265_v38, %s12783_s3 }
  0xd4   : > { %v900_v10 = vpop.permute.xlu1 %899 }
  0xd5   : > { %973 = vst.msk [vmem:[#allocation3 + $0xb8] sm:$0xff] %vm949_vm3, %v900_v10  ;;  %v906_v49 = vpop.permute.xlu0 %905 }
  0xd6   : > { %1273 = vrot.lane.b32.xlu1 %v13257_v37, %s12783_s3  ;;  %976 = vst.msk [vmem:[#allocation3 + $0xd0] sm:$0xff] %vm949_vm3, %v906_v49 }
  0xd7   : > { %1279 = vrot.lane.b32.xlu0 %v13269_v36, %s12783_s3 }
  0xd8   : > { %v904_v1 = vpop.permute.xlu1 %903 }
  0xd9   : > { %975 = vst.msk [vmem:[#allocation3 + $0xc8] sm:$0xff] %vm949_vm3, %v904_v1  ;;  %v910_v3 = vpop.permute.xlu0 %909 }
  0xda   : > { %1277 = vrot.lane.b32.xlu1 %v13267_v35, %s12783_s3  ;;  %978 = vst.msk [vmem:[#allocation3 + $0xe0] sm:$0xff] %vm949_vm3, %v910_v3 }
  0xdb   : > { %1283 = vrot.lane.b32.xlu0 %v13287_v28, %s12783_s3 }
  0xdc   : > { %v908_v46 = vpop.permute.xlu1 %907 }
  0xdd   : > { %977 = vst.msk [vmem:[#allocation3 + $0xd8] sm:$0xff] %vm949_vm3, %v908_v46  ;;  %v914_v2 = vpop.permute.xlu0 %913 }
  0xde   : > { %1281 = vrot.lane.b32.xlu1 %v13279_v33, %s12783_s3  ;;  %980 = vst.msk [vmem:[#allocation3 + $0xf0] sm:$0xff] %vm949_vm3, %v914_v2  ;;  %v13592_v2 = vld [vmem:[#allocation2 + $0x180] sm:$0xff] }
  0xdf   : > { %1287 = vrot.lane.b32.xlu0 %v13303_v21, %s12783_s3 }
  0xe0   : > { %v912_v10 = vpop.permute.xlu1 %911 }
  0xe1   : > { %979 = vst.msk [vmem:[#allocation3 + $0xe8] sm:$0xff] %vm949_vm3, %v912_v10  ;;  %v1047_v49 = vpop.permute.xlu0 %1046 }
  0xe2   : > { %1285 = vrot.lane.b32.xlu1 %v13289_v29, %s12783_s3  ;;  %1143 = vst.msk [vmem:[#allocation3] sm:$0xff] %vm1142_vm4, %v1047_v49 }
  0xe3   : > { %1291 = vrot.lane.b32.xlu0 %v13319_v17, %s12783_s3 }
  0xe4   : > { %v916_v1 = vpop.permute.xlu1 %915 }
  0xe5   : > { %981 = vst.msk [vmem:[#allocation3 + $0xf8] sm:$0xff] %vm949_vm3, %v916_v1  ;;  %v1051_v3 = vpop.permute.xlu0 %1050 }
  0xe6   : > { %1289 = vrot.lane.b32.xlu1 %v13305_v22, %s12783_s3  ;;  %1145 = vst.msk [vmem:[#allocation3 + $0x10] sm:$0xff] %vm1142_vm4, %v1051_v3  ;;  %v13602_v3 = vld [vmem:[#allocation2 + $0x188] sm:$0xff] }
  0xe7   : > { %1295 = vrot.lane.b32.xlu0 %v13335_v13, %s12783_s3 }
  0xe8   : > { %v1049_v46 = vpop.permute.xlu1 %1048 }
  0xe9   : > { %1144 = vst.msk [vmem:[#allocation3 + $0x8] sm:$0xff] %vm1142_vm4, %v1049_v46  ;;  %v1055_v10 = vpop.permute.xlu0 %1054 }
  0xea   : > { %1293 = vrot.lane.b32.xlu1 %v13321_v18, %s12783_s3  ;;  %1147 = vst.msk [vmem:[#allocation3 + $0x20] sm:$0xff] %vm1142_vm4, %v1055_v10 }
  0xeb   : > { %1299 = vrot.lane.b32.xlu0 %v13592_v2, %s12783_s3 }
  0xec   : > { %v1053_v49 = vpop.permute.xlu1 %1052 }
  0xed   : > { %1146 = vst.msk [vmem:[#allocation3 + $0x18] sm:$0xff] %vm1142_vm4, %v1053_v49  ;;  %v1059_v1 = vpop.permute.xlu0 %1058 }
  0xee   : > { %1297 = vrot.lane.b32.xlu1 %v13337_v14, %s12783_s3  ;;  %1149 = vst.msk [vmem:[#allocation3 + $0x30] sm:$0xff] %vm1142_vm4, %v1059_v1 }
  0xef   : > { %1432 = vrot.lane.b32.xlu0 %v13081_v25, %s18391_s26 }
  0xf0   : > { %v1057_v46 = vpop.permute.xlu1 %1056 }
  0xf1   : > { %1148 = vst.msk [vmem:[#allocation3 + $0x28] sm:$0xff] %vm1142_vm4, %v1057_v46  ;;  %v1063_v10 = vpop.permute.xlu0 %1062 }
  0xf2   : > { %1301 = vrot.lane.b32.xlu1 %v13602_v3, %s12783_s3  ;;  %1151 = vst.msk [vmem:[#allocation3 + $0x40] sm:$0xff] %vm1142_vm4, %v1063_v10  ;;  %s18385_s3 = smov 40  }
  0xf3   : > { %1436 = vrot.lane.b32.xlu0 %v13083_v26, %s18391_s26 }
  0xf4   : > { %v1061_v49 = vpop.permute.xlu1 %1060 }
  0xf5   : > { %1150 = vst.msk [vmem:[#allocation3 + $0x38] sm:$0xff] %vm1142_vm4, %v1061_v49  ;;  %v1067_v1 = vpop.permute.xlu0 %1066  ;;  %v18464_v49 = vld [vmem:[#allocation36_spill] sm:$0xff] }
  0xf6   : > { %1434 = vrot.lane.b32.xlu1 %v13093_v27, %s18391_s26  ;;  %1153 = vst.msk [vmem:[#allocation3 + $0x50] sm:$0xff] %vm1142_vm4, %v1067_v1  ;;  %v18465_v1 = vld [vmem:[#allocation38_spill] sm:$0xff] }
  0xf7   : > { %1440 = vrot.lane.b32.xlu0 %v13107_v30, %s18391_s26 }
  0xf8   : > { %v1065_v25 = vpop.permute.xlu1 %1064 }
  0xf9   : > { %1152 = vst.msk [vmem:[#allocation3 + $0x48] sm:$0xff] %vm1142_vm4, %v1065_v25  ;;  %v1071_v46 = vpop.permute.xlu0 %1070 }
  0xfa   : > { %1438 = vrot.lane.b32.xlu1 %v13111_v31, %s18391_s26  ;;  %1155 = vst.msk [vmem:[#allocation3 + $0x60] sm:$0xff] %vm1142_vm4, %v1071_v46  ;;  %v18466_v46 = vld [vmem:[#allocation39_spill] sm:$0xff] }
  0xfb   : > { %1444 = vrot.lane.b32.xlu0 %v13115_v32, %s18391_s26 }
  0xfc   : > { %v1069_v26 = vpop.permute.xlu1 %1068 }
  0xfd   : > { %1154 = vst.msk [vmem:[#allocation3 + $0x58] sm:$0xff] %vm1142_vm4, %v1069_v26  ;;  %v1075_v27 = vpop.permute.xlu0 %1074 }
  0xfe   : > { %1442 = vrot.lane.b32.xlu1 %v13143_v39, %s18391_s26  ;;  %1157 = vst.msk [vmem:[#allocation3 + $0x70] sm:$0xff] %vm1142_vm4, %v1075_v27  ;;  %v13702_v27 = vld [vmem:[#allocation2 + $0x189] sm:$0xff] }
  0xff   : > { %1448 = vrot.lane.b32.xlu0 %v13153_v40, %s18391_s26 }
 0x100   : > { %v1073_v30 = vpop.permute.xlu1 %1072 }
 0x101   : > { %1156 = vst.msk [vmem:[#allocation3 + $0x68] sm:$0xff] %vm1142_vm4, %v1073_v30  ;;  %v1079_v31 = vpop.permute.xlu0 %1078 }
 0x102   : > { %1446 = vrot.lane.b32.xlu1 %v13157_v41, %s18391_s26  ;;  %1159 = vst.msk [vmem:[#allocation3 + $0x80] sm:$0xff] %vm1142_vm4, %v1079_v31  ;;  %v18467_v31 = vld [vmem:[#allocation40_spill] sm:$0xff] }
 0x103   : > { %1452 = vrot.lane.b32.xlu0 %v13161_v42, %s18391_s26 }
 0x104   : > { %v1077_v32 = vpop.permute.xlu1 %1076 }
 0x105   : > { %1158 = vst.msk [vmem:[#allocation3 + $0x78] sm:$0xff] %vm1142_vm4, %v1077_v32  ;;  %v1083_v39 = vpop.permute.xlu0 %1082 }
 0x106   : > { %1450 = vrot.lane.b32.xlu1 %v13165_v43, %s18391_s26  ;;  %1161 = vst.msk [vmem:[#allocation3 + $0x90] sm:$0xff] %vm1142_vm4, %v1083_v39 }
 0x107   : > { %1456 = vrot.lane.b32.xlu0 %v13169_v44, %s18391_s26 }
 0x108   : > { %v1081_v40 = vpop.permute.xlu1 %1080 }
 0x109   : > { %1160 = vst.msk [vmem:[#allocation3 + $0x88] sm:$0xff] %vm1142_vm4, %v1081_v40  ;;  %v1087_v41 = vpop.permute.xlu0 %1086  ;;  %v18468_v40 = vld [vmem:[#allocation41_spill] sm:$0xff] }
 0x10a   : > { %1454 = vrot.lane.b32.xlu1 %v13175_v47, %s18391_s26  ;;  %1163 = vst.msk [vmem:[#allocation3 + $0xa0] sm:$0xff] %vm1142_vm4, %v1087_v41  ;;  %v18469_v41 = vld [vmem:[#allocation42_spill] sm:$0xff] }
 0x10b   : > { %1460 = vrot.lane.b32.xlu0 %v13185_v50, %s18391_s26 }
 0x10c   : > { %v1085_v42 = vpop.permute.xlu1 %1084 }
 0x10d   : > { %1162 = vst.msk [vmem:[#allocation3 + $0x98] sm:$0xff] %vm1142_vm4, %v1085_v42  ;;  %v1091_v43 = vpop.permute.xlu0 %1090 }
 0x10e   : > { %1458 = vrot.lane.b32.xlu1 %v13195_v53, %s18391_s26  ;;  %1165 = vst.msk [vmem:[#allocation3 + $0xb0] sm:$0xff] %vm1142_vm4, %v1091_v43 }
 0x10f   : > { %1464 = vrot.lane.b32.xlu0 %v13205_v56, %s18391_s26 }
 0x110   : > { %v1089_v44 = vpop.permute.xlu1 %1088 }
 0x111   : > { %1164 = vst.msk [vmem:[#allocation3 + $0xa8] sm:$0xff] %vm1142_vm4, %v1089_v44  ;;  %v1095_v47 = vpop.permute.xlu0 %1094  ;;  %v18470_v44 = vld [vmem:[#allocation43_spill] sm:$0xff] }
 0x112   : > { %1462 = vrot.lane.b32.xlu1 %v13231_v63, %s18391_s26  ;;  %1167 = vst.msk [vmem:[#allocation3 + $0xc0] sm:$0xff] %vm1142_vm4, %v1095_v47  ;;  %v18471_v47 = vld [vmem:[#allocation44_spill] sm:$0xff] }
 0x113   : > { %1468 = vrot.lane.b32.xlu0 %v13281_v34, %s18391_s26 }
 0x114   : > { %v1093_v50 = vpop.permute.xlu1 %1092 }
 0x115   : > { %1166 = vst.msk [vmem:[#allocation3 + $0xb8] sm:$0xff] %vm1142_vm4, %v1093_v50  ;;  %v1099_v53 = vpop.permute.xlu0 %1098 }
 0x116   : > { %1466 = vrot.lane.b32.xlu1 %v13291_v23, %s18391_s26  ;;  %1169 = vst.msk [vmem:[#allocation3 + $0xd0] sm:$0xff] %vm1142_vm4, %v1099_v53 }
 0x117   : > { %1472 = vrot.lane.b32.xlu0 %v13299_v24, %s18391_s26 }
 0x118   : > { %v1097_v56 = vpop.permute.xlu1 %1096 }
 0x119   : > { %1168 = vst.msk [vmem:[#allocation3 + $0xc8] sm:$0xff] %vm1142_vm4, %v1097_v56  ;;  %v1103_v63 = vpop.permute.xlu0 %1102  ;;  %v18472_v56 = vld [vmem:[#allocation45_spill] sm:$0xff] }
 0x11a   : > { %1470 = vrot.lane.b32.xlu1 %v13307_v19, %s18391_s26  ;;  %1171 = vst.msk [vmem:[#allocation3 + $0xe0] sm:$0xff] %vm1142_vm4, %v1103_v63  ;;  %v18473_v63 = vld [vmem:[#allocation46_spill] sm:$0xff] }
 0x11b   : > { %1476 = vrot.lane.b32.xlu0 %v13315_v20, %s18391_s26 }
 0x11c   : > { %v1101_v34 = vpop.permute.xlu1 %1100 }
 0x11d   : > { %1170 = vst.msk [vmem:[#allocation3 + $0xd8] sm:$0xff] %vm1142_vm4, %v1101_v34  ;;  %v1107_v23 = vpop.permute.xlu0 %1106 }
 0x11e   : > { %1474 = vrot.lane.b32.xlu1 %v13323_v15, %s18391_s26  ;;  %1173 = vst.msk [vmem:[#allocation3 + $0xf0] sm:$0xff] %vm1142_vm4, %v1107_v23  ;;  %v18463_v15 = vld [vmem:[#allocation34_spill] sm:$0xff] }
 0x11f   : > { %1480 = vrot.lane.b32.xlu0 %v13331_v16, %s18391_s26 }
 0x120   : > { %v1105_v24 = vpop.permute.xlu1 %1104 }
 0x121   : > { %1172 = vst.msk [vmem:[#allocation3 + $0xe8] sm:$0xff] %vm1142_vm4, %v1105_v24  ;;  %v1240_v19 = vpop.permute.xlu0 %1239  ;;  %v18474_v24 = vld [vmem:[#allocation47_spill] sm:$0xff] }
 0x122   : > { %1478 = vrot.lane.b32.xlu1 %v13339_v11, %s18391_s26  ;;  %1336 = vst.msk [vmem:[#allocation3] sm:$0xff] %vm1335_vm5, %v1240_v19  ;;  %v13692_v11 = vld [vmem:[#allocation2 + $0x181] sm:$0xff]  ;;  %v18475_v19 = vld [vmem:[#allocation48_spill] sm:$0xff] }
 0x123   : > { %1484 = vrot.lane.b32.xlu0 %v13347_v12, %s18391_s26 }
 0x124   : > { %v1109_v20 = vpop.permute.xlu1 %1108 }
 0x125   : > { %1174 = vst.msk [vmem:[#allocation3 + $0xf8] sm:$0xff] %vm1142_vm4, %v1109_v20  ;;  %v1244_v10 = vpop.permute.xlu0 %1243 }
 0x126   : > { %1482 = vrot.lane.b32.xlu1 %v18463_v15, %s18391_s26  ;;  %1338 = vst.msk [vmem:[#allocation3 + $0x10] sm:$0xff] %vm1335_vm5, %v1244_v10  ;;  %v18476_v10 = vld [vmem:[#allocation49_spill] sm:$0xff] }
 0x127   : > { %1488 = vrot.lane.b32.xlu0 %v18464_v49, %s18391_s26 }
 0x128   : > { %v1242_v16 = vpop.permute.xlu1 %1241 }
 0x129   : > { %1337 = vst.msk [vmem:[#allocation3 + $0x8] sm:$0xff] %vm1335_vm5, %v1242_v16  ;;  %v1248_v12 = vpop.permute.xlu0 %1247  ;;  %v18477_v16 = vld [vmem:[#allocation50_spill] sm:$0xff] }
 0x12a   : > { %1486 = vrot.lane.b32.xlu1 %v18465_v1, %s18391_s26  ;;  %1340 = vst.msk [vmem:[#allocation3 + $0x20] sm:$0xff] %vm1335_vm5, %v1248_v12  ;;  %v18478_v12 = vld [vmem:[#allocation51_spill] sm:$0xff] }
 0x12b   : > { %1492 = vrot.lane.b32.xlu0 %v13692_v11, %s18391_s26 }
 0x12c   : > { %v1246_v25 = vpop.permute.xlu1 %1245 }
 0x12d   : > { %1339 = vst.msk [vmem:[#allocation3 + $0x18] sm:$0xff] %vm1335_vm5, %v1246_v25  ;;  %v1252_v26 = vpop.permute.xlu0 %1251  ;;  %v18479_v25 = vld [vmem:[#allocation52_spill] sm:$0xff] }
 0x12e   : > { %1490 = vrot.lane.b32.xlu1 %v18466_v46, %s18391_s26  ;;  %1342 = vst.msk [vmem:[#allocation3 + $0x30] sm:$0xff] %vm1335_vm5, %v1252_v26 }
 0x12f   : > { %1625 = vrot.lane.b32.xlu0 %v18467_v31, %s12785_s27  ;;  %v18481_v31 = vld [vmem:[#allocation54_spill] sm:$0xff] }
 0x130   : > { %v1250_v30 = vpop.permute.xlu1 %1249 }
 0x131   : > { %1341 = vst.msk [vmem:[#allocation3 + $0x28] sm:$0xff] %vm1335_vm5, %v1250_v30  ;;  %v1256_v32 = vpop.permute.xlu0 %1255  ;;  %v18480_v30 = vld [vmem:[#allocation53_spill] sm:$0xff] }
 0x132   : > { %1494 = vrot.lane.b32.xlu1 %v13702_v27, %s18391_s26  ;;  %1344 = vst.msk [vmem:[#allocation3 + $0x40] sm:$0xff] %vm1335_vm5, %v1256_v32 }
 0x133   : > { %1629 = vrot.lane.b32.xlu0 %v18468_v40, %s12785_s27  ;;  %v18482_v40 = vld [vmem:[#allocation55_spill] sm:$0xff] }
 0x134   : > { %v1254_v39 = vpop.permute.xlu1 %1253 }
 0x135   : > { %1343 = vst.msk [vmem:[#allocation3 + $0x38] sm:$0xff] %vm1335_vm5, %v1254_v39  ;;  %v1260_v42 = vpop.permute.xlu0 %1259 }
 0x136   : > { %1627 = vrot.lane.b32.xlu1 %v18469_v41, %s12785_s27  ;;  %1346 = vst.msk [vmem:[#allocation3 + $0x50] sm:$0xff] %vm1335_vm5, %v1260_v42  ;;  %v18483_v41 = vld [vmem:[#allocation56_spill] sm:$0xff] }
 0x137   : > { %1633 = vrot.lane.b32.xlu0 %v18470_v44, %s12785_s27  ;;  %v18484_v44 = vld [vmem:[#allocation57_spill] sm:$0xff] }
 0x138   : > { %v1258_v43 = vpop.permute.xlu1 %1257 }
 0x139   : > { %1345 = vst.msk [vmem:[#allocation3 + $0x48] sm:$0xff] %vm1335_vm5, %v1258_v43  ;;  %v1264_v50 = vpop.permute.xlu0 %1263 }
 0x13a   : > { %1631 = vrot.lane.b32.xlu1 %v18471_v47, %s12785_s27  ;;  %1348 = vst.msk [vmem:[#allocation3 + $0x60] sm:$0xff] %vm1335_vm5, %v1264_v50  ;;  %v18485_v47 = vld [vmem:[#allocation58_spill] sm:$0xff] }
 0x13b   : > { %1637 = vrot.lane.b32.xlu0 %v18472_v56, %s12785_s27  ;;  %v18486_v56 = vld [vmem:[#allocation59_spill] sm:$0xff] }
 0x13c   : > { %v1262_v53 = vpop.permute.xlu1 %1261 }
 0x13d   : > { %1347 = vst.msk [vmem:[#allocation3 + $0x58] sm:$0xff] %vm1335_vm5, %v1262_v53  ;;  %v1268_v34 = vpop.permute.xlu0 %1267 }
 0x13e   : > { %1635 = vrot.lane.b32.xlu1 %v18473_v63, %s12785_s27  ;;  %1350 = vst.msk [vmem:[#allocation3 + $0x70] sm:$0xff] %vm1335_vm5, %v1268_v34  ;;  %v18487_v63 = vld [vmem:[#allocation60_spill] sm:$0xff] }
 0x13f   : > { %1641 = vrot.lane.b32.xlu0 %v18474_v24, %s12785_s27  ;;  %v18488_v24 = vld [vmem:[#allocation61_spill] sm:$0xff] }
 0x140   : > { %v1266_v23 = vpop.permute.xlu1 %1265 }
 0x141   : > { %1349 = vst.msk [vmem:[#allocation3 + $0x68] sm:$0xff] %vm1335_vm5, %v1266_v23  ;;  %v1272_v20 = vpop.permute.xlu0 %1271 }
 0x142   : > { %1639 = vrot.lane.b32.xlu1 %v18475_v19, %s12785_s27  ;;  %1352 = vst.msk [vmem:[#allocation3 + $0x80] sm:$0xff] %vm1335_vm5, %v1272_v20  ;;  %v18489_v19 = vld [vmem:[#allocation62_spill] sm:$0xff] }
 0x143   : > { %1645 = vrot.lane.b32.xlu0 %v18476_v10, %s12785_s27  ;;  %v18490_v10 = vld [vmem:[#allocation63_spill] sm:$0xff] }
 0x144   : > { %v1270_v15 = vpop.permute.xlu1 %1269 }
 0x145   : > { %1351 = vst.msk [vmem:[#allocation3 + $0x78] sm:$0xff] %vm1335_vm5, %v1270_v15  ;;  %v1276_v49 = vpop.permute.xlu0 %1275 }
 0x146   : > { %1643 = vrot.lane.b32.xlu1 %v18477_v16, %s12785_s27  ;;  %1354 = vst.msk [vmem:[#allocation3 + $0x90] sm:$0xff] %vm1335_vm5, %v1276_v49  ;;  %v18491_v16 = vld [vmem:[#allocation64_spill] sm:$0xff] }
 0x147   : > { %1649 = vrot.lane.b32.xlu0 %v18478_v12, %s12785_s27  ;;  %v18492_v12 = vld [vmem:[#allocation65_spill] sm:$0xff] }
 0x148   : > { %v1274_v1 = vpop.permute.xlu1 %1273 }
 0x149   : > { %1353 = vst.msk [vmem:[#allocation3 + $0x88] sm:$0xff] %vm1335_vm5, %v1274_v1  ;;  %v1280_v46 = vpop.permute.xlu0 %1279 }
 0x14a   : > { %1647 = vrot.lane.b32.xlu1 %v18479_v25, %s12785_s27  ;;  %1356 = vst.msk [vmem:[#allocation3 + $0xa0] sm:$0xff] %vm1335_vm5, %v1280_v46 }
 0x14b   : > { %1653 = vrot.lane.b32.xlu0 %v18480_v30, %s12785_s27 }
 0x14c   : > { %v1278_v26 = vpop.permute.xlu1 %1277 }
 0x14d   : > { %1355 = vst.msk [vmem:[#allocation3 + $0x98] sm:$0xff] %vm1335_vm5, %v1278_v26  ;;  %v1284_v32 = vpop.permute.xlu0 %1283  ;;  %v13792_v26 = vld [vmem:[#allocation2 + $0x182] sm:$0xff] }
 0x14e   : > { %1651 = vrot.lane.b32.xlu1 %v18481_v31, %s12785_s27  ;;  %1358 = vst.msk [vmem:[#allocation3 + $0xb0] sm:$0xff] %vm1335_vm5, %v1284_v32  ;;  %v13802_v31 = vld [vmem:[#allocation2 + $0x18a] sm:$0xff] }
 0x14f   : > { %1657 = vrot.lane.b32.xlu0 %v18482_v40, %s12785_s27 }
 0x150   : > { %v1282_v39 = vpop.permute.xlu1 %1281 }
 0x151   : > { %1357 = vst.msk [vmem:[#allocation3 + $0xa8] sm:$0xff] %vm1335_vm5, %v1282_v39  ;;  %v1288_v42 = vpop.permute.xlu0 %1287 }
 0x152   : > { %1655 = vrot.lane.b32.xlu1 %v18483_v41, %s12785_s27  ;;  %1360 = vst.msk [vmem:[#allocation3 + $0xc0] sm:$0xff] %vm1335_vm5, %v1288_v42 }
 0x153   : > { %1661 = vrot.lane.b32.xlu0 %v18484_v44, %s12785_s27 }
 0x154   : > { %v1286_v43 = vpop.permute.xlu1 %1285 }
 0x155   : > { %1359 = vst.msk [vmem:[#allocation3 + $0xb8] sm:$0xff] %vm1335_vm5, %v1286_v43  ;;  %v1292_v50 = vpop.permute.xlu0 %1291 }
 0x156   : > { %1659 = vrot.lane.b32.xlu1 %v18485_v47, %s12785_s27  ;;  %1362 = vst.msk [vmem:[#allocation3 + $0xd0] sm:$0xff] %vm1335_vm5, %v1292_v50  ;;  %v1949_v47 = vld [vmem:[#allocation2 + $0x39] sm:$0xff] }
 0x157   : > { %1665 = vrot.lane.b32.xlu0 %v18486_v56, %s12785_s27  ;;  %v1951_v56 = vld [vmem:[#allocation2 + $0x51] sm:$0xff] }
 0x158   : > { %v1290_v53 = vpop.permute.xlu1 %1289 }
 0x159   : > { %1361 = vst.msk [vmem:[#allocation3 + $0xc8] sm:$0xff] %vm1335_vm5, %v1290_v53  ;;  %v1296_v34 = vpop.permute.xlu0 %1295 }
 0x15a   : > { %1663 = vrot.lane.b32.xlu1 %v18487_v63, %s12785_s27  ;;  %1364 = vst.msk [vmem:[#allocation3 + $0xe0] sm:$0xff] %vm1335_vm5, %v1296_v34  ;;  %v1954_v34 = vld [vmem:[#allocation2 + $0x79] sm:$0xff] }
 0x15b   : > { %1669 = vrot.lane.b32.xlu0 %v18488_v24, %s12785_s27  ;;  %v1953_v24 = vld [vmem:[#allocation2 + $0x69] sm:$0xff] }
 0x15c   : > { %v1294_v23 = vpop.permute.xlu1 %1293 }
 0x15d   : > { %1363 = vst.msk [vmem:[#allocation3 + $0xd8] sm:$0xff] %vm1335_vm5, %v1294_v23  ;;  %v1300_v20 = vpop.permute.xlu0 %1299 }
 0x15e   : > { %1667 = vrot.lane.b32.xlu1 %v18489_v19, %s12785_s27  ;;  %1366 = vst.msk [vmem:[#allocation3 + $0xf0] sm:$0xff] %vm1335_vm5, %v1300_v20  ;;  %v1956_v20 = vld [vmem:[#allocation2 + $0x91] sm:$0xff] }
 0x15f   : > { %1673 = vrot.lane.b32.xlu0 %v18490_v10, %s12785_s27  ;;  %v1955_v10 = vld [vmem:[#allocation2 + $0x81] sm:$0xff] }
 0x160   : > { %v1298_v15 = vpop.permute.xlu1 %1297 }
 0x161   : > { %1365 = vst.msk [vmem:[#allocation3 + $0xe8] sm:$0xff] %vm1335_vm5, %v1298_v15  ;;  %v1433_v49 = vpop.permute.xlu0 %1432 }
 0x162   : > { %1671 = vrot.lane.b32.xlu1 %v18491_v16, %s12785_s27  ;;  %1529 = vst.msk [vmem:[#allocation3] sm:$0xff] %vm1528_vm6, %v1433_v49  ;;  %v1958_v49 = vld [vmem:[#allocation2 + $0xa9] sm:$0xff] }
 0x163   : > { %1677 = vrot.lane.b32.xlu0 %v13480_v5, %s12785_s27 }
 0x164   : > { %v1302_v1 = vpop.permute.xlu1 %1301 }
 0x165   : > { %1367 = vst.msk [vmem:[#allocation3 + $0xf8] sm:$0xff] %vm1335_vm5, %v1302_v1  ;;  %v1437_v25 = vpop.permute.xlu0 %1436 }
 0x166   : > { %1675 = vrot.lane.b32.xlu1 %v18492_v12, %s12785_s27  ;;  %1531 = vst.msk [vmem:[#allocation3 + $0x10] sm:$0xff] %vm1528_vm6, %v1437_v25  ;;  %v1957_v12 = vld [vmem:[#allocation2 + $0x99] sm:$0xff] }
 0x167   : > { %1681 = vrot.lane.b32.xlu0 %v13490_v6, %s12785_s27 }
 0x168   : > { %v1435_v46 = vpop.permute.xlu1 %1434 }
 0x169   : > { %1530 = vst.msk [vmem:[#allocation3 + $0x8] sm:$0xff] %vm1528_vm6, %v1435_v46  ;;  %v1441_v5 = vpop.permute.xlu0 %1440  ;;  %v1960_v46 = vld [vmem:[#allocation2 + $0xc1] sm:$0xff] }
 0x16a   : > { %1679 = vrot.lane.b32.xlu1 %v13494_v4, %s12785_s27  ;;  %1533 = vst.msk [vmem:[#allocation3 + $0x20] sm:$0xff] %vm1528_vm6, %v1441_v5 }
 0x16b   : > { %1685 = vrot.lane.b32.xlu0 %v13792_v26, %s12785_s27 }
 0x16c   : > { %v1439_v30 = vpop.permute.xlu1 %1438 }
 0x16d   : > { %1532 = vst.msk [vmem:[#allocation3 + $0x18] sm:$0xff] %vm1528_vm6, %v1439_v30  ;;  %v1445_v6 = vpop.permute.xlu0 %1444  ;;  %v1959_v30 = vld [vmem:[#allocation2 + $0xb1] sm:$0xff] }
 0x16e   : > { %1683 = vrot.lane.b32.xlu1 %v13502_v9, %s12785_s27  ;;  %1535 = vst.msk [vmem:[#allocation3 + $0x30] sm:$0xff] %vm1528_vm6, %v1445_v6 }
 0x16f   : > { %1819 = vrot.lane.b32.xlu0 %v13189_v51, %s18389_s28 }
 0x170   : > { %v1443_v32 = vpop.permute.xlu1 %1442 }
 0x171   : > { %1534 = vst.msk [vmem:[#allocation3 + $0x28] sm:$0xff] %vm1528_vm6, %v1443_v32  ;;  %v1449_v4 = vpop.permute.xlu0 %1448  ;;  %v1962_v32 = vld [vmem:[#allocation2 + $0xd9] sm:$0xff] }
 0x172   : > { %1687 = vrot.lane.b32.xlu1 %v13802_v31, %s12785_s27  ;;  %1537 = vst.msk [vmem:[#allocation3 + $0x40] sm:$0xff] %vm1528_vm6, %v1449_v4  ;;  %s18353_s27 = smov 48  }
 0x173   : > { %1823 = vrot.lane.b32.xlu0 %v13201_v54, %s18389_s28 }
 0x174   : > { %v1447_v39 = vpop.permute.xlu1 %1446 }
 0x175   : > { %1536 = vst.msk [vmem:[#allocation3 + $0x38] sm:$0xff] %vm1528_vm6, %v1447_v39  ;;  %v1453_v9 = vpop.permute.xlu0 %1452  ;;  %v1961_v39 = vld [vmem:[#allocation2 + $0xc9] sm:$0xff] }
 0x176   : > { %1821 = vrot.lane.b32.xlu1 %v13191_v52, %s18389_s28  ;;  %1539 = vst.msk [vmem:[#allocation3 + $0x50] sm:$0xff] %vm1528_vm6, %v1453_v9 }
 0x177   : > { %1827 = vrot.lane.b32.xlu0 %v13211_v57, %s18389_s28 }
 0x178   : > { %v1451_v51 = vpop.permute.xlu1 %1450 }
 0x179   : > { %1538 = vst.msk [vmem:[#allocation3 + $0x48] sm:$0xff] %vm1528_vm6, %v1451_v51  ;;  %v1457_v40 = vpop.permute.xlu0 %1456  ;;  %v1964_v51 = vld [vmem:[#allocation2 + $0xf1] sm:$0xff] }
 0x17a   : > { %1825 = vrot.lane.b32.xlu1 %v13203_v55, %s18389_s28  ;;  %1541 = vst.msk [vmem:[#allocation3 + $0x60] sm:$0xff] %vm1528_vm6, %v1457_v40 }
 0x17b   : > { %1831 = vrot.lane.b32.xlu0 %v13215_v59, %s18389_s28 }
 0x17c   : > { %v1455_v54 = vpop.permute.xlu1 %1454 }
 0x17d   : > { %1540 = vst.msk [vmem:[#allocation3 + $0x58] sm:$0xff] %vm1528_vm6, %v1455_v54  ;;  %v1461_v52 = vpop.permute.xlu0 %1460  ;;  %v1963_v54 = vld [vmem:[#allocation2 + $0xe1] sm:$0xff] }
 0x17e   : > { %1829 = vrot.lane.b32.xlu1 %v13213_v58, %s18389_s28  ;;  %1543 = vst.msk [vmem:[#allocation3 + $0x70] sm:$0xff] %vm1528_vm6, %v1461_v52 }
 0x17f   : > { %1835 = vrot.lane.b32.xlu0 %v13227_v61, %s18389_s28 }
 0x180   : > { %v1459_v57 = vpop.permute.xlu1 %1458 }
 0x181   : > { %1542 = vst.msk [vmem:[#allocation3 + $0x68] sm:$0xff] %vm1528_vm6, %v1459_v57  ;;  %v1465_v55 = vpop.permute.xlu0 %1464  ;;  %v1966_v57 = vld [vmem:[#allocation2 + $0x109] sm:$0xff] }
 0x182   : > { %1833 = vrot.lane.b32.xlu1 %v13225_v60, %s18389_s28  ;;  %1545 = vst.msk [vmem:[#allocation3 + $0x80] sm:$0xff] %vm1528_vm6, %v1465_v55 }
 0x183   : > { %1839 = vrot.lane.b32.xlu0 %v13239_v0, %s18389_s28 }
 0x184   : > { %v1463_v59 = vpop.permute.xlu1 %1462 }
 0x185   : > { %1544 = vst.msk [vmem:[#allocation3 + $0x78] sm:$0xff] %vm1528_vm6, %v1463_v59  ;;  %v1469_v58 = vpop.permute.xlu0 %1468  ;;  %v1965_v59 = vld [vmem:[#allocation2 + $0xf9] sm:$0xff] }
 0x186   : > { %1837 = vrot.lane.b32.xlu1 %v13229_v62, %s18389_s28  ;;  %1547 = vst.msk [vmem:[#allocation3 + $0x90] sm:$0xff] %vm1528_vm6, %v1469_v58 }
 0x187   : > { %1843 = vrot.lane.b32.xlu0 %v13243_v8, %s18389_s28 }
 0x188   : > { %v1467_v61 = vpop.permute.xlu1 %1466 }
 0x189   : > { %1546 = vst.msk [vmem:[#allocation3 + $0x88] sm:$0xff] %vm1528_vm6, %v1467_v61  ;;  %v1473_v60 = vpop.permute.xlu0 %1472  ;;  %v1968_v61 = vld [vmem:[#allocation2 + $0x121] sm:$0xff] }
 0x18a   : > { %1841 = vrot.lane.b32.xlu1 %v13241_v7, %s18389_s28  ;;  %1549 = vst.msk [vmem:[#allocation3 + $0xa0] sm:$0xff] %vm1528_vm6, %v1473_v60 }
 0x18b   : > { %1847 = vrot.lane.b32.xlu0 %v13255_v48, %s18389_s28 }
 0x18c   : > { %v1471_v0 = vpop.permute.xlu1 %1470 }
 0x18d   : > { %1548 = vst.msk [vmem:[#allocation3 + $0x98] sm:$0xff] %vm1528_vm6, %v1471_v0  ;;  %v1477_v62 = vpop.permute.xlu0 %1476  ;;  %v1967_v0 = vld [vmem:[#allocation2 + $0x111] sm:$0xff] }
 0x18e   : > { %1845 = vrot.lane.b32.xlu1 %v13253_v45, %s18389_s28  ;;  %1551 = vst.msk [vmem:[#allocation3 + $0xb0] sm:$0xff] %vm1528_vm6, %v1477_v62 }
 0x18f   : > { %1851 = vrot.lane.b32.xlu0 %v13265_v38, %s18389_s28 }
 0x190   : > { %v1475_v8 = vpop.permute.xlu1 %1474 }
 0x191   : > { %1550 = vst.msk [vmem:[#allocation3 + $0xa8] sm:$0xff] %vm1528_vm6, %v1475_v8  ;;  %v1481_v7 = vpop.permute.xlu0 %1480  ;;  %v1970_v8 = vld [vmem:[#allocation2 + $0x139] sm:$0xff] }
 0x192   : > { %1849 = vrot.lane.b32.xlu1 %v13257_v37, %s18389_s28  ;;  %1553 = vst.msk [vmem:[#allocation3 + $0xc0] sm:$0xff] %vm1528_vm6, %v1481_v7 }
 0x193   : > { %1855 = vrot.lane.b32.xlu0 %v13269_v36, %s18389_s28 }
 0x194   : > { %v1479_v48 = vpop.permute.xlu1 %1478 }
 0x195   : > { %1552 = vst.msk [vmem:[#allocation3 + $0xb8] sm:$0xff] %vm1528_vm6, %v1479_v48  ;;  %v1485_v45 = vpop.permute.xlu0 %1484  ;;  %v1969_v48 = vld [vmem:[#allocation2 + $0x129] sm:$0xff] }
 0x196   : > { %1853 = vrot.lane.b32.xlu1 %v13267_v35, %s18389_s28  ;;  %1555 = vst.msk [vmem:[#allocation3 + $0xd0] sm:$0xff] %vm1528_vm6, %v1485_v45 }
 0x197   : > { %1859 = vrot.lane.b32.xlu0 %v13287_v28, %s18389_s28 }
 0x198   : > { %v1483_v38 = vpop.permute.xlu1 %1482 }
 0x199   : > { %1554 = vst.msk [vmem:[#allocation3 + $0xc8] sm:$0xff] %vm1528_vm6, %v1483_v38  ;;  %v1489_v37 = vpop.permute.xlu0 %1488  ;;  %v1972_v38 = vld [vmem:[#allocation2 + $0x151] sm:$0xff] }
 0x19a   : > { %1857 = vrot.lane.b32.xlu1 %v13279_v33, %s18389_s28  ;;  %1557 = vst.msk [vmem:[#allocation3 + $0xe0] sm:$0xff] %vm1528_vm6, %v1489_v37 }
 0x19b   : > { %1863 = vrot.lane.b32.xlu0 %v13303_v21, %s18389_s28 }
 0x19c   : > { %v1487_v36 = vpop.permute.xlu1 %1486 }
 0x19d   : > { %1556 = vst.msk [vmem:[#allocation3 + $0xd8] sm:$0xff] %vm1528_vm6, %v1487_v36  ;;  %v1493_v35 = vpop.permute.xlu0 %1492  ;;  %v1971_v36 = vld [vmem:[#allocation2 + $0x141] sm:$0xff] }
 0x19e   : > { %1861 = vrot.lane.b32.xlu1 %v13289_v29, %s18389_s28  ;;  %1559 = vst.msk [vmem:[#allocation3 + $0xf0] sm:$0xff] %vm1528_vm6, %v1493_v35 }
 0x19f   : > { %1867 = vrot.lane.b32.xlu0 %v13319_v17, %s18389_s28 }
 0x1a0   : > { %v1491_v28 = vpop.permute.xlu1 %1490 }
 0x1a1   : > { %1558 = vst.msk [vmem:[#allocation3 + $0xe8] sm:$0xff] %vm1528_vm6, %v1491_v28  ;;  %v1626_v33 = vpop.permute.xlu0 %1625  ;;  %v1974_v28 = vld [vmem:[#allocation2 + $0x169] sm:$0xff] }
 0x1a2   : > { %1865 = vrot.lane.b32.xlu1 %v13305_v22, %s18389_s28  ;;  %1722 = vst.msk [vmem:[#allocation3] sm:$0xff] %vm1721_vm7, %v1626_v33  ;;  %v1785_v22 = vld [vmem:[#allocation2 + $0x198] sm:$0xff] }
 0x1a3   : > { %1871 = vrot.lane.b32.xlu0 %v13335_v13, %s18389_s28 }
 0x1a4   : > { %v1495_v21 = vpop.permute.xlu1 %1494 }
 0x1a5   : > { %1560 = vst.msk [vmem:[#allocation3 + $0xf8] sm:$0xff] %vm1528_vm6, %v1495_v21  ;;  %v1630_v29 = vpop.permute.xlu0 %1629  ;;  %v1973_v21 = vld [vmem:[#allocation2 + $0x159] sm:$0xff] }
 0x1a6   : > { %1869 = vrot.lane.b32.xlu1 %v13321_v18, %s18389_s28  ;;  %1724 = vst.msk [vmem:[#allocation3 + $0x10] sm:$0xff] %vm1721_vm7, %v1630_v29  ;;  %v1948_v18 = vld [vmem:[#allocation2 + $0x31] sm:$0xff] }
 0x1a7   : > { %1875 = vrot.lane.b32.xlu0 %v13592_v2, %s18389_s28  ;;  %v1786_v2 = vld [vmem:[#allocation2 + $0x1a0] sm:$0xff] }
 0x1a8   : > { %v1628_v17 = vpop.permute.xlu1 %1627 }
 0x1a9   : > { %1723 = vst.msk [vmem:[#allocation3 + $0x8] sm:$0xff] %vm1721_vm7, %v1628_v17  ;;  %v1634_v41 = vpop.permute.xlu0 %1633  ;;  %v2367_v17 = vld [vmem:[%s18493_s22] sm:$0xff] }
 0x1aa   : > { %1873 = vrot.lane.b32.xlu1 %v13337_v14, %s18389_s28  ;;  %1726 = vst.msk [vmem:[#allocation3 + $0x20] sm:$0xff] %vm1721_vm7, %v1634_v41  ;;  %v1950_v14 = vld [vmem:[#allocation2 + $0x49] sm:$0xff]  ;;  %v3281_v41 = vld [vmem:[%s18256_s15] sm:$0xff] }
 0x1ab   : > { %1879 = vrot.lane.b32.xlu0 %v1785_v22, %s18389_s28  ;;  %v2368_v22 = vld [vmem:[%s18493_s22 + $0x8] sm:$0xff] }
 0x1ac   : > { %v1632_v13 = vpop.permute.xlu1 %1631 }
 0x1ad   : > { %1725 = vst.msk [vmem:[#allocation3 + $0x18] sm:$0xff] %vm1721_vm7, %v1632_v13  ;;  %v1638_v42 = vpop.permute.xlu0 %1637  ;;  %v12335_v13 = vpack.c.bf16 %v2368_v22, %v2367_v17  ;;  %v2160_v17 = vld [vmem:[#allocation2 + $0x112] sm:$0xff] }
 0x1ae   : > { %1877 = vrot.lane.b32.xlu1 %v13602_v3, %s18389_s28  ;;  %1728 = vst.msk [vmem:[#allocation3 + $0x30] sm:$0xff] %vm1721_vm7, %v1638_v42  ;;  %v1952_v3 = vld [vmem:[#allocation2 + $0x61] sm:$0xff] }
 0x1af   : > { %2012 = vrot.lane.b32.xlu0 %v1948_v18, %s12787_s29  ;;  %v3282_v18 = vld [vmem:[%s18256_s15 + $0x8] sm:$0xff]  ;;  %12336 = vmatprep.subr.bf16.mxu0 %v12335_v13 }
 0x1b0   : > { %v1636_v43 = vpop.permute.xlu1 %1635  ;;  %12338 = vmatpush3.bf16.msra.mxu0 %v12335_v13 }
 0x1b1   : > { %1727 = vst.msk [vmem:[#allocation3 + $0x28] sm:$0xff] %vm1721_vm7, %v1636_v43  ;;  %v1642_v44 = vpop.permute.xlu0 %1641  ;;  %v1975_v43 = vld [vmem:[#allocation2 + $0x171] sm:$0xff] }
 0x1b2   : > { %1881 = vrot.lane.b32.xlu1 %v1786_v2, %s18389_s28  ;;  %1730 = vst.msk [vmem:[#allocation3 + $0x40] sm:$0xff] %vm1721_vm7, %v1642_v44  ;;  %v12359_v2 = vpack.c.bf16 %v3282_v18, %v3281_v41  ;;  %v2369_v44 = vld [vmem:[%s18493_s22 + $0x10] sm:$0xff]  ;;  %v2163_v41 = vld [vmem:[#allocation2 + $0x13a] sm:$0xff] }
 0x1b3   : > { %2016 = vrot.lane.b32.xlu0 %v1950_v14, %s12787_s29  ;;  %v2162_v18 = vld [vmem:[#allocation2 + $0x12a] sm:$0xff] }
 0x1b4   : > { %v1640_v50 = vpop.permute.xlu1 %1639  ;;  %12360 = vmatprep.subr.bf16.mxu1 %v12359_v2 }
 0x1b5   : > { %1729 = vst.msk [vmem:[#allocation3 + $0x38] sm:$0xff] %vm1721_vm7, %v1640_v50  ;;  %v1646_v53 = vpop.permute.xlu0 %1645  ;;  %v3283_v50 = vld [vmem:[%s18256_s15 + $0x10] sm:$0xff]  ;;  %12362 = vmatpush3.bf16.msra.mxu1 %v12359_v2 }
 0x1b6   : > { %2014 = vrot.lane.b32.xlu1 %v1949_v47, %s12787_s29  ;;  %1732 = vst.msk [vmem:[#allocation3 + $0x50] sm:$0xff] %vm1721_vm7, %v1646_v53  ;;  %v2370_v47 = vld [vmem:[%s18493_s22 + $0x18] sm:$0xff] }
 0x1b7   : > { %2020 = vrot.lane.b32.xlu0 %v1952_v3, %s12787_s29  ;;  %v1978_v3 = vld [vmem:[#allocation2 + $0x199] sm:$0xff]  ;;  %v12339_v53 = vpack.c.bf16 %v2370_v47, %v2369_v44  ;;  %v2167_v47 = vld [vmem:[#allocation2 + $0x16a] sm:$0xff] }
 0x1b8   : > { %v1644_v63 = vpop.permute.xlu1 %1643  ;;  %v2165_v2 = vld [vmem:[#allocation2 + $0x152] sm:$0xff] }
 0x1b9   : > { %1731 = vst.msk [vmem:[#allocation3 + $0x48] sm:$0xff] %vm1721_vm7, %v1644_v63  ;;  %v1650_v23 = vpop.permute.xlu0 %1649  ;;  %12340 = vmatprep.subr.bf16.mxu0 %v12339_v53 }
 0x1ba   : > { %2018 = vrot.lane.b32.xlu1 %v1951_v56, %s12787_s29  ;;  %1734 = vst.msk [vmem:[#allocation3 + $0x60] sm:$0xff] %vm1721_vm7, %v1650_v23  ;;  %v2141_v23 = vld [vmem:[#allocation2 + $0x32] sm:$0xff]  ;;  %12342 = vmatpush3.bf16.msra.mxu0 %v12339_v53 }
 0x1bb   : > { %2024 = vrot.lane.b32.xlu0 %v1954_v34, %s12787_s29 }
 0x1bc   : > { %v1648_v19 = vpop.permute.xlu1 %1647 }
 0x1bd   : > { %1733 = vst.msk [vmem:[#allocation3 + $0x58] sm:$0xff] %vm1721_vm7, %v1648_v19  ;;  %v1654_v15 = vpop.permute.xlu0 %1653  ;;  %v3285_v19 = vld [vmem:[%s18256_s15 + $0x20] sm:$0xf] }
 0x1be   : > { %2022 = vrot.lane.b32.xlu1 %v1953_v24, %s12787_s29  ;;  %1736 = vst.msk [vmem:[#allocation3 + $0x70] sm:$0xff] %vm1721_vm7, %v1654_v15  ;;  %v2371_v24 = vld [vmem:[%s18493_s22 + $0x20] sm:$0xf] }
 0x1bf   : > { %2028 = vrot.lane.b32.xlu0 %v1956_v20, %s12787_s29  ;;  %11715 = vmatprep.subr.msk.mxu0 %vm2469_vm9, %v2371_v24  ;;  %v1979_v15 = vld [vmem:[#allocation2 + $0x1a1] sm:$0xff] }
 0x1c0   : > { %v1652_v16 = vpop.permute.xlu1 %1651  ;;  %11716 = vmatpush3.msk.msra.mxu0 %vm2469_vm9, %v2371_v24 }
 0x1c1   : > { %1735 = vst.msk [vmem:[#allocation3 + $0x68] sm:$0xff] %vm1721_vm7, %v1652_v16  ;;  %v1658_v1 = vpop.permute.xlu0 %1657  ;;  %v2143_v16 = vld [vmem:[#allocation2 + $0x4a] sm:$0xff] }
 0x1c2   : > { %2026 = vrot.lane.b32.xlu1 %v1955_v10, %s12787_s29  ;;  %1738 = vst.msk [vmem:[#allocation3 + $0x80] sm:$0xff] %vm1721_vm7, %v1658_v1 }
 0x1c3   : > { %2032 = vrot.lane.b32.xlu0 %v1958_v49, %s12787_s29  ;;  %v2142_v49 = vld [vmem:[#allocation2 + $0x3a] sm:$0xff] }
 0x1c4   : > { %v1656_v25 = vpop.permute.xlu1 %1655 }
 0x1c5   : > { %1737 = vst.msk [vmem:[#allocation3 + $0x78] sm:$0xff] %vm1721_vm7, %v1656_v25  ;;  %v1662_v5 = vpop.permute.xlu0 %1661 }
 0x1c6   : > { %2030 = vrot.lane.b32.xlu1 %v1957_v12, %s12787_s29  ;;  %1740 = vst.msk [vmem:[#allocation3 + $0x90] sm:$0xff] %vm1721_vm7, %v1662_v5  ;;  %v2145_v12 = vld [vmem:[#allocation2 + $0x62] sm:$0xff] }
 0x1c7   : > { %2036 = vrot.lane.b32.xlu0 %v1960_v46, %s12787_s29  ;;  %v2144_v46 = vld [vmem:[#allocation2 + $0x52] sm:$0xff] }
 0x1c8   : > { %v1660_v6 = vpop.permute.xlu1 %1659 }
 0x1c9   : > { %1739 = vst.msk [vmem:[#allocation3 + $0x88] sm:$0xff] %vm1721_vm7, %v1660_v6  ;;  %v1666_v4 = vpop.permute.xlu0 %1665 }
 0x1ca   : > { %2034 = vrot.lane.b32.xlu1 %v1959_v30, %s12787_s29  ;;  %1742 = vst.msk [vmem:[#allocation3 + $0xa0] sm:$0xff] %vm1721_vm7, %v1666_v4  ;;  %v2147_v30 = vld [vmem:[#allocation2 + $0x7a] sm:$0xff] }
 0x1cb   : > { %2040 = vrot.lane.b32.xlu0 %v1962_v32, %s12787_s29  ;;  %v2146_v32 = vld [vmem:[#allocation2 + $0x6a] sm:$0xff] }
 0x1cc   : > { %v1664_v9 = vpop.permute.xlu1 %1663 }
 0x1cd   : > { %1741 = vst.msk [vmem:[#allocation3 + $0x98] sm:$0xff] %vm1721_vm7, %v1664_v9  ;;  %v1670_v40 = vpop.permute.xlu0 %1669 }
 0x1ce   : > { %2038 = vrot.lane.b32.xlu1 %v1961_v39, %s12787_s29  ;;  %1744 = vst.msk [vmem:[#allocation3 + $0xb0] sm:$0xff] %vm1721_vm7, %v1670_v40  ;;  %v2149_v39 = vld [vmem:[#allocation2 + $0x92] sm:$0xff] }
 0x1cf   : > { %2044 = vrot.lane.b32.xlu0 %v1964_v51, %s12787_s29  ;;  %v2148_v51 = vld [vmem:[#allocation2 + $0x82] sm:$0xff] }
 0x1d0   : > { %v1668_v52 = vpop.permute.xlu1 %1667 }
 0x1d1   : > { %1743 = vst.msk [vmem:[#allocation3 + $0xa8] sm:$0xff] %vm1721_vm7, %v1668_v52  ;;  %v1674_v55 = vpop.permute.xlu0 %1673 }
 0x1d2   : > { %2042 = vrot.lane.b32.xlu1 %v1963_v54, %s12787_s29  ;;  %1746 = vst.msk [vmem:[#allocation3 + $0xc0] sm:$0xff] %vm1721_vm7, %v1674_v55  ;;  %v2151_v54 = vld [vmem:[#allocation2 + $0xaa] sm:$0xff] }
 0x1d3   : > { %2048 = vrot.lane.b32.xlu0 %v1966_v57, %s12787_s29  ;;  %v2150_v57 = vld [vmem:[#allocation2 + $0x9a] sm:$0xff] }
 0x1d4   : > { %v1672_v58 = vpop.permute.xlu1 %1671 }
 0x1d5   : > { %1745 = vst.msk [vmem:[#allocation3 + $0xb8] sm:$0xff] %vm1721_vm7, %v1672_v58  ;;  %v1678_v60 = vpop.permute.xlu0 %1677 }
 0x1d6   : > { %2046 = vrot.lane.b32.xlu1 %v1965_v59, %s12787_s29  ;;  %1748 = vst.msk [vmem:[#allocation3 + $0xd0] sm:$0xff] %vm1721_vm7, %v1678_v60  ;;  %v2153_v59 = vld [vmem:[#allocation2 + $0xc2] sm:$0xff] }
 0x1d7   : > { %2052 = vrot.lane.b32.xlu0 %v1968_v61, %s12787_s29  ;;  %v2152_v61 = vld [vmem:[#allocation2 + $0xb2] sm:$0xff] }
 0x1d8   : > { %v1676_v62 = vpop.permute.xlu1 %1675 }
 0x1d9   : > { %1747 = vst.msk [vmem:[#allocation3 + $0xc8] sm:$0xff] %vm1721_vm7, %v1676_v62  ;;  %v1682_v7 = vpop.permute.xlu0 %1681 }
 0x1da   : > { %2050 = vrot.lane.b32.xlu1 %v1967_v0, %s12787_s29  ;;  %1750 = vst.msk [vmem:[#allocation3 + $0xe0] sm:$0xff] %vm1721_vm7, %v1682_v7  ;;  %v2155_v0 = vld [vmem:[#allocation2 + $0xda] sm:$0xff] }
 0x1db   : > { %2056 = vrot.lane.b32.xlu0 %v1970_v8, %s12787_s29  ;;  %v2154_v8 = vld [vmem:[#allocation2 + $0xca] sm:$0xff] }
 0x1dc   : > { %v1680_v45 = vpop.permute.xlu1 %1679 }
 0x1dd   : > { %1749 = vst.msk [vmem:[#allocation3 + $0xd8] sm:$0xff] %vm1721_vm7, %v1680_v45  ;;  %v1686_v37 = vpop.permute.xlu0 %1685 }
 0x1de   : > { %2054 = vrot.lane.b32.xlu1 %v1969_v48, %s12787_s29  ;;  %1752 = vst.msk [vmem:[#allocation3 + $0xf0] sm:$0xff] %vm1721_vm7, %v1686_v37  ;;  %v2157_v48 = vld [vmem:[#allocation2 + $0xf2] sm:$0xff] }
 0x1df   : > { %2060 = vrot.lane.b32.xlu0 %v1972_v38, %s12787_s29  ;;  %v2156_v38 = vld [vmem:[#allocation2 + $0xe2] sm:$0xff] }
 0x1e0   : > { %v1684_v35 = vpop.permute.xlu1 %1683 }
 0x1e1   : > { %1751 = vst.msk [vmem:[#allocation3 + $0xe8] sm:$0xff] %vm1721_vm7, %v1684_v35  ;;  %v1820_v33 = vpop.permute.xlu0 %1819 }
 0x1e2   : > { %2058 = vrot.lane.b32.xlu1 %v1971_v36, %s12787_s29  ;;  %1916 = vst.msk [vmem:[#allocation3] sm:$0xff] %vm1915_vm8, %v1820_v33  ;;  %v2159_v36 = vld [vmem:[#allocation2 + $0x10a] sm:$0xff] }
 0x1e3   : > { %2064 = vrot.lane.b32.xlu0 %v1974_v28, %s12787_s29  ;;  %v2158_v28 = vld [vmem:[#allocation2 + $0xfa] sm:$0xff] }
 0x1e4   : > { %v1688_v29 = vpop.permute.xlu1 %1687 }
 0x1e5   : > { %1753 = vst.msk [vmem:[#allocation3 + $0xf8] sm:$0xff] %vm1721_vm7, %v1688_v29  ;;  %v1824_v42 = vpop.permute.xlu0 %1823 }
 0x1e6   : > { %2062 = vrot.lane.b32.xlu1 %v1973_v21, %s12787_s29  ;;  %1918 = vst.msk [vmem:[#allocation3 + $0x10] sm:$0xff] %vm1915_vm8, %v1824_v42  ;;  %v2161_v21 = vld [vmem:[#allocation2 + $0x122] sm:$0xff] }
 0x1e7   : > { %2068 = vrot.lane.b32.xlu0 %v13692_v11, %s12787_s29  ;;  %v3284_v11 = vld [vmem:[%s18256_s15 + $0x18] sm:$0xff] }
 0x1e8   : > { %v1822_v14 = vpop.permute.xlu1 %1821  ;;  %v12363_v63 = vpack.c.bf16 %v3284_v11, %v3283_v50  ;;  %v2737_v11 = vld [vmem:[%s18247_s6] sm:$0xff] }
 0x1e9   : > { %1917 = vst.msk [vmem:[#allocation3 + $0x8] sm:$0xff] %vm1915_vm8, %v1822_v14  ;;  %v1828_v56 = vpop.permute.xlu0 %1827  ;;  %v2164_v14 = vld [vmem:[#allocation2 + $0x142] sm:$0xff] }
 0x1ea   : > { %2066 = vrot.lane.b32.xlu1 %v1975_v43, %s12787_s29  ;;  %1920 = vst.msk [vmem:[#allocation3 + $0x20] sm:$0xff] %vm1915_vm8, %v1828_v56  ;;  %12364 = vmatprep.subr.bf16.mxu1 %v12363_v63  ;;  %v2738_v56 = vld [vmem:[%s18247_s6 + $0x8] sm:$0xff] }
 0x1eb   : > { %2072 = vrot.lane.b32.xlu0 %v1978_v3, %s12787_s29  ;;  %12366 = vmatpush3.bf16.msra.mxu1 %v12363_v63  ;;  %v2166_v3 = vld [vmem:[#allocation2 + $0x15a] sm:$0xff]  ;;  %v14060_v63 = vpack.c.bf16 %v2738_v56, %v2737_v11 }
 0x1ec   : > { %v1826_v34 = vpop.permute.xlu1 %1825  ;;  %11889 = vmatprep.subr.msk.mxu1 %vm2469_vm9, %v3285_v19 }
 0x1ed   : > { %1919 = vst.msk [vmem:[#allocation3 + $0x18] sm:$0xff] %vm1915_vm8, %v1826_v34  ;;  %v1832_v20 = vpop.permute.xlu0 %1831  ;;  %12344 = vmatprep.subr.bf16.mxu0 %v14060_v63 }
 0x1ee   : > { %2070 = vrot.lane.b32.xlu1 %v13702_v27, %s12787_s29  ;;  %1922 = vst.msk [vmem:[#allocation3 + $0x30] sm:$0xff] %vm1915_vm8, %v1832_v20 }
 0x1ef   : > { %2205 = vrot.lane.b32.xlu0 %v2141_v23, %s18387_s23  ;;  %11890 = vmatpush3.msk.msra.mxu1 %vm2469_vm9, %v3285_v19  ;;  %v2168_v23 = vld [vmem:[#allocation2 + $0x172] sm:$0xff]  ;;  %v2171_v19 = vld [vmem:[#allocation2 + $0x19a] sm:$0xff] }
 0x1f0   : > { %v1830_v10 = vpop.permute.xlu1 %1829 }
 0x1f1   : > { %1921 = vst.msk [vmem:[#allocation3 + $0x28] sm:$0xff] %vm1915_vm8, %v1830_v10  ;;  %v1836_v27 = vpop.permute.xlu0 %1835 }
 0x1f2   : > { %2074 = vrot.lane.b32.xlu1 %v1979_v15, %s12787_s29  ;;  %1924 = vst.msk [vmem:[#allocation3 + $0x40] sm:$0xff] %vm1915_vm8, %v1836_v27  ;;  %s12791_s29 = smov 56  }
 0x1f3   : > { %2209 = vrot.lane.b32.xlu0 %v2143_v16, %s18387_s23  ;;  %v2172_v16 = vld [vmem:[#allocation2 + $0x1a2] sm:$0xff] }
 0x1f4   : > { %v1834_v1 = vpop.permute.xlu1 %1833 }
 0x1f5   : > { %1923 = vst.msk [vmem:[#allocation3 + $0x38] sm:$0xff] %vm1915_vm8, %v1834_v1  ;;  %v1840_v25 = vpop.permute.xlu0 %1839 }
 0x1f6   : > { %2207 = vrot.lane.b32.xlu1 %v2142_v49, %s18387_s23  ;;  %1926 = vst.msk [vmem:[#allocation3 + $0x50] sm:$0xff] %vm1915_vm8, %v1840_v25 }
 0x1f7   : > { %2213 = vrot.lane.b32.xlu0 %v2145_v12, %s18387_s23 }
 0x1f8   : > { %v1838_v5 = vpop.permute.xlu1 %1837 }
 0x1f9   : > { %1925 = vst.msk [vmem:[#allocation3 + $0x48] sm:$0xff] %vm1915_vm8, %v1838_v5  ;;  %v1844_v6 = vpop.permute.xlu0 %1843 }
 0x1fa   : > { %2211 = vrot.lane.b32.xlu1 %v2144_v46, %s18387_s23  ;;  %1928 = vst.msk [vmem:[#allocation3 + $0x60] sm:$0xff] %vm1915_vm8, %v1844_v6 }
 0x1fb   : > { %2217 = vrot.lane.b32.xlu0 %v2147_v30, %s18387_s23 }
 0x1fc   : > { %v1842_v4 = vpop.permute.xlu1 %1841 }
 0x1fd   : > { %1927 = vst.msk [vmem:[#allocation3 + $0x58] sm:$0xff] %vm1915_vm8, %v1842_v4  ;;  %v1848_v9 = vpop.permute.xlu0 %1847 }
 0x1fe   : > { %2215 = vrot.lane.b32.xlu1 %v2146_v32, %s18387_s23  ;;  %1930 = vst.msk [vmem:[#allocation3 + $0x70] sm:$0xff] %vm1915_vm8, %v1848_v9 }
 0x1ff   : > { %2221 = vrot.lane.b32.xlu0 %v2149_v39, %s18387_s23 }
 0x200   : > { %v1846_v40 = vpop.permute.xlu1 %1845 }
 0x201   : > { %1929 = vst.msk [vmem:[#allocation3 + $0x68] sm:$0xff] %vm1915_vm8, %v1846_v40  ;;  %v1852_v52 = vpop.permute.xlu0 %1851 }
 0x202   : > { %2219 = vrot.lane.b32.xlu1 %v2148_v51, %s18387_s23  ;;  %1932 = vst.msk [vmem:[#allocation3 + $0x80] sm:$0xff] %vm1915_vm8, %v1852_v52 }
 0x203   : > { %2225 = vrot.lane.b32.xlu0 %v2151_v54, %s18387_s23 }
 0x204   : > { %v1850_v55 = vpop.permute.xlu1 %1849 }
 0x205   : > { %1931 = vst.msk [vmem:[#allocation3 + $0x78] sm:$0xff] %vm1915_vm8, %v1850_v55  ;;  %v1856_v58 = vpop.permute.xlu0 %1855 }
 0x206   : > { %2223 = vrot.lane.b32.xlu1 %v2150_v57, %s18387_s23  ;;  %1934 = vst.msk [vmem:[#allocation3 + $0x90] sm:$0xff] %vm1915_vm8, %v1856_v58 }
 0x207   : > { %2229 = vrot.lane.b32.xlu0 %v2153_v59, %s18387_s23 }
 0x208   : > { %v1854_v60 = vpop.permute.xlu1 %1853 }
 0x209   : > { %1933 = vst.msk [vmem:[#allocation3 + $0x88] sm:$0xff] %vm1915_vm8, %v1854_v60  ;;  %v1860_v62 = vpop.permute.xlu0 %1859 }
 0x20a   : > { %2227 = vrot.lane.b32.xlu1 %v2152_v61, %s18387_s23  ;;  %1936 = vst.msk [vmem:[#allocation3 + $0xa0] sm:$0xff] %vm1915_vm8, %v1860_v62 }
 0x20b   : > { %2233 = vrot.lane.b32.xlu0 %v2155_v0, %s18387_s23 }
 0x20c   : > { %v1858_v7 = vpop.permute.xlu1 %1857 }
 0x20d   : > { %1935 = vst.msk [vmem:[#allocation3 + $0x98] sm:$0xff] %vm1915_vm8, %v1858_v7  ;;  %v1864_v45 = vpop.permute.xlu0 %1863 }
 0x20e   : > { %2231 = vrot.lane.b32.xlu1 %v2154_v8, %s18387_s23  ;;  %1938 = vst.msk [vmem:[#allocation3 + $0xb0] sm:$0xff] %vm1915_vm8, %v1864_v45 }
 0x20f   : > { %2237 = vrot.lane.b32.xlu0 %v2157_v48, %s18387_s23 }
 0x210   : > { %v1862_v37 = vpop.permute.xlu1 %1861 }
 0x211   : > { %1937 = vst.msk [vmem:[#allocation3 + $0xa8] sm:$0xff] %vm1915_vm8, %v1862_v37  ;;  %v1868_v35 = vpop.permute.xlu0 %1867  ;;  %v2739_v37 = vld [vmem:[%s18247_s6 + $0x10] sm:$0xff] }
 0x212   : > { %2235 = vrot.lane.b32.xlu1 %v2156_v38, %s18387_s23  ;;  %1940 = vst.msk [vmem:[#allocation3 + $0xc0] sm:$0xff] %vm1915_vm8, %v1868_v35 }
 0x213   : > { %2241 = vrot.lane.b32.xlu0 %v2159_v36, %s18387_s23  ;;  %v2740_v36 = vld [vmem:[%s18247_s6 + $0x18] sm:$0xff] }
 0x214   : > { %v1866_v33 = vpop.permute.xlu1 %1865 }
 0x215   : > { %1939 = vst.msk [vmem:[#allocation3 + $0xb8] sm:$0xff] %vm1915_vm8, %v1866_v33  ;;  %v1872_v29 = vpop.permute.xlu0 %1871 }
 0x216   : > { %2239 = vrot.lane.b32.xlu1 %v2158_v28, %s18387_s23  ;;  %1942 = vst.msk [vmem:[#allocation3 + $0xd0] sm:$0xff] %vm1915_vm8, %v1872_v29  ;;  %v12347_v29 = vpack.c.bf16 %v2740_v36, %v2739_v37 }
 0x217   : > { %2245 = vrot.lane.b32.xlu0 %v2161_v21, %s18387_s23 }
 0x218   : > { %v1870_v22 = vpop.permute.xlu1 %1869 }
 0x219   : > { %1941 = vst.msk [vmem:[#allocation3 + $0xc8] sm:$0xff] %vm1915_vm8, %v1870_v22  ;;  %v1876_v13 = vpop.permute.xlu0 %1875 }
 0x21a   : > { %2243 = vrot.lane.b32.xlu1 %v2160_v17, %s18387_s23  ;;  %1944 = vst.msk [vmem:[#allocation3 + $0xe0] sm:$0xff] %vm1915_vm8, %v1876_v13 }
 0x21b   : > { %2249 = vrot.lane.b32.xlu0 %v2163_v41, %s18387_s23 }
 0x21c   : > { %v1874_v42 = vpop.permute.xlu1 %1873 }
 0x21d   : > { %1943 = vst.msk [vmem:[#allocation3 + $0xd8] sm:$0xff] %vm1915_vm8, %v1874_v42  ;;  %v1880_v43 = vpop.permute.xlu0 %1879  ;;  %v3009_v42 = vld [vmem:[%s18251_s10] sm:$0xff] }
 0x21e   : > { %2247 = vrot.lane.b32.xlu1 %v2162_v18, %s18387_s23  ;;  %1946 = vst.msk [vmem:[#allocation3 + $0xf0] sm:$0xff] %vm1915_vm8, %v1880_v43  ;;  %v2741_v18 = vld [vmem:[%s18247_s6 + $0x20] sm:$0xf] }
 0x21f   : > { %2253 = vrot.lane.b32.xlu0 %v2165_v2, %s18387_s23  ;;  %v3010_v2 = vld [vmem:[%s18251_s10 + $0x8] sm:$0xff] }
 0x220   : > { %v1878_v44 = vpop.permute.xlu1 %1877 }
 0x221   : > { %1945 = vst.msk [vmem:[#allocation3 + $0xe8] sm:$0xff] %vm1915_vm8, %v1878_v44  ;;  %v2013_v50 = vpop.permute.xlu0 %2012 }
 0x222   : > { %2251 = vrot.lane.b32.xlu1 %v2164_v14, %s18387_s23  ;;  %2109 = vst.msk [vmem:[#allocation3] sm:$0xff] %vm2108_vm10, %v2013_v50  ;;  %v14163_v50 = vpack.c.bf16 %v3010_v2, %v3009_v42  ;;  %v14501_v2 = vld [vmem:[%s18495_s24] ss:$0 sm:$0xff]  ;;  %s18680_s24 = smov 40  }
 0x223   : > { %2257 = vrot.lane.b32.xlu0 %v2167_v47, %s18387_s23 }
 0x224   : > { %v1882_v53 = vpop.permute.xlu1 %1881 }
 0x225   : > { %1947 = vst.msk [vmem:[#allocation3 + $0xf8] sm:$0xff] %vm1915_vm8, %v1882_v53  ;;  %v2017_v34 = vpop.permute.xlu0 %2016 }
 0x226   : > { %2255 = vrot.lane.b32.xlu1 %v2166_v3, %s18387_s23  ;;  %2111 = vst.msk [vmem:[#allocation3 + $0x10] sm:$0xff] %vm2108_vm10, %v2017_v34 }
 0x227   : > { %2261 = vrot.lane.b32.xlu0 %v13792_v26, %s18387_s23 }
 0x228   : > { %v2015_v24 = vpop.permute.xlu1 %2014 }
 0x229   : > { %2110 = vst.msk [vmem:[#allocation3 + $0x8] sm:$0xff] %vm2108_vm10, %v2015_v24  ;;  %v2021_v20 = vpop.permute.xlu0 %2020 }
 0x22a   : > { %2259 = vrot.lane.b32.xlu1 %v2168_v23, %s18387_s23  ;;  %2113 = vst.msk [vmem:[#allocation3 + $0x20] sm:$0xff] %vm2108_vm10, %v2021_v20 }
 0x22b   : > { %2265 = vrot.lane.b32.xlu0 %v2171_v19, %s18387_s23 }
 0x22c   : > { %v2019_v15 = vpop.permute.xlu1 %2018 }
 0x22d   : > { %2112 = vst.msk [vmem:[#allocation3 + $0x18] sm:$0xff] %vm2108_vm10, %v2019_v15  ;;  %v2025_v10 = vpop.permute.xlu0 %2024 }
 0x22e   : > { %2263 = vrot.lane.b32.xlu1 %v13802_v31, %s18387_s23  ;;  %2115 = vst.msk [vmem:[#allocation3 + $0x30] sm:$0xff] %vm2108_vm10, %v2025_v10 }
 0x230   : > { %v2023_v26 = vpop.permute.xlu1 %2022 }
 0x231   : > { %2114 = vst.msk [vmem:[#allocation3 + $0x28] sm:$0xff] %vm2108_vm10, %v2023_v26  ;;  %v2029_v27 = vpop.permute.xlu0 %2028 }
 0x232   : > { %2267 = vrot.lane.b32.xlu1 %v2172_v16, %s18387_s23  ;;  %2117 = vst.msk [vmem:[#allocation3 + $0x40] sm:$0xff] %vm2108_vm10, %v2029_v27 }
 0x234   : > { %v2027_v49 = vpop.permute.xlu1 %2026 }
 0x235   : > { %2116 = vst.msk [vmem:[#allocation3 + $0x38] sm:$0xff] %vm2108_vm10, %v2027_v49  ;;  %v2033_v1 = vpop.permute.xlu0 %2032 }
 0x236   : > { %2119 = vst.msk [vmem:[#allocation3 + $0x50] sm:$0xff] %vm2108_vm10, %v2033_v1 }
 0x238   : > { %v2031_v12 = vpop.permute.xlu1 %2030 }
 0x239   : > { %2118 = vst.msk [vmem:[#allocation3 + $0x48] sm:$0xff] %vm2108_vm10, %v2031_v12  ;;  %v2037_v31 = vpop.permute.xlu0 %2036 }
 0x23a   : > { %2121 = vst.msk [vmem:[#allocation3 + $0x60] sm:$0xff] %vm2108_vm10, %v2037_v31 }
 0x23c   : > { %v2035_v25 = vpop.permute.xlu1 %2034 }
 0x23d   : > { %2120 = vst.msk [vmem:[#allocation3 + $0x58] sm:$0xff] %vm2108_vm10, %v2035_v25  ;;  %v2041_v46 = vpop.permute.xlu0 %2040 }
 0x23e   : > { %2123 = vst.msk [vmem:[#allocation3 + $0x70] sm:$0xff] %vm2108_vm10, %v2041_v46 }
 0x240   : > { %v2039_v5 = vpop.permute.xlu1 %2038 }
 0x241   : > { %2122 = vst.msk [vmem:[#allocation3 + $0x68] sm:$0xff] %vm2108_vm10, %v2039_v5  ;;  %v2045_v30 = vpop.permute.xlu0 %2044 }
 0x242   : > { %2125 = vst.msk [vmem:[#allocation3 + $0x80] sm:$0xff] %vm2108_vm10, %v2045_v30 }
 0x244   : > { %v2043_v6 = vpop.permute.xlu1 %2042 }
 0x245   : > { %2124 = vst.msk [vmem:[#allocation3 + $0x78] sm:$0xff] %vm2108_vm10, %v2043_v6  ;;  %v2049_v32 = vpop.permute.xlu0 %2048 }
 0x246   : > { %2127 = vst.msk [vmem:[#allocation3 + $0x90] sm:$0xff] %vm2108_vm10, %v2049_v32 }
 0x248   : > { %v2047_v4 = vpop.permute.xlu1 %2046 }
 0x249   : > { %2126 = vst.msk [vmem:[#allocation3 + $0x88] sm:$0xff] %vm2108_vm10, %v2047_v4  ;;  %v2053_v39 = vpop.permute.xlu0 %2052 }
 0x24a   : > { %2129 = vst.msk [vmem:[#allocation3 + $0xa0] sm:$0xff] %vm2108_vm10, %v2053_v39 }
 0x24c   : > { %v2051_v9 = vpop.permute.xlu1 %2050 }
 0x24d   : > { %2128 = vst.msk [vmem:[#allocation3 + $0x98] sm:$0xff] %vm2108_vm10, %v2051_v9  ;;  %v2057_v51 = vpop.permute.xlu0 %2056 }
 0x24e   : > { %2131 = vst.msk [vmem:[#allocation3 + $0xb0] sm:$0xff] %vm2108_vm10, %v2057_v51 }
 0x250   : > { %v2055_v40 = vpop.permute.xlu1 %2054 }
 0x251   : > { %2130 = vst.msk [vmem:[#allocation3 + $0xa8] sm:$0xff] %vm2108_vm10, %v2055_v40  ;;  %v2061_v54 = vpop.permute.xlu0 %2060 }
 0x252   : > { %2133 = vst.msk [vmem:[#allocation3 + $0xc0] sm:$0xff] %vm2108_vm10, %v2061_v54 }
 0x254   : > { %v2059_v52 = vpop.permute.xlu1 %2058 }
 0x255   : > { %2132 = vst.msk [vmem:[#allocation3 + $0xb8] sm:$0xff] %vm2108_vm10, %v2059_v52  ;;  %v2065_v57 = vpop.permute.xlu0 %2064 }
 0x256   : > { %2135 = vst.msk [vmem:[#allocation3 + $0xd0] sm:$0xff] %vm2108_vm10, %v2065_v57 }
 0x258   : > { %v2063_v55 = vpop.permute.xlu1 %2062 }
 0x259   : > { %2134 = vst.msk [vmem:[#allocation3 + $0xc8] sm:$0xff] %vm2108_vm10, %v2063_v55  ;;  %v2069_v59 = vpop.permute.xlu0 %2068 }
 0x25a   : > { %2137 = vst.msk [vmem:[#allocation3 + $0xe0] sm:$0xff] %vm2108_vm10, %v2069_v59 }
 0x25c   : > { %v2067_v58 = vpop.permute.xlu1 %2066 }
 0x25d   : > { %2136 = vst.msk [vmem:[#allocation3 + $0xd8] sm:$0xff] %vm2108_vm10, %v2067_v58  ;;  %v2073_v61 = vpop.permute.xlu0 %2072 }
 0x25e   : > { %2139 = vst.msk [vmem:[#allocation3 + $0xf0] sm:$0xff] %vm2108_vm10, %v2073_v61 }
 0x260   : > { %v2071_v60 = vpop.permute.xlu1 %2070 }
 0x261   : > { %2138 = vst.msk [vmem:[#allocation3 + $0xe8] sm:$0xff] %vm2108_vm10, %v2071_v60  ;;  %v2206_v0 = vpop.permute.xlu0 %2205 }
 0x262   : > { %2302 = vst.msk [vmem:[#allocation3] sm:$0xff] %vm2301_vm11, %v2206_v0 }
 0x264   : > { %v2075_v62 = vpop.permute.xlu1 %2074 }
 0x265   : > { %2140 = vst.msk [vmem:[#allocation3 + $0xf8] sm:$0xff] %vm2108_vm10, %v2075_v62  ;;  %v2210_v8 = vpop.permute.xlu0 %2209 }
 0x266   : > { %2304 = vst.msk [vmem:[#allocation3 + $0x10] sm:$0xff] %vm2301_vm11, %v2210_v8 }
 0x268   : > { %v2208_v7 = vpop.permute.xlu1 %2207 }
 0x269   : > { %2303 = vst.msk [vmem:[#allocation3 + $0x8] sm:$0xff] %vm2301_vm11, %v2208_v7  ;;  %v2214_v48 = vpop.permute.xlu0 %2213  ;;  %v14105_v45 = vld [vmem:[#allocation3] sm:$0xff] }
 0x26a   : > { %2306 = vst.msk [vmem:[#allocation3 + $0x20] sm:$0xff] %vm2301_vm11, %v2214_v48  ;;  %11717 = vmatprep.mubr.msk.f32.mxu0 %vm2372_vm12, %v14105_v45  ;;  %11891 = vmatprep.mubr.msk.f32.mxu1 %vm2372_vm12, %v14105_v45 }
 0x26c   : > { %v2212_v38 = vpop.permute.xlu1 %2211 }
 0x26d   : > { %2305 = vst.msk [vmem:[#allocation3 + $0x18] sm:$0xff] %vm2301_vm11, %v2212_v38  ;;  %v2218_v35 = vpop.permute.xlu0 %2217  ;;  %v14120_v28 = vld [vmem:[#allocation3 + $0x10] sm:$0xff] }
 0x26e   : > { %2308 = vst.msk [vmem:[#allocation3 + $0x30] sm:$0xff] %vm2301_vm11, %v2218_v35  ;;  %v3011_v35 = vld [vmem:[%s18251_s10 + $0x10] sm:$0xff] }
 0x270   : > { %v2216_v33 = vpop.permute.xlu1 %2215  ;;  %v14122_v21 = vld [vmem:[#allocation3 + $0x8] sm:$0xff] }
 0x271   : > { %2307 = vst.msk [vmem:[#allocation3 + $0x28] sm:$0xff] %vm2301_vm11, %v2216_v33  ;;  %11718 = vmatmul.mubr.msk.f32.vlgmr.msra.gmra.mrb[0].mxu0 %vm2372_vm12, %v14122_v21  ;;  %11892 = vmatmul.mubr.msk.f32.vlgmr.msra.gmra.mrb[0].mxu1 %vm2372_vm12, %v14122_v21  ;;  %v2222_v17 = vpop.permute.xlu0 %2221  ;;  %v14134_v22 = vld [vmem:[#allocation3 + $0x20] sm:$0xff]  ;;  %v3012_v33 = vld [vmem:[%s18251_s10 + $0x18] sm:$0xff] }
 0x272   : > { %11720 = vmatprep.mubr.msk.f32.mxu0 %vm2372_vm12, %v14120_v28  ;;  %11894 = vmatprep.mubr.msk.f32.mxu1 %vm2372_vm12, %v14120_v28  ;;  %2310 = vst.msk [vmem:[#allocation3 + $0x40] sm:$0xff] %vm2301_vm11, %v2222_v17  ;;  %v3013_v17 = vld [vmem:[%s18251_s10 + $0x20] sm:$0xf] }
 0x273   : > { %12346 = vmatpush3.bf16.msra.mxu0 %v14060_v63 }
 0x274   : > { %v2220_v41 = vpop.permute.xlu1 %2219  ;;  %v14137_v13 = vld [vmem:[#allocation3 + $0x18] sm:$0xff]  ;;  %12348 = vmatprep.subr.bf16.mxu0 %v12347_v29 }
 0x275   : > { %2309 = vst.msk [vmem:[#allocation3 + $0x38] sm:$0xff] %vm2301_vm11, %v2220_v41  ;;  %11721 = vmatmul.mubr.msk.f32.gmra.mrb[2].mxu0 %vm2372_vm12, %v14137_v13  ;;  %11895 = vmatmul.mubr.msk.f32.gmra.mrb[2].mxu1 %vm2372_vm12, %v14137_v13  ;;  %v2226_v43 = vpop.permute.xlu0 %2225  ;;  %v14158_v14 = vld [vmem:[#allocation3 + $0x30] sm:$0xff]  ;;  %v3752_v41 = vld [vmem:[#allocation2 + $0x9] sm:$0xff] }
 0x276   : > { %11723 = vmatprep.mubr.msk.f32.mxu0 %vm2372_vm12, %v14134_v22  ;;  %11897 = vmatprep.mubr.msk.f32.mxu1 %vm2372_vm12, %v14134_v22  ;;  %2312 = vst.msk [vmem:[#allocation3 + $0x50] sm:$0xff] %vm2301_vm11, %v2226_v43 }
 0x277   : > { %12350 = vmatpush3.bf16.msra.mxu0 %v12347_v29  ;;  %v12355_v29 = vpack.c.bf16 %v3012_v33, %v3011_v35  ;;  %3817 = vrot.lane.b32.xlu1 %v3752_v41, %s12782_s25 }
 0x278   : > { %v2224_v44 = vpop.permute.xlu1 %2223  ;;  %v14160_v47 = vld [vmem:[#allocation3 + $0x28] sm:$0xff]  ;;  %11773 = vmatprep.subr.msk.mxu0 %vm2469_vm9, %v2741_v18 }
 0x279   : > { %2311 = vst.msk [vmem:[#allocation3 + $0x48] sm:$0xff] %vm2301_vm11, %v2224_v44  ;;  %11724 = vmatmul.mubr.msk.f32.gmra.mrb[4].mxu0 %vm2372_vm12, %v14160_v47  ;;  %11898 = vmatmul.mubr.msk.f32.gmra.mrb[4].mxu1 %vm2372_vm12, %v14160_v47  ;;  %v2230_v3 = vpop.permute.xlu0 %2229  ;;  %v14175_v53 = vld [vmem:[#allocation3 + $0x40] sm:$0xff] }
 0x27a   : > { %11726 = vmatprep.mubr.msk.f32.mxu0 %vm2372_vm12, %v14158_v14  ;;  %11900 = vmatprep.mubr.msk.f32.mxu1 %vm2372_vm12, %v14158_v14  ;;  %2314 = vst.msk [vmem:[#allocation3 + $0x60] sm:$0xff] %vm2301_vm11, %v2230_v3 }
 0x27b   : > { %11774 = vmatpush3.msk.msra.mxu0 %vm2469_vm9, %v2741_v18  ;;  %v3751_v18 = vld [vmem:[#allocation2 + $0x1] sm:$0xff] }
 0x27c   : > { %v2228_v11 = vpop.permute.xlu1 %2227  ;;  %v14178_v56 = vld [vmem:[#allocation3 + $0x38] sm:$0xff]  ;;  %12352 = vmatprep.subr.bf16.mxu0 %v14163_v50  ;;  %3815 = vrot.lane.b32.xlu0 %v3751_v18, %s12782_s25 }
 0x27d   : > { %2313 = vst.msk [vmem:[#allocation3 + $0x58] sm:$0xff] %vm2301_vm11, %v2228_v11  ;;  %11727 = vmatmul.mubr.msk.f32.gmra.mrb[6].mxu0 %vm2372_vm12, %v14178_v56  ;;  %11901 = vmatmul.mubr.msk.f32.gmra.mrb[6].mxu1 %vm2372_vm12, %v14178_v56  ;;  %v2234_v63 = vpop.permute.xlu0 %2233  ;;  %v14191_v34 = vld [vmem:[#allocation3 + $0x50] sm:$0xff] }
 0x27e   : > { %11729 = vmatprep.mubr.msk.f32.mxu0 %vm2372_vm12, %v14175_v53  ;;  %11903 = vmatprep.mubr.msk.f32.mxu1 %vm2372_vm12, %v14175_v53  ;;  %2316 = vst.msk [vmem:[#allocation3 + $0x70] sm:$0xff] %vm2301_vm11, %v2234_v63 }
 0x280   : > { %v2232_v23 = vpop.permute.xlu1 %2231  ;;  %v14193_v24 = vld [vmem:[#allocation3 + $0x48] sm:$0xff] }
 0x281   : > { %2315 = vst.msk [vmem:[#allocation3 + $0x68] sm:$0xff] %vm2301_vm11, %v2232_v23  ;;  %11730 = vmatmul.mubr.msk.f32.gmra.mrb[8].mxu0 %vm2372_vm12, %v14193_v24  ;;  %11904 = vmatmul.mubr.msk.f32.gmra.mrb[8].mxu1 %vm2372_vm12, %v14193_v24  ;;  %v2238_v19 = vpop.permute.xlu0 %2237  ;;  %v14205_v20 = vld [vmem:[#allocation3 + $0x60] sm:$0xff] }
 0x282   : > { %11732 = vmatprep.mubr.msk.f32.mxu0 %vm2372_vm12, %v14191_v34  ;;  %11906 = vmatprep.mubr.msk.f32.mxu1 %vm2372_vm12, %v14191_v34  ;;  %2318 = vst.msk [vmem:[#allocation3 + $0x80] sm:$0xff] %vm2301_vm11, %v2238_v19 }
 0x284   : > { %v2236_v15 = vpop.permute.xlu1 %2235  ;;  %v14207_v10 = vld [vmem:[#allocation3 + $0x58] sm:$0xff] }
 0x285   : > { %2317 = vst.msk [vmem:[#allocation3 + $0x78] sm:$0xff] %vm2301_vm11, %v2236_v15  ;;  %11733 = vmatmul.mubr.msk.f32.gmra.mrb[10].mxu0 %vm2372_vm12, %v14207_v10  ;;  %11907 = vmatmul.mubr.msk.f32.gmra.mrb[10].mxu1 %vm2372_vm12, %v14207_v10  ;;  %v2242_v16 = vpop.permute.xlu0 %2241  ;;  %v14219_v26 = vld [vmem:[#allocation3 + $0x70] sm:$0xff] }
 0x286   : > { %11735 = vmatprep.mubr.msk.f32.mxu0 %vm2372_vm12, %v14205_v20  ;;  %11909 = vmatprep.mubr.msk.f32.mxu1 %vm2372_vm12, %v14205_v20  ;;  %2320 = vst.msk [vmem:[#allocation3 + $0x90] sm:$0xff] %vm2301_vm11, %v2242_v16 }
 0x288   : > { %v2240_v27 = vpop.permute.xlu1 %2239  ;;  %v14221_v49 = vld [vmem:[#allocation3 + $0x68] sm:$0xff] }
 0x289   : > { %2319 = vst.msk [vmem:[#allocation3 + $0x88] sm:$0xff] %vm2301_vm11, %v2240_v27  ;;  %11736 = vmatmul.mubr.msk.f32.gmra.mrb[12].mxu0 %vm2372_vm12, %v14221_v49  ;;  %11910 = vmatmul.mubr.msk.f32.gmra.mrb[12].mxu1 %vm2372_vm12, %v14221_v49  ;;  %v2246_v1 = vpop.permute.xlu0 %2245  ;;  %v14233_v12 = vld [vmem:[#allocation3 + $0x80] sm:$0xff] }
 0x28a   : > { %11738 = vmatprep.mubr.msk.f32.mxu0 %vm2372_vm12, %v14219_v26  ;;  %11912 = vmatprep.mubr.msk.f32.mxu1 %vm2372_vm12, %v14219_v26  ;;  %2322 = vst.msk [vmem:[#allocation3 + $0xa0] sm:$0xff] %vm2301_vm11, %v2246_v1 }
 0x28c   : > { %v2244_v31 = vpop.permute.xlu1 %2243  ;;  %v14235_v25 = vld [vmem:[#allocation3 + $0x78] sm:$0xff] }
 0x28d   : > { %2321 = vst.msk [vmem:[#allocation3 + $0x98] sm:$0xff] %vm2301_vm11, %v2244_v31  ;;  %11739 = vmatmul.mubr.msk.f32.gmra.mrb[14].mxu0 %vm2372_vm12, %v14235_v25  ;;  %11913 = vmatmul.mubr.msk.f32.gmra.mrb[14].mxu1 %vm2372_vm12, %v14235_v25  ;;  %v2250_v46 = vpop.permute.xlu0 %2249  ;;  %v14247_v5 = vld [vmem:[#allocation3 + $0x90] sm:$0xff] }
 0x28e   : > { %11741 = vmatprep.mubr.msk.f32.mxu0 %vm2372_vm12, %v14233_v12  ;;  %11915 = vmatprep.mubr.msk.f32.mxu1 %vm2372_vm12, %v14233_v12  ;;  %2324 = vst.msk [vmem:[#allocation3 + $0xb0] sm:$0xff] %vm2301_vm11, %v2250_v46 }
 0x290   : > { %v2248_v30 = vpop.permute.xlu1 %2247  ;;  %v14249_v6 = vld [vmem:[#allocation3 + $0x88] sm:$0xff] }
 0x291   : > { %2323 = vst.msk [vmem:[#allocation3 + $0xa8] sm:$0xff] %vm2301_vm11, %v2248_v30  ;;  %11742 = vmatmul.mubr.msk.f32.gmra.mrb[16].mxu0 %vm2372_vm12, %v14249_v6  ;;  %11916 = vmatmul.mubr.msk.f32.gmra.mrb[16].mxu1 %vm2372_vm12, %v14249_v6  ;;  %v2254_v32 = vpop.permute.xlu0 %2253  ;;  %v14261_v4 = vld [vmem:[#allocation3 + $0xa0] sm:$0xff] }
 0x292   : > { %11744 = vmatprep.mubr.msk.f32.mxu0 %vm2372_vm12, %v14247_v5  ;;  %11918 = vmatprep.mubr.msk.f32.mxu1 %vm2372_vm12, %v14247_v5  ;;  %2326 = vst.msk [vmem:[#allocation3 + $0xc0] sm:$0xff] %vm2301_vm11, %v2254_v32 }
 0x294   : > { %v2252_v39 = vpop.permute.xlu1 %2251  ;;  %v14263_v9 = vld [vmem:[#allocation3 + $0x98] sm:$0xff] }
 0x295   : > { %2325 = vst.msk [vmem:[#allocation3 + $0xb8] sm:$0xff] %vm2301_vm11, %v2252_v39  ;;  %11745 = vmatmul.mubr.msk.f32.gmra.mrb[18].mxu0 %vm2372_vm12, %v14263_v9  ;;  %11919 = vmatmul.mubr.msk.f32.gmra.mrb[18].mxu1 %vm2372_vm12, %v14263_v9  ;;  %v2258_v51 = vpop.permute.xlu0 %2257  ;;  %v14275_v40 = vld [vmem:[#allocation3 + $0xb0] sm:$0xff] }
 0x296   : > { %11747 = vmatprep.mubr.msk.f32.mxu0 %vm2372_vm12, %v14261_v4  ;;  %11921 = vmatprep.mubr.msk.f32.mxu1 %vm2372_vm12, %v14261_v4  ;;  %2328 = vst.msk [vmem:[#allocation3 + $0xd0] sm:$0xff] %vm2301_vm11, %v2258_v51 }
 0x298   : > { %v2256_v54 = vpop.permute.xlu1 %2255  ;;  %v14277_v52 = vld [vmem:[#allocation3 + $0xa8] sm:$0xff] }
 0x299   : > { %2327 = vst.msk [vmem:[#allocation3 + $0xc8] sm:$0xff] %vm2301_vm11, %v2256_v54  ;;  %11748 = vmatmul.mubr.msk.f32.gmra.mrb[20].mxu0 %vm2372_vm12, %v14277_v52  ;;  %11922 = vmatmul.mubr.msk.f32.gmra.mrb[20].mxu1 %vm2372_vm12, %v14277_v52  ;;  %v2262_v57 = vpop.permute.xlu0 %2261  ;;  %v14289_v55 = vld [vmem:[#allocation3 + $0xc0] sm:$0xff] }
 0x29a   : > { %11750 = vmatprep.mubr.msk.f32.mxu0 %vm2372_vm12, %v14275_v40  ;;  %11924 = vmatprep.mubr.msk.f32.mxu1 %vm2372_vm12, %v14275_v40  ;;  %2330 = vst.msk [vmem:[#allocation3 + $0xe0] sm:$0xff] %vm2301_vm11, %v2262_v57 }
 0x29c   : > { %v2260_v59 = vpop.permute.xlu1 %2259  ;;  %v14291_v58 = vld [vmem:[#allocation3 + $0xb8] sm:$0xff] }
 0x29d   : > { %2329 = vst.msk [vmem:[#allocation3 + $0xd8] sm:$0xff] %vm2301_vm11, %v2260_v59  ;;  %11751 = vmatmul.mubr.msk.f32.gmra.mrb[22].mxu0 %vm2372_vm12, %v14291_v58  ;;  %11925 = vmatmul.mubr.msk.f32.gmra.mrb[22].mxu1 %vm2372_vm12, %v14291_v58  ;;  %v2266_v61 = vpop.permute.xlu0 %2265  ;;  %v14303_v60 = vld [vmem:[#allocation3 + $0xd0] sm:$0xff] }
 0x29e   : > { %11753 = vmatprep.mubr.msk.f32.mxu0 %vm2372_vm12, %v14289_v55  ;;  %11927 = vmatprep.mubr.msk.f32.mxu1 %vm2372_vm12, %v14289_v55  ;;  %2332 = vst.msk [vmem:[#allocation3 + $0xf0] sm:$0xff] %vm2301_vm11, %v2266_v61 }
 0x2a0   : > { %v2264_v0 = vpop.permute.xlu1 %2263  ;;  %v14305_v62 = vld [vmem:[#allocation3 + $0xc8] sm:$0xff] }
 0x2a1   : > { %2331 = vst.msk [vmem:[#allocation3 + $0xe8] sm:$0xff] %vm2301_vm11, %v2264_v0  ;;  %11754 = vmatmul.mubr.msk.f32.gmra.mrb[24].mxu0 %vm2372_vm12, %v14305_v62  ;;  %11928 = vmatmul.mubr.msk.f32.gmra.mrb[24].mxu1 %vm2372_vm12, %v14305_v62  ;;  %v14316_v8 = vld [vmem:[#allocation3 + $0xe0] sm:$0xff] }
 0x2a2   : > { %11756 = vmatprep.mubr.msk.f32.mxu0 %vm2372_vm12, %v14303_v60  ;;  %11930 = vmatprep.mubr.msk.f32.mxu1 %vm2372_vm12, %v14303_v60 }
 0x2a4   : > { %v2268_v7 = vpop.permute.xlu1 %2267  ;;  %v14318_v48 = vld [vmem:[#allocation3 + $0xd8] sm:$0xff] }
 0x2a5   : > { %2333 = vst.msk [vmem:[#allocation3 + $0xf8] sm:$0xff] %vm2301_vm11, %v2268_v7  ;;  %11757 = vmatmul.mubr.msk.f32.gmra.mrb[26].mxu0 %vm2372_vm12, %v14318_v48  ;;  %11931 = vmatmul.mubr.msk.f32.gmra.mrb[26].mxu1 %vm2372_vm12, %v14318_v48  ;;  %v14329_v38 = vld [vmem:[#allocation3 + $0xf0] sm:$0xff] }
 0x2a6   : > { %11759 = vmatprep.mubr.msk.f32.mxu0 %vm2372_vm12, %v14316_v8  ;;  %11933 = vmatprep.mubr.msk.f32.mxu1 %vm2372_vm12, %v14316_v8 }
 0x2a8   : > { %v14331_v37 = vld [vmem:[#allocation3 + $0xe8] sm:$0xff] }
 0x2a9   : > { %11760 = vmatmul.mubr.msk.f32.gmra.mrb[28].mxu0 %vm2372_vm12, %v14331_v37  ;;  %11934 = vmatmul.mubr.msk.f32.gmra.mrb[28].mxu1 %vm2372_vm12, %v14331_v37 }
 0x2aa   : > { %11762 = vmatprep.mubr.msk.f32.mxu0 %vm2372_vm12, %v14329_v38  ;;  %11936 = vmatprep.mubr.msk.f32.mxu1 %vm2372_vm12, %v14329_v38 }
 0x2ac   : > { %v14341_v36 = vld [vmem:[#allocation3 + $0xf8] sm:$0xff] }
 0x2ad   : > { %11763 = vmatmul.mubr.msk.f32.gmra.mrb[30].mxu0 %vm2372_vm12, %v14341_v36  ;;  %11937 = vmatmul.mubr.msk.f32.gmra.mrb[30].mxu1 %vm2372_vm12, %v14341_v36 }
 0x2ae   : > { %11775 = vmatprep.mubr.msk.f32.mxu0 %vm2372_vm12, %v14105_v45 }
 0x2b1   : > { %11776 = vmatmul.mubr.msk.f32.vlgmr.msra.gmra.mrb[32].mxu0 %vm2372_vm12, %v14122_v21 }
 0x2b2   : > { %11778 = vmatprep.mubr.msk.f32.mxu0 %vm2372_vm12, %v14120_v28  ;;  %12354 = vmatpush3.bf16.msra.mxu0 %v14163_v50 }
 0x2b3   : > { %12356 = vmatprep.subr.bf16.mxu0 %v12355_v29 }
 0x2b5   : > { %11779 = vmatmul.mubr.msk.f32.gmra.mrb[34].mxu0 %vm2372_vm12, %v14137_v13 }
 0x2b6   : > { %11781 = vmatprep.mubr.msk.f32.mxu0 %vm2372_vm12, %v14134_v22  ;;  %12358 = vmatpush3.bf16.msra.mxu0 %v12355_v29 }
 0x2b7   : > { %11831 = vmatprep.subr.msk.mxu0 %vm2469_vm9, %v3013_v17 }
 0x2b9   : > { %11782 = vmatmul.mubr.msk.f32.gmra.mrb[36].mxu0 %vm2372_vm12, %v14160_v47 }
 0x2ba   : > { %11784 = vmatprep.mubr.msk.f32.mxu0 %vm2372_vm12, %v14158_v14  ;;  %11832 = vmatpush3.msk.msra.mxu0 %vm2469_vm9, %v3013_v17 }
 0x2bd   : > { %11785 = vmatmul.mubr.msk.f32.gmra.mrb[38].mxu0 %vm2372_vm12, %v14178_v56 }
 0x2be   : > { %11787 = vmatprep.mubr.msk.f32.mxu0 %vm2372_vm12, %v14175_v53 }
 0x2c1   : > { %11788 = vmatmul.mubr.msk.f32.gmra.mrb[40].mxu0 %vm2372_vm12, %v14193_v24 }
 0x2c2   : > { %11790 = vmatprep.mubr.msk.f32.mxu0 %vm2372_vm12, %v14191_v34 }
 0x2c5   : > { %11791 = vmatmul.mubr.msk.f32.gmra.mrb[42].mxu0 %vm2372_vm12, %v14207_v10 }
 0x2c6   : > { %11793 = vmatprep.mubr.msk.f32.mxu0 %vm2372_vm12, %v14205_v20 }
 0x2c9   : > { %11794 = vmatmul.mubr.msk.f32.gmra.mrb[44].mxu0 %vm2372_vm12, %v14221_v49 }
 0x2ca   : > { %11796 = vmatprep.mubr.msk.f32.mxu0 %vm2372_vm12, %v14219_v26 }
 0x2cd   : > { %11797 = vmatmul.mubr.msk.f32.gmra.mrb[46].mxu0 %vm2372_vm12, %v14235_v25 }
 0x2ce   : > { %11799 = vmatprep.mubr.msk.f32.mxu0 %vm2372_vm12, %v14233_v12 }
 0x2d1   : > { %11800 = vmatmul.mubr.msk.f32.gmra.mrb[48].mxu0 %vm2372_vm12, %v14249_v6 }
 0x2d2   : > { %11802 = vmatprep.mubr.msk.f32.mxu0 %vm2372_vm12, %v14247_v5 }
 0x2d5   : > { %11803 = vmatmul.mubr.msk.f32.gmra.mrb[50].mxu0 %vm2372_vm12, %v14263_v9 }
 0x2d6   : > { %11805 = vmatprep.mubr.msk.f32.mxu0 %vm2372_vm12, %v14261_v4 }
 0x2d9   : > { %11806 = vmatmul.mubr.msk.f32.gmra.mrb[52].mxu0 %vm2372_vm12, %v14277_v52 }
 0x2da   : > { %11808 = vmatprep.mubr.msk.f32.mxu0 %vm2372_vm12, %v14275_v40 }
 0x2dd   : > { %11809 = vmatmul.mubr.msk.f32.gmra.mrb[54].mxu0 %vm2372_vm12, %v14291_v58 }
 0x2de   : > { %11811 = vmatprep.mubr.msk.f32.mxu0 %vm2372_vm12, %v14289_v55 }
 0x2e1   : > { %11812 = vmatmul.mubr.msk.f32.gmra.mrb[56].mxu0 %vm2372_vm12, %v14305_v62 }
 0x2e2   : > { %11814 = vmatprep.mubr.msk.f32.mxu0 %vm2372_vm12, %v14303_v60 }
 0x2e5   : > { %11815 = vmatmul.mubr.msk.f32.gmra.mrb[58].mxu0 %vm2372_vm12, %v14318_v48 }
 0x2e6   : > { %11817 = vmatprep.mubr.msk.f32.mxu0 %vm2372_vm12, %v14316_v8 }
 0x2e9   : > { %11818 = vmatmul.mubr.msk.f32.gmra.mrb[60].mxu0 %vm2372_vm12, %v14331_v37 }
 0x2ea   : > { %11820 = vmatprep.mubr.msk.f32.mxu0 %vm2372_vm12, %v14329_v38 }
 0x2ed   : > { %11821 = vmatmul.mubr.msk.f32.gmra.mrb[62].mxu0 %vm2372_vm12, %v14341_v36 }
 0x2ee   : > { %11833 = vmatprep.mubr.msk.f32.mxu0 %vm2372_vm12, %v14105_v45  ;;  %v3688_v45 = vld [vmem:[#allocation2 + $0x8] sm:$0xff] }
 0x2ef   : > { %3720 = vst.msk [vmem:[#allocation3 + $0x8] sm:$0xff] %vm603_vm0, %v3688_v45 }
 0x2f1   : > { %11834 = vmatmul.mubr.msk.f32.vlgmr.msra.gmra.mrb[64].mxu0 %vm2372_vm12, %v14122_v21  ;;  %v3818_v21 = vpop.permute.xlu1 %3817 }
 0x2f2   : > { %11836 = vmatprep.mubr.msk.f32.mxu0 %vm2372_vm12, %v14120_v28  ;;  %v3687_v28 = vld [vmem:[#allocation2] sm:$0xff]  ;;  %3913 = vst.msk [vmem:[#allocation3 + $0x8] sm:$0xff] %vm3911_vm13, %v3818_v21 }
 0x2f3   : > { %3719 = vst.msk [vmem:[#allocation3] sm:$0xff] %vm603_vm0, %v3687_v28 }
 0x2f5   : > { %11837 = vmatmul.mubr.msk.f32.gmra.mrb[66].mxu0 %vm2372_vm12, %v14137_v13  ;;  %v14495_v13 = vld [vmem:[%s18494_s2] ss:$0 sm:$0xff] }
 0x2f6   : > { %11839 = vmatprep.mubr.msk.f32.mxu0 %vm2372_vm12, %v14134_v22  ;;  %v3816_v22 = vpop.permute.xlu0 %3815 }
 0x2f7   : > { %3912 = vst.msk [vmem:[#allocation3] sm:$0xff] %vm3911_vm13, %v3816_v22 }
 0x2f9   : > { %11840 = vmatmul.mubr.msk.f32.gmra.mrb[68].mxu0 %vm2372_vm12, %v14160_v47 }
 0x2fa   : > { %11842 = vmatprep.mubr.msk.f32.mxu0 %vm2372_vm12, %v14158_v14 }
 0x2fd   : > { %11843 = vmatmul.mubr.msk.f32.gmra.mrb[70].mxu0 %vm2372_vm12, %v14178_v56 }
 0x2fe   : > { %11845 = vmatprep.mubr.msk.f32.mxu0 %vm2372_vm12, %v14175_v53 }
 0x301   : > { %11846 = vmatmul.mubr.msk.f32.gmra.mrb[72].mxu0 %vm2372_vm12, %v14193_v24 }
 0x302   : > { %11848 = vmatprep.mubr.msk.f32.mxu0 %vm2372_vm12, %v14191_v34 }
 0x305   : > { %11849 = vmatmul.mubr.msk.f32.gmra.mrb[74].mxu0 %vm2372_vm12, %v14207_v10 }
 0x306   : > { %11851 = vmatprep.mubr.msk.f32.mxu0 %vm2372_vm12, %v14205_v20 }
 0x309   : > { %11852 = vmatmul.mubr.msk.f32.gmra.mrb[76].mxu0 %vm2372_vm12, %v14221_v49 }
 0x30a   : > { %11854 = vmatprep.mubr.msk.f32.mxu0 %vm2372_vm12, %v14219_v26 }
 0x30d   : > { %11855 = vmatmul.mubr.msk.f32.gmra.mrb[78].mxu0 %vm2372_vm12, %v14235_v25 }
 0x30e   : > { %11857 = vmatprep.mubr.msk.f32.mxu0 %vm2372_vm12, %v14233_v12 }
 0x311   : > { %11858 = vmatmul.mubr.msk.f32.gmra.mrb[80].mxu0 %vm2372_vm12, %v14249_v6 }
 0x312   : > { %11860 = vmatprep.mubr.msk.f32.mxu0 %vm2372_vm12, %v14247_v5 }
 0x315   : > { %11861 = vmatmul.mubr.msk.f32.gmra.mrb[82].mxu0 %vm2372_vm12, %v14263_v9 }
 0x316   : > { %11863 = vmatprep.mubr.msk.f32.mxu0 %vm2372_vm12, %v14261_v4 }
 0x319   : > { %11864 = vmatmul.mubr.msk.f32.gmra.mrb[84].mxu0 %vm2372_vm12, %v14277_v52 }
 0x31a   : > { %11866 = vmatprep.mubr.msk.f32.mxu0 %vm2372_vm12, %v14275_v40 }
 0x31d   : > { %11867 = vmatmul.mubr.msk.f32.gmra.mrb[86].mxu0 %vm2372_vm12, %v14291_v58 }
 0x31e   : > { %11869 = vmatprep.mubr.msk.f32.mxu0 %vm2372_vm12, %v14289_v55 }
 0x321   : > { %11870 = vmatmul.mubr.msk.f32.gmra.mrb[88].mxu0 %vm2372_vm12, %v14305_v62 }
 0x322   : > { %11872 = vmatprep.mubr.msk.f32.mxu0 %vm2372_vm12, %v14303_v60 }
 0x325   : > { %11873 = vmatmul.mubr.msk.f32.gmra.mrb[90].mxu0 %vm2372_vm12, %v14318_v48 }
 0x326   : > { %11875 = vmatprep.mubr.msk.f32.mxu0 %vm2372_vm12, %v14316_v8 }
 0x329   : > { %11876 = vmatmul.mubr.msk.f32.gmra.mrb[92].mxu0 %vm2372_vm12, %v14331_v37 }
 0x32a   : > { %11878 = vmatprep.mubr.msk.f32.mxu0 %vm2372_vm12, %v14329_v38 }
 0x32d   : > { %11879 = vmatmul.mubr.msk.f32.gmra.mrb[94].mxu0 %vm2372_vm12, %v14341_v36 }
 0x344   : > { %v11719_v42 = vpop.f32.mrb[0].mxu0 }
 0x345   : > { %v2705_v43 = vadd.f32 %v11719_v42, %v14495_v13  ;;  %v2539_v14 = vpop.f32.mrb[1].mxu0 }
 0x346   : > { %v2704_v44 = vadd.f32 %v14495_v13, %v2539_v14 }
 0x347   : > { %vm3553_vm14 = vcmp.ge.f32.partialorder %v2705_v43, 0.0  ;;  %v3592_v47 = vmul.f32 %v14501_v2, %v2705_v43 }
 0x348   : > { %vm3552_vm15 = vcmp.ge.f32.partialorder %v2704_v44, 0.0  ;;  %v3591_v50 = vmul.f32 %v14501_v2, %v2704_v44  ;;  %v11722_v3 = vpop.f32.mrb[2].mxu0 }
 0x349   : > { %v3624_v53 = vsel %vm3553_vm14, %v2705_v43, %v3592_v47  ;;  %v2707_v11 = vadd.f32 %v11722_v3, %v14495_v13  ;;  %v2549_v56 = vpop.f32.mrb[3].mxu0 }
 0x34a   : > { %3656 = vst.msk [vmem:[#allocation2 + $0x21] sm:$0xff] %vm603_vm0, %v3624_v53  ;;  %v3623_v63 = vsel %vm3552_vm15, %v2704_v44, %v3591_v50  ;;  %v2706_v34 = vadd.f32 %v14495_v13, %v2549_v56 }
 0x34b   : > { %3655 = vst.msk [vmem:[#allocation2 + $0x19] sm:$0xff] %vm603_vm0, %v3623_v63  ;;  %vm3555_vm1 = vcmp.ge.f32.partialorder %v2707_v11, 0.0  ;;  %v3594_v23 = vmul.f32 %v14501_v2, %v2707_v11 }
 0x34c   : > { %vm3554_vm3 = vcmp.ge.f32.partialorder %v2706_v34, 0.0  ;;  %v3593_v24 = vmul.f32 %v14501_v2, %v2706_v34  ;;  %v11725_v19 = vpop.f32.mrb[4].mxu0 }
 0x34d   : > { %v3626_v20 = vsel %vm3555_vm1, %v2707_v11, %v3594_v23  ;;  %v2709_v15 = vadd.f32 %v11725_v19, %v14495_v13  ;;  %v2559_v10 = vpop.f32.mrb[5].mxu0 }
 0x34e   : > { %3658 = vst.msk [vmem:[#allocation2 + $0x39] sm:$0xff] %vm603_vm0, %v3626_v20  ;;  %v3625_v16 = vsel %vm3554_vm3, %v2706_v34, %v3593_v24  ;;  %v2708_v26 = vadd.f32 %v14495_v13, %v2559_v10 }
 0x34f   : > { %3657 = vst.msk [vmem:[#allocation2 + $0x31] sm:$0xff] %vm603_vm0, %v3625_v16  ;;  %vm3557_vm4 = vcmp.ge.f32.partialorder %v2709_v15, 0.0  ;;  %v3596_v27 = vmul.f32 %v14501_v2, %v2709_v15 }
 0x350   : > { %vm3556_vm5 = vcmp.ge.f32.partialorder %v2708_v26, 0.0  ;;  %v3595_v49 = vmul.f32 %v14501_v2, %v2708_v26  ;;  %v11728_v1 = vpop.f32.mrb[6].mxu0 }
 0x351   : > { %v3628_v12 = vsel %vm3557_vm4, %v2709_v15, %v3596_v27  ;;  %v2711_v31 = vadd.f32 %v11728_v1, %v14495_v13  ;;  %v2569_v25 = vpop.f32.mrb[7].mxu0  ;;  %v3754_v46 = vld [vmem:[#allocation2 + $0x21] sm:$0xff] }
 0x352   : > { %3660 = vst.msk [vmem:[#allocation2 + $0x51] sm:$0xff] %vm603_vm0, %v3628_v12  ;;  %v3627_v5 = vsel %vm3556_vm5, %v2708_v26, %v3595_v49  ;;  %v2710_v30 = vadd.f32 %v14495_v13, %v2569_v25  ;;  %3821 = vrot.lane.b32.xlu1 %v3754_v46, %s12782_s25  ;;  %v3753_v6 = vld [vmem:[#allocation2 + $0x19] sm:$0xff] }
 0x353   : > { %v14523_v32 = vld [vmem:[#allocation2 + $0x20] sm:$0xff]  ;;  %3659 = vst.msk [vmem:[#allocation2 + $0x49] sm:$0xff] %vm603_vm0, %v3627_v5  ;;  %vm3559_vm6 = vcmp.ge.f32.partialorder %v2711_v31, 0.0  ;;  %v3598_v4 = vmul.f32 %v14501_v2, %v2711_v31  ;;  %3819 = vrot.lane.b32.xlu0 %v3753_v6, %s12782_s25  ;;  %v14530_v39 = vld [vmem:[#allocation2 + $0x18] sm:$0xff] }
 0x354   : > { %3722 = vst.msk [vmem:[#allocation3 + $0x18] sm:$0xff] %vm603_vm0, %v14523_v32  ;;  %vm3558_vm7 = vcmp.ge.f32.partialorder %v2710_v30, 0.0  ;;  %v3597_v9 = vmul.f32 %v14501_v2, %v2710_v30  ;;  %v11731_v51 = vpop.f32.mrb[8].mxu0  ;;  %3721 = vst.msk [vmem:[#allocation3 + $0x10] sm:$0xff] %vm603_vm0, %v14530_v39 }
 0x355   : > { %v3630_v40 = vsel %vm3559_vm6, %v2711_v31, %v3598_v4  ;;  %v2713_v54 = vadd.f32 %v11731_v51, %v14495_v13  ;;  %v2579_v52 = vpop.f32.mrb[9].mxu0  ;;  %v3756_v57 = vld [vmem:[#allocation2 + $0x39] sm:$0xff] }
 0x356   : > { %3662 = vst.msk [vmem:[#allocation2 + $0x69] sm:$0xff] %vm603_vm0, %v3630_v40  ;;  %v3629_v55 = vsel %vm3558_vm7, %v2710_v30, %v3597_v9  ;;  %v2712_v59 = vadd.f32 %v14495_v13, %v2579_v52  ;;  %3825 = vrot.lane.b32.xlu1 %v3756_v57, %s12782_s25  ;;  %v3755_v58 = vld [vmem:[#allocation2 + $0x31] sm:$0xff] }
 0x357   : > { %v14539_v61 = vld [vmem:[#allocation2 + $0x38] sm:$0xff]  ;;  %3661 = vst.msk [vmem:[#allocation2 + $0x61] sm:$0xff] %vm603_vm0, %v3629_v55  ;;  %vm3561_vm8 = vcmp.ge.f32.partialorder %v2713_v54, 0.0  ;;  %v3600_v60 = vmul.f32 %v14501_v2, %v2713_v54  ;;  %3823 = vrot.lane.b32.xlu0 %v3755_v58, %s12782_s25  ;;  %v14546_v0 = vld [vmem:[#allocation2 + $0x30] sm:$0xff] }
 0x358   : > { %3724 = vst.msk [vmem:[#allocation3 + $0x28] sm:$0xff] %vm603_vm0, %v14539_v61  ;;  %vm3560_vm9 = vcmp.ge.f32.partialorder %v2712_v59, 0.0  ;;  %v3599_v62 = vmul.f32 %v14501_v2, %v2712_v59  ;;  %v11734_v8 = vpop.f32.mrb[10].mxu0  ;;  %3723 = vst.msk [vmem:[#allocation3 + $0x20] sm:$0xff] %vm603_vm0, %v14546_v0 }
 0x359   : > { %v3632_v7 = vsel %vm3561_vm8, %v2713_v54, %v3600_v60  ;;  %v2715_v48 = vadd.f32 %v11734_v8, %v14495_v13  ;;  %v2589_v38 = vpop.f32.mrb[11].mxu0  ;;  %v3758_v37 = vld [vmem:[#allocation2 + $0x51] sm:$0xff] }
 0x35a   : > { %3664 = vst.msk [vmem:[#allocation2 + $0x81] sm:$0xff] %vm603_vm0, %v3632_v7  ;;  %v3631_v36 = vsel %vm3560_vm9, %v2712_v59, %v3599_v62  ;;  %v2714_v35 = vadd.f32 %v14495_v13, %v2589_v38  ;;  %3829 = vrot.lane.b32.xlu1 %v3758_v37, %s12782_s25  ;;  %v3757_v33 = vld [vmem:[#allocation2 + $0x49] sm:$0xff] }
 0x35b   : > { %v14555_v29 = vld [vmem:[#allocation2 + $0x50] sm:$0xff]  ;;  %3663 = vst.msk [vmem:[#allocation2 + $0x79] sm:$0xff] %vm603_vm0, %v3631_v36  ;;  %vm3563_vm10 = vcmp.ge.f32.partialorder %v2715_v48, 0.0  ;;  %v3602_v17 = vmul.f32 %v14501_v2, %v2715_v48  ;;  %3827 = vrot.lane.b32.xlu0 %v3757_v33, %s12782_s25  ;;  %v14562_v41 = vld [vmem:[#allocation2 + $0x48] sm:$0xff] }
 0x35c   : > { %3726 = vst.msk [vmem:[#allocation3 + $0x38] sm:$0xff] %vm603_vm0, %v14555_v29  ;;  %vm3562_vm11 = vcmp.ge.f32.partialorder %v2714_v35, 0.0  ;;  %v3601_v18 = vmul.f32 %v14501_v2, %v2714_v35  ;;  %v11737_v45 = vpop.f32.mrb[12].mxu0  ;;  %3725 = vst.msk [vmem:[#allocation3 + $0x30] sm:$0xff] %vm603_vm0, %v14562_v41 }
 0x35d   : > { %v3634_v28 = vsel %vm3563_vm10, %v2715_v48, %v3602_v17  ;;  %v2717_v21 = vadd.f32 %v11737_v45, %v14495_v13  ;;  %v2599_v22 = vpop.f32.mrb[13].mxu0  ;;  %v3760_v42 = vld [vmem:[#allocation2 + $0x69] sm:$0xff] }
 0x35e   : > { %3666 = vst.msk [vmem:[#allocation2 + $0x99] sm:$0xff] %vm603_vm0, %v3634_v28  ;;  %v3633_v43 = vsel %vm3562_vm11, %v2714_v35, %v3601_v18  ;;  %v2716_v14 = vadd.f32 %v14495_v13, %v2599_v22  ;;  %3833 = vrot.lane.b32.xlu1 %v3760_v42, %s12782_s25  ;;  %v3759_v44 = vld [vmem:[#allocation2 + $0x61] sm:$0xff] }
 0x35f   : > { %v14571_v47 = vld [vmem:[#allocation2 + $0x68] sm:$0xff]  ;;  %3665 = vst.msk [vmem:[#allocation2 + $0x91] sm:$0xff] %vm603_vm0, %v3633_v43  ;;  %vm3565_vm12 = vcmp.ge.f32.partialorder %v2717_v21, 0.0  ;;  %v3604_v50 = vmul.f32 %v14501_v2, %v2717_v21  ;;  %3831 = vrot.lane.b32.xlu0 %v3759_v44, %s12782_s25  ;;  %v14578_v3 = vld [vmem:[#allocation2 + $0x60] sm:$0xff] }
 0x360   : > { %3728 = vst.msk [vmem:[#allocation3 + $0x48] sm:$0xff] %vm603_vm0, %v14571_v47  ;;  %vm3564_vm14 = vcmp.ge.f32.partialorder %v2716_v14, 0.0  ;;  %v3603_v53 = vmul.f32 %v14501_v2, %v2716_v14  ;;  %v11740_v11 = vpop.f32.mrb[14].mxu0  ;;  %3727 = vst.msk [vmem:[#allocation3 + $0x40] sm:$0xff] %vm603_vm0, %v14578_v3 }
 0x361   : > { %v3636_v56 = vsel %vm3565_vm12, %v2717_v21, %v3604_v50  ;;  %v2719_v63 = vadd.f32 %v11740_v11, %v14495_v13  ;;  %v2609_v34 = vpop.f32.mrb[15].mxu0  ;;  %v14584_v23 = vld [vmem:[#allocation2 + $0x81] sm:$0xff] }
 0x362   : > { %3668 = vst.msk [vmem:[#allocation2 + $0xb1] sm:$0xff] %vm603_vm0, %v3636_v56  ;;  %v3635_v24 = vsel %vm3564_vm14, %v2716_v14, %v3603_v53  ;;  %v2718_v19 = vadd.f32 %v14495_v13, %v2609_v34  ;;  %3837 = vrot.lane.b32.xlu1 %v14584_v23, %s12782_s25  ;;  %v14590_v20 = vld [vmem:[#allocation2 + $0x79] sm:$0xff] }
 0x363   : > { %v14592_v15 = vld [vmem:[#allocation2 + $0x80] sm:$0xff]  ;;  %3667 = vst.msk [vmem:[#allocation2 + $0xa9] sm:$0xff] %vm603_vm0, %v3635_v24  ;;  %vm3567_vm15 = vcmp.ge.f32.partialorder %v2719_v63, 0.0  ;;  %v3606_v10 = vmul.f32 %v14501_v2, %v2719_v63  ;;  %3835 = vrot.lane.b32.xlu0 %v14590_v20, %s12782_s25  ;;  %v14600_v16 = vld [vmem:[#allocation2 + $0x78] sm:$0xff] }
 0x364   : > { %3730 = vst.msk [vmem:[#allocation3 + $0x58] sm:$0xff] %vm603_vm0, %v14592_v15  ;;  %vm3566_vm1 = vcmp.ge.f32.partialorder %v2718_v19, 0.0  ;;  %v3605_v26 = vmul.f32 %v14501_v2, %v2718_v19  ;;  %v11743_v27 = vpop.f32.mrb[16].mxu0  ;;  %3729 = vst.msk [vmem:[#allocation3 + $0x50] sm:$0xff] %vm603_vm0, %v14600_v16 }
 0x365   : > { %v3638_v49 = vsel %vm3567_vm15, %v2719_v63, %v3606_v10  ;;  %v2721_v1 = vadd.f32 %v11743_v27, %v14495_v13  ;;  %v2619_v12 = vpop.f32.mrb[17].mxu0  ;;  %v14606_v31 = vld [vmem:[#allocation2 + $0x99] sm:$0xff] }
 0x366   : > { %3670 = vst.msk [vmem:[#allocation2 + $0xc9] sm:$0xff] %vm603_vm0, %v3638_v49  ;;  %v3637_v25 = vsel %vm3566_vm1, %v2718_v19, %v3605_v26  ;;  %v2720_v46 = vadd.f32 %v14495_v13, %v2619_v12  ;;  %3841 = vrot.lane.b32.xlu1 %v14606_v31, %s12782_s25  ;;  %v14612_v5 = vld [vmem:[#allocation2 + $0x91] sm:$0xff] }
 0x367   : > { %v14614_v30 = vld [vmem:[#allocation2 + $0x98] sm:$0xff]  ;;  %3669 = vst.msk [vmem:[#allocation2 + $0xc1] sm:$0xff] %vm603_vm0, %v3637_v25  ;;  %vm3569_vm3 = vcmp.ge.f32.partialorder %v2721_v1, 0.0  ;;  %v3608_v6 = vmul.f32 %v14501_v2, %v2721_v1  ;;  %3839 = vrot.lane.b32.xlu0 %v14612_v5, %s12782_s25  ;;  %v14622_v4 = vld [vmem:[#allocation2 + $0x90] sm:$0xff] }
 0x368   : > { %3732 = vst.msk [vmem:[#allocation3 + $0x68] sm:$0xff] %vm603_vm0, %v14614_v30  ;;  %vm3568_vm4 = vcmp.ge.f32.partialorder %v2720_v46, 0.0  ;;  %v3607_v9 = vmul.f32 %v14501_v2, %v2720_v46  ;;  %v11746_v51 = vpop.f32.mrb[18].mxu0  ;;  %3731 = vst.msk [vmem:[#allocation3 + $0x60] sm:$0xff] %vm603_vm0, %v14622_v4 }
 0x369   : > { %v3640_v40 = vsel %vm3569_vm3, %v2721_v1, %v3608_v6  ;;  %v2723_v54 = vadd.f32 %v11746_v51, %v14495_v13  ;;  %v2629_v52 = vpop.f32.mrb[19].mxu0  ;;  %v14628_v57 = vld [vmem:[#allocation2 + $0xb1] sm:$0xff] }
 0x36a   : > { %3672 = vst.msk [vmem:[#allocation2 + $0xe1] sm:$0xff] %vm603_vm0, %v3640_v40  ;;  %v3639_v55 = vsel %vm3568_vm4, %v2720_v46, %v3607_v9  ;;  %v2722_v59 = vadd.f32 %v14495_v13, %v2629_v52  ;;  %3845 = vrot.lane.b32.xlu1 %v14628_v57, %s12782_s25  ;;  %v14634_v58 = vld [vmem:[#allocation2 + $0xa9] sm:$0xff] }
 0x36b   : > { %v14636_v60 = vld [vmem:[#allocation2 + $0xb0] sm:$0xff]  ;;  %3671 = vst.msk [vmem:[#allocation2 + $0xd9] sm:$0xff] %vm603_vm0, %v3639_v55  ;;  %vm3571_vm5 = vcmp.ge.f32.partialorder %v2723_v54, 0.0  ;;  %v3610_v62 = vmul.f32 %v14501_v2, %v2723_v54  ;;  %3843 = vrot.lane.b32.xlu0 %v14634_v58, %s12782_s25  ;;  %v14644_v8 = vld [vmem:[#allocation2 + $0xa8] sm:$0xff] }
 0x36c   : > { %3734 = vst.msk [vmem:[#allocation3 + $0x78] sm:$0xff] %vm603_vm0, %v14636_v60  ;;  %vm3570_vm6 = vcmp.ge.f32.partialorder %v2722_v59, 0.0  ;;  %v3609_v7 = vmul.f32 %v14501_v2, %v2722_v59  ;;  %v11749_v48 = vpop.f32.mrb[20].mxu0  ;;  %3733 = vst.msk [vmem:[#allocation3 + $0x70] sm:$0xff] %vm603_vm0, %v14644_v8 }
 0x36d   : > { %v3642_v38 = vsel %vm3571_vm5, %v2723_v54, %v3610_v62  ;;  %v2725_v37 = vadd.f32 %v11749_v48, %v14495_v13  ;;  %v2639_v36 = vpop.f32.mrb[21].mxu0  ;;  %v14650_v35 = vld [vmem:[#allocation2 + $0xc9] sm:$0xff] }
 0x36e   : > { %3674 = vst.msk [vmem:[#allocation2 + $0xf9] sm:$0xff] %vm603_vm0, %v3642_v38  ;;  %v3641_v33 = vsel %vm3570_vm6, %v2722_v59, %v3609_v7  ;;  %v2724_v17 = vadd.f32 %v14495_v13, %v2639_v36  ;;  %3849 = vrot.lane.b32.xlu1 %v14650_v35, %s12782_s25  ;;  %v14656_v18 = vld [vmem:[#allocation2 + $0xc1] sm:$0xff]  ;;  %vm4104_vm6 = vcmask 195712  }
 0x36f   : > { %v14658_v45 = vld [vmem:[#allocation2 + $0xc8] sm:$0xff]  ;;  %3673 = vst.msk [vmem:[#allocation2 + $0xf1] sm:$0xff] %vm603_vm0, %v3641_v33  ;;  %vm3573_vm7 = vcmp.ge.f32.partialorder %v2725_v37, 0.0  ;;  %v3612_v28 = vmul.f32 %v14501_v2, %v2725_v37  ;;  %3847 = vrot.lane.b32.xlu0 %v14656_v18, %s12782_s25  ;;  %v14666_v21 = vld [vmem:[#allocation2 + $0xc0] sm:$0xff] }
 0x370   : > { %3736 = vst.msk [vmem:[#allocation3 + $0x88] sm:$0xff] %vm603_vm0, %v14658_v45  ;;  %vm3572_vm8 = vcmp.ge.f32.partialorder %v2724_v17, 0.0  ;;  %v3611_v22 = vmul.f32 %v14501_v2, %v2724_v17  ;;  %v11752_v42 = vpop.f32.mrb[22].mxu0  ;;  %3735 = vst.msk [vmem:[#allocation3 + $0x80] sm:$0xff] %vm603_vm0, %v14666_v21 }
 0x371   : > { %v3644_v43 = vsel %vm3573_vm7, %v2725_v37, %v3612_v28  ;;  %v2727_v14 = vadd.f32 %v11752_v42, %v14495_v13  ;;  %v2649_v44 = vpop.f32.mrb[23].mxu0  ;;  %v14672_v50 = vld [vmem:[#allocation2 + $0xe1] sm:$0xff]  ;;  %vm4297_vm7 = vcmask 261312  }
 0x372   : > { %3676 = vst.msk [vmem:[#allocation2 + $0x111] sm:$0xff] %vm603_vm0, %v3644_v43  ;;  %v3643_v53 = vsel %vm3572_vm8, %v2724_v17, %v3611_v22  ;;  %v2726_v11 = vadd.f32 %v14495_v13, %v2649_v44  ;;  %3853 = vrot.lane.b32.xlu1 %v14672_v50, %s12782_s25  ;;  %v14678_v56 = vld [vmem:[#allocation2 + $0xd9] sm:$0xff]  ;;  %vm4490_vm8 = vcmask 326912  }
 0x373   : > { %v14680_v63 = vld [vmem:[#allocation2 + $0xe0] sm:$0xff]  ;;  %3675 = vst.msk [vmem:[#allocation2 + $0x109] sm:$0xff] %vm603_vm0, %v3643_v53  ;;  %vm3575_vm9 = vcmp.ge.f32.partialorder %v2727_v14, 0.0  ;;  %v3614_v34 = vmul.f32 %v14501_v2, %v2727_v14  ;;  %3851 = vrot.lane.b32.xlu0 %v14678_v56, %s12782_s25  ;;  %v14688_v24 = vld [vmem:[#allocation2 + $0xd8] sm:$0xff] }
 0x374   : > { %3738 = vst.msk [vmem:[#allocation3 + $0x98] sm:$0xff] %vm603_vm0, %v14680_v63  ;;  %vm3574_vm10 = vcmp.ge.f32.partialorder %v2726_v11, 0.0  ;;  %v3613_v19 = vmul.f32 %v14501_v2, %v2726_v11  ;;  %v11755_v10 = vpop.f32.mrb[24].mxu0  ;;  %3737 = vst.msk [vmem:[#allocation3 + $0x90] sm:$0xff] %vm603_vm0, %v14688_v24 }
 0x375   : > { %v3646_v26 = vsel %vm3575_vm9, %v2727_v14, %v3614_v34  ;;  %v2729_v27 = vadd.f32 %v11755_v10, %v14495_v13  ;;  %v2659_v49 = vpop.f32.mrb[25].mxu0  ;;  %v14694_v1 = vld [vmem:[#allocation2 + $0xf9] sm:$0xff]  ;;  %vm4683_vm9 = vcmask 392512  }
 0x376   : > { %3678 = vst.msk [vmem:[#allocation2 + $0x129] sm:$0xff] %vm603_vm0, %v3646_v26  ;;  %v3645_v12 = vsel %vm3574_vm10, %v2726_v11, %v3613_v19  ;;  %v2728_v25 = vadd.f32 %v14495_v13, %v2659_v49  ;;  %3857 = vrot.lane.b32.xlu1 %v14694_v1, %s12782_s25  ;;  %v14700_v46 = vld [vmem:[#allocation2 + $0xf1] sm:$0xff]  ;;  %vm4876_vm10 = vcmask 458112  }
 0x377   : > { %v14702_v6 = vld [vmem:[#allocation2 + $0xf8] sm:$0xff]  ;;  %3677 = vst.msk [vmem:[#allocation2 + $0x121] sm:$0xff] %vm603_vm0, %v3645_v12  ;;  %vm3577_vm11 = vcmp.ge.f32.partialorder %v2729_v27, 0.0  ;;  %v3616_v9 = vmul.f32 %v14501_v2, %v2729_v27  ;;  %3855 = vrot.lane.b32.xlu0 %v14700_v46, %s12782_s25  ;;  %v14710_v51 = vld [vmem:[#allocation2 + $0xf0] sm:$0xff] }
 0x378   : > { %3740 = vst.msk [vmem:[#allocation3 + $0xa8] sm:$0xff] %vm603_vm0, %v14702_v6  ;;  %vm3576_vm12 = vcmp.ge.f32.partialorder %v2728_v25, 0.0  ;;  %v3615_v40 = vmul.f32 %v14501_v2, %v2728_v25  ;;  %v11758_v54 = vpop.f32.mrb[26].mxu0  ;;  %3739 = vst.msk [vmem:[#allocation3 + $0xa0] sm:$0xff] %vm603_vm0, %v14710_v51 }
 0x379   : > { %v3648_v52 = vsel %vm3577_vm11, %v2729_v27, %v3616_v9  ;;  %v2731_v55 = vadd.f32 %v11758_v54, %v14495_v13  ;;  %v2669_v59 = vpop.f32.mrb[27].mxu0  ;;  %v14716_v62 = vld [vmem:[#allocation2 + $0x111] sm:$0xff]  ;;  %vm5069_vm11 = vcmask 523712  }
 0x37a   : > { %3680 = vst.msk [vmem:[#allocation2 + $0x141] sm:$0xff] %vm603_vm0, %v3648_v52  ;;  %v3647_v7 = vsel %vm3576_vm12, %v2728_v25, %v3615_v40  ;;  %v2730_v48 = vadd.f32 %v14495_v13, %v2669_v59  ;;  %3861 = vrot.lane.b32.xlu1 %v14716_v62, %s12782_s25  ;;  %v14722_v38 = vld [vmem:[#allocation2 + $0x109] sm:$0xff]  ;;  %vm5262_vm12 = vcmask 589312  }
 0x37b   : > { %v14724_v37 = vld [vmem:[#allocation2 + $0x110] sm:$0xff]  ;;  %3679 = vst.msk [vmem:[#allocation2 + $0x139] sm:$0xff] %vm603_vm0, %v3647_v7  ;;  %vm3579_vm14 = vcmp.ge.f32.partialorder %v2731_v55, 0.0  ;;  %v3618_v36 = vmul.f32 %v14501_v2, %v2731_v55  ;;  %3859 = vrot.lane.b32.xlu0 %v14722_v38, %s12782_s25  ;;  %v14732_v33 = vld [vmem:[#allocation2 + $0x108] sm:$0xff] }
 0x37c   : > { %3742 = vst.msk [vmem:[#allocation3 + $0xb8] sm:$0xff] %vm603_vm0, %v14724_v37  ;;  %vm3578_vm15 = vcmp.ge.f32.partialorder %v2730_v48, 0.0  ;;  %v3617_v17 = vmul.f32 %v14501_v2, %v2730_v48  ;;  %v11761_v28 = vpop.f32.mrb[28].mxu0  ;;  %3741 = vst.msk [vmem:[#allocation3 + $0xb0] sm:$0xff] %vm603_vm0, %v14732_v33 }
 0x37d   : > { %v3650_v22 = vsel %vm3579_vm14, %v2731_v55, %v3618_v36  ;;  %v2733_v42 = vadd.f32 %v11761_v28, %v14495_v13  ;;  %v2679_v43 = vpop.f32.mrb[29].mxu0  ;;  %v14738_v14 = vld [vmem:[#allocation2 + $0x129] sm:$0xff]  ;;  %vm5336_vm14 = vcmask 588800  }
 0x37e   : > { %3682 = vst.msk [vmem:[#allocation2 + $0x159] sm:$0xff] %vm603_vm0, %v3650_v22  ;;  %v3649_v44 = vsel %vm3578_vm15, %v2730_v48, %v3617_v17  ;;  %v2732_v53 = vadd.f32 %v14495_v13, %v2679_v43  ;;  %3865 = vrot.lane.b32.xlu1 %v14738_v14, %s12782_s25  ;;  %v14744_v11 = vld [vmem:[#allocation2 + $0x121] sm:$0xff] }
 0x37f   : > { %v14746_v34 = vld [vmem:[#allocation2 + $0x128] sm:$0xff]  ;;  %3681 = vst.msk [vmem:[#allocation2 + $0x151] sm:$0xff] %vm603_vm0, %v3649_v44  ;;  %vm3581_vm1 = vcmp.ge.f32.partialorder %v2733_v42, 0.0  ;;  %v3620_v19 = vmul.f32 %v14501_v2, %v2733_v42  ;;  %3863 = vrot.lane.b32.xlu0 %v14744_v11, %s12782_s25  ;;  %v14754_v10 = vld [vmem:[#allocation2 + $0x120] sm:$0xff] }
 0x380   : > { %3744 = vst.msk [vmem:[#allocation3 + $0xc8] sm:$0xff] %vm603_vm0, %v14746_v34  ;;  %vm3580_vm3 = vcmp.ge.f32.partialorder %v2732_v53, 0.0  ;;  %v3619_v26 = vmul.f32 %v14501_v2, %v2732_v53  ;;  %v11764_v27 = vpop.f32.mrb[30].mxu0  ;;  %3743 = vst.msk [vmem:[#allocation3 + $0xc0] sm:$0xff] %vm603_vm0, %v14754_v10 }
 0x381   : > { %v3652_v49 = vsel %vm3581_vm1, %v2733_v42, %v3620_v19  ;;  %v14759_v12 = vld [vmem:[#allocation2 + $0x141] sm:$0xff]  ;;  %v2735_v25 = vadd.f32 %v11764_v27, %v14495_v13  ;;  %v2689_v9 = vpop.f32.mrb[31].mxu0 }
 0x382   : > { %3684 = vst.msk [vmem:[#allocation2 + $0x171] sm:$0xff] %vm603_vm0, %v3652_v49  ;;  %v3651_v40 = vsel %vm3580_vm3, %v2732_v53, %v3619_v26  ;;  %3869 = vrot.lane.b32.xlu1 %v14759_v12, %s12782_s25  ;;  %v14765_v54 = vld [vmem:[#allocation2 + $0x139] sm:$0xff]  ;;  %v2734_v52 = vadd.f32 %v14495_v13, %v2689_v9  ;;  %v3945_v49 = vld [vmem:[#allocation2 + $0xa] sm:$0xff] }
 0x383   : > { %v14768_v55 = vld [vmem:[#allocation2 + $0x140] sm:$0xff]  ;;  %3683 = vst.msk [vmem:[#allocation2 + $0x169] sm:$0xff] %vm603_vm0, %v3651_v40  ;;  %vm3583_vm4 = vcmp.ge.f32.partialorder %v2735_v25, 0.0  ;;  %v3622_v59 = vmul.f32 %v14501_v2, %v2735_v25  ;;  %3867 = vrot.lane.b32.xlu0 %v14765_v54, %s12782_s25  ;;  %v14776_v7 = vld [vmem:[#allocation2 + $0x138] sm:$0xff] }
 0x384   : > { %3746 = vst.msk [vmem:[#allocation3 + $0xd8] sm:$0xff] %vm603_vm0, %v14768_v55  ;;  %vm3582_vm5 = vcmp.ge.f32.partialorder %v2734_v52, 0.0  ;;  %v3621_v48 = vmul.f32 %v14501_v2, %v2734_v52  ;;  %v14779_v36 = vpop.f32.mrb[32].mxu0  ;;  %3745 = vst.msk [vmem:[#allocation3 + $0xd0] sm:$0xff] %vm603_vm0, %v14776_v7  ;;  %v3944_v40 = vld [vmem:[#allocation2 + $0x2] sm:$0xff] }
 0x385   : > { %18496 = vst [vmem:[#allocation34_spill] sm:$0xff] %v14779_v36  ;;  %v3654_v13 = vsel %vm3583_vm4, %v2735_v25, %v3622_v59  ;;  %v14783_v17 = vpop.f32.mrb[33].mxu0  ;;  %v14785_v28 = vld [vmem:[#allocation2 + $0x159] sm:$0xff] }
 0x386   : > { %18497 = vst [vmem:[#allocation36_spill] sm:$0xff] %v14783_v17  ;;  %3686 = vst.msk [vmem:[#allocation2 + $0x189] sm:$0xff] %vm603_vm0, %v3654_v13  ;;  %v3653_v22 = vsel %vm3582_vm5, %v2734_v52, %v3621_v48  ;;  %3873 = vrot.lane.b32.xlu1 %v14785_v28, %s12782_s25  ;;  %v14790_v42 = vld [vmem:[#allocation2 + $0x151] sm:$0xff]  ;;  %v14833_v13 = vld [vmem:[#allocation2 + $0x22] sm:$0xff] }
 0x387   : > { %v14792_v43 = vld [vmem:[#allocation2 + $0x158] sm:$0xff]  ;;  %3685 = vst.msk [vmem:[#allocation2 + $0x181] sm:$0xff] %vm603_vm0, %v3653_v22  ;;  %3871 = vrot.lane.b32.xlu0 %v14790_v42, %s12782_s25  ;;  %v14799_v2 = vld [vmem:[#allocation2 + $0x150] sm:$0xff] }
 0x388   : > { %3748 = vst.msk [vmem:[#allocation3 + $0xe8] sm:$0xff] %vm603_vm0, %v14792_v43  ;;  %v14801_v44 = vpop.f32.mrb[34].mxu0  ;;  %3747 = vst.msk [vmem:[#allocation3 + $0xe0] sm:$0xff] %vm603_vm0, %v14799_v2  ;;  %v14837_v22 = vld [vmem:[#allocation2 + $0x1a] sm:$0xff]  ;;  %v14869_v17 = vld [vmem:[#allocation2 + $0x6a] sm:$0xff] }
 0x389   : > { %18498 = vst [vmem:[#allocation38_spill] sm:$0xff] %v14801_v44  ;;  %v14805_v53 = vpop.f32.mrb[35].mxu0  ;;  %v14807_v19 = vld [vmem:[#allocation2 + $0x171] sm:$0xff]  ;;  %18514 = vst [vmem:[#allocation54_spill] sm:$0xff] %v14869_v17 }
 0x38a   : > { %18499 = vst [vmem:[#allocation39_spill] sm:$0xff] %v14805_v53  ;;  %3877 = vrot.lane.b32.xlu1 %v14807_v19, %s12782_s25  ;;  %v14811_v26 = vld [vmem:[#allocation2 + $0x169] sm:$0xff]  ;;  %v14857_v53 = vld [vmem:[#allocation2 + $0x52] sm:$0xff] }
 0x38b   : > { %v14813_v27 = vld [vmem:[#allocation2 + $0x170] sm:$0xff]  ;;  %3875 = vrot.lane.b32.xlu0 %v14811_v26, %s12782_s25  ;;  %v14819_v25 = vld [vmem:[#allocation2 + $0x168] sm:$0xff]  ;;  %18510 = vst [vmem:[#allocation50_spill] sm:$0xff] %v14857_v53 }
 0x38c   : > { %18500 = vst [vmem:[#allocation40_spill] sm:$0xff] %v14813_v27  ;;  %3750 = vst.msk [vmem:[#allocation3 + $0xf8] sm:$0xff] %vm603_vm0, %v14813_v27  ;;  %v14821_v9 = vpop.f32.mrb[36].mxu0 }
 0x38d   : > { %18501 = vst [vmem:[#allocation41_spill] sm:$0xff] %v14819_v25  ;;  %18502 = vst [vmem:[#allocation42_spill] sm:$0xff] %v14821_v9  ;;  %v14825_v52 = vpop.f32.mrb[37].mxu0 }
 0x38e   : > { %3749 = vst.msk [vmem:[#allocation3 + $0xf0] sm:$0xff] %vm603_vm0, %v14819_v25  ;;  %18503 = vst [vmem:[#allocation43_spill] sm:$0xff] %v14825_v52  ;;  %4010 = vrot.lane.b32.xlu1 %v3945_v49, %s18391_s26  ;;  %v14845_v49 = vld [vmem:[#allocation2 + $0x3a] sm:$0xff] }
 0x38f   : > { %4008 = vrot.lane.b32.xlu0 %v3944_v40, %s18391_s26  ;;  %v14849_v40 = vld [vmem:[#allocation2 + $0x32] sm:$0xff] }
 0x390   : > { %v14829_v59 = vpop.f32.mrb[38].mxu0 }
 0x391   : > { %18504 = vst [vmem:[#allocation44_spill] sm:$0xff] %v14829_v59  ;;  %v14831_v48 = vpop.f32.mrb[39].mxu0 }
 0x392   : > { %18505 = vst [vmem:[#allocation45_spill] sm:$0xff] %v14831_v48  ;;  %4014 = vrot.lane.b32.xlu1 %v14833_v13, %s18391_s26 }
 0x393   : > { %4012 = vrot.lane.b32.xlu0 %v14837_v22, %s18391_s26 }
 0x394   : > { %v14841_v9 = vpop.f32.mrb[40].mxu0 }
 0x395   : > { %18506 = vst [vmem:[#allocation46_spill] sm:$0xff] %v14841_v9  ;;  %v14843_v52 = vpop.f32.mrb[41].mxu0 }
 0x396   : > { %18507 = vst [vmem:[#allocation47_spill] sm:$0xff] %v14843_v52  ;;  %4018 = vrot.lane.b32.xlu1 %v14845_v49, %s18391_s26  ;;  %v14861_v52 = vld [vmem:[#allocation2 + $0x4a] sm:$0xff] }
 0x397   : > { %4016 = vrot.lane.b32.xlu0 %v14849_v40, %s18391_s26  ;;  %18511 = vst [vmem:[#allocation51_spill] sm:$0xff] %v14861_v52 }
 0x398   : > { %v14853_v48 = vpop.f32.mrb[42].mxu0 }
 0x399   : > { %18508 = vst [vmem:[#allocation48_spill] sm:$0xff] %v14853_v48  ;;  %v14855_v59 = vpop.f32.mrb[43].mxu0 }
 0x39a   : > { %18509 = vst [vmem:[#allocation49_spill] sm:$0xff] %v14855_v59  ;;  %4022 = vrot.lane.b32.xlu1 %v14857_v53, %s18391_s26  ;;  %v14873_v59 = vld [vmem:[#allocation2 + $0x62] sm:$0xff] }
 0x39b   : > { %4020 = vrot.lane.b32.xlu0 %v14861_v52, %s18391_s26  ;;  %18515 = vst [vmem:[#allocation55_spill] sm:$0xff] %v14873_v59  ;;  %v14881_v53 = vld [vmem:[#allocation2 + $0x82] sm:$0xff]  ;;  %v14893_v52 = vld [vmem:[#allocation2 + $0x9a] sm:$0xff] }
 0x39c   : > { %v14865_v9 = vpop.f32.mrb[44].mxu0  ;;  %18518 = vst [vmem:[#allocation58_spill] sm:$0xff] %v14881_v53  ;;  %18522 = vst [vmem:[#allocation62_spill] sm:$0xff] %v14893_v52 }
 0x39d   : > { %18512 = vst [vmem:[#allocation52_spill] sm:$0xff] %v14865_v9  ;;  %v14867_v44 = vpop.f32.mrb[45].mxu0 }
 0x39e   : > { %18513 = vst [vmem:[#allocation53_spill] sm:$0xff] %v14867_v44  ;;  %4026 = vrot.lane.b32.xlu1 %v14869_v17, %s18391_s26  ;;  %v14885_v44 = vld [vmem:[#allocation2 + $0x7a] sm:$0xff] }
 0x39f   : > { %4024 = vrot.lane.b32.xlu0 %v14873_v59, %s18391_s26  ;;  %18519 = vst [vmem:[#allocation59_spill] sm:$0xff] %v14885_v44  ;;  %v14905_v59 = vld [vmem:[#allocation2 + $0xb2] sm:$0xff] }
 0x3a0   : > { %v14877_v48 = vpop.f32.mrb[46].mxu0  ;;  %18526 = vst [vmem:[#allocation66_spill] sm:$0xff] %v14905_v59 }
 0x3a1   : > { %18516 = vst [vmem:[#allocation56_spill] sm:$0xff] %v14877_v48  ;;  %v14879_v36 = vpop.f32.mrb[47].mxu0 }
 0x3a2   : > { %18517 = vst [vmem:[#allocation57_spill] sm:$0xff] %v14879_v36  ;;  %4030 = vrot.lane.b32.xlu1 %v14881_v53, %s18391_s26  ;;  %v14897_v36 = vld [vmem:[#allocation2 + $0x92] sm:$0xff] }
 0x3a3   : > { %4028 = vrot.lane.b32.xlu0 %v14885_v44, %s18391_s26  ;;  %18523 = vst [vmem:[#allocation63_spill] sm:$0xff] %v14897_v36  ;;  %v14917_v44 = vld [vmem:[#allocation2 + $0xca] sm:$0xff] }
 0x3a4   : > { %v14889_v9 = vpop.f32.mrb[48].mxu0  ;;  %18530 = vst [vmem:[#allocation70_spill] sm:$0xff] %v14917_v44 }
 0x3a5   : > { %18520 = vst [vmem:[#allocation60_spill] sm:$0xff] %v14889_v9  ;;  %v14891_v17 = vpop.f32.mrb[49].mxu0 }
 0x3a6   : > { %18521 = vst [vmem:[#allocation61_spill] sm:$0xff] %v14891_v17  ;;  %4034 = vrot.lane.b32.xlu1 %v14893_v52, %s18391_s26  ;;  %v14909_v17 = vld [vmem:[#allocation2 + $0xaa] sm:$0xff] }
 0x3a7   : > { %4032 = vrot.lane.b32.xlu0 %v14897_v36, %s18391_s26  ;;  %18527 = vst [vmem:[#allocation67_spill] sm:$0xff] %v14909_v17  ;;  %v14929_v36 = vld [vmem:[#allocation2 + $0xe2] sm:$0xff] }
 0x3a8   : > { %v14901_v48 = vpop.f32.mrb[50].mxu0  ;;  %18534 = vst [vmem:[#allocation74_spill] sm:$0xff] %v14929_v36 }
 0x3a9   : > { %18524 = vst [vmem:[#allocation64_spill] sm:$0xff] %v14901_v48  ;;  %v14903_v53 = vpop.f32.mrb[51].mxu0 }
 0x3aa   : > { %18525 = vst [vmem:[#allocation65_spill] sm:$0xff] %v14903_v53  ;;  %4038 = vrot.lane.b32.xlu1 %v14905_v59, %s18391_s26  ;;  %v14921_v53 = vld [vmem:[#allocation2 + $0xc2] sm:$0xff] }
 0x3ab   : > { %4036 = vrot.lane.b32.xlu0 %v14909_v17, %s18391_s26  ;;  %18531 = vst [vmem:[#allocation71_spill] sm:$0xff] %v14921_v53  ;;  %v14941_v17 = vld [vmem:[#allocation2 + $0xfa] sm:$0xff] }
 0x3ac   : > { %v14913_v9 = vpop.f32.mrb[52].mxu0  ;;  %18538 = vst [vmem:[#allocation78_spill] sm:$0xff] %v14941_v17 }
 0x3ad   : > { %18528 = vst [vmem:[#allocation68_spill] sm:$0xff] %v14913_v9  ;;  %v14915_v52 = vpop.f32.mrb[53].mxu0 }
 0x3ae   : > { %18529 = vst [vmem:[#allocation69_spill] sm:$0xff] %v14915_v52  ;;  %4042 = vrot.lane.b32.xlu1 %v14917_v44, %s18391_s26  ;;  %v14933_v52 = vld [vmem:[#allocation2 + $0xda] sm:$0xff] }
 0x3af   : > { %4040 = vrot.lane.b32.xlu0 %v14921_v53, %s18391_s26  ;;  %18535 = vst [vmem:[#allocation75_spill] sm:$0xff] %v14933_v52  ;;  %v14953_v53 = vld [vmem:[#allocation2 + $0x112] sm:$0xff] }
 0x3b0   : > { %v14925_v48 = vpop.f32.mrb[54].mxu0  ;;  %18542 = vst [vmem:[#allocation82_spill] sm:$0xff] %v14953_v53 }
 0x3b1   : > { %18532 = vst [vmem:[#allocation72_spill] sm:$0xff] %v14925_v48  ;;  %v14927_v59 = vpop.f32.mrb[55].mxu0 }
 0x3b2   : > { %18533 = vst [vmem:[#allocation73_spill] sm:$0xff] %v14927_v59  ;;  %4046 = vrot.lane.b32.xlu1 %v14929_v36, %s18391_s26  ;;  %v14945_v59 = vld [vmem:[#allocation2 + $0xf2] sm:$0xff] }
 0x3b3   : > { %4044 = vrot.lane.b32.xlu0 %v14933_v52, %s18391_s26  ;;  %18539 = vst [vmem:[#allocation79_spill] sm:$0xff] %v14945_v59  ;;  %v14965_v52 = vld [vmem:[#allocation2 + $0x12a] sm:$0xff] }
 0x3b4   : > { %v14937_v9 = vpop.f32.mrb[56].mxu0  ;;  %18546 = vst [vmem:[#allocation86_spill] sm:$0xff] %v14965_v52 }
 0x3b5   : > { %18536 = vst [vmem:[#allocation76_spill] sm:$0xff] %v14937_v9  ;;  %v14939_v44 = vpop.f32.mrb[57].mxu0 }
 0x3b6   : > { %18537 = vst [vmem:[#allocation77_spill] sm:$0xff] %v14939_v44  ;;  %4050 = vrot.lane.b32.xlu1 %v14941_v17, %s18391_s26  ;;  %v14957_v44 = vld [vmem:[#allocation2 + $0x10a] sm:$0xff] }
 0x3b7   : > { %4048 = vrot.lane.b32.xlu0 %v14945_v59, %s18391_s26  ;;  %18543 = vst [vmem:[#allocation83_spill] sm:$0xff] %v14957_v44 }
 0x3b8   : > { %v14949_v48 = vpop.f32.mrb[58].mxu0 }
 0x3b9   : > { %18540 = vst [vmem:[#allocation80_spill] sm:$0xff] %v14949_v48  ;;  %v14951_v36 = vpop.f32.mrb[59].mxu0 }
 0x3ba   : > { %18541 = vst [vmem:[#allocation81_spill] sm:$0xff] %v14951_v36  ;;  %4054 = vrot.lane.b32.xlu1 %v14953_v53, %s18391_s26  ;;  %v14969_v36 = vld [vmem:[#allocation2 + $0x122] sm:$0xff] }
 0x3bb   : > { %4052 = vrot.lane.b32.xlu0 %v14957_v44, %s18391_s26  ;;  %v14975_v53 = vld [vmem:[#allocation2 + $0x142] sm:$0xff]  ;;  %v14986_v44 = vld [vmem:[#allocation2 + $0x15a] sm:$0xff] }
 0x3bc   : > { %v14961_v9 = vpop.f32.mrb[60].mxu0  ;;  %18548 = vst [vmem:[#allocation88_spill] sm:$0xff] %v14975_v53 }
 0x3bd   : > { %18544 = vst [vmem:[#allocation84_spill] sm:$0xff] %v14961_v9  ;;  %v14963_v17 = vpop.f32.mrb[61].mxu0 }
 0x3be   : > { %18545 = vst [vmem:[#allocation85_spill] sm:$0xff] %v14963_v17  ;;  %4058 = vrot.lane.b32.xlu1 %v14965_v52, %s18391_s26  ;;  %v14981_v17 = vld [vmem:[#allocation2 + $0x13a] sm:$0xff] }
 0x3bf   : > { %4056 = vrot.lane.b32.xlu0 %v14969_v36, %s18391_s26  ;;  %18550 = vst [vmem:[#allocation90_spill] sm:$0xff] %v14981_v17 }
 0x3c0   : > { %v14973_v48 = vpop.f32.mrb[62].mxu0 }
 0x3c1   : > { %18547 = vst [vmem:[#allocation87_spill] sm:$0xff] %v14973_v48  ;;  %v14977_v59 = vpop.f32.mrb[63].mxu0 }
 0x3c2   : > { %18549 = vst [vmem:[#allocation89_spill] sm:$0xff] %v14977_v59  ;;  %4062 = vrot.lane.b32.xlu1 %v14975_v53, %s18391_s26  ;;  %v14991_v59 = vld [vmem:[#allocation2 + $0x152] sm:$0xff] }
 0x3c3   : > { %4060 = vrot.lane.b32.xlu0 %v14981_v17, %s18391_s26  ;;  %18551 = vst [vmem:[#allocation91_spill] sm:$0xff] %v14991_v59  ;;  %v14996_v53 = vld [vmem:[#allocation2 + $0x172] sm:$0xff] }
 0x3c4   : > { %v3822_v9 = vpop.permute.xlu1 %3821 }
 0x3c5   : > { %3915 = vst.msk [vmem:[#allocation3 + $0x18] sm:$0xff] %vm3911_vm13, %v3822_v9  ;;  %v3820_v52 = vpop.permute.xlu0 %3819  ;;  %v15001_v9 = vld [vmem:[#allocation2 + $0x16a] sm:$0xff] }
 0x3c6   : > { %3914 = vst.msk [vmem:[#allocation3 + $0x10] sm:$0xff] %vm3911_vm13, %v3820_v52  ;;  %4066 = vrot.lane.b32.xlu1 %v14986_v44, %s18391_s26 }
 0x3c7   : > { %4064 = vrot.lane.b32.xlu0 %v14991_v59, %s18391_s26 }
 0x3c8   : > { %v3826_v48 = vpop.permute.xlu1 %3825 }
 0x3c9   : > { %3917 = vst.msk [vmem:[#allocation3 + $0x28] sm:$0xff] %vm3911_vm13, %v3826_v48  ;;  %v3824_v17 = vpop.permute.xlu0 %3823 }
 0x3ca   : > { %3916 = vst.msk [vmem:[#allocation3 + $0x20] sm:$0xff] %vm3911_vm13, %v3824_v17  ;;  %4070 = vrot.lane.b32.xlu1 %v14996_v53, %s18391_s26 }
 0x3cb   : > { %4068 = vrot.lane.b32.xlu0 %v15001_v9, %s18391_s26 }
 0x3cc   : > { %v3830_v52 = vpop.permute.xlu1 %3829 }
 0x3cd   : > { %3919 = vst.msk [vmem:[#allocation3 + $0x38] sm:$0xff] %vm3911_vm13, %v3830_v52  ;;  %v3828_v59 = vpop.permute.xlu0 %3827 }
 0x3ce   : > { %3918 = vst.msk [vmem:[#allocation3 + $0x30] sm:$0xff] %vm3911_vm13, %v3828_v59  ;;  %4203 = vrot.lane.b32.xlu1 %v14523_v32, %s18389_s28 }
 0x3cf   : > { %4201 = vrot.lane.b32.xlu0 %v14530_v39, %s18389_s28 }
 0x3d0   : > { %v3834_v17 = vpop.permute.xlu1 %3833 }
 0x3d1   : > { %3921 = vst.msk [vmem:[#allocation3 + $0x48] sm:$0xff] %vm3911_vm13, %v3834_v17  ;;  %v3832_v48 = vpop.permute.xlu0 %3831 }
 0x3d2   : > { %3920 = vst.msk [vmem:[#allocation3 + $0x40] sm:$0xff] %vm3911_vm13, %v3832_v48  ;;  %4207 = vrot.lane.b32.xlu1 %v14539_v61, %s18389_s28 }
 0x3d3   : > { %4205 = vrot.lane.b32.xlu0 %v14546_v0, %s18389_s28 }
 0x3d4   : > { %v3838_v52 = vpop.permute.xlu1 %3837 }
 0x3d5   : > { %3923 = vst.msk [vmem:[#allocation3 + $0x58] sm:$0xff] %vm3911_vm13, %v3838_v52  ;;  %v3836_v59 = vpop.permute.xlu0 %3835 }
 0x3d6   : > { %3922 = vst.msk [vmem:[#allocation3 + $0x50] sm:$0xff] %vm3911_vm13, %v3836_v59  ;;  %4211 = vrot.lane.b32.xlu1 %v14555_v29, %s18389_s28 }
 0x3d7   : > { %4209 = vrot.lane.b32.xlu0 %v14562_v41, %s18389_s28 }
 0x3d8   : > { %v3842_v32 = vpop.permute.xlu1 %3841 }
 0x3d9   : > { %3925 = vst.msk [vmem:[#allocation3 + $0x68] sm:$0xff] %vm3911_vm13, %v3842_v32  ;;  %v3840_v39 = vpop.permute.xlu0 %3839 }
 0x3da   : > { %3924 = vst.msk [vmem:[#allocation3 + $0x60] sm:$0xff] %vm3911_vm13, %v3840_v39  ;;  %4215 = vrot.lane.b32.xlu1 %v14571_v47, %s18389_s28 }
 0x3db   : > { %4213 = vrot.lane.b32.xlu0 %v14578_v3, %s18389_s28 }
 0x3dc   : > { %v3846_v17 = vpop.permute.xlu1 %3845 }
 0x3dd   : > { %3927 = vst.msk [vmem:[#allocation3 + $0x78] sm:$0xff] %vm3911_vm13, %v3846_v17  ;;  %v3844_v48 = vpop.permute.xlu0 %3843 }
 0x3de   : > { %3926 = vst.msk [vmem:[#allocation3 + $0x70] sm:$0xff] %vm3911_vm13, %v3844_v48  ;;  %4219 = vrot.lane.b32.xlu1 %v14592_v15, %s18389_s28 }
 0x3df   : > { %4217 = vrot.lane.b32.xlu0 %v14600_v16, %s18389_s28 }
 0x3e0   : > { %v3850_v52 = vpop.permute.xlu1 %3849 }
 0x3e1   : > { %3929 = vst.msk [vmem:[#allocation3 + $0x88] sm:$0xff] %vm3911_vm13, %v3850_v52  ;;  %v3848_v59 = vpop.permute.xlu0 %3847 }
 0x3e2   : > { %3928 = vst.msk [vmem:[#allocation3 + $0x80] sm:$0xff] %vm3911_vm13, %v3848_v59  ;;  %4223 = vrot.lane.b32.xlu1 %v14614_v30, %s18389_s28 }
 0x3e3   : > { %4221 = vrot.lane.b32.xlu0 %v14622_v4, %s18389_s28 }
 0x3e4   : > { %v3854_v32 = vpop.permute.xlu1 %3853 }
 0x3e5   : > { %3931 = vst.msk [vmem:[#allocation3 + $0x98] sm:$0xff] %vm3911_vm13, %v3854_v32  ;;  %v3852_v39 = vpop.permute.xlu0 %3851 }
 0x3e6   : > { %3930 = vst.msk [vmem:[#allocation3 + $0x90] sm:$0xff] %vm3911_vm13, %v3852_v39  ;;  %4227 = vrot.lane.b32.xlu1 %v14636_v60, %s18389_s28 }
 0x3e7   : > { %4225 = vrot.lane.b32.xlu0 %v14644_v8, %s18389_s28 }
 0x3e8   : > { %v3858_v17 = vpop.permute.xlu1 %3857 }
 0x3e9   : > { %3933 = vst.msk [vmem:[#allocation3 + $0xa8] sm:$0xff] %vm3911_vm13, %v3858_v17  ;;  %v3856_v48 = vpop.permute.xlu0 %3855 }
 0x3ea   : > { %3932 = vst.msk [vmem:[#allocation3 + $0xa0] sm:$0xff] %vm3911_vm13, %v3856_v48  ;;  %4231 = vrot.lane.b32.xlu1 %v14658_v45, %s18389_s28 }
 0x3eb   : > { %4229 = vrot.lane.b32.xlu0 %v14666_v21, %s18389_s28 }
 0x3ec   : > { %v3862_v52 = vpop.permute.xlu1 %3861 }
 0x3ed   : > { %3935 = vst.msk [vmem:[#allocation3 + $0xb8] sm:$0xff] %vm3911_vm13, %v3862_v52  ;;  %v3860_v59 = vpop.permute.xlu0 %3859 }
 0x3ee   : > { %3934 = vst.msk [vmem:[#allocation3 + $0xb0] sm:$0xff] %vm3911_vm13, %v3860_v59  ;;  %4235 = vrot.lane.b32.xlu1 %v14680_v63, %s18389_s28 }
 0x3ef   : > { %4233 = vrot.lane.b32.xlu0 %v14688_v24, %s18389_s28 }
 0x3f0   : > { %v3866_v32 = vpop.permute.xlu1 %3865 }
 0x3f1   : > { %3937 = vst.msk [vmem:[#allocation3 + $0xc8] sm:$0xff] %vm3911_vm13, %v3866_v32  ;;  %v3864_v39 = vpop.permute.xlu0 %3863 }
 0x3f2   : > { %3936 = vst.msk [vmem:[#allocation3 + $0xc0] sm:$0xff] %vm3911_vm13, %v3864_v39  ;;  %4239 = vrot.lane.b32.xlu1 %v14702_v6, %s18389_s28 }
 0x3f3   : > { %4237 = vrot.lane.b32.xlu0 %v14710_v51, %s18389_s28 }
 0x3f4   : > { %v3870_v17 = vpop.permute.xlu1 %3869 }
 0x3f5   : > { %3939 = vst.msk [vmem:[#allocation3 + $0xd8] sm:$0xff] %vm3911_vm13, %v3870_v17  ;;  %v3868_v48 = vpop.permute.xlu0 %3867 }
 0x3f6   : > { %3938 = vst.msk [vmem:[#allocation3 + $0xd0] sm:$0xff] %vm3911_vm13, %v3868_v48  ;;  %4243 = vrot.lane.b32.xlu1 %v14724_v37, %s18389_s28 }
 0x3f7   : > { %4241 = vrot.lane.b32.xlu0 %v14732_v33, %s18389_s28 }
 0x3f8   : > { %v3874_v52 = vpop.permute.xlu1 %3873 }
 0x3f9   : > { %3941 = vst.msk [vmem:[#allocation3 + $0xe8] sm:$0xff] %vm3911_vm13, %v3874_v52  ;;  %v3872_v59 = vpop.permute.xlu0 %3871 }
 0x3fa   : > { %3940 = vst.msk [vmem:[#allocation3 + $0xe0] sm:$0xff] %vm3911_vm13, %v3872_v59  ;;  %4247 = vrot.lane.b32.xlu1 %v14746_v34, %s18389_s28 }
 0x3fb   : > { %4245 = vrot.lane.b32.xlu0 %v14754_v10, %s18389_s28 }
 0x3fc   : > { %v3878_v32 = vpop.permute.xlu1 %3877 }
 0x3fd   : > { %3943 = vst.msk [vmem:[#allocation3 + $0xf8] sm:$0xff] %vm3911_vm13, %v3878_v32  ;;  %v3876_v39 = vpop.permute.xlu0 %3875 }
 0x3fe   : > { %3942 = vst.msk [vmem:[#allocation3 + $0xf0] sm:$0xff] %vm3911_vm13, %v3876_v39  ;;  %4251 = vrot.lane.b32.xlu1 %v14768_v55, %s18389_s28 }
 0x3ff   : > { %4249 = vrot.lane.b32.xlu0 %v14776_v7, %s18389_s28 }
 0x400   : > { %v4011_v17 = vpop.permute.xlu1 %4010 }
 0x401   : > { %4106 = vst.msk [vmem:[#allocation3 + $0x8] sm:$0xff] %vm4104_vm6, %v4011_v17  ;;  %v4009_v48 = vpop.permute.xlu0 %4008  ;;  %v15096_v17 = vld [vmem:[#allocation2 + $0x188] sm:$0xff] }
 0x402   : > { %4105 = vst.msk [vmem:[#allocation3] sm:$0xff] %vm4104_vm6, %v4009_v48  ;;  %4255 = vrot.lane.b32.xlu1 %v14792_v43, %s18389_s28  ;;  %18552 = vst [vmem:[#allocation92_spill] sm:$0xff] %v15096_v17  ;;  %v15101_v48 = vld [vmem:[#allocation2 + $0x180] sm:$0xff] }
 0x403   : > { %4253 = vrot.lane.b32.xlu0 %v14799_v2, %s18389_s28 }
 0x404   : > { %v4015_v52 = vpop.permute.xlu1 %4014 }
 0x405   : > { %4108 = vst.msk [vmem:[#allocation3 + $0x18] sm:$0xff] %vm4104_vm6, %v4015_v52  ;;  %v4013_v59 = vpop.permute.xlu0 %4012 }
 0x406   : > { %4107 = vst.msk [vmem:[#allocation3 + $0x10] sm:$0xff] %vm4104_vm6, %v4013_v59  ;;  %4259 = vrot.lane.b32.xlu1 %v14813_v27, %s18389_s28  ;;  %v15110_v27 = vld [vmem:[#allocation2 + $0x39] sm:$0xff] }
 0x407   : > { %4257 = vrot.lane.b32.xlu0 %v14819_v25, %s18389_s28  ;;  %v4331_v25 = vld [vmem:[#allocation2 + $0x21] sm:$0xff]  ;;  %18553 = vst [vmem:[#allocation93_spill] sm:$0xff] %v15110_v27 }
 0x408   : > { %v4019_v32 = vpop.permute.xlu1 %4018 }
 0x409   : > { %4110 = vst.msk [vmem:[#allocation3 + $0x28] sm:$0xff] %vm4104_vm6, %v4019_v32  ;;  %v4017_v39 = vpop.permute.xlu0 %4016  ;;  %v4330_v32 = vld [vmem:[#allocation2 + $0x19] sm:$0xff] }
 0x40a   : > { %4109 = vst.msk [vmem:[#allocation3 + $0x20] sm:$0xff] %vm4104_vm6, %v4017_v39  ;;  %4263 = vrot.lane.b32.xlu1 %v15096_v17, %s18389_s28 }
 0x40b   : > { %4261 = vrot.lane.b32.xlu0 %v15101_v48, %s18389_s28 }
 0x40c   : > { %v4023_v52 = vpop.permute.xlu1 %4022 }
 0x40d   : > { %4112 = vst.msk [vmem:[#allocation3 + $0x38] sm:$0xff] %vm4104_vm6, %v4023_v52  ;;  %v4021_v59 = vpop.permute.xlu0 %4020  ;;  %v15115_v52 = vld [vmem:[#allocation2 + $0x31] sm:$0xff] }
 0x40e   : > { %4111 = vst.msk [vmem:[#allocation3 + $0x30] sm:$0xff] %vm4104_vm6, %v4021_v59  ;;  %4396 = vrot.lane.b32.xlu1 %v4331_v25, %s18387_s23  ;;  %18554 = vst [vmem:[#allocation94_spill] sm:$0xff] %v15115_v52 }
 0x40f   : > { %4394 = vrot.lane.b32.xlu0 %v4330_v32, %s18387_s23  ;;  %v15120_v32 = vld [vmem:[#allocation2 + $0x51] sm:$0xff] }
 0x410   : > { %v4027_v39 = vpop.permute.xlu1 %4026 }
 0x411   : > { %4114 = vst.msk [vmem:[#allocation3 + $0x48] sm:$0xff] %vm4104_vm6, %v4027_v39  ;;  %v4025_v17 = vpop.permute.xlu0 %4024 }
 0x412   : > { %4113 = vst.msk [vmem:[#allocation3 + $0x40] sm:$0xff] %vm4104_vm6, %v4025_v17  ;;  %4400 = vrot.lane.b32.xlu1 %v15110_v27, %s18387_s23  ;;  %v15125_v17 = vld [vmem:[#allocation2 + $0x49] sm:$0xff] }
 0x413   : > { %4398 = vrot.lane.b32.xlu0 %v15115_v52, %s18387_s23  ;;  %18555 = vst [vmem:[#allocation95_spill] sm:$0xff] %v15125_v17  ;;  %v15130_v27 = vld [vmem:[#allocation2 + $0x69] sm:$0xff] }
 0x414   : > { %v4031_v25 = vpop.permute.xlu1 %4030 }
 0x415   : > { %4116 = vst.msk [vmem:[#allocation3 + $0x58] sm:$0xff] %vm4104_vm6, %v4031_v25  ;;  %v4029_v59 = vpop.permute.xlu0 %4028  ;;  %v15135_v25 = vld [vmem:[#allocation2 + $0x61] sm:$0xff] }
 0x416   : > { %4115 = vst.msk [vmem:[#allocation3 + $0x50] sm:$0xff] %vm4104_vm6, %v4029_v59  ;;  %4404 = vrot.lane.b32.xlu1 %v15120_v32, %s18387_s23 }
 0x417   : > { %4402 = vrot.lane.b32.xlu0 %v15125_v17, %s18387_s23 }
 0x418   : > { %v4035_v39 = vpop.permute.xlu1 %4034 }
 0x419   : > { %4118 = vst.msk [vmem:[#allocation3 + $0x68] sm:$0xff] %vm4104_vm6, %v4035_v39  ;;  %v4033_v52 = vpop.permute.xlu0 %4032 }
 0x41a   : > { %4117 = vst.msk [vmem:[#allocation3 + $0x60] sm:$0xff] %vm4104_vm6, %v4033_v52  ;;  %4408 = vrot.lane.b32.xlu1 %v15130_v27, %s18387_s23 }
 0x41b   : > { %4406 = vrot.lane.b32.xlu0 %v15135_v25, %s18387_s23 }
 0x41c   : > { %v4039_v59 = vpop.permute.xlu1 %4038 }
 0x41d   : > { %4120 = vst.msk [vmem:[#allocation3 + $0x78] sm:$0xff] %vm4104_vm6, %v4039_v59  ;;  %v4037_v17 = vpop.permute.xlu0 %4036 }
 0x41e   : > { %4119 = vst.msk [vmem:[#allocation3 + $0x70] sm:$0xff] %vm4104_vm6, %v4037_v17  ;;  %4412 = vrot.lane.b32.xlu1 %v14584_v23, %s18387_s23 }
 0x41f   : > { %4410 = vrot.lane.b32.xlu0 %v14590_v20, %s18387_s23 }
 0x420   : > { %v4043_v52 = vpop.permute.xlu1 %4042 }
 0x421   : > { %4122 = vst.msk [vmem:[#allocation3 + $0x88] sm:$0xff] %vm4104_vm6, %v4043_v52  ;;  %v4041_v39 = vpop.permute.xlu0 %4040 }
 0x422   : > { %4121 = vst.msk [vmem:[#allocation3 + $0x80] sm:$0xff] %vm4104_vm6, %v4041_v39  ;;  %4416 = vrot.lane.b32.xlu1 %v14606_v31, %s18387_s23 }
 0x423   : > { %4414 = vrot.lane.b32.xlu0 %v14612_v5, %s18387_s23 }
 0x424   : > { %v4047_v59 = vpop.permute.xlu1 %4046 }
 0x425   : > { %4124 = vst.msk [vmem:[#allocation3 + $0x98] sm:$0xff] %vm4104_vm6, %v4047_v59  ;;  %v4045_v17 = vpop.permute.xlu0 %4044 }
 0x426   : > { %4123 = vst.msk [vmem:[#allocation3 + $0x90] sm:$0xff] %vm4104_vm6, %v4045_v17  ;;  %4420 = vrot.lane.b32.xlu1 %v14628_v57, %s18387_s23 }
 0x427   : > { %4418 = vrot.lane.b32.xlu0 %v14634_v58, %s18387_s23 }
 0x428   : > { %v4051_v23 = vpop.permute.xlu1 %4050 }
 0x429   : > { %4126 = vst.msk [vmem:[#allocation3 + $0xa8] sm:$0xff] %vm4104_vm6, %v4051_v23  ;;  %v4049_v20 = vpop.permute.xlu0 %4048 }
 0x42a   : > { %4125 = vst.msk [vmem:[#allocation3 + $0xa0] sm:$0xff] %vm4104_vm6, %v4049_v20  ;;  %4424 = vrot.lane.b32.xlu1 %v14650_v35, %s18387_s23 }
 0x42b   : > { %4422 = vrot.lane.b32.xlu0 %v14656_v18, %s18387_s23 }
 0x42c   : > { %v4055_v31 = vpop.permute.xlu1 %4054 }
 0x42d   : > { %4128 = vst.msk [vmem:[#allocation3 + $0xb8] sm:$0xff] %vm4104_vm6, %v4055_v31  ;;  %v4053_v5 = vpop.permute.xlu0 %4052 }
 0x42e   : > { %4127 = vst.msk [vmem:[#allocation3 + $0xb0] sm:$0xff] %vm4104_vm6, %v4053_v5  ;;  %4428 = vrot.lane.b32.xlu1 %v14672_v50, %s18387_s23 }
 0x42f   : > { %4426 = vrot.lane.b32.xlu0 %v14678_v56, %s18387_s23 }
 0x430   : > { %v4059_v57 = vpop.permute.xlu1 %4058 }
 0x431   : > { %4130 = vst.msk [vmem:[#allocation3 + $0xc8] sm:$0xff] %vm4104_vm6, %v4059_v57  ;;  %v4057_v58 = vpop.permute.xlu0 %4056  ;;  %v18560_v57 = vld [vmem:[#allocation58_spill] sm:$0xff] }
 0x432   : > { %4129 = vst.msk [vmem:[#allocation3 + $0xc0] sm:$0xff] %vm4104_vm6, %v4057_v58  ;;  %4432 = vrot.lane.b32.xlu1 %v14694_v1, %s18387_s23  ;;  %v18561_v58 = vld [vmem:[#allocation59_spill] sm:$0xff] }
 0x433   : > { %4430 = vrot.lane.b32.xlu0 %v14700_v46, %s18387_s23 }
 0x434   : > { %v4063_v35 = vpop.permute.xlu1 %4062 }
 0x435   : > { %4132 = vst.msk [vmem:[#allocation3 + $0xd8] sm:$0xff] %vm4104_vm6, %v4063_v35  ;;  %v4061_v18 = vpop.permute.xlu0 %4060 }
 0x436   : > { %4131 = vst.msk [vmem:[#allocation3 + $0xd0] sm:$0xff] %vm4104_vm6, %v4061_v18  ;;  %4436 = vrot.lane.b32.xlu1 %v14716_v62, %s18387_s23 }
 0x437   : > { %4434 = vrot.lane.b32.xlu0 %v14722_v38, %s18387_s23 }
 0x438   : > { %v4067_v50 = vpop.permute.xlu1 %4066 }
 0x439   : > { %4134 = vst.msk [vmem:[#allocation3 + $0xe8] sm:$0xff] %vm4104_vm6, %v4067_v50  ;;  %v4065_v56 = vpop.permute.xlu0 %4064  ;;  %v18562_v50 = vld [vmem:[#allocation62_spill] sm:$0xff] }
 0x43a   : > { %4133 = vst.msk [vmem:[#allocation3 + $0xe0] sm:$0xff] %vm4104_vm6, %v4065_v56  ;;  %4440 = vrot.lane.b32.xlu1 %v14738_v14, %s18387_s23  ;;  %v18563_v56 = vld [vmem:[#allocation63_spill] sm:$0xff] }
 0x43b   : > { %4438 = vrot.lane.b32.xlu0 %v14744_v11, %s18387_s23 }
 0x43c   : > { %v4071_v1 = vpop.permute.xlu1 %4070 }
 0x43d   : > { %4136 = vst.msk [vmem:[#allocation3 + $0xf8] sm:$0xff] %vm4104_vm6, %v4071_v1  ;;  %v4069_v46 = vpop.permute.xlu0 %4068 }
 0x43e   : > { %4135 = vst.msk [vmem:[#allocation3 + $0xf0] sm:$0xff] %vm4104_vm6, %v4069_v46  ;;  %4444 = vrot.lane.b32.xlu1 %v14759_v12, %s18387_s23 }
 0x43f   : > { %4442 = vrot.lane.b32.xlu0 %v14765_v54, %s18387_s23 }
 0x440   : > { %v4204_v62 = vpop.permute.xlu1 %4203 }
 0x441   : > { %4299 = vst.msk [vmem:[#allocation3 + $0x8] sm:$0xff] %vm4297_vm7, %v4204_v62  ;;  %v4202_v38 = vpop.permute.xlu0 %4201  ;;  %v18564_v62 = vld [vmem:[#allocation66_spill] sm:$0xff] }
 0x442   : > { %4298 = vst.msk [vmem:[#allocation3] sm:$0xff] %vm4297_vm7, %v4202_v38  ;;  %4448 = vrot.lane.b32.xlu1 %v14785_v28, %s18387_s23  ;;  %v15206_v28 = vld [vmem:[#allocation2 + $0x189] sm:$0xff] }
 0x443   : > { %4446 = vrot.lane.b32.xlu0 %v14790_v42, %s18387_s23  ;;  %v15211_v42 = vld [vmem:[#allocation2 + $0x181] sm:$0xff] }
 0x444   : > { %v4208_v14 = vpop.permute.xlu1 %4207  ;;  %v18565_v38 = vld [vmem:[#allocation67_spill] sm:$0xff] }
 0x445   : > { %4301 = vst.msk [vmem:[#allocation3 + $0x18] sm:$0xff] %vm4297_vm7, %v4208_v14  ;;  %v4206_v11 = vpop.permute.xlu0 %4205 }
 0x446   : > { %4300 = vst.msk [vmem:[#allocation3 + $0x10] sm:$0xff] %vm4297_vm7, %v4206_v11  ;;  %4452 = vrot.lane.b32.xlu1 %v14807_v19, %s18387_s23 }
 0x447   : > { %4450 = vrot.lane.b32.xlu0 %v14811_v26, %s18387_s23 }
 0x448   : > { %v4212_v12 = vpop.permute.xlu1 %4211 }
 0x449   : > { %4303 = vst.msk [vmem:[#allocation3 + $0x28] sm:$0xff] %vm4297_vm7, %v4212_v12  ;;  %v4210_v54 = vpop.permute.xlu0 %4209  ;;  %v18566_v12 = vld [vmem:[#allocation70_spill] sm:$0xff] }
 0x44a   : > { %4302 = vst.msk [vmem:[#allocation3 + $0x20] sm:$0xff] %vm4297_vm7, %v4210_v54  ;;  %4456 = vrot.lane.b32.xlu1 %v15206_v28, %s18387_s23  ;;  %v18567_v54 = vld [vmem:[#allocation71_spill] sm:$0xff] }
 0x44b   : > { %4454 = vrot.lane.b32.xlu0 %v15211_v42, %s18387_s23 }
 0x44c   : > { %v4216_v19 = vpop.permute.xlu1 %4215 }
 0x44d   : > { %4305 = vst.msk [vmem:[#allocation3 + $0x38] sm:$0xff] %vm4297_vm7, %v4216_v19  ;;  %v4214_v26 = vpop.permute.xlu0 %4213 }
 0x44e   : > { %4304 = vst.msk [vmem:[#allocation3 + $0x30] sm:$0xff] %vm4297_vm7, %v4214_v26  ;;  %4589 = vrot.lane.b32.xlu1 %v14833_v13, %s18385_s3  ;;  %v18556_v13 = vld [vmem:[#allocation50_spill] sm:$0xff] }
 0x44f   : > { %4587 = vrot.lane.b32.xlu0 %v14837_v22, %s18385_s3  ;;  %v18557_v22 = vld [vmem:[#allocation51_spill] sm:$0xff] }
 0x450   : > { %v4220_v52 = vpop.permute.xlu1 %4219 }
 0x451   : > { %4307 = vst.msk [vmem:[#allocation3 + $0x48] sm:$0xff] %vm4297_vm7, %v4220_v52  ;;  %v4218_v39 = vpop.permute.xlu0 %4217  ;;  %v18568_v52 = vld [vmem:[#allocation74_spill] sm:$0xff] }
 0x452   : > { %4306 = vst.msk [vmem:[#allocation3 + $0x40] sm:$0xff] %vm4297_vm7, %v4218_v39  ;;  %4593 = vrot.lane.b32.xlu1 %v14845_v49, %s18385_s3  ;;  %v18558_v49 = vld [vmem:[#allocation54_spill] sm:$0xff]  ;;  %v18569_v39 = vld [vmem:[#allocation75_spill] sm:$0xff] }
 0x453   : > { %4591 = vrot.lane.b32.xlu0 %v14849_v40, %s18385_s3  ;;  %v18559_v40 = vld [vmem:[#allocation55_spill] sm:$0xff] }
 0x454   : > { %v4224_v59 = vpop.permute.xlu1 %4223 }
 0x455   : > { %4309 = vst.msk [vmem:[#allocation3 + $0x58] sm:$0xff] %vm4297_vm7, %v4224_v59  ;;  %v4222_v17 = vpop.permute.xlu0 %4221 }
 0x456   : > { %4308 = vst.msk [vmem:[#allocation3 + $0x50] sm:$0xff] %vm4297_vm7, %v4222_v17  ;;  %4597 = vrot.lane.b32.xlu1 %v18556_v13, %s18385_s3  ;;  %v18570_v13 = vld [vmem:[#allocation78_spill] sm:$0xff] }
 0x457   : > { %4595 = vrot.lane.b32.xlu0 %v18557_v22, %s18385_s3  ;;  %v18571_v22 = vld [vmem:[#allocation79_spill] sm:$0xff] }
 0x458   : > { %v4228_v23 = vpop.permute.xlu1 %4227 }
 0x459   : > { %4311 = vst.msk [vmem:[#allocation3 + $0x68] sm:$0xff] %vm4297_vm7, %v4228_v23  ;;  %v4226_v20 = vpop.permute.xlu0 %4225 }
 0x45a   : > { %4310 = vst.msk [vmem:[#allocation3 + $0x60] sm:$0xff] %vm4297_vm7, %v4226_v20  ;;  %4601 = vrot.lane.b32.xlu1 %v18558_v49, %s18385_s3  ;;  %v18572_v49 = vld [vmem:[#allocation82_spill] sm:$0xff] }
 0x45b   : > { %4599 = vrot.lane.b32.xlu0 %v18559_v40, %s18385_s3  ;;  %v18573_v40 = vld [vmem:[#allocation83_spill] sm:$0xff] }
 0x45c   : > { %v4232_v31 = vpop.permute.xlu1 %4231 }
 0x45d   : > { %4313 = vst.msk [vmem:[#allocation3 + $0x78] sm:$0xff] %vm4297_vm7, %v4232_v31  ;;  %v4230_v5 = vpop.permute.xlu0 %4229 }
 0x45e   : > { %4312 = vst.msk [vmem:[#allocation3 + $0x70] sm:$0xff] %vm4297_vm7, %v4230_v5  ;;  %4605 = vrot.lane.b32.xlu1 %v18560_v57, %s18385_s3  ;;  %v18574_v57 = vld [vmem:[#allocation86_spill] sm:$0xff] }
 0x45f   : > { %4603 = vrot.lane.b32.xlu0 %v18561_v58, %s18385_s3 }
 0x460   : > { %v4236_v35 = vpop.permute.xlu1 %4235 }
 0x461   : > { %4315 = vst.msk [vmem:[#allocation3 + $0x88] sm:$0xff] %vm4297_vm7, %v4236_v35  ;;  %v4234_v18 = vpop.permute.xlu0 %4233 }
 0x462   : > { %4314 = vst.msk [vmem:[#allocation3 + $0x80] sm:$0xff] %vm4297_vm7, %v4234_v18  ;;  %4609 = vrot.lane.b32.xlu1 %v18562_v50, %s18385_s3  ;;  %v18575_v18 = vld [vmem:[#allocation88_spill] sm:$0xff]  ;;  %v18576_v50 = vld [vmem:[#allocation90_spill] sm:$0xff] }
 0x463   : > { %4607 = vrot.lane.b32.xlu0 %v18563_v56, %s18385_s3 }
 0x464   : > { %v4240_v1 = vpop.permute.xlu1 %4239 }
 0x465   : > { %4317 = vst.msk [vmem:[#allocation3 + $0x98] sm:$0xff] %vm4297_vm7, %v4240_v1  ;;  %v4238_v46 = vpop.permute.xlu0 %4237 }
 0x466   : > { %4316 = vst.msk [vmem:[#allocation3 + $0x90] sm:$0xff] %vm4297_vm7, %v4238_v46  ;;  %4613 = vrot.lane.b32.xlu1 %v18564_v62, %s18385_s3 }
 0x467   : > { %4611 = vrot.lane.b32.xlu0 %v18565_v38, %s18385_s3 }
 0x468   : > { %v4244_v14 = vpop.permute.xlu1 %4243 }
 0x469   : > { %4319 = vst.msk [vmem:[#allocation3 + $0xa8] sm:$0xff] %vm4297_vm7, %v4244_v14  ;;  %v4242_v11 = vpop.permute.xlu0 %4241 }
 0x46a   : > { %4318 = vst.msk [vmem:[#allocation3 + $0xa0] sm:$0xff] %vm4297_vm7, %v4242_v11  ;;  %4617 = vrot.lane.b32.xlu1 %v18566_v12, %s18385_s3  ;;  %v15311_v11 = vld [vmem:[#allocation2 + $0x182] sm:$0xff] }
 0x46b   : > { %4615 = vrot.lane.b32.xlu0 %v18567_v54, %s18385_s3 }
 0x46c   : > { %v4248_v19 = vpop.permute.xlu1 %4247 }
 0x46d   : > { %4321 = vst.msk [vmem:[#allocation3 + $0xb8] sm:$0xff] %vm4297_vm7, %v4248_v19  ;;  %v4246_v26 = vpop.permute.xlu0 %4245 }
 0x46e   : > { %4320 = vst.msk [vmem:[#allocation3 + $0xb0] sm:$0xff] %vm4297_vm7, %v4246_v26  ;;  %4621 = vrot.lane.b32.xlu1 %v18568_v52, %s18385_s3 }
 0x46f   : > { %4619 = vrot.lane.b32.xlu0 %v18569_v39, %s18385_s3  ;;  %v4747_v39 = vld [vmem:[#allocation2 + $0x1a0] sm:$0xff] }
 0x470   : > { %v4252_v59 = vpop.permute.xlu1 %4251 }
 0x471   : > { %4323 = vst.msk [vmem:[#allocation3 + $0xc8] sm:$0xff] %vm4297_vm7, %v4252_v59  ;;  %v4250_v17 = vpop.permute.xlu0 %4249 }
 0x472   : > { %4322 = vst.msk [vmem:[#allocation3 + $0xc0] sm:$0xff] %vm4297_vm7, %v4250_v17  ;;  %4625 = vrot.lane.b32.xlu1 %v18570_v13, %s18385_s3  ;;  %v4746_v17 = vld [vmem:[#allocation2 + $0x198] sm:$0xff] }
 0x473   : > { %4623 = vrot.lane.b32.xlu0 %v18571_v22, %s18385_s3  ;;  %v5327_v22 = vld [vmem:[%s18248_s7] sm:$0xff] }
 0x474   : > { %v4256_v23 = vpop.permute.xlu1 %4255 }
 0x475   : > { %4325 = vst.msk [vmem:[#allocation3 + $0xd8] sm:$0xff] %vm4297_vm7, %v4256_v23  ;;  %v4254_v20 = vpop.permute.xlu0 %4253  ;;  %v5328_v23 = vld [vmem:[%s18248_s7 + $0x8] sm:$0xff] }
 0x476   : > { %4324 = vst.msk [vmem:[#allocation3 + $0xd0] sm:$0xff] %vm4297_vm7, %v4254_v20  ;;  %4629 = vrot.lane.b32.xlu1 %v18572_v49, %s18385_s3 }
 0x477   : > { %4627 = vrot.lane.b32.xlu0 %v18573_v40, %s18385_s3  ;;  %v18581_v40 = vld [vmem:[#allocation93_spill] sm:$0xff] }
 0x478   : > { %v4260_v31 = vpop.permute.xlu1 %4259 }
 0x479   : > { %4327 = vst.msk [vmem:[#allocation3 + $0xe8] sm:$0xff] %vm4297_vm7, %v4260_v31  ;;  %v4258_v5 = vpop.permute.xlu0 %4257  ;;  %v18582_v31 = vld [vmem:[#allocation94_spill] sm:$0xff] }
 0x47a   : > { %4326 = vst.msk [vmem:[#allocation3 + $0xe0] sm:$0xff] %vm4297_vm7, %v4258_v5  ;;  %4633 = vrot.lane.b32.xlu1 %v18574_v57, %s18385_s3 }
 0x47b   : > { %4631 = vrot.lane.b32.xlu0 %v14969_v36, %s18385_s3  ;;  %v18577_v36 = vld [vmem:[#allocation91_spill] sm:$0xff] }
 0x47c   : > { %v4264_v58 = vpop.permute.xlu1 %4263 }
 0x47d   : > { %4329 = vst.msk [vmem:[#allocation3 + $0xf8] sm:$0xff] %vm4297_vm7, %v4264_v58  ;;  %v4262_v35 = vpop.permute.xlu0 %4261  ;;  %v18583_v58 = vld [vmem:[#allocation95_spill] sm:$0xff] }
 0x47e   : > { %4328 = vst.msk [vmem:[#allocation3 + $0xf0] sm:$0xff] %vm4297_vm7, %v4262_v35  ;;  %4637 = vrot.lane.b32.xlu1 %v18575_v18, %s18385_s3 }
 0x47f   : > { %4635 = vrot.lane.b32.xlu0 %v18576_v50, %s18385_s3  ;;  %v5329_v50 = vld [vmem:[%s18248_s7 + $0x10] sm:$0xff] }
 0x480   : > { %v4397_v56 = vpop.permute.xlu1 %4396 }
 0x481   : > { %4492 = vst.msk [vmem:[#allocation3 + $0x8] sm:$0xff] %vm4490_vm8, %v4397_v56  ;;  %v4395_v1 = vpop.permute.xlu0 %4394 }
 0x482   : > { %4491 = vst.msk [vmem:[#allocation3] sm:$0xff] %vm4490_vm8, %v4395_v1  ;;  %4641 = vrot.lane.b32.xlu1 %v14986_v44, %s18385_s3  ;;  %v15306_v44 = vld [vmem:[#allocation2 + $0x18a] sm:$0xff] }
 0x483   : > { %4639 = vrot.lane.b32.xlu0 %v18577_v36, %s18385_s3 }
 0x484   : > { %v4401_v46 = vpop.permute.xlu1 %4400 }
 0x485   : > { %4494 = vst.msk [vmem:[#allocation3 + $0x18] sm:$0xff] %vm4490_vm8, %v4401_v46  ;;  %v4399_v62 = vpop.permute.xlu0 %4398  ;;  %v4916_v46 = vld [vmem:[#allocation2 + $0x81] sm:$0xff] }
 0x486   : > { %4493 = vst.msk [vmem:[#allocation3 + $0x10] sm:$0xff] %vm4490_vm8, %v4399_v62  ;;  %4645 = vrot.lane.b32.xlu1 %v14996_v53, %s18385_s3 }
 0x487   : > { %4643 = vrot.lane.b32.xlu0 %v15001_v9, %s18385_s3 }
 0x488   : > { %v4405_v38 = vpop.permute.xlu1 %4404 }
 0x489   : > { %4496 = vst.msk [vmem:[#allocation3 + $0x28] sm:$0xff] %vm4490_vm8, %v4405_v38  ;;  %v4403_v14 = vpop.permute.xlu0 %4402 }
 0x48a   : > { %4495 = vst.msk [vmem:[#allocation3 + $0x20] sm:$0xff] %vm4490_vm8, %v4403_v14  ;;  %4649 = vrot.lane.b32.xlu1 %v15306_v44, %s18385_s3  ;;  %v4917_v14 = vld [vmem:[#allocation2 + $0x91] sm:$0xff] }
 0x48b   : > { %4647 = vrot.lane.b32.xlu0 %v15311_v11, %s18385_s3 }
 0x48c   : > { %v4409_v53 = vpop.permute.xlu1 %4408 }
 0x48d   : > { %4498 = vst.msk [vmem:[#allocation3 + $0x38] sm:$0xff] %vm4490_vm8, %v4409_v53  ;;  %v4407_v9 = vpop.permute.xlu0 %4406 }
 0x48e   : > { %4497 = vst.msk [vmem:[#allocation3 + $0x30] sm:$0xff] %vm4490_vm8, %v4407_v9  ;;  %4782 = vrot.lane.b32.xlu1 %v14539_v61, %s18353_s27 }
 0x48f   : > { %4780 = vrot.lane.b32.xlu0 %v14546_v0, %s18353_s27 }
 0x490   : > { %v4413_v12 = vpop.permute.xlu1 %4412 }
 0x491   : > { %4500 = vst.msk [vmem:[#allocation3 + $0x48] sm:$0xff] %vm4490_vm8, %v4413_v12  ;;  %v4411_v54 = vpop.permute.xlu0 %4410  ;;  %v4920_v12 = vld [vmem:[#allocation2 + $0xb1] sm:$0xff] }
 0x492   : > { %4499 = vst.msk [vmem:[#allocation3 + $0x40] sm:$0xff] %vm4490_vm8, %v4411_v54  ;;  %4786 = vrot.lane.b32.xlu1 %v14555_v29, %s18353_s27  ;;  %v4919_v54 = vld [vmem:[#allocation2 + $0xa9] sm:$0xff] }
 0x493   : > { %4784 = vrot.lane.b32.xlu0 %v14562_v41, %s18353_s27 }
 0x494   : > { %v4417_v19 = vpop.permute.xlu1 %4416 }
 0x495   : > { %4502 = vst.msk [vmem:[#allocation3 + $0x58] sm:$0xff] %vm4490_vm8, %v4417_v19  ;;  %v4415_v26 = vpop.permute.xlu0 %4414  ;;  %v5331_v19 = vld [vmem:[%s18248_s7 + $0x20] sm:$0xff] }
 0x496   : > { %4501 = vst.msk [vmem:[#allocation3 + $0x50] sm:$0xff] %vm4490_vm8, %v4415_v26  ;;  %4790 = vrot.lane.b32.xlu1 %v14571_v47, %s18353_s27  ;;  %v5332_v26 = vld [vmem:[%s18248_s7 + $0x28] sm:$0xff] }
 0x497   : > { %4788 = vrot.lane.b32.xlu0 %v14578_v3, %s18353_s27 }
 0x498   : > { %v4421_v61 = vpop.permute.xlu1 %4420 }
 0x499   : > { %4504 = vst.msk [vmem:[#allocation3 + $0x68] sm:$0xff] %vm4490_vm8, %v4421_v61  ;;  %v4419_v0 = vpop.permute.xlu0 %4418  ;;  %v12375_v61 = vpack.c.bf16 %v5332_v26, %v5331_v19 }
 0x49a   : > { %4503 = vst.msk [vmem:[#allocation3 + $0x60] sm:$0xff] %vm4490_vm8, %v4419_v0  ;;  %4794 = vrot.lane.b32.xlu1 %v14592_v15, %s18353_s27 }
 0x49b   : > { %4792 = vrot.lane.b32.xlu0 %v14600_v16, %s18353_s27 }
 0x49c   : > { %v4425_v29 = vpop.permute.xlu1 %4424 }
 0x49d   : > { %4506 = vst.msk [vmem:[#allocation3 + $0x78] sm:$0xff] %vm4490_vm8, %v4425_v29  ;;  %v4423_v41 = vpop.permute.xlu0 %4422 }
 0x49e   : > { %4505 = vst.msk [vmem:[#allocation3 + $0x70] sm:$0xff] %vm4490_vm8, %v4423_v41  ;;  %4798 = vrot.lane.b32.xlu1 %v14614_v30, %s18353_s27  ;;  %v4922_v41 = vld [vmem:[#allocation2 + $0xc9] sm:$0xff] }
 0x49f   : > { %4796 = vrot.lane.b32.xlu0 %v14622_v4, %s18353_s27 }
 0x4a0   : > { %v4429_v47 = vpop.permute.xlu1 %4428 }
 0x4a1   : > { %4508 = vst.msk [vmem:[#allocation3 + $0x88] sm:$0xff] %vm4490_vm8, %v4429_v47  ;;  %v4427_v3 = vpop.permute.xlu0 %4426  ;;  %v4921_v47 = vld [vmem:[#allocation2 + $0xc1] sm:$0xff] }
 0x4a2   : > { %4507 = vst.msk [vmem:[#allocation3 + $0x80] sm:$0xff] %vm4490_vm8, %v4427_v3  ;;  %4802 = vrot.lane.b32.xlu1 %v14636_v60, %s18353_s27 }
 0x4a3   : > { %4800 = vrot.lane.b32.xlu0 %v14644_v8, %s18353_s27 }
 0x4a4   : > { %v4433_v15 = vpop.permute.xlu1 %4432 }
 0x4a5   : > { %4510 = vst.msk [vmem:[#allocation3 + $0x98] sm:$0xff] %vm4490_vm8, %v4433_v15  ;;  %v4431_v16 = vpop.permute.xlu0 %4430 }
 0x4a6   : > { %4509 = vst.msk [vmem:[#allocation3 + $0x90] sm:$0xff] %vm4490_vm8, %v4431_v16  ;;  %4806 = vrot.lane.b32.xlu1 %v14658_v45, %s18353_s27  ;;  %v4924_v16 = vld [vmem:[#allocation2 + $0xe1] sm:$0xff] }
 0x4a7   : > { %4804 = vrot.lane.b32.xlu0 %v14666_v21, %s18353_s27 }
 0x4a8   : > { %v4437_v30 = vpop.permute.xlu1 %4436 }
 0x4a9   : > { %4512 = vst.msk [vmem:[#allocation3 + $0xa8] sm:$0xff] %vm4490_vm8, %v4437_v30  ;;  %v4435_v4 = vpop.permute.xlu0 %4434  ;;  %v4923_v30 = vld [vmem:[#allocation2 + $0xd9] sm:$0xff] }
 0x4aa   : > { %4511 = vst.msk [vmem:[#allocation3 + $0xa0] sm:$0xff] %vm4490_vm8, %v4435_v4  ;;  %4810 = vrot.lane.b32.xlu1 %v14680_v63, %s18353_s27 }
 0x4ab   : > { %4808 = vrot.lane.b32.xlu0 %v14688_v24, %s18353_s27 }
 0x4ac   : > { %v4441_v60 = vpop.permute.xlu1 %4440 }
 0x4ad   : > { %4514 = vst.msk [vmem:[#allocation3 + $0xb8] sm:$0xff] %vm4490_vm8, %v4441_v60  ;;  %v4439_v8 = vpop.permute.xlu0 %4438 }
 0x4ae   : > { %4513 = vst.msk [vmem:[#allocation3 + $0xb0] sm:$0xff] %vm4490_vm8, %v4439_v8  ;;  %4814 = vrot.lane.b32.xlu1 %v14702_v6, %s18353_s27  ;;  %v4926_v8 = vld [vmem:[#allocation2 + $0xf9] sm:$0xff] }
 0x4af   : > { %4812 = vrot.lane.b32.xlu0 %v14710_v51, %s18353_s27 }
 0x4b0   : > { %v4445_v45 = vpop.permute.xlu1 %4444 }
 0x4b1   : > { %4516 = vst.msk [vmem:[#allocation3 + $0xc8] sm:$0xff] %vm4490_vm8, %v4445_v45  ;;  %v4443_v21 = vpop.permute.xlu0 %4442  ;;  %v4925_v45 = vld [vmem:[#allocation2 + $0xf1] sm:$0xff] }
 0x4b2   : > { %4515 = vst.msk [vmem:[#allocation3 + $0xc0] sm:$0xff] %vm4490_vm8, %v4443_v21  ;;  %4818 = vrot.lane.b32.xlu1 %v14724_v37, %s18353_s27 }
 0x4b3   : > { %4816 = vrot.lane.b32.xlu0 %v14732_v33, %s18353_s27 }
 0x4b4   : > { %v4449_v63 = vpop.permute.xlu1 %4448 }
 0x4b5   : > { %4518 = vst.msk [vmem:[#allocation3 + $0xd8] sm:$0xff] %vm4490_vm8, %v4449_v63  ;;  %v4447_v24 = vpop.permute.xlu0 %4446 }
 0x4b6   : > { %4517 = vst.msk [vmem:[#allocation3 + $0xd0] sm:$0xff] %vm4490_vm8, %v4447_v24  ;;  %4822 = vrot.lane.b32.xlu1 %v14746_v34, %s18353_s27  ;;  %v4928_v24 = vld [vmem:[#allocation2 + $0x111] sm:$0xff] }
 0x4b7   : > { %4820 = vrot.lane.b32.xlu0 %v14754_v10, %s18353_s27 }
 0x4b8   : > { %v4453_v6 = vpop.permute.xlu1 %4452 }
 0x4b9   : > { %4520 = vst.msk [vmem:[#allocation3 + $0xe8] sm:$0xff] %vm4490_vm8, %v4453_v6  ;;  %v4451_v51 = vpop.permute.xlu0 %4450  ;;  %v5333_v6 = vld [vmem:[%s18248_s7 + $0x30] sm:$0xff] }
 0x4ba   : > { %4519 = vst.msk [vmem:[#allocation3 + $0xe0] sm:$0xff] %vm4490_vm8, %v4451_v51  ;;  %4826 = vrot.lane.b32.xlu1 %v14768_v55, %s18353_s27  ;;  %v18578_v55 = vld [vmem:[#allocation40_spill] sm:$0xff]  ;;  %v5334_v51 = vld [vmem:[%s18248_s7 + $0x38] sm:$0xff] }
 0x4bb   : > { %4824 = vrot.lane.b32.xlu0 %v14776_v7, %s18353_s27  ;;  %v18579_v7 = vld [vmem:[#allocation41_spill] sm:$0xff] }
 0x4bc   : > { %v4457_v37 = vpop.permute.xlu1 %4456 }
 0x4bd   : > { %4522 = vst.msk [vmem:[#allocation3 + $0xf8] sm:$0xff] %vm4490_vm8, %v4457_v37  ;;  %v4455_v33 = vpop.permute.xlu0 %4454  ;;  %v4927_v37 = vld [vmem:[#allocation2 + $0x109] sm:$0xff] }
 0x4be   : > { %4521 = vst.msk [vmem:[#allocation3 + $0xf0] sm:$0xff] %vm4490_vm8, %v4455_v33  ;;  %4830 = vrot.lane.b32.xlu1 %v14792_v43, %s18353_s27  ;;  %v12379_v33 = vpack.c.bf16 %v5334_v51, %v5333_v6  ;;  %v5113_v6 = vld [vmem:[#allocation2 + $0xb2] sm:$0xff]  ;;  %v5112_v51 = vld [vmem:[#allocation2 + $0xaa] sm:$0xff] }
 0x4bf   : > { %4828 = vrot.lane.b32.xlu0 %v14799_v2, %s18353_s27  ;;  %v18580_v2 = vld [vmem:[#allocation92_spill] sm:$0xff] }
 0x4c0   : > { %v4590_v34 = vpop.permute.xlu1 %4589 }
 0x4c1   : > { %4685 = vst.msk [vmem:[#allocation3 + $0x8] sm:$0xff] %vm4683_vm9, %v4590_v34  ;;  %v4588_v10 = vpop.permute.xlu0 %4587 }
 0x4c2   : > { %4684 = vst.msk [vmem:[#allocation3] sm:$0xff] %vm4683_vm9, %v4588_v10  ;;  %4834 = vrot.lane.b32.xlu1 %v18578_v55, %s18353_s27  ;;  %v4930_v55 = vld [vmem:[#allocation2 + $0x129] sm:$0xff] }
 0x4c3   : > { %4832 = vrot.lane.b32.xlu0 %v18579_v7, %s18353_s27  ;;  %v4929_v7 = vld [vmem:[#allocation2 + $0x121] sm:$0xff] }
 0x4c4   : > { %v4594_v52 = vpop.permute.xlu1 %4593 }
 0x4c5   : > { %4687 = vst.msk [vmem:[#allocation3 + $0x18] sm:$0xff] %vm4683_vm9, %v4594_v52  ;;  %v4592_v43 = vpop.permute.xlu0 %4591 }
 0x4c6   : > { %4686 = vst.msk [vmem:[#allocation3 + $0x10] sm:$0xff] %vm4683_vm9, %v4592_v43  ;;  %4838 = vrot.lane.b32.xlu1 %v18580_v2, %s18353_s27  ;;  %v5690_v43 = vld [vmem:[%s18252_s11] sm:$0xff]  ;;  %v5691_v2 = vld [vmem:[%s18252_s11 + $0x8] sm:$0xff] }
 0x4c7   : > { %4836 = vrot.lane.b32.xlu0 %v15101_v48, %s18353_s27  ;;  %v12367_v48 = vpack.c.bf16 %v5328_v23, %v5327_v22  ;;  %v5692_v23 = vld [vmem:[%s18252_s11 + $0x10] sm:$0xff] }
 0x4c8   : > { %v4598_v59 = vpop.permute.xlu1 %4597 }
 0x4c9   : > { %4689 = vst.msk [vmem:[#allocation3 + $0x28] sm:$0xff] %vm4683_vm9, %v4598_v59  ;;  %v4596_v13 = vpop.permute.xlu0 %4595  ;;  %12368 = vmatprep.subr.bf16.mxu1 %v12367_v48  ;;  %v4932_v59 = vld [vmem:[#allocation2 + $0x141] sm:$0xff] }
 0x4ca   : > { %4688 = vst.msk [vmem:[#allocation3 + $0x20] sm:$0xff] %vm4683_vm9, %v4596_v13  ;;  %4842 = vrot.lane.b32.xlu1 %v4747_v39, %s18353_s27  ;;  %12370 = vmatpush3.bf16.msra.mxu1 %v12367_v48  ;;  %v4931_v13 = vld [vmem:[#allocation2 + $0x139] sm:$0xff] }
 0x4cb   : > { %4840 = vrot.lane.b32.xlu0 %v4746_v17, %s18353_s27  ;;  %v12383_v17 = vpack.c.bf16 %v5691_v2, %v5690_v43  ;;  %v5693_v48 = vld [vmem:[%s18252_s11 + $0x18] sm:$0xff]  ;;  %s18393_s27 = smov 64  }
 0x4cc   : > { %v4602_v20 = vpop.permute.xlu1 %4601  ;;  %v5116_v43 = vld [vmem:[#allocation2 + $0xda] sm:$0xff] }
 0x4cd   : > { %4691 = vst.msk [vmem:[#allocation3 + $0x38] sm:$0xff] %vm4683_vm9, %v4602_v20  ;;  %v4600_v49 = vpop.permute.xlu0 %4599  ;;  %12384 = vmatprep.subr.bf16.mxu0 %v12383_v17 }
 0x4ce   : > { %4690 = vst.msk [vmem:[#allocation3 + $0x30] sm:$0xff] %vm4683_vm9, %v4600_v49  ;;  %4975 = vrot.lane.b32.xlu1 %v18581_v40, %s12791_s29  ;;  %12386 = vmatpush3.bf16.msra.mxu0 %v12383_v17  ;;  %v4934_v49 = vld [vmem:[#allocation2 + $0x159] sm:$0xff]  ;;  %v12387_v40 = vpack.c.bf16 %v5693_v48, %v5692_v23  ;;  %v5120_v48 = vld [vmem:[#allocation2 + $0x10a] sm:$0xff] }
 0x4cf   : > { %4973 = vrot.lane.b32.xlu0 %v18582_v31, %s12791_s29  ;;  %v4933_v31 = vld [vmem:[#allocation2 + $0x151] sm:$0xff] }
 0x4d0   : > { %v4606_v5 = vpop.permute.xlu1 %4605  ;;  %12388 = vmatprep.subr.bf16.mxu0 %v12387_v40  ;;  %v5118_v17 = vld [vmem:[#allocation2 + $0xf2] sm:$0xff] }
 0x4d1   : > { %4693 = vst.msk [vmem:[#allocation3 + $0x48] sm:$0xff] %vm4683_vm9, %v4606_v5  ;;  %v4604_v57 = vpop.permute.xlu0 %4603  ;;  %v5335_v5 = vld [vmem:[%s18248_s7 + $0x40] sm:$0xff]  ;;  %v5121_v23 = vld [vmem:[#allocation2 + $0x112] sm:$0xff] }
 0x4d2   : > { %4692 = vst.msk [vmem:[#allocation3 + $0x40] sm:$0xff] %vm4683_vm9, %v4604_v57  ;;  %4979 = vrot.lane.b32.xlu1 %v15120_v32, %s12791_s29  ;;  %v5330_v32 = vld [vmem:[%s18248_s7 + $0x18] sm:$0xff]  ;;  %12390 = vmatpush3.bf16.msra.mxu0 %v12387_v40  ;;  %v5123_v40 = vld [vmem:[#allocation2 + $0x12a] sm:$0xff] }
 0x4d3   : > { %4977 = vrot.lane.b32.xlu0 %v18583_v58, %s12791_s29  ;;  %v12371_v56 = vpack.c.bf16 %v5330_v32, %v5329_v50  ;;  %v5694_v58 = vld [vmem:[%s18252_s11 + $0x20] sm:$0xff]  ;;  %v4936_v50 = vld [vmem:[#allocation2 + $0x171] sm:$0xff] }
 0x4d4   : > { %v4610_v35 = vpop.permute.xlu1 %4609 }
 0x4d5   : > { %4695 = vst.msk [vmem:[#allocation3 + $0x58] sm:$0xff] %vm4683_vm9, %v4610_v35  ;;  %v4608_v18 = vpop.permute.xlu0 %4607  ;;  %12372 = vmatprep.subr.bf16.mxu1 %v12371_v56  ;;  %v5695_v35 = vld [vmem:[%s18252_s11 + $0x28] sm:$0xff] }
 0x4d6   : > { %4694 = vst.msk [vmem:[#allocation3 + $0x50] sm:$0xff] %vm4683_vm9, %v4608_v18  ;;  %4983 = vrot.lane.b32.xlu1 %v15130_v27, %s12791_s29  ;;  %v4915_v27 = vld [vmem:[#allocation2 + $0x79] sm:$0xff]  ;;  %12374 = vmatpush3.bf16.msra.mxu1 %v12371_v56  ;;  %v12391_v32 = vpack.c.bf16 %v5695_v35, %v5694_v58  ;;  %v4935_v56 = vld [vmem:[#allocation2 + $0x169] sm:$0xff] }
 0x4d7   : > { %4981 = vrot.lane.b32.xlu0 %v15135_v25, %s12791_s29  ;;  %v4918_v25 = vld [vmem:[#allocation2 + $0x99] sm:$0xff]  ;;  %12376 = vmatprep.subr.bf16.mxu1 %v12375_v61  ;;  %v5957_v58 = vld [vmem:[%s18257_s16 + $0x8] sm:$0xff] }
 0x4d8   : > { %v4614_v1 = vpop.permute.xlu1 %4613  ;;  %12392 = vmatprep.subr.bf16.mxu0 %v12391_v32 }
 0x4d9   : > { %4697 = vst.msk [vmem:[#allocation3 + $0x68] sm:$0xff] %vm4683_vm9, %v4614_v1  ;;  %v4612_v36 = vpop.permute.xlu0 %4611  ;;  %12394 = vmatpush3.bf16.msra.mxu0 %v12391_v32  ;;  %v5124_v32 = vld [vmem:[#allocation2 + $0x13a] sm:$0xff] }
 0x4da   : > { %4696 = vst.msk [vmem:[#allocation3 + $0x60] sm:$0xff] %vm4683_vm9, %v4612_v36  ;;  %4987 = vrot.lane.b32.xlu1 %v4916_v46, %s12791_s29  ;;  %12378 = vmatpush3.bf16.msra.mxu1 %v12375_v61  ;;  %v5696_v36 = vld [vmem:[%s18252_s11 + $0x30] sm:$0xff]  ;;  %v5697_v46 = vld [vmem:[%s18252_s11 + $0x38] sm:$0xff] }
 0x4db   : > { %4985 = vrot.lane.b32.xlu0 %v4915_v27, %s12791_s29  ;;  %12380 = vmatprep.subr.bf16.mxu1 %v12379_v33  ;;  %v5105_v61 = vld [vmem:[#allocation2 + $0x52] sm:$0xff] }
 0x4dc   : > { %v4618_v62 = vpop.permute.xlu1 %4617 }
 0x4dd   : > { %4699 = vst.msk [vmem:[#allocation3 + $0x78] sm:$0xff] %vm4683_vm9, %v4618_v62  ;;  %v4616_v38 = vpop.permute.xlu0 %4615  ;;  %v12395_v62 = vpack.c.bf16 %v5697_v46, %v5696_v36  ;;  %v5127_v36 = vld [vmem:[#allocation2 + $0x15a] sm:$0xff]  ;;  %v5126_v46 = vld [vmem:[#allocation2 + $0x152] sm:$0xff] }
 0x4de   : > { %4698 = vst.msk [vmem:[#allocation3 + $0x70] sm:$0xff] %vm4683_vm9, %v4616_v38  ;;  %4991 = vrot.lane.b32.xlu1 %v4918_v25, %s12791_s29  ;;  %12382 = vmatpush3.bf16.msra.mxu1 %v12379_v33  ;;  %v4940_v38 = vld [vmem:[#allocation2 + $0x1a1] sm:$0xff] }
 0x4df   : > { %4989 = vrot.lane.b32.xlu0 %v4917_v14, %s12791_s29  ;;  %11955 = vmatprep.subr.mxu1 %v5335_v5  ;;  %v4939_v14 = vld [vmem:[#allocation2 + $0x199] sm:$0xff] }
 0x4e0   : > { %v4622_v53 = vpop.permute.xlu1 %4621  ;;  %12396 = vmatprep.subr.bf16.mxu0 %v12395_v62 }
 0x4e1   : > { %4701 = vst.msk [vmem:[#allocation3 + $0x88] sm:$0xff] %vm4683_vm9, %v4622_v53  ;;  %v4620_v9 = vpop.permute.xlu0 %4619  ;;  %12398 = vmatpush3.bf16.msra.mxu0 %v12395_v62 }
 0x4e2   : > { %4700 = vst.msk [vmem:[#allocation3 + $0x80] sm:$0xff] %vm4683_vm9, %v4620_v9  ;;  %4995 = vrot.lane.b32.xlu1 %v4920_v12, %s12791_s29  ;;  %11956 = vmatpush3.msra.mxu1 %v5335_v5  ;;  %v5698_v9 = vld [vmem:[%s18252_s11 + $0x40] sm:$0xff] }
 0x4e3   : > { %4993 = vrot.lane.b32.xlu0 %v4919_v54, %s12791_s29  ;;  %12021 = vmatprep.subr.mxu0 %v5698_v9  ;;  %v5103_v12 = vld [vmem:[#allocation2 + $0x3a] sm:$0xff]  ;;  %v5102_v54 = vld [vmem:[#allocation2 + $0x32] sm:$0xff] }
 0x4e4   : > { %v4626_v0 = vpop.permute.xlu1 %4625 }
 0x4e5   : > { %4703 = vst.msk [vmem:[#allocation3 + $0x98] sm:$0xff] %vm4683_vm9, %v4626_v0  ;;  %v4624_v29 = vpop.permute.xlu0 %4623  ;;  %12022 = vmatpush3.msra.mxu0 %v5698_v9  ;;  %v5104_v0 = vld [vmem:[#allocation2 + $0x4a] sm:$0xff]  ;;  %v5133_v9 = vld [vmem:[#allocation2 + $0x1a2] sm:$0xff] }
 0x4e6   : > { %4702 = vst.msk [vmem:[#allocation3 + $0x90] sm:$0xff] %vm4683_vm9, %v4624_v29  ;;  %4999 = vrot.lane.b32.xlu1 %v4922_v41, %s12791_s29 }
 0x4e7   : > { %4997 = vrot.lane.b32.xlu0 %v4921_v47, %s12791_s29  ;;  %v5107_v47 = vld [vmem:[#allocation2 + $0x6a] sm:$0xff] }
 0x4e8   : > { %v4630_v3 = vpop.permute.xlu1 %4629 }
 0x4e9   : > { %4705 = vst.msk [vmem:[#allocation3 + $0xa8] sm:$0xff] %vm4683_vm9, %v4630_v3  ;;  %v4628_v15 = vpop.permute.xlu0 %4627  ;;  %v5106_v3 = vld [vmem:[#allocation2 + $0x62] sm:$0xff] }
 0x4ea   : > { %4704 = vst.msk [vmem:[#allocation3 + $0xa0] sm:$0xff] %vm4683_vm9, %v4628_v15  ;;  %5003 = vrot.lane.b32.xlu1 %v4924_v16, %s12791_s29 }
 0x4eb   : > { %5001 = vrot.lane.b32.xlu0 %v4923_v30, %s12791_s29  ;;  %v5109_v30 = vld [vmem:[#allocation2 + $0x82] sm:$0xff] }
 0x4ec   : > { %v4634_v4 = vpop.permute.xlu1 %4633 }
 0x4ed   : > { %4707 = vst.msk [vmem:[#allocation3 + $0xb8] sm:$0xff] %vm4683_vm9, %v4634_v4  ;;  %v4632_v60 = vpop.permute.xlu0 %4631  ;;  %v5108_v4 = vld [vmem:[#allocation2 + $0x7a] sm:$0xff] }
 0x4ee   : > { %4706 = vst.msk [vmem:[#allocation3 + $0xb0] sm:$0xff] %vm4683_vm9, %v4632_v60  ;;  %5007 = vrot.lane.b32.xlu1 %v4926_v8, %s12791_s29 }
 0x4ef   : > { %5005 = vrot.lane.b32.xlu0 %v4925_v45, %s12791_s29  ;;  %v5111_v45 = vld [vmem:[#allocation2 + $0x9a] sm:$0xff] }
 0x4f0   : > { %v4638_v21 = vpop.permute.xlu1 %4637 }
 0x4f1   : > { %4709 = vst.msk [vmem:[#allocation3 + $0xc8] sm:$0xff] %vm4683_vm9, %v4638_v21  ;;  %v4636_v63 = vpop.permute.xlu0 %4635  ;;  %v5110_v21 = vld [vmem:[#allocation2 + $0x92] sm:$0xff] }
 0x4f2   : > { %4708 = vst.msk [vmem:[#allocation3 + $0xc0] sm:$0xff] %vm4683_vm9, %v4636_v63  ;;  %5011 = vrot.lane.b32.xlu1 %v4928_v24, %s12791_s29 }
 0x4f3   : > { %5009 = vrot.lane.b32.xlu0 %v4927_v37, %s12791_s29 }
 0x4f4   : > { %v4642_v34 = vpop.permute.xlu1 %4641 }
 0x4f5   : > { %4711 = vst.msk [vmem:[#allocation3 + $0xd8] sm:$0xff] %vm4683_vm9, %v4642_v34  ;;  %v4640_v10 = vpop.permute.xlu0 %4639  ;;  %v5115_v34 = vld [vmem:[#allocation2 + $0xca] sm:$0xff] }
 0x4f6   : > { %4710 = vst.msk [vmem:[#allocation3 + $0xd0] sm:$0xff] %vm4683_vm9, %v4640_v10  ;;  %5015 = vrot.lane.b32.xlu1 %v4930_v55, %s12791_s29  ;;  %v5114_v10 = vld [vmem:[#allocation2 + $0xc2] sm:$0xff] }
 0x4f7   : > { %5013 = vrot.lane.b32.xlu0 %v4929_v7, %s12791_s29 }
 0x4f8   : > { %v4646_v52 = vpop.permute.xlu1 %4645 }
 0x4f9   : > { %4713 = vst.msk [vmem:[#allocation3 + $0xe8] sm:$0xff] %vm4683_vm9, %v4646_v52  ;;  %v4644_v39 = vpop.permute.xlu0 %4643  ;;  %v5117_v52 = vld [vmem:[#allocation2 + $0xe2] sm:$0xff] }
 0x4fa   : > { %4712 = vst.msk [vmem:[#allocation3 + $0xe0] sm:$0xff] %vm4683_vm9, %v4644_v39  ;;  %5019 = vrot.lane.b32.xlu1 %v4932_v59, %s12791_s29  ;;  %v5119_v59 = vld [vmem:[#allocation2 + $0xfa] sm:$0xff] }
 0x4fb   : > { %5017 = vrot.lane.b32.xlu0 %v4931_v13, %s12791_s29 }
 0x4fc   : > { %v4650_v22 = vpop.permute.xlu1 %4649 }
 0x4fd   : > { %4715 = vst.msk [vmem:[#allocation3 + $0xf8] sm:$0xff] %vm4683_vm9, %v4650_v22  ;;  %v4648_v20 = vpop.permute.xlu0 %4647 }
 0x4fe   : > { %4714 = vst.msk [vmem:[#allocation3 + $0xf0] sm:$0xff] %vm4683_vm9, %v4648_v20  ;;  %5023 = vrot.lane.b32.xlu1 %v4934_v49, %s12791_s29 }
 0x4ff   : > { %5021 = vrot.lane.b32.xlu0 %v4933_v31, %s12791_s29  ;;  %v5122_v31 = vld [vmem:[#allocation2 + $0x122] sm:$0xff] }
 0x500   : > { %v4783_v57 = vpop.permute.xlu1 %4782 }
 0x501   : > { %4878 = vst.msk [vmem:[#allocation3 + $0x8] sm:$0xff] %vm4876_vm10, %v4783_v57  ;;  %v4781_v18 = vpop.permute.xlu0 %4780  ;;  %v5956_v57 = vld [vmem:[%s18257_s16] sm:$0xff] }
 0x502   : > { %4877 = vst.msk [vmem:[#allocation3] sm:$0xff] %vm4876_vm10, %v4781_v18  ;;  %5027 = vrot.lane.b32.xlu1 %v4936_v50, %s12791_s29  ;;  %v5125_v18 = vld [vmem:[#allocation2 + $0x142] sm:$0xff]  ;;  %v15586_v50 = vpack.c.bf16 %v5957_v58, %v5956_v57  ;;  %v5962_v57 = vld [vmem:[%s18257_s16 + $0x30] sm:$0xff]  ;;  %v5963_v58 = vld [vmem:[%s18257_s16 + $0x38] sm:$0xff] }
 0x503   : > { %5025 = vrot.lane.b32.xlu0 %v4935_v56, %s12791_s29 }
 0x504   : > { %v4787_v1 = vpop.permute.xlu1 %4786  ;;  %12400 = vmatprep.subr.bf16.mxu1 %v15586_v50 }
 0x505   : > { %4880 = vst.msk [vmem:[#allocation3 + $0x18] sm:$0xff] %vm4876_vm10, %v4787_v1  ;;  %v4785_v27 = vpop.permute.xlu0 %4784 }
 0x506   : > { %4879 = vst.msk [vmem:[#allocation3 + $0x10] sm:$0xff] %vm4876_vm10, %v4785_v27  ;;  %5031 = vrot.lane.b32.xlu1 %v15206_v28, %s12791_s29 }
 0x507   : > { %5029 = vrot.lane.b32.xlu0 %v15211_v42, %s12791_s29 }
 0x508   : > { %v4791_v25 = vpop.permute.xlu1 %4790 }
 0x509   : > { %4882 = vst.msk [vmem:[#allocation3 + $0x28] sm:$0xff] %vm4876_vm10, %v4791_v25  ;;  %v4789_v53 = vpop.permute.xlu0 %4788  ;;  %v5128_v25 = vld [vmem:[#allocation2 + $0x16a] sm:$0xff] }
 0x50a   : > { %4881 = vst.msk [vmem:[#allocation3 + $0x20] sm:$0xff] %vm4876_vm10, %v4789_v53  ;;  %5035 = vrot.lane.b32.xlu1 %v4940_v38, %s12791_s29  ;;  %v5129_v38 = vld [vmem:[#allocation2 + $0x172] sm:$0xff] }
 0x50b   : > { %5033 = vrot.lane.b32.xlu0 %v4939_v14, %s12791_s29 }
 0x50c   : > { %v4795_v28 = vpop.permute.xlu1 %4794 }
 0x50d   : > { %4884 = vst.msk [vmem:[#allocation3 + $0x38] sm:$0xff] %vm4876_vm10, %v4795_v28  ;;  %v4793_v42 = vpop.permute.xlu0 %4792 }
 0x50e   : > { %4883 = vst.msk [vmem:[#allocation3 + $0x30] sm:$0xff] %vm4876_vm10, %v4793_v42  ;;  %5168 = vrot.lane.b32.xlu1 %v5103_v12, %s18393_s27  ;;  %v5132_v42 = vld [vmem:[#allocation2 + $0x19a] sm:$0xff] }
 0x50f   : > { %5166 = vrot.lane.b32.xlu0 %v5102_v54, %s18393_s27 }
 0x510   : > { %v4799_v19 = vpop.permute.xlu1 %4798 }
 0x511   : > { %4886 = vst.msk [vmem:[#allocation3 + $0x48] sm:$0xff] %vm4876_vm10, %v4799_v19  ;;  %v4797_v26 = vpop.permute.xlu0 %4796 }
 0x512   : > { %4885 = vst.msk [vmem:[#allocation3 + $0x40] sm:$0xff] %vm4876_vm10, %v4797_v26  ;;  %5172 = vrot.lane.b32.xlu1 %v5105_v61, %s18393_s27 }
 0x513   : > { %5170 = vrot.lane.b32.xlu0 %v5104_v0, %s18393_s27 }
 0x514   : > { %v4803_v29 = vpop.permute.xlu1 %4802 }
 0x515   : > { %4888 = vst.msk [vmem:[#allocation3 + $0x58] sm:$0xff] %vm4876_vm10, %v4803_v29  ;;  %v4801_v41 = vpop.permute.xlu0 %4800 }
 0x516   : > { %4887 = vst.msk [vmem:[#allocation3 + $0x50] sm:$0xff] %vm4876_vm10, %v4801_v41  ;;  %5176 = vrot.lane.b32.xlu1 %v5107_v47, %s18393_s27 }
 0x517   : > { %5174 = vrot.lane.b32.xlu0 %v5106_v3, %s18393_s27 }
 0x518   : > { %v4807_v15 = vpop.permute.xlu1 %4806 }
 0x519   : > { %4890 = vst.msk [vmem:[#allocation3 + $0x68] sm:$0xff] %vm4876_vm10, %v4807_v15  ;;  %v4805_v16 = vpop.permute.xlu0 %4804 }
 0x51a   : > { %4889 = vst.msk [vmem:[#allocation3 + $0x60] sm:$0xff] %vm4876_vm10, %v4805_v16  ;;  %5180 = vrot.lane.b32.xlu1 %v5109_v30, %s18393_s27 }
 0x51b   : > { %5178 = vrot.lane.b32.xlu0 %v5108_v4, %s18393_s27 }
 0x51c   : > { %v4811_v60 = vpop.permute.xlu1 %4810 }
 0x51d   : > { %4892 = vst.msk [vmem:[#allocation3 + $0x78] sm:$0xff] %vm4876_vm10, %v4811_v60  ;;  %v4809_v8 = vpop.permute.xlu0 %4808 }
 0x51e   : > { %4891 = vst.msk [vmem:[#allocation3 + $0x70] sm:$0xff] %vm4876_vm10, %v4809_v8  ;;  %5184 = vrot.lane.b32.xlu1 %v5111_v45, %s18393_s27 }
 0x51f   : > { %5182 = vrot.lane.b32.xlu0 %v5110_v21, %s18393_s27 }
 0x520   : > { %v4815_v63 = vpop.permute.xlu1 %4814 }
 0x521   : > { %4894 = vst.msk [vmem:[#allocation3 + $0x88] sm:$0xff] %vm4876_vm10, %v4815_v63  ;;  %v4813_v24 = vpop.permute.xlu0 %4812 }
 0x522   : > { %4893 = vst.msk [vmem:[#allocation3 + $0x80] sm:$0xff] %vm4876_vm10, %v4813_v24  ;;  %5188 = vrot.lane.b32.xlu1 %v5113_v6, %s18393_s27 }
 0x523   : > { %5186 = vrot.lane.b32.xlu0 %v5112_v51, %s18393_s27 }
 0x524   : > { %v4819_v37 = vpop.permute.xlu1 %4818 }
 0x525   : > { %4896 = vst.msk [vmem:[#allocation3 + $0x98] sm:$0xff] %vm4876_vm10, %v4819_v37  ;;  %v4817_v33 = vpop.permute.xlu0 %4816 }
 0x526   : > { %4895 = vst.msk [vmem:[#allocation3 + $0x90] sm:$0xff] %vm4876_vm10, %v4817_v33  ;;  %5192 = vrot.lane.b32.xlu1 %v5115_v34, %s18393_s27 }
 0x527   : > { %5190 = vrot.lane.b32.xlu0 %v5114_v10, %s18393_s27 }
 0x528   : > { %v4823_v55 = vpop.permute.xlu1 %4822 }
 0x529   : > { %4898 = vst.msk [vmem:[#allocation3 + $0xa8] sm:$0xff] %vm4876_vm10, %v4823_v55  ;;  %v4821_v7 = vpop.permute.xlu0 %4820 }
 0x52a   : > { %4897 = vst.msk [vmem:[#allocation3 + $0xa0] sm:$0xff] %vm4876_vm10, %v4821_v7  ;;  %5196 = vrot.lane.b32.xlu1 %v5117_v52, %s18393_s27 }
 0x52b   : > { %5194 = vrot.lane.b32.xlu0 %v5116_v43, %s18393_s27  ;;  %v5958_v43 = vld [vmem:[%s18257_s16 + $0x10] sm:$0xff] }
 0x52c   : > { %v4827_v2 = vpop.permute.xlu1 %4826 }
 0x52d   : > { %4900 = vst.msk [vmem:[#allocation3 + $0xb8] sm:$0xff] %vm4876_vm10, %v4827_v2  ;;  %v4825_v39 = vpop.permute.xlu0 %4824  ;;  %v5959_v2 = vld [vmem:[%s18257_s16 + $0x18] sm:$0xff] }
 0x52e   : > { %4899 = vst.msk [vmem:[#allocation3 + $0xb0] sm:$0xff] %vm4876_vm10, %v4825_v39  ;;  %5200 = vrot.lane.b32.xlu1 %v5119_v59, %s18393_s27 }
 0x52f   : > { %5198 = vrot.lane.b32.xlu0 %v5118_v17, %s18393_s27 }
 0x530   : > { %v4831_v13 = vpop.permute.xlu1 %4830 }
 0x531   : > { %4902 = vst.msk [vmem:[#allocation3 + $0xc8] sm:$0xff] %vm4876_vm10, %v4831_v13  ;;  %v4829_v22 = vpop.permute.xlu0 %4828  ;;  %v12403_v13 = vpack.c.bf16 %v5959_v2, %v5958_v43 }
 0x532   : > { %4901 = vst.msk [vmem:[#allocation3 + $0xc0] sm:$0xff] %vm4876_vm10, %v4829_v22  ;;  %5204 = vrot.lane.b32.xlu1 %v5121_v23, %s18393_s27  ;;  %v5960_v23 = vld [vmem:[%s18257_s16 + $0x20] sm:$0xff] }
 0x533   : > { %5202 = vrot.lane.b32.xlu0 %v5120_v48, %s18393_s27  ;;  %v5961_v48 = vld [vmem:[%s18257_s16 + $0x28] sm:$0xff] }
 0x534   : > { %v4835_v20 = vpop.permute.xlu1 %4834 }
 0x535   : > { %4904 = vst.msk [vmem:[#allocation3 + $0xd8] sm:$0xff] %vm4876_vm10, %v4835_v20  ;;  %v4833_v49 = vpop.permute.xlu0 %4832 }
 0x536   : > { %4903 = vst.msk [vmem:[#allocation3 + $0xd0] sm:$0xff] %vm4876_vm10, %v4833_v49  ;;  %5208 = vrot.lane.b32.xlu1 %v5123_v40, %s18393_s27 }
 0x537   : > { %5206 = vrot.lane.b32.xlu0 %v5122_v31, %s18393_s27  ;;  %v12407_v31 = vpack.c.bf16 %v5961_v48, %v5960_v23  ;;  %v6358_v48 = vld [vmem:[#allocation2 + $0x8] sm:$0xff] }
 0x538   : > { %v4839_v5 = vpop.permute.xlu1 %4838 }
 0x539   : > { %4906 = vst.msk [vmem:[#allocation3 + $0xe8] sm:$0xff] %vm4876_vm10, %v4839_v5  ;;  %v4837_v35 = vpop.permute.xlu0 %4836 }
 0x53a   : > { %4905 = vst.msk [vmem:[#allocation3 + $0xe0] sm:$0xff] %vm4876_vm10, %v4837_v35  ;;  %5212 = vrot.lane.b32.xlu1 %v5125_v18, %s18393_s27 }
 0x53b   : > { %5210 = vrot.lane.b32.xlu0 %v5124_v32, %s18393_s27  ;;  %v12411_v32 = vpack.c.bf16 %v5963_v58, %v5962_v57  ;;  %v18585_v58 = vld [vmem:[#allocation36_spill] sm:$0xff] }
 0x53c   : > { %v4843_v56 = vpop.permute.xlu1 %4842 }
 0x53d   : > { %4908 = vst.msk [vmem:[#allocation3 + $0xf8] sm:$0xff] %vm4876_vm10, %v4843_v56  ;;  %v4841_v1 = vpop.permute.xlu0 %4840 }
 0x53e   : > { %4907 = vst.msk [vmem:[#allocation3 + $0xf0] sm:$0xff] %vm4876_vm10, %v4841_v1  ;;  %5216 = vrot.lane.b32.xlu1 %v5127_v36, %s18393_s27 }
 0x53f   : > { %5214 = vrot.lane.b32.xlu0 %v5126_v46, %s18393_s27 }
 0x540   : > { %v4976_v27 = vpop.permute.xlu1 %4975 }
 0x541   : > { %5071 = vst.msk [vmem:[#allocation3 + $0x8] sm:$0xff] %vm5069_vm11, %v4976_v27  ;;  %v4974_v62 = vpop.permute.xlu0 %4973 }
 0x542   : > { %5070 = vst.msk [vmem:[#allocation3] sm:$0xff] %vm5069_vm11, %v4974_v62  ;;  %5220 = vrot.lane.b32.xlu1 %v5129_v38, %s18393_s27  ;;  %v5964_v62 = vld [vmem:[%s18257_s16 + $0x40] sm:$0xff] }
 0x543   : > { %5218 = vrot.lane.b32.xlu0 %v5128_v25, %s18393_s27 }
 0x544   : > { %v4980_v14 = vpop.permute.xlu1 %4979 }
 0x545   : > { %5073 = vst.msk [vmem:[#allocation3 + $0x18] sm:$0xff] %vm5069_vm11, %v4980_v14  ;;  %v4978_v53 = vpop.permute.xlu0 %4977 }
 0x546   : > { %5072 = vst.msk [vmem:[#allocation3 + $0x10] sm:$0xff] %vm5069_vm11, %v4978_v53  ;;  %5224 = vrot.lane.b32.xlu1 %v15306_v44, %s18393_s27 }
 0x547   : > { %5222 = vrot.lane.b32.xlu0 %v15311_v11, %s18393_s27 }
 0x548   : > { %v4984_v28 = vpop.permute.xlu1 %4983 }
 0x549   : > { %5075 = vst.msk [vmem:[#allocation3 + $0x28] sm:$0xff] %vm5069_vm11, %v4984_v28  ;;  %v4982_v12 = vpop.permute.xlu0 %4981 }
 0x54a   : > { %5074 = vst.msk [vmem:[#allocation3 + $0x20] sm:$0xff] %vm5069_vm11, %v4982_v12  ;;  %5228 = vrot.lane.b32.xlu1 %v5133_v9, %s18393_s27 }
 0x54b   : > { %5226 = vrot.lane.b32.xlu0 %v5132_v42, %s18393_s27 }
 0x54c   : > { %v4988_v54 = vpop.permute.xlu1 %4987 }
 0x54d   : > { %5077 = vst.msk [vmem:[#allocation3 + $0x38] sm:$0xff] %vm5069_vm11, %v4988_v54  ;;  %v4986_v19 = vpop.permute.xlu0 %4985 }
 0x54e   : > { %5076 = vst.msk [vmem:[#allocation3 + $0x30] sm:$0xff] %vm5069_vm11, %v4986_v19 }
 0x550   : > { %v4992_v44 = vpop.permute.xlu1 %4991 }
 0x551   : > { %5079 = vst.msk [vmem:[#allocation3 + $0x48] sm:$0xff] %vm5069_vm11, %v4992_v44  ;;  %v4990_v11 = vpop.permute.xlu0 %4989 }
 0x552   : > { %5078 = vst.msk [vmem:[#allocation3 + $0x40] sm:$0xff] %vm5069_vm11, %v4990_v11 }
 0x554   : > { %v4996_v26 = vpop.permute.xlu1 %4995 }
 0x555   : > { %5081 = vst.msk [vmem:[#allocation3 + $0x58] sm:$0xff] %vm5069_vm11, %v4996_v26  ;;  %v4994_v61 = vpop.permute.xlu0 %4993 }
 0x556   : > { %5080 = vst.msk [vmem:[#allocation3 + $0x50] sm:$0xff] %vm5069_vm11, %v4994_v61 }
 0x558   : > { %v5000_v0 = vpop.permute.xlu1 %4999 }
 0x559   : > { %5083 = vst.msk [vmem:[#allocation3 + $0x68] sm:$0xff] %vm5069_vm11, %v5000_v0  ;;  %v4998_v29 = vpop.permute.xlu0 %4997 }
 0x55a   : > { %5082 = vst.msk [vmem:[#allocation3 + $0x60] sm:$0xff] %vm5069_vm11, %v4998_v29 }
 0x55c   : > { %v5004_v41 = vpop.permute.xlu1 %5003 }
 0x55d   : > { %5085 = vst.msk [vmem:[#allocation3 + $0x78] sm:$0xff] %vm5069_vm11, %v5004_v41  ;;  %v5002_v47 = vpop.permute.xlu0 %5001 }
 0x55e   : > { %5084 = vst.msk [vmem:[#allocation3 + $0x70] sm:$0xff] %vm5069_vm11, %v5002_v47 }
 0x560   : > { %v5008_v3 = vpop.permute.xlu1 %5007 }
 0x561   : > { %5087 = vst.msk [vmem:[#allocation3 + $0x88] sm:$0xff] %vm5069_vm11, %v5008_v3  ;;  %v5006_v15 = vpop.permute.xlu0 %5005 }
 0x562   : > { %5086 = vst.msk [vmem:[#allocation3 + $0x80] sm:$0xff] %vm5069_vm11, %v5006_v15 }
 0x564   : > { %v5012_v16 = vpop.permute.xlu1 %5011 }
 0x565   : > { %5089 = vst.msk [vmem:[#allocation3 + $0x98] sm:$0xff] %vm5069_vm11, %v5012_v16  ;;  %v5010_v30 = vpop.permute.xlu0 %5009 }
 0x566   : > { %5088 = vst.msk [vmem:[#allocation3 + $0x90] sm:$0xff] %vm5069_vm11, %v5010_v30 }
 0x568   : > { %v5016_v4 = vpop.permute.xlu1 %5015 }
 0x569   : > { %5091 = vst.msk [vmem:[#allocation3 + $0xa8] sm:$0xff] %vm5069_vm11, %v5016_v4  ;;  %v5014_v60 = vpop.permute.xlu0 %5013 }
 0x56a   : > { %5090 = vst.msk [vmem:[#allocation3 + $0xa0] sm:$0xff] %vm5069_vm11, %v5014_v60 }
 0x56c   : > { %v5020_v8 = vpop.permute.xlu1 %5019 }
 0x56d   : > { %5093 = vst.msk [vmem:[#allocation3 + $0xb8] sm:$0xff] %vm5069_vm11, %v5020_v8  ;;  %v5018_v45 = vpop.permute.xlu0 %5017 }
 0x56e   : > { %5092 = vst.msk [vmem:[#allocation3 + $0xb0] sm:$0xff] %vm5069_vm11, %v5018_v45 }
 0x570   : > { %v5024_v21 = vpop.permute.xlu1 %5023 }
 0x571   : > { %5095 = vst.msk [vmem:[#allocation3 + $0xc8] sm:$0xff] %vm5069_vm11, %v5024_v21  ;;  %v5022_v63 = vpop.permute.xlu0 %5021 }
 0x572   : > { %5094 = vst.msk [vmem:[#allocation3 + $0xc0] sm:$0xff] %vm5069_vm11, %v5022_v63 }
 0x574   : > { %v5028_v24 = vpop.permute.xlu1 %5027 }
 0x575   : > { %5097 = vst.msk [vmem:[#allocation3 + $0xd8] sm:$0xff] %vm5069_vm11, %v5028_v24  ;;  %v5026_v6 = vpop.permute.xlu0 %5025 }
 0x576   : > { %5096 = vst.msk [vmem:[#allocation3 + $0xd0] sm:$0xff] %vm5069_vm11, %v5026_v6 }
 0x578   : > { %v5032_v51 = vpop.permute.xlu1 %5031 }
 0x579   : > { %5099 = vst.msk [vmem:[#allocation3 + $0xe8] sm:$0xff] %vm5069_vm11, %v5032_v51  ;;  %v5030_v37 = vpop.permute.xlu0 %5029 }
 0x57a   : > { %5098 = vst.msk [vmem:[#allocation3 + $0xe0] sm:$0xff] %vm5069_vm11, %v5030_v37 }
 0x57c   : > { %v5036_v33 = vpop.permute.xlu1 %5035 }
 0x57d   : > { %5101 = vst.msk [vmem:[#allocation3 + $0xf8] sm:$0xff] %vm5069_vm11, %v5036_v33  ;;  %v5034_v34 = vpop.permute.xlu0 %5033 }
 0x57e   : > { %5100 = vst.msk [vmem:[#allocation3 + $0xf0] sm:$0xff] %vm5069_vm11, %v5034_v34 }
 0x580   : > { %v5169_v10 = vpop.permute.xlu1 %5168 }
 0x581   : > { %5264 = vst.msk [vmem:[#allocation3 + $0x8] sm:$0xff] %vm5262_vm12, %v5169_v10  ;;  %v5167_v55 = vpop.permute.xlu0 %5166 }
 0x582   : > { %5263 = vst.msk [vmem:[#allocation3] sm:$0xff] %vm5262_vm12, %v5167_v55 }
 0x584   : > { %v5173_v7 = vpop.permute.xlu1 %5172 }
 0x585   : > { %5266 = vst.msk [vmem:[#allocation3 + $0x18] sm:$0xff] %vm5262_vm12, %v5173_v7  ;;  %v5171_v52 = vpop.permute.xlu0 %5170 }
 0x586   : > { %5265 = vst.msk [vmem:[#allocation3 + $0x10] sm:$0xff] %vm5262_vm12, %v5171_v52 }
 0x588   : > { %v5177_v39 = vpop.permute.xlu1 %5176  ;;  %v15654_v22 = vld [vmem:[#allocation3 + $0x8] sm:$0xff] }
 0x589   : > { %5268 = vst.msk [vmem:[#allocation3 + $0x28] sm:$0xff] %vm5262_vm12, %v5177_v39  ;;  %v5175_v59 = vpop.permute.xlu0 %5174  ;;  %v15647_v17 = vld [vmem:[#allocation3] sm:$0xff] }
 0x58a   : > { %5267 = vst.msk [vmem:[#allocation3 + $0x20] sm:$0xff] %vm5262_vm12, %v5175_v59  ;;  %11957 = vmatprep.mubr.msk.f32.mxu1 %vm5336_vm14, %v15647_v17  ;;  %12023 = vmatprep.mubr.msk.f32.mxu0 %vm5336_vm14, %v15647_v17 }
 0x58b   : > { %11958 = vmatmul.mubr.msk.f32.vlgmr.msra.gmra.mrb[32].mxu1 %vm5336_vm14, %v15654_v22  ;;  %12024 = vmatmul.mubr.msk.f32.vlgmr.msra.gmra.mrb[64].mxu0 %vm5336_vm14, %v15654_v22  ;;  %6390 = vst.msk [vmem:[#allocation3 + $0x8] sm:$0xff] %vm603_vm0, %v6358_v48 }
 0x58c   : > { %v5181_v20 = vpop.permute.xlu1 %5180  ;;  %12402 = vmatpush3.bf16.msra.mxu1 %v15586_v50  ;;  %v15675_v5 = vld [vmem:[#allocation3 + $0x18] sm:$0xff] }
 0x58d   : > { %5270 = vst.msk [vmem:[#allocation3 + $0x38] sm:$0xff] %vm5262_vm12, %v5181_v20  ;;  %v5179_v49 = vpop.permute.xlu0 %5178  ;;  %v15668_v40 = vld [vmem:[#allocation3 + $0x10] sm:$0xff]  ;;  %12404 = vmatprep.subr.bf16.mxu1 %v12403_v13 }
 0x58e   : > { %5269 = vst.msk [vmem:[#allocation3 + $0x30] sm:$0xff] %vm5262_vm12, %v5179_v49  ;;  %11960 = vmatprep.mubr.msk.f32.mxu1 %vm5336_vm14, %v15668_v40  ;;  %12026 = vmatprep.mubr.msk.f32.mxu0 %vm5336_vm14, %v15668_v40  ;;  %v6357_v20 = vld [vmem:[#allocation2] sm:$0xff] }
 0x58f   : > { %11961 = vmatmul.mubr.msk.f32.gmra.mrb[34].mxu1 %vm5336_vm14, %v15675_v5  ;;  %12027 = vmatmul.mubr.msk.f32.gmra.mrb[66].mxu0 %vm5336_vm14, %v15675_v5  ;;  %v15906_v49 = vld [vmem:[%s18245_s4] ss:$0 sm:$0xff]  ;;  %6389 = vst.msk [vmem:[#allocation3] sm:$0xff] %vm603_vm0, %v6357_v20 }
 0x590   : > { %v5185_v35 = vpop.permute.xlu1 %5184  ;;  %12406 = vmatpush3.bf16.msra.mxu1 %v12403_v13  ;;  %v15695_v56 = vld [vmem:[#allocation3 + $0x28] sm:$0xff] }
 0x591   : > { %5272 = vst.msk [vmem:[#allocation3 + $0x48] sm:$0xff] %vm5262_vm12, %v5185_v35  ;;  %v5183_v18 = vpop.permute.xlu0 %5182  ;;  %v15688_v50 = vld [vmem:[#allocation3 + $0x20] sm:$0xff]  ;;  %12408 = vmatprep.subr.bf16.mxu1 %v12407_v31  ;;  %v2976_v35 = vadd.f32 %v15906_v49, %v18585_v58 }
 0x592   : > { %5271 = vst.msk [vmem:[#allocation3 + $0x40] sm:$0xff] %vm5262_vm12, %v5183_v18  ;;  %11963 = vmatprep.mubr.msk.f32.mxu1 %vm5336_vm14, %v15688_v50  ;;  %12029 = vmatprep.mubr.msk.f32.mxu0 %vm5336_vm14, %v15688_v50 }
 0x593   : > { %11964 = vmatmul.mubr.msk.f32.gmra.mrb[36].mxu1 %vm5336_vm14, %v15695_v56  ;;  %12030 = vmatmul.mubr.msk.f32.gmra.mrb[68].mxu0 %vm5336_vm14, %v15695_v56 }
 0x594   : > { %v5189_v1 = vpop.permute.xlu1 %5188  ;;  %12410 = vmatpush3.bf16.msra.mxu1 %v12407_v31  ;;  %v15709_v27 = vld [vmem:[#allocation3 + $0x38] sm:$0xff]  ;;  %v18584_v31 = vld [vmem:[#allocation34_spill] sm:$0xff] }
 0x595   : > { %5274 = vst.msk [vmem:[#allocation3 + $0x58] sm:$0xff] %vm5262_vm12, %v5189_v1  ;;  %v5187_v36 = vpop.permute.xlu0 %5186  ;;  %v15702_v46 = vld [vmem:[#allocation3 + $0x30] sm:$0xff]  ;;  %12412 = vmatprep.subr.bf16.mxu1 %v12411_v32 }
 0x596   : > { %5273 = vst.msk [vmem:[#allocation3 + $0x50] sm:$0xff] %vm5262_vm12, %v5187_v36  ;;  %11966 = vmatprep.mubr.msk.f32.mxu1 %vm5336_vm14, %v15702_v46  ;;  %12032 = vmatprep.mubr.msk.f32.mxu0 %vm5336_vm14, %v15702_v46  ;;  %v18586_v36 = vld [vmem:[#allocation38_spill] sm:$0xff] }
 0x597   : > { %11967 = vmatmul.mubr.msk.f32.gmra.mrb[38].mxu1 %vm5336_vm14, %v15709_v27  ;;  %12033 = vmatmul.mubr.msk.f32.gmra.mrb[70].mxu0 %vm5336_vm14, %v15709_v27 }
 0x598   : > { %v5193_v38 = vpop.permute.xlu1 %5192  ;;  %12414 = vmatpush3.bf16.msra.mxu1 %v12411_v32  ;;  %v15726_v53 = vld [vmem:[#allocation3 + $0x48] sm:$0xff] }
 0x599   : > { %5276 = vst.msk [vmem:[#allocation3 + $0x68] sm:$0xff] %vm5262_vm12, %v5193_v38  ;;  %v5191_v25 = vpop.permute.xlu0 %5190  ;;  %v15719_v14 = vld [vmem:[#allocation3 + $0x40] sm:$0xff]  ;;  %12087 = vmatprep.subr.mxu1 %v5964_v62 }
 0x59a   : > { %5275 = vst.msk [vmem:[#allocation3 + $0x60] sm:$0xff] %vm5262_vm12, %v5191_v25  ;;  %11969 = vmatprep.mubr.msk.f32.mxu1 %vm5336_vm14, %v15719_v14  ;;  %12035 = vmatprep.mubr.msk.f32.mxu0 %vm5336_vm14, %v15719_v14 }
 0x59b   : > { %11970 = vmatmul.mubr.msk.f32.gmra.mrb[40].mxu1 %vm5336_vm14, %v15726_v53  ;;  %12036 = vmatmul.mubr.msk.f32.gmra.mrb[72].mxu0 %vm5336_vm14, %v15726_v53 }
 0x59c   : > { %v5197_v9 = vpop.permute.xlu1 %5196  ;;  %12088 = vmatpush3.msra.mxu1 %v5964_v62  ;;  %v15740_v12 = vld [vmem:[#allocation3 + $0x58] sm:$0xff] }
 0x59d   : > { %5278 = vst.msk [vmem:[#allocation3 + $0x78] sm:$0xff] %vm5262_vm12, %v5197_v9  ;;  %v5195_v28 = vpop.permute.xlu0 %5194  ;;  %v15733_v42 = vld [vmem:[#allocation3 + $0x50] sm:$0xff]  ;;  %v18587_v62 = vld [vmem:[#allocation39_spill] sm:$0xff] }
 0x59e   : > { %5277 = vst.msk [vmem:[#allocation3 + $0x70] sm:$0xff] %vm5262_vm12, %v5195_v28  ;;  %11972 = vmatprep.mubr.msk.f32.mxu1 %vm5336_vm14, %v15733_v42  ;;  %12038 = vmatprep.mubr.msk.f32.mxu0 %vm5336_vm14, %v15733_v42  ;;  %v2978_v38 = vadd.f32 %v15906_v49, %v18587_v62 }
 0x59f   : > { %11973 = vmatmul.mubr.msk.f32.gmra.mrb[42].mxu1 %vm5336_vm14, %v15740_v12  ;;  %12039 = vmatmul.mubr.msk.f32.gmra.mrb[74].mxu0 %vm5336_vm14, %v15740_v12 }
 0x5a0   : > { %v5201_v54 = vpop.permute.xlu1 %5200  ;;  %v15754_v11 = vld [vmem:[#allocation3 + $0x68] sm:$0xff] }
 0x5a1   : > { %5280 = vst.msk [vmem:[#allocation3 + $0x88] sm:$0xff] %vm5262_vm12, %v5201_v54  ;;  %v5199_v19 = vpop.permute.xlu0 %5198  ;;  %v15747_v44 = vld [vmem:[#allocation3 + $0x60] sm:$0xff]  ;;  %v18588_v54 = vld [vmem:[#allocation42_spill] sm:$0xff] }
 0x5a2   : > { %5279 = vst.msk [vmem:[#allocation3 + $0x80] sm:$0xff] %vm5262_vm12, %v5199_v19  ;;  %11975 = vmatprep.mubr.msk.f32.mxu1 %vm5336_vm14, %v15747_v44  ;;  %12041 = vmatprep.mubr.msk.f32.mxu0 %vm5336_vm14, %v15747_v44  ;;  %v2981_v19 = vadd.f32 %v18588_v54, %v15906_v49 }
 0x5a3   : > { %11976 = vmatmul.mubr.msk.f32.gmra.mrb[44].mxu1 %vm5336_vm14, %v15754_v11  ;;  %12042 = vmatmul.mubr.msk.f32.gmra.mrb[76].mxu0 %vm5336_vm14, %v15754_v11 }
 0x5a4   : > { %v5205_v26 = vpop.permute.xlu1 %5204  ;;  %v15768_v29 = vld [vmem:[#allocation3 + $0x78] sm:$0xff] }
 0x5a5   : > { %5282 = vst.msk [vmem:[#allocation3 + $0x98] sm:$0xff] %vm5262_vm12, %v5205_v26  ;;  %v5203_v61 = vpop.permute.xlu0 %5202  ;;  %v15761_v0 = vld [vmem:[#allocation3 + $0x70] sm:$0xff] }
 0x5a6   : > { %5281 = vst.msk [vmem:[#allocation3 + $0x90] sm:$0xff] %vm5262_vm12, %v5203_v61  ;;  %11978 = vmatprep.mubr.msk.f32.mxu1 %vm5336_vm14, %v15761_v0  ;;  %12044 = vmatprep.mubr.msk.f32.mxu0 %vm5336_vm14, %v15761_v0 }
 0x5a7   : > { %11979 = vmatmul.mubr.msk.f32.gmra.mrb[46].mxu1 %vm5336_vm14, %v15768_v29  ;;  %12045 = vmatmul.mubr.msk.f32.gmra.mrb[78].mxu0 %vm5336_vm14, %v15768_v29 }
 0x5a8   : > { %v5209_v41 = vpop.permute.xlu1 %5208  ;;  %v15782_v15 = vld [vmem:[#allocation3 + $0x88] sm:$0xff] }
 0x5a9   : > { %5284 = vst.msk [vmem:[#allocation3 + $0xa8] sm:$0xff] %vm5262_vm12, %v5209_v41  ;;  %v5207_v47 = vpop.permute.xlu0 %5206  ;;  %v15775_v3 = vld [vmem:[#allocation3 + $0x80] sm:$0xff] }
 0x5aa   : > { %5283 = vst.msk [vmem:[#allocation3 + $0xa0] sm:$0xff] %vm5262_vm12, %v5207_v47  ;;  %11981 = vmatprep.mubr.msk.f32.mxu1 %vm5336_vm14, %v15775_v3  ;;  %12047 = vmatprep.mubr.msk.f32.mxu0 %vm5336_vm14, %v15775_v3 }
 0x5ab   : > { %11982 = vmatmul.mubr.msk.f32.gmra.mrb[48].mxu1 %vm5336_vm14, %v15782_v15  ;;  %12048 = vmatmul.mubr.msk.f32.gmra.mrb[80].mxu0 %vm5336_vm14, %v15782_v15 }
 0x5ac   : > { %v5213_v16 = vpop.permute.xlu1 %5212  ;;  %v15796_v60 = vld [vmem:[#allocation3 + $0x98] sm:$0xff] }
 0x5ad   : > { %5286 = vst.msk [vmem:[#allocation3 + $0xb8] sm:$0xff] %vm5262_vm12, %v5213_v16  ;;  %v5211_v30 = vpop.permute.xlu0 %5210  ;;  %v15789_v4 = vld [vmem:[#allocation3 + $0x90] sm:$0xff]  ;;  %v18590_v16 = vld [vmem:[#allocation44_spill] sm:$0xff] }
 0x5ae   : > { %5285 = vst.msk [vmem:[#allocation3 + $0xb0] sm:$0xff] %vm5262_vm12, %v5211_v30  ;;  %11984 = vmatprep.mubr.msk.f32.mxu1 %vm5336_vm14, %v15789_v4  ;;  %12050 = vmatprep.mubr.msk.f32.mxu0 %vm5336_vm14, %v15789_v4  ;;  %v2983_v30 = vadd.f32 %v18590_v16, %v15906_v49 }
 0x5af   : > { %11985 = vmatmul.mubr.msk.f32.gmra.mrb[50].mxu1 %vm5336_vm14, %v15796_v60  ;;  %12051 = vmatmul.mubr.msk.f32.gmra.mrb[82].mxu0 %vm5336_vm14, %v15796_v60 }
 0x5b0   : > { %v5217_v8 = vpop.permute.xlu1 %5216  ;;  %v15810_v63 = vld [vmem:[#allocation3 + $0xa8] sm:$0xff] }
 0x5b1   : > { %5288 = vst.msk [vmem:[#allocation3 + $0xc8] sm:$0xff] %vm5262_vm12, %v5217_v8  ;;  %v5215_v45 = vpop.permute.xlu0 %5214  ;;  %v15803_v21 = vld [vmem:[#allocation3 + $0xa0] sm:$0xff] }
 0x5b2   : > { %5287 = vst.msk [vmem:[#allocation3 + $0xc0] sm:$0xff] %vm5262_vm12, %v5215_v45  ;;  %11987 = vmatprep.mubr.msk.f32.mxu1 %vm5336_vm14, %v15803_v21  ;;  %12053 = vmatprep.mubr.msk.f32.mxu0 %vm5336_vm14, %v15803_v21 }
 0x5b3   : > { %11988 = vmatmul.mubr.msk.f32.gmra.mrb[52].mxu1 %vm5336_vm14, %v15810_v63  ;;  %12054 = vmatmul.mubr.msk.f32.gmra.mrb[84].mxu0 %vm5336_vm14, %v15810_v63 }
 0x5b4   : > { %v5221_v24 = vpop.permute.xlu1 %5220  ;;  %v5318_v37 = vld [vmem:[#allocation3 + $0xb8] sm:$0xff] }
 0x5b5   : > { %5290 = vst.msk [vmem:[#allocation3 + $0xd8] sm:$0xff] %vm5262_vm12, %v5221_v24  ;;  %v5219_v6 = vpop.permute.xlu0 %5218  ;;  %v15817_v51 = vld [vmem:[#allocation3 + $0xb0] sm:$0xff] }
 0x5b6   : > { %5289 = vst.msk [vmem:[#allocation3 + $0xd0] sm:$0xff] %vm5262_vm12, %v5219_v6  ;;  %11990 = vmatprep.mubr.msk.f32.mxu1 %vm5336_vm14, %v15817_v51  ;;  %12056 = vmatprep.mubr.msk.f32.mxu0 %vm5336_vm14, %v15817_v51 }
 0x5b7   : > { %11991 = vmatmul.mubr.msk.f32.gmra.mrb[54].mxu1 %vm5336_vm14, %v5318_v37  ;;  %12057 = vmatmul.mubr.msk.f32.gmra.mrb[86].mxu0 %vm5336_vm14, %v5318_v37 }
 0x5b8   : > { %v5225_v33 = vpop.permute.xlu1 %5224  ;;  %v5320_v55 = vld [vmem:[#allocation3 + $0xc8] sm:$0xff] }
 0x5b9   : > { %5292 = vst.msk [vmem:[#allocation3 + $0xe8] sm:$0xff] %vm5262_vm12, %v5225_v33  ;;  %v5223_v34 = vpop.permute.xlu0 %5222  ;;  %v5319_v10 = vld [vmem:[#allocation3 + $0xc0] sm:$0xff] }
 0x5ba   : > { %5291 = vst.msk [vmem:[#allocation3 + $0xe0] sm:$0xff] %vm5262_vm12, %v5223_v34  ;;  %11993 = vmatprep.mubr.msk.f32.mxu1 %vm5336_vm14, %v5319_v10  ;;  %12059 = vmatprep.mubr.msk.f32.mxu0 %vm5336_vm14, %v5319_v10 }
 0x5bb   : > { %11994 = vmatmul.mubr.msk.f32.gmra.mrb[56].mxu1 %vm5336_vm14, %v5320_v55  ;;  %12060 = vmatmul.mubr.msk.f32.gmra.mrb[88].mxu0 %vm5336_vm14, %v5320_v55 }
 0x5bc   : > { %v5229_v7 = vpop.permute.xlu1 %5228  ;;  %v5322_v2 = vld [vmem:[#allocation3 + $0xd8] sm:$0xff] }
 0x5bd   : > { %v5227_v52 = vpop.permute.xlu0 %5226  ;;  %5294 = vst.msk [vmem:[#allocation3 + $0xf8] sm:$0xff] %vm5262_vm12, %v5229_v7  ;;  %v5321_v43 = vld [vmem:[#allocation3 + $0xd0] sm:$0xff] }
 0x5be   : > { %5293 = vst.msk [vmem:[#allocation3 + $0xf0] sm:$0xff] %vm5262_vm12, %v5227_v52  ;;  %11996 = vmatprep.mubr.msk.f32.mxu1 %vm5336_vm14, %v5321_v43  ;;  %12062 = vmatprep.mubr.msk.f32.mxu0 %vm5336_vm14, %v5321_v43 }
 0x5bf   : > { %11997 = vmatmul.mubr.msk.f32.gmra.mrb[58].mxu1 %vm5336_vm14, %v5322_v2  ;;  %12063 = vmatmul.mubr.msk.f32.gmra.mrb[90].mxu0 %vm5336_vm14, %v5322_v2 }
 0x5c0   : > { %v5324_v59 = vld [vmem:[#allocation3 + $0xe8] sm:$0xff] }
 0x5c1   : > { %v5323_v39 = vld [vmem:[#allocation3 + $0xe0] sm:$0xff] }
 0x5c2   : > { %11999 = vmatprep.mubr.msk.f32.mxu1 %vm5336_vm14, %v5323_v39  ;;  %12065 = vmatprep.mubr.msk.f32.mxu0 %vm5336_vm14, %v5323_v39 }
 0x5c3   : > { %12000 = vmatmul.mubr.msk.f32.gmra.mrb[60].mxu1 %vm5336_vm14, %v5324_v59  ;;  %12066 = vmatmul.mubr.msk.f32.gmra.mrb[92].mxu0 %vm5336_vm14, %v5324_v59 }
 0x5c4   : > { %v5326_v13 = vld [vmem:[#allocation3 + $0xf8] sm:$0xff] }
 0x5c5   : > { %v5325_v23 = vld [vmem:[#allocation3 + $0xf0] sm:$0xff] }
 0x5c6   : > { %12002 = vmatprep.mubr.msk.f32.mxu1 %vm5336_vm14, %v5325_v23  ;;  %12068 = vmatprep.mubr.msk.f32.mxu0 %vm5336_vm14, %v5325_v23 }
 0x5c7   : > { %12003 = vmatmul.mubr.msk.f32.gmra.mrb[62].mxu1 %vm5336_vm14, %v5326_v13  ;;  %12069 = vmatmul.mubr.msk.f32.gmra.mrb[94].mxu0 %vm5336_vm14, %v5326_v13 }
 0x5c8   : > { %12089 = vmatprep.mubr.msk.f32.mxu1 %vm5336_vm14, %v15647_v17  ;;  %v6422_v17 = vld [vmem:[#allocation2 + $0x9] sm:$0xff] }
 0x5c9   : > { %6487 = vrot.lane.b32.xlu1 %v6422_v17, %s12782_s25 }
 0x5cb   : > { %12090 = vmatmul.mubr.msk.f32.vlgmr.msra.gmra.mrb[0].mxu1 %vm5336_vm14, %v15654_v22  ;;  %v6421_v22 = vld [vmem:[#allocation2 + $0x1] sm:$0xff] }
 0x5cc   : > { %12092 = vmatprep.mubr.msk.f32.mxu1 %vm5336_vm14, %v15668_v40  ;;  %6485 = vrot.lane.b32.xlu0 %v6421_v22, %s12782_s25 }
 0x5cf   : > { %12093 = vmatmul.mubr.msk.f32.gmra.mrb[2].mxu1 %vm5336_vm14, %v15675_v5  ;;  %v2977_v5 = vadd.f32 %v18584_v31, %v15906_v49 }
 0x5d0   : > { %12095 = vmatprep.mubr.msk.f32.mxu1 %vm5336_vm14, %v15688_v50  ;;  %v15918_v50 = vld [vmem:[%s18246_s5] ss:$0 sm:$0xff] }
 0x5d3   : > { %12096 = vmatmul.mubr.msk.f32.gmra.mrb[4].mxu1 %vm5336_vm14, %v15695_v56 }
 0x5d4   : > { %12098 = vmatprep.mubr.msk.f32.mxu1 %vm5336_vm14, %v15702_v46  ;;  %v2979_v46 = vadd.f32 %v18586_v36, %v15906_v49 }
 0x5d7   : > { %12099 = vmatmul.mubr.msk.f32.gmra.mrb[6].mxu1 %vm5336_vm14, %v15709_v27 }
 0x5d8   : > { %12101 = vmatprep.mubr.msk.f32.mxu1 %vm5336_vm14, %v15719_v14 }
 0x5db   : > { %12102 = vmatmul.mubr.msk.f32.gmra.mrb[8].mxu1 %vm5336_vm14, %v15726_v53 }
 0x5dc   : > { %12104 = vmatprep.mubr.msk.f32.mxu1 %vm5336_vm14, %v15733_v42 }
 0x5df   : > { %12105 = vmatmul.mubr.msk.f32.gmra.mrb[10].mxu1 %vm5336_vm14, %v15740_v12 }
 0x5e0   : > { %12107 = vmatprep.mubr.msk.f32.mxu1 %vm5336_vm14, %v15747_v44 }
 0x5e3   : > { %12108 = vmatmul.mubr.msk.f32.gmra.mrb[12].mxu1 %vm5336_vm14, %v15754_v11  ;;  %v18589_v11 = vld [vmem:[#allocation43_spill] sm:$0xff] }
 0x5e4   : > { %12110 = vmatprep.mubr.msk.f32.mxu1 %vm5336_vm14, %v15761_v0  ;;  %v2980_v26 = vadd.f32 %v15906_v49, %v18589_v11 }
 0x5e7   : > { %12111 = vmatmul.mubr.msk.f32.gmra.mrb[14].mxu1 %vm5336_vm14, %v15768_v29 }
 0x5e8   : > { %12113 = vmatprep.mubr.msk.f32.mxu1 %vm5336_vm14, %v15775_v3 }
 0x5eb   : > { %12114 = vmatmul.mubr.msk.f32.gmra.mrb[16].mxu1 %vm5336_vm14, %v15782_v15 }
 0x5ec   : > { %12116 = vmatprep.mubr.msk.f32.mxu1 %vm5336_vm14, %v15789_v4 }
 0x5ef   : > { %12117 = vmatmul.mubr.msk.f32.gmra.mrb[18].mxu1 %vm5336_vm14, %v15796_v60  ;;  %v18591_v60 = vld [vmem:[#allocation45_spill] sm:$0xff] }
 0x5f0   : > { %12119 = vmatprep.mubr.msk.f32.mxu1 %vm5336_vm14, %v15803_v21  ;;  %v2982_v8 = vadd.f32 %v15906_v49, %v18591_v60 }
 0x5f3   : > { %12120 = vmatmul.mubr.msk.f32.gmra.mrb[20].mxu1 %vm5336_vm14, %v15810_v63 }
 0x5f4   : > { %12122 = vmatprep.mubr.msk.f32.mxu1 %vm5336_vm14, %v15817_v51 }
 0x5f7   : > { %12123 = vmatmul.mubr.msk.f32.gmra.mrb[22].mxu1 %vm5336_vm14, %v5318_v37 }
 0x5f8   : > { %12125 = vmatprep.mubr.msk.f32.mxu1 %vm5336_vm14, %v5319_v10 }
 0x5fb   : > { %12126 = vmatmul.mubr.msk.f32.gmra.mrb[24].mxu1 %vm5336_vm14, %v5320_v55  ;;  %v18592_v55 = vld [vmem:[#allocation46_spill] sm:$0xff] }
 0x5fc   : > { %12128 = vmatprep.mubr.msk.f32.mxu1 %vm5336_vm14, %v5321_v43  ;;  %v2985_v7 = vadd.f32 %v18592_v55, %v15906_v49 }
 0x5ff   : > { %12129 = vmatmul.mubr.msk.f32.gmra.mrb[26].mxu1 %vm5336_vm14, %v5322_v2  ;;  %v18593_v2 = vld [vmem:[#allocation47_spill] sm:$0xff] }
 0x600   : > { %12131 = vmatprep.mubr.msk.f32.mxu1 %vm5336_vm14, %v5323_v39  ;;  %v2984_v39 = vadd.f32 %v15906_v49, %v18593_v2 }
 0x603   : > { %12132 = vmatmul.mubr.msk.f32.gmra.mrb[28].mxu1 %vm5336_vm14, %v5324_v59 }
 0x604   : > { %12134 = vmatprep.mubr.msk.f32.mxu1 %vm5336_vm14, %v5325_v23 }
 0x607   : > { %12135 = vmatmul.mubr.msk.f32.gmra.mrb[30].mxu1 %vm5336_vm14, %v5326_v13 }
 0x63b   : > { %v6488_v40 = vpop.permute.xlu1 %6487 }
 0x63c   : > { %6582 = vst.msk [vmem:[#allocation3 + $0x8] sm:$0xff] %vm3911_vm13, %v6488_v40 }
 0x63e   : > { %v6486_v57 = vpop.permute.xlu0 %6485 }
 0x63f   : > { %6581 = vst.msk [vmem:[#allocation3] sm:$0xff] %vm3911_vm13, %v6486_v57  ;;  %v18594_v57 = vld [vmem:[#allocation48_spill] sm:$0xff] }
 0x640   : > { %v2987_v58 = vadd.f32 %v18594_v57, %v15906_v49 }
 0x65e   : > { %v11959_v18 = vpop.f32.mrb[32].mxu1 }
 0x65f   : > { %v5659_v32 = vadd.f32 %v11959_v18, %v2977_v5  ;;  %v5499_v56 = vpop.f32.mrb[33].mxu1 }
 0x660   : > { %v5658_v1 = vadd.f32 %v5499_v56, %v2976_v35 }
 0x661   : > { %vm6223_vm15 = vcmp.ge.f32.partialorder %v5659_v32, 0.0  ;;  %v6262_v27 = vmul.f32 %v15918_v50, %v5659_v32 }
 0x662   : > { %vm6222_vm1 = vcmp.ge.f32.partialorder %v5658_v1, 0.0  ;;  %v6261_v25 = vmul.f32 %v15918_v50, %v5658_v1  ;;  %v11962_v14 = vpop.f32.mrb[34].mxu1 }
 0x663   : > { %v6294_v53 = vsel %vm6223_vm15, %v5659_v32, %v6262_v27  ;;  %v5661_v9 = vadd.f32 %v11962_v14, %v2979_v46  ;;  %v5509_v28 = vpop.f32.mrb[35].mxu1  ;;  %v18595_v32 = vld [vmem:[#allocation49_spill] sm:$0xff] }
 0x664   : > { %6326 = vst.msk [vmem:[#allocation2 + $0x21] sm:$0xff] %vm603_vm0, %v6294_v53  ;;  %v6293_v42 = vsel %vm6222_vm1, %v5658_v1, %v6261_v25  ;;  %v5660_v12 = vadd.f32 %v5509_v28, %v2978_v38  ;;  %v2986_v56 = vadd.f32 %v15906_v49, %v18595_v32  ;;  %v18596_v28 = vld [vmem:[#allocation52_spill] sm:$0xff] }
 0x665   : > { %6325 = vst.msk [vmem:[#allocation2 + $0x19] sm:$0xff] %vm603_vm0, %v6293_v42  ;;  %vm6225_vm3 = vcmp.ge.f32.partialorder %v5661_v9, 0.0  ;;  %v6264_v44 = vmul.f32 %v15918_v50, %v5661_v9  ;;  %v2989_v42 = vadd.f32 %v18596_v28, %v15906_v49 }
 0x666   : > { %vm6224_vm4 = vcmp.ge.f32.partialorder %v5660_v12, 0.0  ;;  %v6263_v61 = vmul.f32 %v15918_v50, %v5660_v12  ;;  %v11965_v0 = vpop.f32.mrb[36].mxu1 }
 0x667   : > { %v6296_v29 = vsel %vm6225_vm3, %v5661_v9, %v6264_v44  ;;  %v5663_v41 = vadd.f32 %v11965_v0, %v2981_v19  ;;  %v5519_v47 = vpop.f32.mrb[37].mxu1  ;;  %v18597_v19 = vld [vmem:[#allocation53_spill] sm:$0xff] }
 0x668   : > { %6328 = vst.msk [vmem:[#allocation2 + $0x39] sm:$0xff] %vm603_vm0, %v6296_v29  ;;  %v6295_v3 = vsel %vm6224_vm4, %v5660_v12, %v6263_v61  ;;  %v5662_v15 = vadd.f32 %v5519_v47, %v2980_v26  ;;  %v2988_v44 = vadd.f32 %v15906_v49, %v18597_v19 }
 0x669   : > { %6327 = vst.msk [vmem:[#allocation2 + $0x31] sm:$0xff] %vm603_vm0, %v6295_v3  ;;  %vm6227_vm5 = vcmp.ge.f32.partialorder %v5663_v41, 0.0  ;;  %v6266_v4 = vmul.f32 %v15918_v50, %v5663_v41 }
 0x66a   : > { %vm6226_vm15 = vcmp.ge.f32.partialorder %v5662_v15, 0.0  ;;  %v6265_v45 = vmul.f32 %v15918_v50, %v5662_v15  ;;  %v11968_v21 = vpop.f32.mrb[38].mxu1 }
 0x66b   : > { %v6298_v63 = vsel %vm6227_vm5, %v5663_v41, %v6266_v4  ;;  %v5665_v24 = vadd.f32 %v11968_v21, %v2983_v30  ;;  %v5529_v6 = vpop.f32.mrb[39].mxu1  ;;  %v15943_v51 = vld [vmem:[#allocation2 + $0x21] sm:$0xff]  ;;  %v18598_v30 = vld [vmem:[#allocation56_spill] sm:$0xff] }
 0x66c   : > { %6330 = vst.msk [vmem:[#allocation2 + $0x51] sm:$0xff] %vm603_vm0, %v6298_v63  ;;  %v6297_v37 = vsel %vm6226_vm15, %v5662_v15, %v6265_v45  ;;  %v5664_v33 = vadd.f32 %v5529_v6, %v2982_v8  ;;  %6491 = vrot.lane.b32.xlu1 %v15943_v51, %s12782_s25  ;;  %v15948_v34 = vld [vmem:[#allocation2 + $0x19] sm:$0xff]  ;;  %v2991_v4 = vadd.f32 %v18598_v30, %v15906_v49 }
 0x66d   : > { %v15950_v10 = vld [vmem:[#allocation2 + $0x20] sm:$0xff]  ;;  %6329 = vst.msk [vmem:[#allocation2 + $0x49] sm:$0xff] %vm603_vm0, %v6297_v37  ;;  %vm6229_vm1 = vcmp.ge.f32.partialorder %v5665_v24, 0.0  ;;  %v6268_v52 = vmul.f32 %v15918_v50, %v5665_v24  ;;  %6489 = vrot.lane.b32.xlu0 %v15948_v34, %s12782_s25  ;;  %v15960_v43 = vld [vmem:[#allocation2 + $0x18] sm:$0xff] }
 0x66e   : > { %6392 = vst.msk [vmem:[#allocation3 + $0x18] sm:$0xff] %vm603_vm0, %v15950_v10  ;;  %vm6228_vm3 = vcmp.ge.f32.partialorder %v5664_v33, 0.0  ;;  %v6267_v59 = vmul.f32 %v15918_v50, %v5664_v33  ;;  %v11971_v13 = vpop.f32.mrb[40].mxu1  ;;  %6391 = vst.msk [vmem:[#allocation3 + $0x10] sm:$0xff] %vm603_vm0, %v15960_v43  ;;  %v18599_v45 = vld [vmem:[#allocation57_spill] sm:$0xff] }
 0x66f   : > { %v6300_v23 = vsel %vm6229_vm1, %v5665_v24, %v6268_v52  ;;  %v5667_v17 = vadd.f32 %v11971_v13, %v2985_v7  ;;  %v5539_v22 = vpop.f32.mrb[41].mxu1  ;;  %v15967_v48 = vld [vmem:[#allocation2 + $0x39] sm:$0xff]  ;;  %v2990_v21 = vadd.f32 %v15906_v49, %v18599_v45 }
 0x670   : > { %6332 = vst.msk [vmem:[#allocation2 + $0x69] sm:$0xff] %vm603_vm0, %v6300_v23  ;;  %v6299_v20 = vsel %vm6228_vm3, %v5664_v33, %v6267_v59  ;;  %v5666_v40 = vadd.f32 %v5539_v22, %v2984_v39  ;;  %6495 = vrot.lane.b32.xlu1 %v15967_v48, %s12782_s25  ;;  %v15972_v31 = vld [vmem:[#allocation2 + $0x31] sm:$0xff] }
 0x671   : > { %v15974_v5 = vld [vmem:[#allocation2 + $0x38] sm:$0xff]  ;;  %6331 = vst.msk [vmem:[#allocation2 + $0x61] sm:$0xff] %vm603_vm0, %v6299_v20  ;;  %vm6231_vm4 = vcmp.ge.f32.partialorder %v5667_v17, 0.0  ;;  %v6270_v35 = vmul.f32 %v15918_v50, %v5667_v17  ;;  %6493 = vrot.lane.b32.xlu0 %v15972_v31, %s12782_s25  ;;  %v15984_v18 = vld [vmem:[#allocation2 + $0x30] sm:$0xff] }
 0x672   : > { %6394 = vst.msk [vmem:[#allocation3 + $0x28] sm:$0xff] %vm603_vm0, %v15974_v5  ;;  %vm6230_vm5 = vcmp.ge.f32.partialorder %v5666_v40, 0.0  ;;  %v6269_v1 = vmul.f32 %v15918_v50, %v5666_v40  ;;  %v11974_v36 = vpop.f32.mrb[42].mxu1  ;;  %6393 = vst.msk [vmem:[#allocation3 + $0x20] sm:$0xff] %vm603_vm0, %v15984_v18  ;;  %v18600_v59 = vld [vmem:[#allocation60_spill] sm:$0xff]  ;;  %v18601_v22 = vld [vmem:[#allocation61_spill] sm:$0xff] }
 0x673   : > { %v6302_v46 = vsel %vm6231_vm4, %v5667_v17, %v6270_v35  ;;  %v5669_v27 = vadd.f32 %v11974_v36, %v2987_v58  ;;  %v5549_v62 = vpop.f32.mrb[43].mxu1  ;;  %v15991_v38 = vld [vmem:[#allocation2 + $0x51] sm:$0xff]  ;;  %v2993_v13 = vadd.f32 %v18600_v59, %v15906_v49  ;;  %v2992_v20 = vadd.f32 %v15906_v49, %v18601_v22 }
 0x674   : > { %6334 = vst.msk [vmem:[#allocation2 + $0x81] sm:$0xff] %vm603_vm0, %v6302_v46  ;;  %v6301_v25 = vsel %vm6230_vm5, %v5666_v40, %v6269_v1  ;;  %v5668_v14 = vadd.f32 %v5549_v62, %v2986_v56  ;;  %6499 = vrot.lane.b32.xlu1 %v15991_v38, %s12782_s25  ;;  %v15996_v53 = vld [vmem:[#allocation2 + $0x49] sm:$0xff] }
 0x675   : > { %v15998_v9 = vld [vmem:[#allocation2 + $0x50] sm:$0xff]  ;;  %6333 = vst.msk [vmem:[#allocation2 + $0x79] sm:$0xff] %vm603_vm0, %v6301_v25  ;;  %vm6233_vm15 = vcmp.ge.f32.partialorder %v5669_v27, 0.0  ;;  %v6272_v12 = vmul.f32 %v15918_v50, %v5669_v27  ;;  %6497 = vrot.lane.b32.xlu0 %v15996_v53, %s12782_s25  ;;  %v16008_v54 = vld [vmem:[#allocation2 + $0x48] sm:$0xff] }
 0x676   : > { %6396 = vst.msk [vmem:[#allocation3 + $0x38] sm:$0xff] %vm603_vm0, %v15998_v9  ;;  %vm6232_vm1 = vcmp.ge.f32.partialorder %v5668_v14, 0.0  ;;  %v6271_v11 = vmul.f32 %v15918_v50, %v5668_v14  ;;  %v11977_v26 = vpop.f32.mrb[44].mxu1  ;;  %6395 = vst.msk [vmem:[#allocation3 + $0x30] sm:$0xff] %vm603_vm0, %v16008_v54  ;;  %v18602_v62 = vld [vmem:[#allocation64_spill] sm:$0xff] }
 0x677   : > { %v6304_v61 = vsel %vm6233_vm15, %v5669_v27, %v6272_v12  ;;  %v5671_v0 = vadd.f32 %v11977_v26, %v2989_v42  ;;  %v5559_v29 = vpop.f32.mrb[45].mxu1  ;;  %v16015_v41 = vld [vmem:[#allocation2 + $0x69] sm:$0xff]  ;;  %v2995_v25 = vadd.f32 %v18602_v62, %v15906_v49  ;;  %v18603_v42 = vld [vmem:[#allocation65_spill] sm:$0xff] }
 0x678   : > { %6336 = vst.msk [vmem:[#allocation2 + $0x99] sm:$0xff] %vm603_vm0, %v6304_v61  ;;  %v6303_v47 = vsel %vm6232_vm1, %v5668_v14, %v6271_v11  ;;  %v5670_v3 = vadd.f32 %v5559_v29, %v2988_v44  ;;  %6503 = vrot.lane.b32.xlu1 %v16015_v41, %s12782_s25  ;;  %v16020_v15 = vld [vmem:[#allocation2 + $0x61] sm:$0xff]  ;;  %v2994_v12 = vadd.f32 %v15906_v49, %v18603_v42 }
 0x679   : > { %v16022_v16 = vld [vmem:[#allocation2 + $0x68] sm:$0xff]  ;;  %6335 = vst.msk [vmem:[#allocation2 + $0x91] sm:$0xff] %vm603_vm0, %v6303_v47  ;;  %vm6235_vm3 = vcmp.ge.f32.partialorder %v5671_v0, 0.0  ;;  %v6274_v60 = vmul.f32 %v15918_v50, %v5671_v0  ;;  %6501 = vrot.lane.b32.xlu0 %v16020_v15, %s12782_s25  ;;  %v16032_v8 = vld [vmem:[#allocation2 + $0x60] sm:$0xff] }
 0x67a   : > { %6398 = vst.msk [vmem:[#allocation3 + $0x48] sm:$0xff] %vm603_vm0, %v16022_v16  ;;  %vm6234_vm4 = vcmp.ge.f32.partialorder %v5670_v3, 0.0  ;;  %v6273_v63 = vmul.f32 %v15918_v50, %v5670_v3  ;;  %v11980_v24 = vpop.f32.mrb[46].mxu1  ;;  %6397 = vst.msk [vmem:[#allocation3 + $0x40] sm:$0xff] %vm603_vm0, %v16032_v8 }
 0x67b   : > { %v6306_v6 = vsel %vm6235_vm3, %v5671_v0, %v6274_v60  ;;  %v5673_v37 = vadd.f32 %v11980_v24, %v2991_v4  ;;  %v5569_v33 = vpop.f32.mrb[47].mxu1  ;;  %v16039_v55 = vld [vmem:[#allocation2 + $0x81] sm:$0xff]  ;;  %v18604_v4 = vld [vmem:[#allocation68_spill] sm:$0xff] }
 0x67c   : > { %6338 = vst.msk [vmem:[#allocation2 + $0xb1] sm:$0xff] %vm603_vm0, %v6306_v6  ;;  %v6305_v7 = vsel %vm6234_vm4, %v5670_v3, %v6273_v63  ;;  %v5672_v52 = vadd.f32 %v5569_v33, %v2990_v21  ;;  %6507 = vrot.lane.b32.xlu1 %v16039_v55, %s12782_s25  ;;  %v16044_v2 = vld [vmem:[#allocation2 + $0x79] sm:$0xff]  ;;  %v2997_v60 = vadd.f32 %v18604_v4, %v15906_v49 }
 0x67d   : > { %v16046_v39 = vld [vmem:[#allocation2 + $0x80] sm:$0xff]  ;;  %6337 = vst.msk [vmem:[#allocation2 + $0xa9] sm:$0xff] %vm603_vm0, %v6305_v7  ;;  %vm6237_vm5 = vcmp.ge.f32.partialorder %v5673_v37, 0.0  ;;  %v6276_v23 = vmul.f32 %v15918_v50, %v5673_v37  ;;  %6505 = vrot.lane.b32.xlu0 %v16044_v2, %s12782_s25  ;;  %v16056_v17 = vld [vmem:[#allocation2 + $0x78] sm:$0xff] }
 0x67e   : > { %6400 = vst.msk [vmem:[#allocation3 + $0x58] sm:$0xff] %vm603_vm0, %v16046_v39  ;;  %vm6236_vm15 = vcmp.ge.f32.partialorder %v5672_v52, 0.0  ;;  %v6275_v40 = vmul.f32 %v15918_v50, %v5672_v52  ;;  %v11983_v57 = vpop.f32.mrb[48].mxu1  ;;  %6399 = vst.msk [vmem:[#allocation3 + $0x50] sm:$0xff] %vm603_vm0, %v16056_v17  ;;  %v18605_v63 = vld [vmem:[#allocation69_spill] sm:$0xff] }
 0x67f   : > { %v6308_v58 = vsel %vm6237_vm5, %v5673_v37, %v6276_v23  ;;  %v5675_v35 = vadd.f32 %v11983_v57, %v2993_v13  ;;  %v5579_v32 = vpop.f32.mrb[49].mxu1  ;;  %v16063_v56 = vld [vmem:[#allocation2 + $0x99] sm:$0xff]  ;;  %v2996_v24 = vadd.f32 %v15906_v49, %v18605_v63 }
 0x680   : > { %6340 = vst.msk [vmem:[#allocation2 + $0xc9] sm:$0xff] %vm603_vm0, %v6308_v58  ;;  %v6307_v1 = vsel %vm6236_vm15, %v5672_v52, %v6275_v40  ;;  %v5674_v36 = vadd.f32 %v5579_v32, %v2992_v20  ;;  %6511 = vrot.lane.b32.xlu1 %v16063_v56, %s12782_s25  ;;  %v16068_v46 = vld [vmem:[#allocation2 + $0x91] sm:$0xff] }
 0x681   : > { %v16070_v27 = vld [vmem:[#allocation2 + $0x98] sm:$0xff]  ;;  %6339 = vst.msk [vmem:[#allocation2 + $0xc1] sm:$0xff] %vm603_vm0, %v6307_v1  ;;  %vm6239_vm1 = vcmp.ge.f32.partialorder %v5675_v35, 0.0  ;;  %v6278_v14 = vmul.f32 %v15918_v50, %v5675_v35  ;;  %6509 = vrot.lane.b32.xlu0 %v16068_v46, %s12782_s25  ;;  %v16080_v28 = vld [vmem:[#allocation2 + $0x90] sm:$0xff] }
 0x682   : > { %6402 = vst.msk [vmem:[#allocation3 + $0x68] sm:$0xff] %vm603_vm0, %v16070_v27  ;;  %vm6238_vm3 = vcmp.ge.f32.partialorder %v5674_v36, 0.0  ;;  %v6277_v19 = vmul.f32 %v15918_v50, %v5674_v36  ;;  %v11986_v44 = vpop.f32.mrb[50].mxu1  ;;  %6401 = vst.msk [vmem:[#allocation3 + $0x60] sm:$0xff] %vm603_vm0, %v16080_v28  ;;  %v18606_v40 = vld [vmem:[#allocation72_spill] sm:$0xff]  ;;  %v18607_v32 = vld [vmem:[#allocation73_spill] sm:$0xff] }
 0x683   : > { %v6310_v11 = vsel %vm6239_vm1, %v5675_v35, %v6278_v14  ;;  %v5677_v26 = vadd.f32 %v11986_v44, %v2995_v25  ;;  %v5589_v61 = vpop.f32.mrb[51].mxu1  ;;  %v16087_v0 = vld [vmem:[#allocation2 + $0xb1] sm:$0xff]  ;;  %v2999_v57 = vadd.f32 %v18606_v40, %v15906_v49  ;;  %v2998_v1 = vadd.f32 %v15906_v49, %v18607_v32 }
 0x684   : > { %6342 = vst.msk [vmem:[#allocation2 + $0xe1] sm:$0xff] %vm603_vm0, %v6310_v11  ;;  %v6309_v29 = vsel %vm6238_vm3, %v5674_v36, %v6277_v19  ;;  %v5676_v47 = vadd.f32 %v5589_v61, %v2994_v12  ;;  %6515 = vrot.lane.b32.xlu1 %v16087_v0, %s12782_s25  ;;  %v16092_v3 = vld [vmem:[#allocation2 + $0xa9] sm:$0xff] }
 0x685   : > { %v16094_v30 = vld [vmem:[#allocation2 + $0xb0] sm:$0xff]  ;;  %6341 = vst.msk [vmem:[#allocation2 + $0xd9] sm:$0xff] %vm603_vm0, %v6309_v29  ;;  %vm6241_vm4 = vcmp.ge.f32.partialorder %v5677_v26, 0.0  ;;  %v6280_v45 = vmul.f32 %v15918_v50, %v5677_v26  ;;  %6513 = vrot.lane.b32.xlu0 %v16092_v3, %s12782_s25  ;;  %v16104_v21 = vld [vmem:[#allocation2 + $0xa8] sm:$0xff] }
 0x686   : > { %6404 = vst.msk [vmem:[#allocation3 + $0x78] sm:$0xff] %vm603_vm0, %v16094_v30  ;;  %vm6240_vm5 = vcmp.ge.f32.partialorder %v5676_v47, 0.0  ;;  %v6279_v6 = vmul.f32 %v15918_v50, %v5676_v47  ;;  %v11989_v37 = vpop.f32.mrb[52].mxu1  ;;  %6403 = vst.msk [vmem:[#allocation3 + $0x70] sm:$0xff] %vm603_vm0, %v16104_v21  ;;  %v18608_v61 = vld [vmem:[#allocation76_spill] sm:$0xff] }
 0x687   : > { %v6312_v33 = vsel %vm6241_vm4, %v5677_v26, %v6280_v45  ;;  %v5679_v7 = vadd.f32 %v11989_v37, %v2997_v60  ;;  %v5599_v52 = vpop.f32.mrb[53].mxu1  ;;  %v16111_v59 = vld [vmem:[#allocation2 + $0xc9] sm:$0xff]  ;;  %v3001_v29 = vadd.f32 %v18608_v61, %v15906_v49  ;;  %v18609_v60 = vld [vmem:[#allocation77_spill] sm:$0xff] }
 0x688   : > { %6344 = vst.msk [vmem:[#allocation2 + $0xf9] sm:$0xff] %vm603_vm0, %v6312_v33  ;;  %v6311_v13 = vsel %vm6240_vm5, %v5676_v47, %v6279_v6  ;;  %v5678_v23 = vadd.f32 %v5599_v52, %v2996_v24  ;;  %6519 = vrot.lane.b32.xlu1 %v16111_v59, %s12782_s25  ;;  %v16116_v22 = vld [vmem:[#allocation2 + $0xc1] sm:$0xff]  ;;  %v3000_v45 = vadd.f32 %v15906_v49, %v18609_v60 }
 0x689   : > { %v16118_v20 = vld [vmem:[#allocation2 + $0xc8] sm:$0xff]  ;;  %6343 = vst.msk [vmem:[#allocation2 + $0xf1] sm:$0xff] %vm603_vm0, %v6311_v13  ;;  %vm6243_vm15 = vcmp.ge.f32.partialorder %v5679_v7, 0.0  ;;  %v6282_v58 = vmul.f32 %v15918_v50, %v5679_v7  ;;  %6517 = vrot.lane.b32.xlu0 %v16116_v22, %s12782_s25  ;;  %v16128_v35 = vld [vmem:[#allocation2 + $0xc0] sm:$0xff] }
 0x68a   : > { %6406 = vst.msk [vmem:[#allocation3 + $0x88] sm:$0xff] %vm603_vm0, %v16118_v20  ;;  %vm6242_vm1 = vcmp.ge.f32.partialorder %v5678_v23, 0.0  ;;  %v6281_v36 = vmul.f32 %v15918_v50, %v5678_v23  ;;  %v11992_v62 = vpop.f32.mrb[54].mxu1  ;;  %6405 = vst.msk [vmem:[#allocation3 + $0x80] sm:$0xff] %vm603_vm0, %v16128_v35 }
 0x68b   : > { %v6314_v25 = vsel %vm6243_vm15, %v5679_v7, %v6282_v58  ;;  %v5681_v14 = vadd.f32 %v11992_v62, %v2999_v57  ;;  %v5609_v42 = vpop.f32.mrb[55].mxu1  ;;  %v16135_v12 = vld [vmem:[#allocation2 + $0xe1] sm:$0xff]  ;;  %v18610_v57 = vld [vmem:[#allocation80_spill] sm:$0xff] }
 0x68c   : > { %6346 = vst.msk [vmem:[#allocation2 + $0x111] sm:$0xff] %vm603_vm0, %v6314_v25  ;;  %v6313_v19 = vsel %vm6242_vm1, %v5678_v23, %v6281_v36  ;;  %v5680_v44 = vadd.f32 %v5609_v42, %v2998_v1  ;;  %6523 = vrot.lane.b32.xlu1 %v16135_v12, %s12782_s25  ;;  %v16140_v11 = vld [vmem:[#allocation2 + $0xd9] sm:$0xff]  ;;  %v3003_v58 = vadd.f32 %v18610_v57, %v15906_v49 }
 0x68d   : > { %v16142_v26 = vld [vmem:[#allocation2 + $0xe0] sm:$0xff]  ;;  %6345 = vst.msk [vmem:[#allocation2 + $0x109] sm:$0xff] %vm603_vm0, %v6313_v19  ;;  %vm6245_vm3 = vcmp.ge.f32.partialorder %v5681_v14, 0.0  ;;  %v6284_v47 = vmul.f32 %v15918_v50, %v5681_v14  ;;  %6521 = vrot.lane.b32.xlu0 %v16140_v11, %s12782_s25  ;;  %v16152_v4 = vld [vmem:[#allocation2 + $0xd8] sm:$0xff] }
 0x68e   : > { %6408 = vst.msk [vmem:[#allocation3 + $0x98] sm:$0xff] %vm603_vm0, %v16142_v26  ;;  %vm6244_vm4 = vcmp.ge.f32.partialorder %v5680_v44, 0.0  ;;  %v6283_v63 = vmul.f32 %v15918_v50, %v5680_v44  ;;  %v11995_v24 = vpop.f32.mrb[56].mxu1  ;;  %6407 = vst.msk [vmem:[#allocation3 + $0x90] sm:$0xff] %vm603_vm0, %v16152_v4  ;;  %v18611_v36 = vld [vmem:[#allocation81_spill] sm:$0xff] }
 0x68f   : > { %v6316_v6 = vsel %vm6245_vm3, %v5681_v14, %v6284_v47  ;;  %v5683_v37 = vadd.f32 %v11995_v24, %v3001_v29  ;;  %v5619_v33 = vpop.f32.mrb[57].mxu1  ;;  %v16159_v7 = vld [vmem:[#allocation2 + $0xf9] sm:$0xff]  ;;  %v3002_v62 = vadd.f32 %v15906_v49, %v18611_v36 }
 0x690   : > { %6348 = vst.msk [vmem:[#allocation2 + $0x129] sm:$0xff] %vm603_vm0, %v6316_v6  ;;  %v6315_v52 = vsel %vm6244_vm4, %v5680_v44, %v6283_v63  ;;  %v5682_v13 = vadd.f32 %v5619_v33, %v3000_v45  ;;  %6527 = vrot.lane.b32.xlu1 %v16159_v7, %s12782_s25  ;;  %v16164_v23 = vld [vmem:[#allocation2 + $0xf1] sm:$0xff] }
 0x691   : > { %v16166_v40 = vld [vmem:[#allocation2 + $0xf8] sm:$0xff]  ;;  %6347 = vst.msk [vmem:[#allocation2 + $0x121] sm:$0xff] %vm603_vm0, %v6315_v52  ;;  %vm6247_vm5 = vcmp.ge.f32.partialorder %v5683_v37, 0.0  ;;  %v6286_v32 = vmul.f32 %v15918_v50, %v5683_v37  ;;  %6525 = vrot.lane.b32.xlu0 %v16164_v23, %s12782_s25  ;;  %v16176_v1 = vld [vmem:[#allocation2 + $0xf0] sm:$0xff] }
 0x692   : > { %6410 = vst.msk [vmem:[#allocation3 + $0xa8] sm:$0xff] %vm603_vm0, %v16166_v40  ;;  %vm6246_vm15 = vcmp.ge.f32.partialorder %v5682_v13, 0.0  ;;  %v6285_v25 = vmul.f32 %v15918_v50, %v5682_v13  ;;  %v11998_v14 = vpop.f32.mrb[58].mxu1  ;;  %6409 = vst.msk [vmem:[#allocation3 + $0xa0] sm:$0xff] %vm603_vm0, %v16176_v1  ;;  %v18612_v63 = vld [vmem:[#allocation84_spill] sm:$0xff]  ;;  %v18613_v33 = vld [vmem:[#allocation85_spill] sm:$0xff] }
 0x693   : > { %v6318_v42 = vsel %vm6247_vm5, %v5683_v37, %v6286_v32  ;;  %v5685_v19 = vadd.f32 %v11998_v14, %v3003_v58  ;;  %v5629_v44 = vpop.f32.mrb[59].mxu1  ;;  %v16183_v61 = vld [vmem:[#allocation2 + $0x111] sm:$0xff]  ;;  %v3005_v24 = vadd.f32 %v18612_v63, %v15906_v49  ;;  %v3004_v52 = vadd.f32 %v15906_v49, %v18613_v33 }
 0x694   : > { %6350 = vst.msk [vmem:[#allocation2 + $0x141] sm:$0xff] %vm603_vm0, %v6318_v42  ;;  %v6317_v29 = vsel %vm6246_vm15, %v5682_v13, %v6285_v25  ;;  %v5684_v47 = vadd.f32 %v5629_v44, %v3002_v62  ;;  %6531 = vrot.lane.b32.xlu1 %v16183_v61, %s12782_s25  ;;  %v16188_v60 = vld [vmem:[#allocation2 + $0x109] sm:$0xff] }
 0x695   : > { %v16190_v45 = vld [vmem:[#allocation2 + $0x110] sm:$0xff]  ;;  %6349 = vst.msk [vmem:[#allocation2 + $0x139] sm:$0xff] %vm603_vm0, %v6317_v29  ;;  %vm6249_vm1 = vcmp.ge.f32.partialorder %v5685_v19, 0.0  ;;  %v6288_v6 = vmul.f32 %v15918_v50, %v5685_v19  ;;  %6529 = vrot.lane.b32.xlu0 %v16188_v60, %s12782_s25  ;;  %v16200_v37 = vld [vmem:[#allocation2 + $0x108] sm:$0xff] }
 0x696   : > { %6412 = vst.msk [vmem:[#allocation3 + $0xb8] sm:$0xff] %vm603_vm0, %v16190_v45  ;;  %vm6248_vm3 = vcmp.ge.f32.partialorder %v5684_v47, 0.0  ;;  %v6287_v13 = vmul.f32 %v15918_v50, %v5684_v47  ;;  %v12001_v57 = vpop.f32.mrb[60].mxu1  ;;  %6411 = vst.msk [vmem:[#allocation3 + $0xb0] sm:$0xff] %vm603_vm0, %v16200_v37  ;;  %v18614_v29 = vld [vmem:[#allocation87_spill] sm:$0xff] }
 0x697   : > { %v6320_v58 = vsel %vm6249_vm1, %v5685_v19, %v6288_v6  ;;  %v5687_v32 = vadd.f32 %v12001_v57, %v3005_v24  ;;  %v5639_v36 = vpop.f32.mrb[61].mxu1  ;;  %v16207_v62 = vld [vmem:[#allocation2 + $0x129] sm:$0xff]  ;;  %v3007_v63 = vadd.f32 %v18614_v29, %v15906_v49  ;;  %v18615_v24 = vld [vmem:[#allocation89_spill] sm:$0xff] }
 0x698   : > { %6352 = vst.msk [vmem:[#allocation2 + $0x159] sm:$0xff] %vm603_vm0, %v6320_v58  ;;  %v6319_v25 = vsel %vm6248_vm3, %v5684_v47, %v6287_v13  ;;  %v5686_v14 = vadd.f32 %v5639_v36, %v3004_v52  ;;  %6535 = vrot.lane.b32.xlu1 %v16207_v62, %s12782_s25  ;;  %v16212_v42 = vld [vmem:[#allocation2 + $0x121] sm:$0xff]  ;;  %v3006_v6 = vadd.f32 %v15906_v49, %v18615_v24 }
 0x699   : > { %v16214_v44 = vld [vmem:[#allocation2 + $0x128] sm:$0xff]  ;;  %6351 = vst.msk [vmem:[#allocation2 + $0x151] sm:$0xff] %vm603_vm0, %v6319_v25  ;;  %vm6251_vm4 = vcmp.ge.f32.partialorder %v5687_v32, 0.0  ;;  %v6290_v19 = vmul.f32 %v15918_v50, %v5687_v32  ;;  %6533 = vrot.lane.b32.xlu0 %v16212_v42, %s12782_s25  ;;  %v16224_v47 = vld [vmem:[#allocation2 + $0x120] sm:$0xff] }
 0x69a   : > { %6414 = vst.msk [vmem:[#allocation3 + $0xc8] sm:$0xff] %vm603_vm0, %v16214_v44  ;;  %vm6250_vm5 = vcmp.ge.f32.partialorder %v5686_v14, 0.0  ;;  %v6289_v33 = vmul.f32 %v15918_v50, %v5686_v14  ;;  %v12004_v52 = vpop.f32.mrb[62].mxu1  ;;  %6413 = vst.msk [vmem:[#allocation3 + $0xc0] sm:$0xff] %vm603_vm0, %v16224_v47 }
 0x69b   : > { %v6322_v13 = vsel %vm6251_vm4, %v5687_v32, %v6290_v19  ;;  %v5689_v57 = vadd.f32 %v12004_v52, %v3007_v63  ;;  %v5649_v58 = vpop.f32.mrb[63].mxu1  ;;  %v16231_v36 = vld [vmem:[#allocation2 + $0x141] sm:$0xff] }
 0x69c   : > { %6354 = vst.msk [vmem:[#allocation2 + $0x171] sm:$0xff] %vm603_vm0, %v6322_v13  ;;  %v6321_v25 = vsel %vm6250_vm5, %v5686_v14, %v6289_v33  ;;  %v5688_v29 = vadd.f32 %v5649_v58, %v3006_v6  ;;  %6539 = vrot.lane.b32.xlu1 %v16231_v36, %s12782_s25  ;;  %v16236_v49 = vld [vmem:[#allocation2 + $0x139] sm:$0xff] }
 0x69d   : > { %v16238_v24 = vld [vmem:[#allocation2 + $0x140] sm:$0xff]  ;;  %6353 = vst.msk [vmem:[#allocation2 + $0x169] sm:$0xff] %vm603_vm0, %v6321_v25  ;;  %vm6253_vm15 = vcmp.ge.f32.partialorder %v5689_v57, 0.0  ;;  %v6292_v32 = vmul.f32 %v15918_v50, %v5689_v57  ;;  %6537 = vrot.lane.b32.xlu0 %v16236_v49, %s12782_s25  ;;  %v16246_v14 = vld [vmem:[#allocation2 + $0x138] sm:$0xff] }
 0x69e   : > { %6416 = vst.msk [vmem:[#allocation3 + $0xd8] sm:$0xff] %vm603_vm0, %v16238_v24  ;;  %vm6252_vm1 = vcmp.ge.f32.partialorder %v5688_v29, 0.0  ;;  %v6291_v63 = vmul.f32 %v15918_v50, %v5688_v29  ;;  %6415 = vst.msk [vmem:[#allocation3 + $0xd0] sm:$0xff] %vm603_vm0, %v16246_v14 }
 0x69f   : > { %v6324_v19 = vsel %vm6253_vm15, %v5689_v57, %v6292_v32  ;;  %v16251_v6 = vld [vmem:[#allocation2 + $0x159] sm:$0xff] }
 0x6a0   : > { %6356 = vst.msk [vmem:[#allocation2 + $0x189] sm:$0xff] %vm603_vm0, %v6324_v19  ;;  %v6323_v33 = vsel %vm6252_vm1, %v5688_v29, %v6291_v63  ;;  %6543 = vrot.lane.b32.xlu1 %v16251_v6, %s12782_s25  ;;  %v16256_v52 = vld [vmem:[#allocation2 + $0x151] sm:$0xff]  ;;  %v6613_v63 = vld [vmem:[#allocation2 + $0x2] sm:$0xff] }
 0x6a1   : > { %18616 = vst [vmem:[#allocation50_spill] sm:$0xff] %v16256_v52  ;;  %v16258_v13 = vld [vmem:[#allocation2 + $0x158] sm:$0xff]  ;;  %6355 = vst.msk [vmem:[#allocation2 + $0x181] sm:$0xff] %vm603_vm0, %v6323_v33  ;;  %6541 = vrot.lane.b32.xlu0 %v16256_v52, %s12782_s25  ;;  %v16265_v50 = vld [vmem:[#allocation2 + $0x150] sm:$0xff] }
 0x6a2   : > { %6418 = vst.msk [vmem:[#allocation3 + $0xe8] sm:$0xff] %vm603_vm0, %v16258_v13  ;;  %6417 = vst.msk [vmem:[#allocation3 + $0xe0] sm:$0xff] %vm603_vm0, %v16265_v50  ;;  %v6614_v29 = vld [vmem:[#allocation2 + $0xa] sm:$0xff]  ;;  %v16287_v19 = vld [vmem:[#allocation2 + $0x22] sm:$0xff] }
 0x6a3   : > { %v16269_v57 = vld [vmem:[#allocation2 + $0x171] sm:$0xff]  ;;  %18619 = vst [vmem:[#allocation55_spill] sm:$0xff] %v16287_v19  ;;  %v16291_v33 = vld [vmem:[#allocation2 + $0x1a] sm:$0xff] }
 0x6a4   : > { %18617 = vst [vmem:[#allocation51_spill] sm:$0xff] %v16269_v57  ;;  %6547 = vrot.lane.b32.xlu1 %v16269_v57, %s12782_s25  ;;  %v16273_v58 = vld [vmem:[#allocation2 + $0x169] sm:$0xff]  ;;  %18620 = vst [vmem:[#allocation58_spill] sm:$0xff] %v16291_v33  ;;  %v16299_v57 = vld [vmem:[#allocation2 + $0x32] sm:$0xff] }
 0x6a5   : > { %18618 = vst [vmem:[#allocation54_spill] sm:$0xff] %v16273_v58  ;;  %v16275_v25 = vld [vmem:[#allocation2 + $0x170] sm:$0xff]  ;;  %6545 = vrot.lane.b32.xlu0 %v16273_v58, %s12782_s25  ;;  %v16281_v32 = vld [vmem:[#allocation2 + $0x168] sm:$0xff]  ;;  %v16295_v58 = vld [vmem:[#allocation2 + $0x3a] sm:$0xff] }
 0x6a6   : > { %6420 = vst.msk [vmem:[#allocation3 + $0xf8] sm:$0xff] %vm603_vm0, %v16275_v25  ;;  %6419 = vst.msk [vmem:[#allocation3 + $0xf0] sm:$0xff] %vm603_vm0, %v16281_v32  ;;  %v16402_v52 = vld [vmem:[#allocation2 + $0x172] sm:$0xff] }
 0x6a7   : > { %18621 = vst [vmem:[#allocation59_spill] sm:$0xff] %v16295_v58  ;;  %18622 = vst [vmem:[#allocation62_spill] sm:$0xff] %v16299_v57 }
 0x6a8   : > { %6679 = vrot.lane.b32.xlu1 %v6614_v29, %s18391_s26  ;;  %v16303_v29 = vld [vmem:[#allocation2 + $0x52] sm:$0xff] }
 0x6a9   : > { %6677 = vrot.lane.b32.xlu0 %v6613_v63, %s18391_s26  ;;  %18623 = vst [vmem:[#allocation63_spill] sm:$0xff] %v16303_v29  ;;  %v16307_v63 = vld [vmem:[#allocation2 + $0x4a] sm:$0xff] }
 0x6aa   : > { %18624 = vst [vmem:[#allocation66_spill] sm:$0xff] %v16307_v63 }
 0x6ac   : > { %6683 = vrot.lane.b32.xlu1 %v16287_v19, %s18391_s26 }
 0x6ad   : > { %6681 = vrot.lane.b32.xlu0 %v16291_v33, %s18391_s26  ;;  %v16311_v33 = vld [vmem:[#allocation2 + $0x6a] sm:$0xff] }
 0x6ae   : > { %18625 = vst [vmem:[#allocation67_spill] sm:$0xff] %v16311_v33 }
 0x6b0   : > { %6687 = vrot.lane.b32.xlu1 %v16295_v58, %s18391_s26  ;;  %v16315_v58 = vld [vmem:[#allocation2 + $0x62] sm:$0xff] }
 0x6b1   : > { %6685 = vrot.lane.b32.xlu0 %v16299_v57, %s18391_s26  ;;  %18626 = vst [vmem:[#allocation70_spill] sm:$0xff] %v16315_v58  ;;  %v16319_v57 = vld [vmem:[#allocation2 + $0x82] sm:$0xff] }
 0x6b2   : > { %18627 = vst [vmem:[#allocation71_spill] sm:$0xff] %v16319_v57 }
 0x6b4   : > { %6691 = vrot.lane.b32.xlu1 %v16303_v29, %s18391_s26  ;;  %v16323_v29 = vld [vmem:[#allocation2 + $0x7a] sm:$0xff] }
 0x6b5   : > { %6689 = vrot.lane.b32.xlu0 %v16307_v63, %s18391_s26  ;;  %18628 = vst [vmem:[#allocation74_spill] sm:$0xff] %v16323_v29  ;;  %v16327_v63 = vld [vmem:[#allocation2 + $0x9a] sm:$0xff] }
 0x6b6   : > { %18629 = vst [vmem:[#allocation75_spill] sm:$0xff] %v16327_v63 }
 0x6b8   : > { %6695 = vrot.lane.b32.xlu1 %v16311_v33, %s18391_s26  ;;  %v16331_v33 = vld [vmem:[#allocation2 + $0x92] sm:$0xff] }
 0x6b9   : > { %6693 = vrot.lane.b32.xlu0 %v16315_v58, %s18391_s26  ;;  %18630 = vst [vmem:[#allocation78_spill] sm:$0xff] %v16331_v33  ;;  %v16335_v58 = vld [vmem:[#allocation2 + $0xb2] sm:$0xff] }
 0x6ba   : > { %18631 = vst [vmem:[#allocation79_spill] sm:$0xff] %v16335_v58 }
 0x6bc   : > { %6699 = vrot.lane.b32.xlu1 %v16319_v57, %s18391_s26  ;;  %v16339_v57 = vld [vmem:[#allocation2 + $0xaa] sm:$0xff] }
 0x6bd   : > { %6697 = vrot.lane.b32.xlu0 %v16323_v29, %s18391_s26  ;;  %18632 = vst [vmem:[#allocation82_spill] sm:$0xff] %v16339_v57  ;;  %v16343_v29 = vld [vmem:[#allocation2 + $0xca] sm:$0xff] }
 0x6be   : > { %18633 = vst [vmem:[#allocation83_spill] sm:$0xff] %v16343_v29 }
 0x6c0   : > { %6703 = vrot.lane.b32.xlu1 %v16327_v63, %s18391_s26  ;;  %v16347_v63 = vld [vmem:[#allocation2 + $0xc2] sm:$0xff] }
 0x6c1   : > { %6701 = vrot.lane.b32.xlu0 %v16331_v33, %s18391_s26  ;;  %18634 = vst [vmem:[#allocation86_spill] sm:$0xff] %v16347_v63  ;;  %v16351_v33 = vld [vmem:[#allocation2 + $0xe2] sm:$0xff] }
 0x6c2   : > { %18635 = vst [vmem:[#allocation88_spill] sm:$0xff] %v16351_v33 }
 0x6c4   : > { %6707 = vrot.lane.b32.xlu1 %v16335_v58, %s18391_s26  ;;  %v16355_v58 = vld [vmem:[#allocation2 + $0xda] sm:$0xff] }
 0x6c5   : > { %6705 = vrot.lane.b32.xlu0 %v16339_v57, %s18391_s26  ;;  %18636 = vst [vmem:[#allocation90_spill] sm:$0xff] %v16355_v58  ;;  %v16359_v57 = vld [vmem:[#allocation2 + $0xfa] sm:$0xff] }
 0x6c6   : > { %18637 = vst [vmem:[#allocation91_spill] sm:$0xff] %v16359_v57 }
 0x6c8   : > { %6711 = vrot.lane.b32.xlu1 %v16343_v29, %s18391_s26  ;;  %v16363_v29 = vld [vmem:[#allocation2 + $0xf2] sm:$0xff] }
 0x6c9   : > { %6709 = vrot.lane.b32.xlu0 %v16347_v63, %s18391_s26  ;;  %18638 = vst [vmem:[#allocation40_spill] sm:$0xff] %v16363_v29  ;;  %v16367_v63 = vld [vmem:[#allocation2 + $0x112] sm:$0xff] }
 0x6ca   : > { %18639 = vst [vmem:[#allocation41_spill] sm:$0xff] %v16367_v63 }
 0x6cc   : > { %6715 = vrot.lane.b32.xlu1 %v16351_v33, %s18391_s26  ;;  %v16371_v33 = vld [vmem:[#allocation2 + $0x10a] sm:$0xff] }
 0x6cd   : > { %6713 = vrot.lane.b32.xlu0 %v16355_v58, %s18391_s26  ;;  %18640 = vst [vmem:[#allocation92_spill] sm:$0xff] %v16371_v33  ;;  %v16375_v58 = vld [vmem:[#allocation2 + $0x12a] sm:$0xff] }
 0x6ce   : > { %18641 = vst [vmem:[#allocation93_spill] sm:$0xff] %v16375_v58 }
 0x6d0   : > { %6719 = vrot.lane.b32.xlu1 %v16359_v57, %s18391_s26  ;;  %v16379_v57 = vld [vmem:[#allocation2 + $0x122] sm:$0xff] }
 0x6d1   : > { %6717 = vrot.lane.b32.xlu0 %v16363_v29, %s18391_s26  ;;  %18642 = vst [vmem:[#allocation94_spill] sm:$0xff] %v16379_v57  ;;  %v16383_v29 = vld [vmem:[#allocation2 + $0x142] sm:$0xff] }
 0x6d2   : > { %18643 = vst [vmem:[#allocation95_spill] sm:$0xff] %v16383_v29 }
 0x6d4   : > { %6723 = vrot.lane.b32.xlu1 %v16367_v63, %s18391_s26  ;;  %v16387_v63 = vld [vmem:[#allocation2 + $0x13a] sm:$0xff] }
 0x6d5   : > { %6721 = vrot.lane.b32.xlu0 %v16371_v33, %s18391_s26  ;;  %18644 = vst [vmem:[#allocation34_spill] sm:$0xff] %v16387_v63 }
 0x6d8   : > { %6727 = vrot.lane.b32.xlu1 %v16375_v58, %s18391_s26  ;;  %v16392_v58 = vld [vmem:[#allocation2 + $0x15a] sm:$0xff] }
 0x6d9   : > { %6725 = vrot.lane.b32.xlu0 %v16379_v57, %s18391_s26  ;;  %v16397_v57 = vld [vmem:[#allocation2 + $0x152] sm:$0xff] }
 0x6da   : > { %18645 = vst [vmem:[#allocation36_spill] sm:$0xff] %v16397_v57 }
 0x6dc   : > { %6731 = vrot.lane.b32.xlu1 %v16383_v29, %s18391_s26 }
 0x6dd   : > { %6729 = vrot.lane.b32.xlu0 %v16387_v63, %s18391_s26 }
 0x6de   : > { %v6492_v33 = vpop.permute.xlu1 %6491 }
 0x6df   : > { %6584 = vst.msk [vmem:[#allocation3 + $0x18] sm:$0xff] %vm3911_vm13, %v6492_v33  ;;  %v6490_v19 = vpop.permute.xlu0 %6489 }
 0x6e0   : > { %6583 = vst.msk [vmem:[#allocation3 + $0x10] sm:$0xff] %vm3911_vm13, %v6490_v19  ;;  %6735 = vrot.lane.b32.xlu1 %v16392_v58, %s18391_s26  ;;  %v16407_v19 = vld [vmem:[#allocation2 + $0x16a] sm:$0xff] }
 0x6e1   : > { %6733 = vrot.lane.b32.xlu0 %v16397_v57, %s18391_s26 }
 0x6e2   : > { %v6496_v29 = vpop.permute.xlu1 %6495 }
 0x6e3   : > { %6586 = vst.msk [vmem:[#allocation3 + $0x28] sm:$0xff] %vm3911_vm13, %v6496_v29  ;;  %v6494_v63 = vpop.permute.xlu0 %6493 }
 0x6e4   : > { %6585 = vst.msk [vmem:[#allocation3 + $0x20] sm:$0xff] %vm3911_vm13, %v6494_v63  ;;  %6739 = vrot.lane.b32.xlu1 %v16402_v52, %s18391_s26 }
 0x6e5   : > { %6737 = vrot.lane.b32.xlu0 %v16407_v19, %s18391_s26 }
 0x6e6   : > { %v6500_v33 = vpop.permute.xlu1 %6499 }
 0x6e7   : > { %6588 = vst.msk [vmem:[#allocation3 + $0x38] sm:$0xff] %vm3911_vm13, %v6500_v33  ;;  %v6498_v57 = vpop.permute.xlu0 %6497 }
 0x6e8   : > { %6587 = vst.msk [vmem:[#allocation3 + $0x30] sm:$0xff] %vm3911_vm13, %v6498_v57  ;;  %6871 = vrot.lane.b32.xlu1 %v15950_v10, %s18389_s28 }
 0x6e9   : > { %6869 = vrot.lane.b32.xlu0 %v15960_v43, %s18389_s28 }
 0x6ea   : > { %v6504_v29 = vpop.permute.xlu1 %6503 }
 0x6eb   : > { %6590 = vst.msk [vmem:[#allocation3 + $0x48] sm:$0xff] %vm3911_vm13, %v6504_v29  ;;  %v6502_v63 = vpop.permute.xlu0 %6501 }
 0x6ec   : > { %6589 = vst.msk [vmem:[#allocation3 + $0x40] sm:$0xff] %vm3911_vm13, %v6502_v63  ;;  %6875 = vrot.lane.b32.xlu1 %v15974_v5, %s18389_s28 }
 0x6ed   : > { %6873 = vrot.lane.b32.xlu0 %v15984_v18, %s18389_s28 }
 0x6ee   : > { %v6508_v33 = vpop.permute.xlu1 %6507 }
 0x6ef   : > { %6592 = vst.msk [vmem:[#allocation3 + $0x58] sm:$0xff] %vm3911_vm13, %v6508_v33  ;;  %v6506_v57 = vpop.permute.xlu0 %6505 }
 0x6f0   : > { %6591 = vst.msk [vmem:[#allocation3 + $0x50] sm:$0xff] %vm3911_vm13, %v6506_v57  ;;  %6879 = vrot.lane.b32.xlu1 %v15998_v9, %s18389_s28 }
 0x6f1   : > { %6877 = vrot.lane.b32.xlu0 %v16008_v54, %s18389_s28 }
 0x6f2   : > { %v6512_v10 = vpop.permute.xlu1 %6511 }
 0x6f3   : > { %6594 = vst.msk [vmem:[#allocation3 + $0x68] sm:$0xff] %vm3911_vm13, %v6512_v10  ;;  %v6510_v43 = vpop.permute.xlu0 %6509 }
 0x6f4   : > { %6593 = vst.msk [vmem:[#allocation3 + $0x60] sm:$0xff] %vm3911_vm13, %v6510_v43  ;;  %6883 = vrot.lane.b32.xlu1 %v16022_v16, %s18389_s28 }
 0x6f5   : > { %6881 = vrot.lane.b32.xlu0 %v16032_v8, %s18389_s28 }
 0x6f6   : > { %v6516_v29 = vpop.permute.xlu1 %6515 }
 0x6f7   : > { %6596 = vst.msk [vmem:[#allocation3 + $0x78] sm:$0xff] %vm3911_vm13, %v6516_v29  ;;  %v6514_v63 = vpop.permute.xlu0 %6513 }
 0x6f8   : > { %6595 = vst.msk [vmem:[#allocation3 + $0x70] sm:$0xff] %vm3911_vm13, %v6514_v63  ;;  %6887 = vrot.lane.b32.xlu1 %v16046_v39, %s18389_s28 }
 0x6f9   : > { %6885 = vrot.lane.b32.xlu0 %v16056_v17, %s18389_s28 }
 0x6fa   : > { %v6520_v33 = vpop.permute.xlu1 %6519 }
 0x6fb   : > { %6598 = vst.msk [vmem:[#allocation3 + $0x88] sm:$0xff] %vm3911_vm13, %v6520_v33  ;;  %v6518_v57 = vpop.permute.xlu0 %6517 }
 0x6fc   : > { %6597 = vst.msk [vmem:[#allocation3 + $0x80] sm:$0xff] %vm3911_vm13, %v6518_v57  ;;  %6891 = vrot.lane.b32.xlu1 %v16070_v27, %s18389_s28 }
 0x6fd   : > { %6889 = vrot.lane.b32.xlu0 %v16080_v28, %s18389_s28 }
 0x6fe   : > { %v6524_v10 = vpop.permute.xlu1 %6523 }
 0x6ff   : > { %6600 = vst.msk [vmem:[#allocation3 + $0x98] sm:$0xff] %vm3911_vm13, %v6524_v10  ;;  %v6522_v43 = vpop.permute.xlu0 %6521 }
 0x700   : > { %6599 = vst.msk [vmem:[#allocation3 + $0x90] sm:$0xff] %vm3911_vm13, %v6522_v43  ;;  %6895 = vrot.lane.b32.xlu1 %v16094_v30, %s18389_s28 }
 0x701   : > { %6893 = vrot.lane.b32.xlu0 %v16104_v21, %s18389_s28 }
 0x702   : > { %v6528_v29 = vpop.permute.xlu1 %6527 }
 0x703   : > { %6602 = vst.msk [vmem:[#allocation3 + $0xa8] sm:$0xff] %vm3911_vm13, %v6528_v29  ;;  %v6526_v63 = vpop.permute.xlu0 %6525 }
 0x704   : > { %6601 = vst.msk [vmem:[#allocation3 + $0xa0] sm:$0xff] %vm3911_vm13, %v6526_v63  ;;  %6899 = vrot.lane.b32.xlu1 %v16118_v20, %s18389_s28 }
 0x705   : > { %6897 = vrot.lane.b32.xlu0 %v16128_v35, %s18389_s28 }
 0x706   : > { %v6532_v33 = vpop.permute.xlu1 %6531 }
 0x707   : > { %6604 = vst.msk [vmem:[#allocation3 + $0xb8] sm:$0xff] %vm3911_vm13, %v6532_v33  ;;  %v6530_v57 = vpop.permute.xlu0 %6529 }
 0x708   : > { %6603 = vst.msk [vmem:[#allocation3 + $0xb0] sm:$0xff] %vm3911_vm13, %v6530_v57  ;;  %6903 = vrot.lane.b32.xlu1 %v16142_v26, %s18389_s28 }
 0x709   : > { %6901 = vrot.lane.b32.xlu0 %v16152_v4, %s18389_s28 }
 0x70a   : > { %v6536_v10 = vpop.permute.xlu1 %6535 }
 0x70b   : > { %6606 = vst.msk [vmem:[#allocation3 + $0xc8] sm:$0xff] %vm3911_vm13, %v6536_v10  ;;  %v6534_v43 = vpop.permute.xlu0 %6533 }
 0x70c   : > { %6605 = vst.msk [vmem:[#allocation3 + $0xc0] sm:$0xff] %vm3911_vm13, %v6534_v43  ;;  %6907 = vrot.lane.b32.xlu1 %v16166_v40, %s18389_s28 }
 0x70d   : > { %6905 = vrot.lane.b32.xlu0 %v16176_v1, %s18389_s28 }
 0x70e   : > { %v6540_v29 = vpop.permute.xlu1 %6539 }
 0x70f   : > { %6608 = vst.msk [vmem:[#allocation3 + $0xd8] sm:$0xff] %vm3911_vm13, %v6540_v29  ;;  %v6538_v63 = vpop.permute.xlu0 %6537 }
 0x710   : > { %6607 = vst.msk [vmem:[#allocation3 + $0xd0] sm:$0xff] %vm3911_vm13, %v6538_v63  ;;  %6911 = vrot.lane.b32.xlu1 %v16190_v45, %s18389_s28 }
 0x711   : > { %6909 = vrot.lane.b32.xlu0 %v16200_v37, %s18389_s28 }
 0x712   : > { %v6544_v33 = vpop.permute.xlu1 %6543 }
 0x713   : > { %6610 = vst.msk [vmem:[#allocation3 + $0xe8] sm:$0xff] %vm3911_vm13, %v6544_v33  ;;  %v6542_v57 = vpop.permute.xlu0 %6541 }
 0x714   : > { %6609 = vst.msk [vmem:[#allocation3 + $0xe0] sm:$0xff] %vm3911_vm13, %v6542_v57  ;;  %6915 = vrot.lane.b32.xlu1 %v16214_v44, %s18389_s28 }
 0x715   : > { %6913 = vrot.lane.b32.xlu0 %v16224_v47, %s18389_s28 }
 0x716   : > { %v6548_v10 = vpop.permute.xlu1 %6547 }
 0x717   : > { %6612 = vst.msk [vmem:[#allocation3 + $0xf8] sm:$0xff] %vm3911_vm13, %v6548_v10  ;;  %v6546_v43 = vpop.permute.xlu0 %6545 }
 0x718   : > { %6611 = vst.msk [vmem:[#allocation3 + $0xf0] sm:$0xff] %vm3911_vm13, %v6546_v43  ;;  %6919 = vrot.lane.b32.xlu1 %v16238_v24, %s18389_s28 }
 0x719   : > { %6917 = vrot.lane.b32.xlu0 %v16246_v14, %s18389_s28 }
 0x71a   : > { %v6680_v29 = vpop.permute.xlu1 %6679 }
 0x71b   : > { %6774 = vst.msk [vmem:[#allocation3 + $0x8] sm:$0xff] %vm4104_vm6, %v6680_v29  ;;  %v6678_v63 = vpop.permute.xlu0 %6677  ;;  %v6836_v29 = vld [vmem:[#allocation2 + $0x188] sm:$0xff] }
 0x71c   : > { %6773 = vst.msk [vmem:[#allocation3] sm:$0xff] %vm4104_vm6, %v6678_v63  ;;  %6923 = vrot.lane.b32.xlu1 %v16258_v13, %s18389_s28  ;;  %v16504_v63 = vld [vmem:[#allocation2 + $0x180] sm:$0xff] }
 0x71d   : > { %6921 = vrot.lane.b32.xlu0 %v16265_v50, %s18389_s28 }
 0x71e   : > { %v6684_v33 = vpop.permute.xlu1 %6683 }
 0x71f   : > { %6776 = vst.msk [vmem:[#allocation3 + $0x18] sm:$0xff] %vm4104_vm6, %v6684_v33  ;;  %v6682_v57 = vpop.permute.xlu0 %6681 }
 0x720   : > { %6775 = vst.msk [vmem:[#allocation3 + $0x10] sm:$0xff] %vm4104_vm6, %v6682_v57  ;;  %6927 = vrot.lane.b32.xlu1 %v16275_v25, %s18389_s28 }
 0x721   : > { %6925 = vrot.lane.b32.xlu0 %v16281_v32, %s18389_s28 }
 0x722   : > { %v6688_v10 = vpop.permute.xlu1 %6687 }
 0x723   : > { %6778 = vst.msk [vmem:[#allocation3 + $0x28] sm:$0xff] %vm4104_vm6, %v6688_v10  ;;  %v6686_v43 = vpop.permute.xlu0 %6685 }
 0x724   : > { %6777 = vst.msk [vmem:[#allocation3 + $0x20] sm:$0xff] %vm4104_vm6, %v6686_v43  ;;  %6931 = vrot.lane.b32.xlu1 %v6836_v29, %s18389_s28 }
 0x725   : > { %6929 = vrot.lane.b32.xlu0 %v16504_v63, %s18389_s28 }
 0x726   : > { %v6692_v33 = vpop.permute.xlu1 %6691 }
 0x727   : > { %6780 = vst.msk [vmem:[#allocation3 + $0x38] sm:$0xff] %vm4104_vm6, %v6692_v33  ;;  %v6690_v57 = vpop.permute.xlu0 %6689 }
 0x728   : > { %6779 = vst.msk [vmem:[#allocation3 + $0x30] sm:$0xff] %vm4104_vm6, %v6690_v57  ;;  %7063 = vrot.lane.b32.xlu1 %v15943_v51, %s18387_s23 }
 0x729   : > { %7061 = vrot.lane.b32.xlu0 %v15948_v34, %s18387_s23 }
 0x72a   : > { %v6696_v10 = vpop.permute.xlu1 %6695 }
 0x72b   : > { %6782 = vst.msk [vmem:[#allocation3 + $0x48] sm:$0xff] %vm4104_vm6, %v6696_v10  ;;  %v6694_v43 = vpop.permute.xlu0 %6693 }
 0x72c   : > { %6781 = vst.msk [vmem:[#allocation3 + $0x40] sm:$0xff] %vm4104_vm6, %v6694_v43  ;;  %7067 = vrot.lane.b32.xlu1 %v15967_v48, %s18387_s23 }
 0x72d   : > { %7065 = vrot.lane.b32.xlu0 %v15972_v31, %s18387_s23 }
 0x72e   : > { %v6700_v29 = vpop.permute.xlu1 %6699 }
 0x72f   : > { %6784 = vst.msk [vmem:[#allocation3 + $0x58] sm:$0xff] %vm4104_vm6, %v6700_v29  ;;  %v6698_v33 = vpop.permute.xlu0 %6697  ;;  %v16604_v29 = vld [vmem:[#allocation2 + $0x181] sm:$0xff] }
 0x730   : > { %6783 = vst.msk [vmem:[#allocation3 + $0x50] sm:$0xff] %vm4104_vm6, %v6698_v33  ;;  %7071 = vrot.lane.b32.xlu1 %v15991_v38, %s18387_s23 }
 0x731   : > { %7069 = vrot.lane.b32.xlu0 %v15996_v53, %s18387_s23 }
 0x732   : > { %v6704_v51 = vpop.permute.xlu1 %6703 }
 0x733   : > { %6786 = vst.msk [vmem:[#allocation3 + $0x68] sm:$0xff] %vm4104_vm6, %v6704_v51  ;;  %v6702_v34 = vpop.permute.xlu0 %6701 }
 0x734   : > { %6785 = vst.msk [vmem:[#allocation3 + $0x60] sm:$0xff] %vm4104_vm6, %v6702_v34  ;;  %7075 = vrot.lane.b32.xlu1 %v16015_v41, %s18387_s23  ;;  %v18649_v34 = vld [vmem:[#allocation55_spill] sm:$0xff] }
 0x735   : > { %7073 = vrot.lane.b32.xlu0 %v16020_v15, %s18387_s23 }
 0x736   : > { %v6708_v48 = vpop.permute.xlu1 %6707 }
 0x737   : > { %6788 = vst.msk [vmem:[#allocation3 + $0x78] sm:$0xff] %vm4104_vm6, %v6708_v48  ;;  %v6706_v31 = vpop.permute.xlu0 %6705  ;;  %v18650_v48 = vld [vmem:[#allocation58_spill] sm:$0xff] }
 0x738   : > { %6787 = vst.msk [vmem:[#allocation3 + $0x70] sm:$0xff] %vm4104_vm6, %v6706_v31  ;;  %7079 = vrot.lane.b32.xlu1 %v16039_v55, %s18387_s23 }
 0x739   : > { %7077 = vrot.lane.b32.xlu0 %v16044_v2, %s18387_s23 }
 0x73a   : > { %v6712_v38 = vpop.permute.xlu1 %6711 }
 0x73b   : > { %6790 = vst.msk [vmem:[#allocation3 + $0x88] sm:$0xff] %vm4104_vm6, %v6712_v38  ;;  %v6710_v53 = vpop.permute.xlu0 %6709 }
 0x73c   : > { %6789 = vst.msk [vmem:[#allocation3 + $0x80] sm:$0xff] %vm4104_vm6, %v6710_v53  ;;  %7083 = vrot.lane.b32.xlu1 %v16063_v56, %s18387_s23  ;;  %v18651_v53 = vld [vmem:[#allocation59_spill] sm:$0xff] }
 0x73d   : > { %7081 = vrot.lane.b32.xlu0 %v16068_v46, %s18387_s23 }
 0x73e   : > { %v6716_v41 = vpop.permute.xlu1 %6715 }
 0x73f   : > { %6792 = vst.msk [vmem:[#allocation3 + $0x98] sm:$0xff] %vm4104_vm6, %v6716_v41  ;;  %v6714_v15 = vpop.permute.xlu0 %6713  ;;  %v18652_v41 = vld [vmem:[#allocation62_spill] sm:$0xff] }
 0x740   : > { %6791 = vst.msk [vmem:[#allocation3 + $0x90] sm:$0xff] %vm4104_vm6, %v6714_v15  ;;  %7087 = vrot.lane.b32.xlu1 %v16087_v0, %s18387_s23 }
 0x741   : > { %7085 = vrot.lane.b32.xlu0 %v16092_v3, %s18387_s23 }
 0x742   : > { %v6720_v55 = vpop.permute.xlu1 %6719 }
 0x743   : > { %6794 = vst.msk [vmem:[#allocation3 + $0xa8] sm:$0xff] %vm4104_vm6, %v6720_v55  ;;  %v6718_v2 = vpop.permute.xlu0 %6717 }
 0x744   : > { %6793 = vst.msk [vmem:[#allocation3 + $0xa0] sm:$0xff] %vm4104_vm6, %v6718_v2  ;;  %7091 = vrot.lane.b32.xlu1 %v16111_v59, %s18387_s23  ;;  %v18653_v2 = vld [vmem:[#allocation63_spill] sm:$0xff] }
 0x745   : > { %7089 = vrot.lane.b32.xlu0 %v16116_v22, %s18387_s23 }
 0x746   : > { %v6724_v56 = vpop.permute.xlu1 %6723 }
 0x747   : > { %6796 = vst.msk [vmem:[#allocation3 + $0xb8] sm:$0xff] %vm4104_vm6, %v6724_v56  ;;  %v6722_v46 = vpop.permute.xlu0 %6721  ;;  %v18654_v56 = vld [vmem:[#allocation66_spill] sm:$0xff] }
 0x748   : > { %6795 = vst.msk [vmem:[#allocation3 + $0xb0] sm:$0xff] %vm4104_vm6, %v6722_v46  ;;  %7095 = vrot.lane.b32.xlu1 %v16135_v12, %s18387_s23 }
 0x749   : > { %7093 = vrot.lane.b32.xlu0 %v16140_v11, %s18387_s23 }
 0x74a   : > { %v6728_v0 = vpop.permute.xlu1 %6727 }
 0x74b   : > { %6798 = vst.msk [vmem:[#allocation3 + $0xc8] sm:$0xff] %vm4104_vm6, %v6728_v0  ;;  %v6726_v3 = vpop.permute.xlu0 %6725 }
 0x74c   : > { %6797 = vst.msk [vmem:[#allocation3 + $0xc0] sm:$0xff] %vm4104_vm6, %v6726_v3  ;;  %7099 = vrot.lane.b32.xlu1 %v16159_v7, %s18387_s23  ;;  %v18655_v3 = vld [vmem:[#allocation67_spill] sm:$0xff] }
 0x74d   : > { %7097 = vrot.lane.b32.xlu0 %v16164_v23, %s18387_s23 }
 0x74e   : > { %v6732_v59 = vpop.permute.xlu1 %6731 }
 0x74f   : > { %6800 = vst.msk [vmem:[#allocation3 + $0xd8] sm:$0xff] %vm4104_vm6, %v6732_v59  ;;  %v6730_v22 = vpop.permute.xlu0 %6729  ;;  %v18656_v59 = vld [vmem:[#allocation70_spill] sm:$0xff] }
 0x750   : > { %6799 = vst.msk [vmem:[#allocation3 + $0xd0] sm:$0xff] %vm4104_vm6, %v6730_v22  ;;  %7103 = vrot.lane.b32.xlu1 %v16183_v61, %s18387_s23 }
 0x751   : > { %7101 = vrot.lane.b32.xlu0 %v16188_v60, %s18387_s23 }
 0x752   : > { %v6736_v12 = vpop.permute.xlu1 %6735 }
 0x753   : > { %6802 = vst.msk [vmem:[#allocation3 + $0xe8] sm:$0xff] %vm4104_vm6, %v6736_v12  ;;  %v6734_v11 = vpop.permute.xlu0 %6733 }
 0x754   : > { %6801 = vst.msk [vmem:[#allocation3 + $0xe0] sm:$0xff] %vm4104_vm6, %v6734_v11  ;;  %7107 = vrot.lane.b32.xlu1 %v16207_v62, %s18387_s23  ;;  %v18646_v62 = vld [vmem:[#allocation50_spill] sm:$0xff]  ;;  %v18657_v11 = vld [vmem:[#allocation71_spill] sm:$0xff] }
 0x755   : > { %7105 = vrot.lane.b32.xlu0 %v16212_v42, %s18387_s23 }
 0x756   : > { %v6740_v7 = vpop.permute.xlu1 %6739 }
 0x757   : > { %6804 = vst.msk [vmem:[#allocation3 + $0xf8] sm:$0xff] %vm4104_vm6, %v6740_v7  ;;  %v6738_v23 = vpop.permute.xlu0 %6737  ;;  %v18658_v7 = vld [vmem:[#allocation74_spill] sm:$0xff] }
 0x758   : > { %6803 = vst.msk [vmem:[#allocation3 + $0xf0] sm:$0xff] %vm4104_vm6, %v6738_v23  ;;  %7111 = vrot.lane.b32.xlu1 %v16231_v36, %s18387_s23  ;;  %v18647_v36 = vld [vmem:[#allocation51_spill] sm:$0xff] }
 0x759   : > { %7109 = vrot.lane.b32.xlu0 %v16236_v49, %s18387_s23  ;;  %v18648_v49 = vld [vmem:[#allocation54_spill] sm:$0xff] }
 0x75a   : > { %v6872_v61 = vpop.permute.xlu1 %6871 }
 0x75b   : > { %6966 = vst.msk [vmem:[#allocation3 + $0x8] sm:$0xff] %vm4297_vm7, %v6872_v61  ;;  %v6870_v60 = vpop.permute.xlu0 %6869 }
 0x75c   : > { %6965 = vst.msk [vmem:[#allocation3] sm:$0xff] %vm4297_vm7, %v6870_v60  ;;  %7115 = vrot.lane.b32.xlu1 %v16251_v6, %s18387_s23  ;;  %v16599_v6 = vld [vmem:[#allocation2 + $0x189] sm:$0xff] }
 0x75d   : > { %7113 = vrot.lane.b32.xlu0 %v18646_v62, %s18387_s23  ;;  %v18659_v60 = vld [vmem:[#allocation75_spill] sm:$0xff]  ;;  %v18660_v62 = vld [vmem:[#allocation78_spill] sm:$0xff] }
 0x75e   : > { %v6876_v42 = vpop.permute.xlu1 %6875 }
 0x75f   : > { %6968 = vst.msk [vmem:[#allocation3 + $0x18] sm:$0xff] %vm4297_vm7, %v6876_v42  ;;  %v6874_v57 = vpop.permute.xlu0 %6873 }
 0x760   : > { %6967 = vst.msk [vmem:[#allocation3 + $0x10] sm:$0xff] %vm4297_vm7, %v6874_v57  ;;  %7119 = vrot.lane.b32.xlu1 %v18647_v36, %s18387_s23  ;;  %v18661_v36 = vld [vmem:[#allocation79_spill] sm:$0xff] }
 0x761   : > { %7117 = vrot.lane.b32.xlu0 %v18648_v49, %s18387_s23  ;;  %v18662_v49 = vld [vmem:[#allocation82_spill] sm:$0xff] }
 0x762   : > { %v6880_v10 = vpop.permute.xlu1 %6879 }
 0x763   : > { %6970 = vst.msk [vmem:[#allocation3 + $0x28] sm:$0xff] %vm4297_vm7, %v6880_v10  ;;  %v6878_v43 = vpop.permute.xlu0 %6877 }
 0x764   : > { %6969 = vst.msk [vmem:[#allocation3 + $0x20] sm:$0xff] %vm4297_vm7, %v6878_v43  ;;  %7123 = vrot.lane.b32.xlu1 %v16599_v6, %s18387_s23 }
 0x765   : > { %7121 = vrot.lane.b32.xlu0 %v16604_v29, %s18387_s23  ;;  %s18678_s23 = smov 24  }
 0x766   : > { %v6884_v33 = vpop.permute.xlu1 %6883 }
 0x767   : > { %6972 = vst.msk [vmem:[#allocation3 + $0x38] sm:$0xff] %vm4297_vm7, %v6884_v33  ;;  %v6882_v51 = vpop.permute.xlu0 %6881  ;;  %v18663_v33 = vld [vmem:[#allocation83_spill] sm:$0xff] }
 0x768   : > { %6971 = vst.msk [vmem:[#allocation3 + $0x30] sm:$0xff] %vm4297_vm7, %v6882_v51  ;;  %7255 = vrot.lane.b32.xlu1 %v18649_v34, %s18385_s3  ;;  %v18664_v51 = vld [vmem:[#allocation86_spill] sm:$0xff] }
 0x769   : > { %7253 = vrot.lane.b32.xlu0 %v18650_v48, %s18385_s3 }
 0x76a   : > { %v6888_v31 = vpop.permute.xlu1 %6887 }
 0x76b   : > { %6974 = vst.msk [vmem:[#allocation3 + $0x48] sm:$0xff] %vm4297_vm7, %v6888_v31  ;;  %v6886_v38 = vpop.permute.xlu0 %6885  ;;  %v18665_v31 = vld [vmem:[#allocation88_spill] sm:$0xff] }
 0x76c   : > { %6973 = vst.msk [vmem:[#allocation3 + $0x40] sm:$0xff] %vm4297_vm7, %v6886_v38  ;;  %7259 = vrot.lane.b32.xlu1 %v18651_v53, %s18385_s3  ;;  %v18666_v38 = vld [vmem:[#allocation90_spill] sm:$0xff] }
 0x76d   : > { %7257 = vrot.lane.b32.xlu0 %v18652_v41, %s18385_s3 }
 0x76e   : > { %v6892_v15 = vpop.permute.xlu1 %6891 }
 0x76f   : > { %6976 = vst.msk [vmem:[#allocation3 + $0x58] sm:$0xff] %vm4297_vm7, %v6892_v15  ;;  %v6890_v55 = vpop.permute.xlu0 %6889  ;;  %v18667_v15 = vld [vmem:[#allocation91_spill] sm:$0xff] }
 0x770   : > { %6975 = vst.msk [vmem:[#allocation3 + $0x50] sm:$0xff] %vm4297_vm7, %v6890_v55  ;;  %7263 = vrot.lane.b32.xlu1 %v18653_v2, %s18385_s3  ;;  %v18668_v55 = vld [vmem:[#allocation40_spill] sm:$0xff] }
 0x771   : > { %7261 = vrot.lane.b32.xlu0 %v18654_v56, %s18385_s3 }
 0x772   : > { %v6896_v46 = vpop.permute.xlu1 %6895 }
 0x773   : > { %6978 = vst.msk [vmem:[#allocation3 + $0x68] sm:$0xff] %vm4297_vm7, %v6896_v46  ;;  %v6894_v0 = vpop.permute.xlu0 %6893  ;;  %v18669_v46 = vld [vmem:[#allocation41_spill] sm:$0xff] }
 0x774   : > { %6977 = vst.msk [vmem:[#allocation3 + $0x60] sm:$0xff] %vm4297_vm7, %v6894_v0  ;;  %7267 = vrot.lane.b32.xlu1 %v18655_v3, %s18385_s3  ;;  %v18670_v0 = vld [vmem:[#allocation92_spill] sm:$0xff] }
 0x775   : > { %7265 = vrot.lane.b32.xlu0 %v18656_v59, %s18385_s3 }
 0x776   : > { %v6900_v22 = vpop.permute.xlu1 %6899 }
 0x777   : > { %6980 = vst.msk [vmem:[#allocation3 + $0x78] sm:$0xff] %vm4297_vm7, %v6900_v22  ;;  %v6898_v12 = vpop.permute.xlu0 %6897  ;;  %v18671_v22 = vld [vmem:[#allocation93_spill] sm:$0xff] }
 0x778   : > { %6979 = vst.msk [vmem:[#allocation3 + $0x70] sm:$0xff] %vm4297_vm7, %v6898_v12  ;;  %7271 = vrot.lane.b32.xlu1 %v18657_v11, %s18385_s3  ;;  %v18672_v12 = vld [vmem:[#allocation94_spill] sm:$0xff] }
 0x779   : > { %7269 = vrot.lane.b32.xlu0 %v18658_v7, %s18385_s3 }
 0x77a   : > { %v6904_v23 = vpop.permute.xlu1 %6903 }
 0x77b   : > { %6982 = vst.msk [vmem:[#allocation3 + $0x88] sm:$0xff] %vm4297_vm7, %v6904_v23  ;;  %v6902_v61 = vpop.permute.xlu0 %6901  ;;  %v18673_v23 = vld [vmem:[#allocation95_spill] sm:$0xff] }
 0x77c   : > { %6981 = vst.msk [vmem:[#allocation3 + $0x80] sm:$0xff] %vm4297_vm7, %v6902_v61  ;;  %7275 = vrot.lane.b32.xlu1 %v18659_v60, %s18385_s3  ;;  %v18674_v61 = vld [vmem:[#allocation34_spill] sm:$0xff] }
 0x77d   : > { %7273 = vrot.lane.b32.xlu0 %v18660_v62, %s18385_s3 }
 0x77e   : > { %v6908_v42 = vpop.permute.xlu1 %6907 }
 0x77f   : > { %6984 = vst.msk [vmem:[#allocation3 + $0x98] sm:$0xff] %vm4297_vm7, %v6908_v42  ;;  %v6906_v57 = vpop.permute.xlu0 %6905  ;;  %v18675_v42 = vld [vmem:[#allocation36_spill] sm:$0xff] }
 0x780   : > { %6983 = vst.msk [vmem:[#allocation3 + $0x90] sm:$0xff] %vm4297_vm7, %v6906_v57  ;;  %7279 = vrot.lane.b32.xlu1 %v18661_v36, %s18385_s3 }
 0x781   : > { %7277 = vrot.lane.b32.xlu0 %v18662_v49, %s18385_s3 }
 0x782   : > { %v6912_v10 = vpop.permute.xlu1 %6911 }
 0x783   : > { %6986 = vst.msk [vmem:[#allocation3 + $0xa8] sm:$0xff] %vm4297_vm7, %v6912_v10  ;;  %v6910_v43 = vpop.permute.xlu0 %6909 }
 0x784   : > { %6985 = vst.msk [vmem:[#allocation3 + $0xa0] sm:$0xff] %vm4297_vm7, %v6910_v43  ;;  %7283 = vrot.lane.b32.xlu1 %v18663_v33, %s18385_s3  ;;  %v16704_v43 = vld [vmem:[#allocation2 + $0x182] sm:$0xff] }
 0x785   : > { %7281 = vrot.lane.b32.xlu0 %v18664_v51, %s18385_s3 }
 0x786   : > { %v6916_v34 = vpop.permute.xlu1 %6915 }
 0x787   : > { %6988 = vst.msk [vmem:[#allocation3 + $0xb8] sm:$0xff] %vm4297_vm7, %v6916_v34  ;;  %v6914_v48 = vpop.permute.xlu0 %6913 }
 0x788   : > { %6987 = vst.msk [vmem:[#allocation3 + $0xb0] sm:$0xff] %vm4297_vm7, %v6914_v48  ;;  %7287 = vrot.lane.b32.xlu1 %v18665_v31, %s18385_s3 }
 0x789   : > { %7285 = vrot.lane.b32.xlu0 %v18666_v38, %s18385_s3 }
 0x78a   : > { %v6920_v53 = vpop.permute.xlu1 %6919 }
 0x78b   : > { %6990 = vst.msk [vmem:[#allocation3 + $0xc8] sm:$0xff] %vm4297_vm7, %v6920_v53  ;;  %v6918_v41 = vpop.permute.xlu0 %6917  ;;  %v7991_v53 = vld [vmem:[%s18253_s12 + $0x10] sm:$0xff] }
 0x78c   : > { %6989 = vst.msk [vmem:[#allocation3 + $0xc0] sm:$0xff] %vm4297_vm7, %v6918_v41  ;;  %7291 = vrot.lane.b32.xlu1 %v18667_v15, %s18385_s3  ;;  %v7992_v41 = vld [vmem:[%s18253_s12 + $0x18] sm:$0xff]  ;;  %v8353_v15 = vld [vmem:[%s18258_s17 + $0x10] sm:$0xff] }
 0x78d   : > { %7289 = vrot.lane.b32.xlu0 %v18668_v55, %s18385_s3 }
 0x78e   : > { %v6924_v2 = vpop.permute.xlu1 %6923 }
 0x78f   : > { %6992 = vst.msk [vmem:[#allocation3 + $0xd8] sm:$0xff] %vm4297_vm7, %v6924_v2  ;;  %v6922_v56 = vpop.permute.xlu0 %6921 }
 0x790   : > { %6991 = vst.msk [vmem:[#allocation3 + $0xd0] sm:$0xff] %vm4297_vm7, %v6922_v56  ;;  %7295 = vrot.lane.b32.xlu1 %v18669_v46, %s18385_s3  ;;  %v7993_v46 = vld [vmem:[%s18253_s12 + $0x20] sm:$0xff] }
 0x791   : > { %7293 = vrot.lane.b32.xlu0 %v18670_v0, %s18385_s3  ;;  %v7994_v0 = vld [vmem:[%s18253_s12 + $0x28] sm:$0xff] }
 0x792   : > { %v6928_v3 = vpop.permute.xlu1 %6927 }
 0x793   : > { %6994 = vst.msk [vmem:[#allocation3 + $0xe8] sm:$0xff] %vm4297_vm7, %v6928_v3  ;;  %v6926_v59 = vpop.permute.xlu0 %6925  ;;  %v8355_v3 = vld [vmem:[%s18258_s17 + $0x20] sm:$0xff] }
 0x794   : > { %6993 = vst.msk [vmem:[#allocation3 + $0xe0] sm:$0xff] %vm4297_vm7, %v6926_v59  ;;  %7299 = vrot.lane.b32.xlu1 %v18671_v22, %s18385_s3 }
 0x795   : > { %7297 = vrot.lane.b32.xlu0 %v18672_v12, %s18385_s3 }
 0x796   : > { %v6932_v11 = vpop.permute.xlu1 %6931 }
 0x797   : > { %6996 = vst.msk [vmem:[#allocation3 + $0xf8] sm:$0xff] %vm4297_vm7, %v6932_v11  ;;  %v6930_v7 = vpop.permute.xlu0 %6929  ;;  %v7995_v11 = vld [vmem:[%s18253_s12 + $0x30] sm:$0xff] }
 0x798   : > { %6995 = vst.msk [vmem:[#allocation3 + $0xf0] sm:$0xff] %vm4297_vm7, %v6930_v7  ;;  %7303 = vrot.lane.b32.xlu1 %v18673_v23, %s18385_s3  ;;  %v7996_v7 = vld [vmem:[%s18253_s12 + $0x38] sm:$0xff]  ;;  %v8357_v23 = vld [vmem:[%s18258_s17 + $0x30] sm:$0xff] }
 0x799   : > { %7301 = vrot.lane.b32.xlu0 %v18674_v61, %s18385_s3 }
 0x79a   : > { %v7064_v60 = vpop.permute.xlu1 %7063 }
 0x79b   : > { %7158 = vst.msk [vmem:[#allocation3 + $0x8] sm:$0xff] %vm4490_vm8, %v7064_v60  ;;  %v7062_v62 = vpop.permute.xlu0 %7061 }
 0x79c   : > { %7157 = vst.msk [vmem:[#allocation3] sm:$0xff] %vm4490_vm8, %v7062_v62  ;;  %7307 = vrot.lane.b32.xlu1 %v16392_v58, %s18385_s3  ;;  %v16699_v58 = vld [vmem:[#allocation2 + $0x18a] sm:$0xff] }
 0x79d   : > { %7305 = vrot.lane.b32.xlu0 %v18675_v42, %s18385_s3  ;;  %v7573_v62 = vld [vmem:[#allocation2 + $0x31] sm:$0xff] }
 0x79e   : > { %v7068_v57 = vpop.permute.xlu1 %7067 }
 0x79f   : > { %7160 = vst.msk [vmem:[#allocation3 + $0x18] sm:$0xff] %vm4490_vm8, %v7068_v57  ;;  %v7066_v36 = vpop.permute.xlu0 %7065  ;;  %v7997_v57 = vld [vmem:[%s18253_s12 + $0x40] sm:$0xff] }
 0x7a0   : > { %7159 = vst.msk [vmem:[#allocation3 + $0x10] sm:$0xff] %vm4490_vm8, %v7066_v36  ;;  %7311 = vrot.lane.b32.xlu1 %v16402_v52, %s18385_s3  ;;  %v8359_v36 = vld [vmem:[%s18258_s17 + $0x40] sm:$0xff] }
 0x7a1   : > { %7309 = vrot.lane.b32.xlu0 %v16407_v19, %s18385_s3 }
 0x7a2   : > { %v7072_v49 = vpop.permute.xlu1 %7071 }
 0x7a3   : > { %7162 = vst.msk [vmem:[#allocation3 + $0x28] sm:$0xff] %vm4490_vm8, %v7072_v49  ;;  %v7070_v10 = vpop.permute.xlu0 %7069 }
 0x7a4   : > { %7161 = vst.msk [vmem:[#allocation3 + $0x20] sm:$0xff] %vm4490_vm8, %v7070_v10  ;;  %7315 = vrot.lane.b32.xlu1 %v16699_v58, %s18385_s3 }
 0x7a5   : > { %7313 = vrot.lane.b32.xlu0 %v16704_v43, %s18385_s3  ;;  %s18679_s3 = smov 32  }
 0x7a6   : > { %v7076_v52 = vpop.permute.xlu1 %7075 }
 0x7a7   : > { %7164 = vst.msk [vmem:[#allocation3 + $0x38] sm:$0xff] %vm4490_vm8, %v7076_v52  ;;  %v7074_v19 = vpop.permute.xlu0 %7073  ;;  %v7765_v52 = vld [vmem:[#allocation2 + $0x32] sm:$0xff] }
 0x7a8   : > { %7163 = vst.msk [vmem:[#allocation3 + $0x30] sm:$0xff] %vm4490_vm8, %v7074_v19  ;;  %7447 = vrot.lane.b32.xlu1 %v15974_v5, %s18676_s1 }
 0x7a9   : > { %7445 = vrot.lane.b32.xlu0 %v15984_v18, %s18676_s1 }
 0x7aa   : > { %v7080_v33 = vpop.permute.xlu1 %7079 }
 0x7ab   : > { %7166 = vst.msk [vmem:[#allocation3 + $0x48] sm:$0xff] %vm4490_vm8, %v7080_v33  ;;  %v7078_v51 = vpop.permute.xlu0 %7077 }
 0x7ac   : > { %7165 = vst.msk [vmem:[#allocation3 + $0x40] sm:$0xff] %vm4490_vm8, %v7078_v51  ;;  %7451 = vrot.lane.b32.xlu1 %v15998_v9, %s18676_s1  ;;  %v7575_v51 = vld [vmem:[#allocation2 + $0x49] sm:$0xff] }
 0x7ad   : > { %7449 = vrot.lane.b32.xlu0 %v16008_v54, %s18676_s1 }
 0x7ae   : > { %v7084_v34 = vpop.permute.xlu1 %7083 }
 0x7af   : > { %7168 = vst.msk [vmem:[#allocation3 + $0x58] sm:$0xff] %vm4490_vm8, %v7084_v34  ;;  %v7082_v48 = vpop.permute.xlu0 %7081  ;;  %v7766_v34 = vld [vmem:[#allocation2 + $0x3a] sm:$0xff] }
 0x7b0   : > { %7167 = vst.msk [vmem:[#allocation3 + $0x50] sm:$0xff] %vm4490_vm8, %v7082_v48  ;;  %7455 = vrot.lane.b32.xlu1 %v16022_v16, %s18676_s1 }
 0x7b1   : > { %7453 = vrot.lane.b32.xlu0 %v16032_v8, %s18676_s1 }
 0x7b2   : > { %v7088_v5 = vpop.permute.xlu1 %7087 }
 0x7b3   : > { %7170 = vst.msk [vmem:[#allocation3 + $0x68] sm:$0xff] %vm4490_vm8, %v7088_v5  ;;  %v7086_v18 = vpop.permute.xlu0 %7085 }
 0x7b4   : > { %7169 = vst.msk [vmem:[#allocation3 + $0x60] sm:$0xff] %vm4490_vm8, %v7086_v18  ;;  %7459 = vrot.lane.b32.xlu1 %v16046_v39, %s18676_s1  ;;  %v7767_v18 = vld [vmem:[#allocation2 + $0x4a] sm:$0xff] }
 0x7b5   : > { %7457 = vrot.lane.b32.xlu0 %v16056_v17, %s18676_s1 }
 0x7b6   : > { %v7092_v9 = vpop.permute.xlu1 %7091 }
 0x7b7   : > { %7172 = vst.msk [vmem:[#allocation3 + $0x78] sm:$0xff] %vm4490_vm8, %v7092_v9  ;;  %v7090_v54 = vpop.permute.xlu0 %7089  ;;  %v7576_v9 = vld [vmem:[#allocation2 + $0x51] sm:$0xff] }
 0x7b8   : > { %7171 = vst.msk [vmem:[#allocation3 + $0x70] sm:$0xff] %vm4490_vm8, %v7090_v54  ;;  %7463 = vrot.lane.b32.xlu1 %v16070_v27, %s18676_s1 }
 0x7b9   : > { %7461 = vrot.lane.b32.xlu0 %v16080_v28, %s18676_s1 }
 0x7ba   : > { %v7096_v16 = vpop.permute.xlu1 %7095 }
 0x7bb   : > { %7174 = vst.msk [vmem:[#allocation3 + $0x88] sm:$0xff] %vm4490_vm8, %v7096_v16  ;;  %v7094_v8 = vpop.permute.xlu0 %7093 }
 0x7bc   : > { %7173 = vst.msk [vmem:[#allocation3 + $0x80] sm:$0xff] %vm4490_vm8, %v7094_v8  ;;  %7467 = vrot.lane.b32.xlu1 %v16094_v30, %s18676_s1  ;;  %v7577_v8 = vld [vmem:[#allocation2 + $0x61] sm:$0xff] }
 0x7bd   : > { %7465 = vrot.lane.b32.xlu0 %v16104_v21, %s18676_s1 }
 0x7be   : > { %v7100_v39 = vpop.permute.xlu1 %7099 }
 0x7bf   : > { %7176 = vst.msk [vmem:[#allocation3 + $0x98] sm:$0xff] %vm4490_vm8, %v7100_v39  ;;  %v7098_v17 = vpop.permute.xlu0 %7097  ;;  %v7768_v39 = vld [vmem:[#allocation2 + $0x52] sm:$0xff] }
 0x7c0   : > { %7175 = vst.msk [vmem:[#allocation3 + $0x90] sm:$0xff] %vm4490_vm8, %v7098_v17  ;;  %7471 = vrot.lane.b32.xlu1 %v16118_v20, %s18676_s1 }
 0x7c1   : > { %7469 = vrot.lane.b32.xlu0 %v16128_v35, %s18676_s1 }
 0x7c2   : > { %v7104_v27 = vpop.permute.xlu1 %7103 }
 0x7c3   : > { %7178 = vst.msk [vmem:[#allocation3 + $0xa8] sm:$0xff] %vm4490_vm8, %v7104_v27  ;;  %v7102_v28 = vpop.permute.xlu0 %7101 }
 0x7c4   : > { %7177 = vst.msk [vmem:[#allocation3 + $0xa0] sm:$0xff] %vm4490_vm8, %v7102_v28  ;;  %7475 = vrot.lane.b32.xlu1 %v16142_v26, %s18676_s1  ;;  %v7769_v28 = vld [vmem:[#allocation2 + $0x62] sm:$0xff] }
 0x7c5   : > { %7473 = vrot.lane.b32.xlu0 %v16152_v4, %s18676_s1 }
 0x7c6   : > { %v7108_v30 = vpop.permute.xlu1 %7107 }
 0x7c7   : > { %7180 = vst.msk [vmem:[#allocation3 + $0xb8] sm:$0xff] %vm4490_vm8, %v7108_v30  ;;  %v7106_v21 = vpop.permute.xlu0 %7105  ;;  %v7578_v30 = vld [vmem:[#allocation2 + $0x69] sm:$0xff] }
 0x7c8   : > { %7179 = vst.msk [vmem:[#allocation3 + $0xb0] sm:$0xff] %vm4490_vm8, %v7106_v21  ;;  %7479 = vrot.lane.b32.xlu1 %v16166_v40, %s18676_s1  ;;  %v7989_v40 = vld [vmem:[%s18253_s12] sm:$0xff] }
 0x7c9   : > { %7477 = vrot.lane.b32.xlu0 %v16176_v1, %s18676_s1  ;;  %v7990_v1 = vld [vmem:[%s18253_s12 + $0x8] sm:$0xff] }
 0x7ca   : > { %v7112_v20 = vpop.permute.xlu1 %7111  ;;  %v12415_v31 = vpack.c.bf16 %v7990_v1, %v7989_v40  ;;  %v7771_v1 = vld [vmem:[#allocation2 + $0x7a] sm:$0xff] }
 0x7cb   : > { %7182 = vst.msk [vmem:[#allocation3 + $0xc8] sm:$0xff] %vm4490_vm8, %v7112_v20  ;;  %v7110_v35 = vpop.permute.xlu0 %7109 }
 0x7cc   : > { %7181 = vst.msk [vmem:[#allocation3 + $0xc0] sm:$0xff] %vm4490_vm8, %v7110_v35  ;;  %7483 = vrot.lane.b32.xlu1 %v16190_v45, %s18676_s1  ;;  %v8351_v45 = vld [vmem:[%s18258_s17] sm:$0xff]  ;;  %12416 = vmatprep.subr.bf16.mxu0 %v12415_v31 }
 0x7cd   : > { %7481 = vrot.lane.b32.xlu0 %v16200_v37, %s18676_s1  ;;  %12418 = vmatpush3.bf16.msra.mxu0 %v12415_v31  ;;  %v7579_v35 = vld [vmem:[#allocation2 + $0x79] sm:$0xff] }
 0x7ce   : > { %v7116_v26 = vpop.permute.xlu1 %7115 }
 0x7cf   : > { %7184 = vst.msk [vmem:[#allocation3 + $0xd8] sm:$0xff] %vm4490_vm8, %v7116_v26  ;;  %v7114_v4 = vpop.permute.xlu0 %7113  ;;  %v7770_v26 = vld [vmem:[#allocation2 + $0x6a] sm:$0xff] }
 0x7d0   : > { %7183 = vst.msk [vmem:[#allocation3 + $0xd0] sm:$0xff] %vm4490_vm8, %v7114_v4  ;;  %7487 = vrot.lane.b32.xlu1 %v16214_v44, %s18676_s1  ;;  %v8352_v44 = vld [vmem:[%s18258_s17 + $0x8] sm:$0xff] }
 0x7d1   : > { %7485 = vrot.lane.b32.xlu0 %v16224_v47, %s18676_s1  ;;  %v12431_v38 = vpack.c.bf16 %v8352_v44, %v8351_v45  ;;  %v7580_v45 = vld [vmem:[#allocation2 + $0x81] sm:$0xff]  ;;  %v7581_v44 = vld [vmem:[#allocation2 + $0x91] sm:$0xff] }
 0x7d2   : > { %v7120_v37 = vpop.permute.xlu1 %7119 }
 0x7d3   : > { %7186 = vst.msk [vmem:[#allocation3 + $0xe8] sm:$0xff] %vm4490_vm8, %v7120_v37  ;;  %v7118_v47 = vpop.permute.xlu0 %7117  ;;  %12432 = vmatprep.subr.bf16.mxu1 %v12431_v38 }
 0x7d4   : > { %7185 = vst.msk [vmem:[#allocation3 + $0xe0] sm:$0xff] %vm4490_vm8, %v7118_v47  ;;  %7491 = vrot.lane.b32.xlu1 %v16238_v24, %s18676_s1  ;;  %12434 = vmatpush3.bf16.msra.mxu1 %v12431_v38  ;;  %v12419_v24 = vpack.c.bf16 %v7992_v41, %v7991_v53  ;;  %v7772_v47 = vld [vmem:[#allocation2 + $0x82] sm:$0xff]  ;;  %v7773_v41 = vld [vmem:[#allocation2 + $0x92] sm:$0xff] }
 0x7d5   : > { %7489 = vrot.lane.b32.xlu0 %v16246_v14, %s18676_s1  ;;  %v8354_v14 = vld [vmem:[%s18258_s17 + $0x18] sm:$0xff] }
 0x7d6   : > { %v7124_v55 = vpop.permute.xlu1 %7123  ;;  %v12435_v56 = vpack.c.bf16 %v8354_v14, %v8353_v15  ;;  %12420 = vmatprep.subr.bf16.mxu0 %v12419_v24  ;;  %v7582_v15 = vld [vmem:[#allocation2 + $0x99] sm:$0xff]  ;;  %v7583_v14 = vld [vmem:[#allocation2 + $0xa9] sm:$0xff] }
 0x7d7   : > { %7188 = vst.msk [vmem:[#allocation3 + $0xf8] sm:$0xff] %vm4490_vm8, %v7124_v55  ;;  %v7122_v2 = vpop.permute.xlu0 %7121  ;;  %12422 = vmatpush3.bf16.msra.mxu0 %v12419_v24 }
 0x7d8   : > { %7187 = vst.msk [vmem:[#allocation3 + $0xf0] sm:$0xff] %vm4490_vm8, %v7122_v2  ;;  %7495 = vrot.lane.b32.xlu1 %v16258_v13, %s18676_s1  ;;  %12436 = vmatprep.subr.bf16.mxu1 %v12435_v56  ;;  %v12423_v13 = vpack.c.bf16 %v7994_v0, %v7993_v46  ;;  %v7774_v2 = vld [vmem:[#allocation2 + $0x9a] sm:$0xff]  ;;  %v7775_v0 = vld [vmem:[#allocation2 + $0xaa] sm:$0xff] }
 0x7d9   : > { %7493 = vrot.lane.b32.xlu0 %v16265_v50, %s18676_s1  ;;  %12438 = vmatpush3.bf16.msra.mxu1 %v12435_v56  ;;  %v8356_v50 = vld [vmem:[%s18258_s17 + $0x28] sm:$0xff] }
 0x7da   : > { %v7256_v59 = vpop.permute.xlu1 %7255  ;;  %v12439_v12 = vpack.c.bf16 %v8356_v50, %v8355_v3  ;;  %12424 = vmatprep.subr.bf16.mxu0 %v12423_v13  ;;  %v7584_v3 = vld [vmem:[#allocation2 + $0xb1] sm:$0xff]  ;;  %v7585_v50 = vld [vmem:[#allocation2 + $0xc1] sm:$0xff] }
 0x7db   : > { %7350 = vst.msk [vmem:[#allocation3 + $0x8] sm:$0xff] %vm4683_vm9, %v7256_v59  ;;  %v7254_v22 = vpop.permute.xlu0 %7253  ;;  %12426 = vmatpush3.bf16.msra.mxu0 %v12423_v13 }
 0x7dc   : > { %7349 = vst.msk [vmem:[#allocation3] sm:$0xff] %vm4683_vm9, %v7254_v22  ;;  %7499 = vrot.lane.b32.xlu1 %v16275_v25, %s18676_s1  ;;  %12440 = vmatprep.subr.bf16.mxu1 %v12439_v12  ;;  %v12427_v25 = vpack.c.bf16 %v7996_v7, %v7995_v11  ;;  %v7776_v22 = vld [vmem:[#allocation2 + $0xb2] sm:$0xff]  ;;  %v7777_v7 = vld [vmem:[#allocation2 + $0xc2] sm:$0xff] }
 0x7dd   : > { %7497 = vrot.lane.b32.xlu0 %v16281_v32, %s18676_s1  ;;  %12442 = vmatpush3.bf16.msra.mxu1 %v12439_v12  ;;  %v8358_v32 = vld [vmem:[%s18258_s17 + $0x38] sm:$0xff] }
 0x7de   : > { %v7260_v61 = vpop.permute.xlu1 %7259  ;;  %v12443_v42 = vpack.c.bf16 %v8358_v32, %v8357_v23  ;;  %12428 = vmatprep.subr.bf16.mxu0 %v12427_v25  ;;  %v7586_v23 = vld [vmem:[#allocation2 + $0xc9] sm:$0xff]  ;;  %v7587_v32 = vld [vmem:[#allocation2 + $0xd9] sm:$0xff] }
 0x7df   : > { %7352 = vst.msk [vmem:[#allocation3 + $0x18] sm:$0xff] %vm4683_vm9, %v7260_v61  ;;  %v7258_v60 = vpop.permute.xlu0 %7257  ;;  %12430 = vmatpush3.bf16.msra.mxu0 %v12427_v25 }
 0x7e0   : > { %7351 = vst.msk [vmem:[#allocation3 + $0x10] sm:$0xff] %vm4683_vm9, %v7258_v60  ;;  %7637 = vrot.lane.b32.xlu1 %v7573_v62, %s12791_s29  ;;  %12444 = vmatprep.subr.bf16.mxu1 %v12443_v42  ;;  %v7778_v60 = vld [vmem:[#allocation2 + $0xca] sm:$0xff] }
 0x7e1   : > { %7501 = vrot.lane.b32.xlu0 %v16504_v63, %s18676_s1  ;;  %12446 = vmatpush3.bf16.msra.mxu1 %v12443_v42  ;;  %v7574_v63 = vld [vmem:[#allocation2 + $0x39] sm:$0xff] }
 0x7e2   : > { %v7264_v49 = vpop.permute.xlu1 %7263  ;;  %12153 = vmatprep.subr.mxu0 %v7997_v57  ;;  %12219 = vmatprep.subr.mxu1 %v8359_v36 }
 0x7e3   : > { %7354 = vst.msk [vmem:[#allocation3 + $0x28] sm:$0xff] %vm4683_vm9, %v7264_v49  ;;  %v7262_v10 = vpop.permute.xlu0 %7261  ;;  %12154 = vmatpush3.msra.mxu0 %v7997_v57  ;;  %v7779_v57 = vld [vmem:[#allocation2 + $0xda] sm:$0xff] }
 0x7e4   : > { %7353 = vst.msk [vmem:[#allocation3 + $0x20] sm:$0xff] %vm4683_vm9, %v7262_v10  ;;  %7829 = vrot.lane.b32.xlu1 %v7765_v52, %s18393_s27  ;;  %v7589_v52 = vld [vmem:[#allocation2 + $0xf1] sm:$0xff] }
 0x7e5   : > { %7639 = vrot.lane.b32.xlu0 %v7574_v63, %s12791_s29  ;;  %12220 = vmatpush3.msra.mxu1 %v8359_v36  ;;  %v7588_v36 = vld [vmem:[#allocation2 + $0xe1] sm:$0xff] }
 0x7e6   : > { %v7268_v19 = vpop.permute.xlu1 %7267  ;;  %v7780_v63 = vld [vmem:[#allocation2 + $0xe2] sm:$0xff] }
 0x7e7   : > { %7356 = vst.msk [vmem:[#allocation3 + $0x38] sm:$0xff] %vm4683_vm9, %v7268_v19  ;;  %v7266_v33 = vpop.permute.xlu0 %7265 }
 0x7e8   : > { %7355 = vst.msk [vmem:[#allocation3 + $0x30] sm:$0xff] %vm4683_vm9, %v7266_v33  ;;  %7641 = vrot.lane.b32.xlu1 %v7575_v51, %s12791_s29  ;;  %v7781_v51 = vld [vmem:[#allocation2 + $0xf2] sm:$0xff] }
 0x7e9   : > { %7831 = vrot.lane.b32.xlu0 %v7766_v34, %s18393_s27  ;;  %v7590_v34 = vld [vmem:[#allocation2 + $0xf9] sm:$0xff] }
 0x7ea   : > { %v7272_v48 = vpop.permute.xlu1 %7271 }
 0x7eb   : > { %7358 = vst.msk [vmem:[#allocation3 + $0x48] sm:$0xff] %vm4683_vm9, %v7272_v48  ;;  %v7270_v5 = vpop.permute.xlu0 %7269 }
 0x7ec   : > { %7357 = vst.msk [vmem:[#allocation3 + $0x40] sm:$0xff] %vm4683_vm9, %v7270_v5  ;;  %7833 = vrot.lane.b32.xlu1 %v7767_v18, %s18393_s27  ;;  %v7591_v18 = vld [vmem:[#allocation2 + $0x109] sm:$0xff] }
 0x7ed   : > { %7643 = vrot.lane.b32.xlu0 %v7576_v9, %s12791_s29  ;;  %v7782_v9 = vld [vmem:[#allocation2 + $0xfa] sm:$0xff] }
 0x7ee   : > { %v7276_v54 = vpop.permute.xlu1 %7275 }
 0x7ef   : > { %7360 = vst.msk [vmem:[#allocation3 + $0x58] sm:$0xff] %vm4683_vm9, %v7276_v54  ;;  %v7274_v16 = vpop.permute.xlu0 %7273 }
 0x7f0   : > { %7359 = vst.msk [vmem:[#allocation3 + $0x50] sm:$0xff] %vm4683_vm9, %v7274_v16  ;;  %7645 = vrot.lane.b32.xlu1 %v7577_v8, %s12791_s29  ;;  %v7783_v8 = vld [vmem:[#allocation2 + $0x10a] sm:$0xff] }
 0x7f1   : > { %7835 = vrot.lane.b32.xlu0 %v7768_v39, %s18393_s27  ;;  %v7592_v39 = vld [vmem:[#allocation2 + $0x111] sm:$0xff] }
 0x7f2   : > { %v7280_v17 = vpop.permute.xlu1 %7279 }
 0x7f3   : > { %7362 = vst.msk [vmem:[#allocation3 + $0x68] sm:$0xff] %vm4683_vm9, %v7280_v17  ;;  %v7278_v27 = vpop.permute.xlu0 %7277 }
 0x7f4   : > { %7361 = vst.msk [vmem:[#allocation3 + $0x60] sm:$0xff] %vm4683_vm9, %v7278_v27  ;;  %7837 = vrot.lane.b32.xlu1 %v7769_v28, %s18393_s27  ;;  %v7593_v28 = vld [vmem:[#allocation2 + $0x121] sm:$0xff] }
 0x7f5   : > { %7647 = vrot.lane.b32.xlu0 %v7578_v30, %s12791_s29  ;;  %v7784_v30 = vld [vmem:[#allocation2 + $0x112] sm:$0xff] }
 0x7f6   : > { %v7284_v21 = vpop.permute.xlu1 %7283 }
 0x7f7   : > { %7364 = vst.msk [vmem:[#allocation3 + $0x78] sm:$0xff] %vm4683_vm9, %v7284_v21  ;;  %v7282_v20 = vpop.permute.xlu0 %7281 }
 0x7f8   : > { %7363 = vst.msk [vmem:[#allocation3 + $0x70] sm:$0xff] %vm4683_vm9, %v7282_v20  ;;  %7649 = vrot.lane.b32.xlu1 %v7579_v35, %s12791_s29  ;;  %v7785_v35 = vld [vmem:[#allocation2 + $0x122] sm:$0xff] }
 0x7f9   : > { %7839 = vrot.lane.b32.xlu0 %v7770_v26, %s18393_s27  ;;  %v7594_v26 = vld [vmem:[#allocation2 + $0x129] sm:$0xff] }
 0x7fa   : > { %v7288_v4 = vpop.permute.xlu1 %7287 }
 0x7fb   : > { %7366 = vst.msk [vmem:[#allocation3 + $0x88] sm:$0xff] %vm4683_vm9, %v7288_v4  ;;  %v7286_v40 = vpop.permute.xlu0 %7285 }
 0x7fc   : > { %7365 = vst.msk [vmem:[#allocation3 + $0x80] sm:$0xff] %vm4683_vm9, %v7286_v40  ;;  %7841 = vrot.lane.b32.xlu1 %v7771_v1, %s18393_s27  ;;  %v7595_v1 = vld [vmem:[#allocation2 + $0x139] sm:$0xff] }
 0x7fd   : > { %7651 = vrot.lane.b32.xlu0 %v7580_v45, %s12791_s29  ;;  %v7786_v45 = vld [vmem:[#allocation2 + $0x12a] sm:$0xff] }
 0x7fe   : > { %v7292_v37 = vpop.permute.xlu1 %7291 }
 0x7ff   : > { %7368 = vst.msk [vmem:[#allocation3 + $0x98] sm:$0xff] %vm4683_vm9, %v7292_v37  ;;  %v7290_v31 = vpop.permute.xlu0 %7289 }
 0x800   : > { %7367 = vst.msk [vmem:[#allocation3 + $0x90] sm:$0xff] %vm4683_vm9, %v7290_v31  ;;  %7653 = vrot.lane.b32.xlu1 %v7581_v44, %s12791_s29  ;;  %v7787_v44 = vld [vmem:[#allocation2 + $0x13a] sm:$0xff] }
 0x801   : > { %7843 = vrot.lane.b32.xlu0 %v7772_v47, %s18393_s27  ;;  %v7596_v47 = vld [vmem:[#allocation2 + $0x141] sm:$0xff] }
 0x802   : > { %v7296_v38 = vpop.permute.xlu1 %7295 }
 0x803   : > { %7370 = vst.msk [vmem:[#allocation3 + $0xa8] sm:$0xff] %vm4683_vm9, %v7296_v38  ;;  %v7294_v53 = vpop.permute.xlu0 %7293 }
 0x804   : > { %7369 = vst.msk [vmem:[#allocation3 + $0xa0] sm:$0xff] %vm4683_vm9, %v7294_v53  ;;  %7845 = vrot.lane.b32.xlu1 %v7773_v41, %s18393_s27  ;;  %v7597_v41 = vld [vmem:[#allocation2 + $0x151] sm:$0xff] }
 0x805   : > { %7655 = vrot.lane.b32.xlu0 %v7582_v15, %s12791_s29  ;;  %v7788_v15 = vld [vmem:[#allocation2 + $0x142] sm:$0xff] }
 0x806   : > { %v7300_v55 = vpop.permute.xlu1 %7299 }
 0x807   : > { %7372 = vst.msk [vmem:[#allocation3 + $0xb8] sm:$0xff] %vm4683_vm9, %v7300_v55  ;;  %v7298_v24 = vpop.permute.xlu0 %7297 }
 0x808   : > { %7371 = vst.msk [vmem:[#allocation3 + $0xb0] sm:$0xff] %vm4683_vm9, %v7298_v24  ;;  %7657 = vrot.lane.b32.xlu1 %v7583_v14, %s12791_s29  ;;  %v7789_v14 = vld [vmem:[#allocation2 + $0x152] sm:$0xff] }
 0x809   : > { %7847 = vrot.lane.b32.xlu0 %v7774_v2, %s18393_s27  ;;  %v7598_v2 = vld [vmem:[#allocation2 + $0x159] sm:$0xff] }
 0x80a   : > { %v7304_v56 = vpop.permute.xlu1 %7303 }
 0x80b   : > { %7374 = vst.msk [vmem:[#allocation3 + $0xc8] sm:$0xff] %vm4683_vm9, %v7304_v56  ;;  %v7302_v46 = vpop.permute.xlu0 %7301 }
 0x80c   : > { %7373 = vst.msk [vmem:[#allocation3 + $0xc0] sm:$0xff] %vm4683_vm9, %v7302_v46  ;;  %7849 = vrot.lane.b32.xlu1 %v7775_v0, %s18393_s27  ;;  %v7599_v0 = vld [vmem:[#allocation2 + $0x169] sm:$0xff] }
 0x80d   : > { %7659 = vrot.lane.b32.xlu0 %v7584_v3, %s12791_s29  ;;  %v7790_v3 = vld [vmem:[#allocation2 + $0x15a] sm:$0xff] }
 0x80e   : > { %v7308_v59 = vpop.permute.xlu1 %7307 }
 0x80f   : > { %7376 = vst.msk [vmem:[#allocation3 + $0xd8] sm:$0xff] %vm4683_vm9, %v7308_v59  ;;  %v7306_v13 = vpop.permute.xlu0 %7305 }
 0x810   : > { %7375 = vst.msk [vmem:[#allocation3 + $0xd0] sm:$0xff] %vm4683_vm9, %v7306_v13  ;;  %7661 = vrot.lane.b32.xlu1 %v7585_v50, %s12791_s29  ;;  %v7791_v50 = vld [vmem:[#allocation2 + $0x16a] sm:$0xff] }
 0x811   : > { %7851 = vrot.lane.b32.xlu0 %v7776_v22, %s18393_s27  ;;  %v7600_v22 = vld [vmem:[#allocation2 + $0x171] sm:$0xff] }
 0x812   : > { %v7312_v12 = vpop.permute.xlu1 %7311 }
 0x813   : > { %7378 = vst.msk [vmem:[#allocation3 + $0xe8] sm:$0xff] %vm4683_vm9, %v7312_v12  ;;  %v7310_v11 = vpop.permute.xlu0 %7309 }
 0x814   : > { %7377 = vst.msk [vmem:[#allocation3 + $0xe0] sm:$0xff] %vm4683_vm9, %v7310_v11  ;;  %7853 = vrot.lane.b32.xlu1 %v7777_v7, %s18393_s27  ;;  %v7410_v7 = vld [vmem:[#allocation2 + $0x188] sm:$0xff] }
 0x815   : > { %7663 = vrot.lane.b32.xlu0 %v7586_v23, %s12791_s29  ;;  %v7792_v23 = vld [vmem:[#allocation2 + $0x172] sm:$0xff] }
 0x816   : > { %v7316_v61 = vpop.permute.xlu1 %7315 }
 0x817   : > { %7380 = vst.msk [vmem:[#allocation3 + $0xf8] sm:$0xff] %vm4683_vm9, %v7316_v61  ;;  %v7314_v25 = vpop.permute.xlu0 %7313 }
 0x818   : > { %7379 = vst.msk [vmem:[#allocation3 + $0xf0] sm:$0xff] %vm4683_vm9, %v7314_v25  ;;  %7665 = vrot.lane.b32.xlu1 %v7587_v32, %s12791_s29 }
 0x819   : > { %7855 = vrot.lane.b32.xlu0 %v7778_v60, %s18393_s27 }
 0x81a   : > { %v7448_v62 = vpop.permute.xlu1 %7447 }
 0x81b   : > { %7542 = vst.msk [vmem:[#allocation3 + $0x8] sm:$0xff] %vm4876_vm10, %v7448_v62  ;;  %v7446_v42 = vpop.permute.xlu0 %7445  ;;  %v7412_v62 = vld [vmem:[#allocation2 + $0x1a0] sm:$0xff] }
 0x81c   : > { %7541 = vst.msk [vmem:[#allocation3] sm:$0xff] %vm4876_vm10, %v7446_v42  ;;  %7857 = vrot.lane.b32.xlu1 %v7779_v57, %s18393_s27  ;;  %v7411_v57 = vld [vmem:[#allocation2 + $0x198] sm:$0xff] }
 0x81d   : > { %7667 = vrot.lane.b32.xlu0 %v7588_v36, %s12791_s29 }
 0x81e   : > { %v7452_v49 = vpop.permute.xlu1 %7451 }
 0x81f   : > { %7544 = vst.msk [vmem:[#allocation3 + $0x18] sm:$0xff] %vm4876_vm10, %v7452_v49  ;;  %v7450_v10 = vpop.permute.xlu0 %7449 }
 0x820   : > { %7543 = vst.msk [vmem:[#allocation3 + $0x10] sm:$0xff] %vm4876_vm10, %v7450_v10  ;;  %7669 = vrot.lane.b32.xlu1 %v7589_v52, %s12791_s29  ;;  %v7603_v10 = vld [vmem:[#allocation2 + $0x199] sm:$0xff] }
 0x821   : > { %7859 = vrot.lane.b32.xlu0 %v7780_v63, %s18393_s27  ;;  %v7795_v52 = vld [vmem:[#allocation2 + $0x19a] sm:$0xff]  ;;  %v7796_v63 = vld [vmem:[#allocation2 + $0x1a2] sm:$0xff] }
 0x822   : > { %v7456_v19 = vpop.permute.xlu1 %7455 }
 0x823   : > { %7546 = vst.msk [vmem:[#allocation3 + $0x28] sm:$0xff] %vm4876_vm10, %v7456_v19  ;;  %v7454_v33 = vpop.permute.xlu0 %7453 }
 0x824   : > { %7545 = vst.msk [vmem:[#allocation3 + $0x20] sm:$0xff] %vm4876_vm10, %v7454_v33  ;;  %7861 = vrot.lane.b32.xlu1 %v7781_v51, %s18393_s27 }
 0x825   : > { %7671 = vrot.lane.b32.xlu0 %v7590_v34, %s12791_s29 }
 0x826   : > { %v7460_v48 = vpop.permute.xlu1 %7459 }
 0x827   : > { %7548 = vst.msk [vmem:[#allocation3 + $0x38] sm:$0xff] %vm4876_vm10, %v7460_v48  ;;  %v7458_v5 = vpop.permute.xlu0 %7457 }
 0x828   : > { %7547 = vst.msk [vmem:[#allocation3 + $0x30] sm:$0xff] %vm4876_vm10, %v7458_v5  ;;  %7673 = vrot.lane.b32.xlu1 %v7591_v18, %s12791_s29 }
 0x829   : > { %7863 = vrot.lane.b32.xlu0 %v7782_v9, %s18393_s27 }
 0x82a   : > { %v7464_v54 = vpop.permute.xlu1 %7463 }
 0x82b   : > { %7550 = vst.msk [vmem:[#allocation3 + $0x48] sm:$0xff] %vm4876_vm10, %v7464_v54  ;;  %v7462_v16 = vpop.permute.xlu0 %7461 }
 0x82c   : > { %7549 = vst.msk [vmem:[#allocation3 + $0x40] sm:$0xff] %vm4876_vm10, %v7462_v16  ;;  %7865 = vrot.lane.b32.xlu1 %v7783_v8, %s18393_s27 }
 0x82d   : > { %7675 = vrot.lane.b32.xlu0 %v7592_v39, %s12791_s29 }
 0x82e   : > { %v7468_v17 = vpop.permute.xlu1 %7467 }
 0x82f   : > { %7552 = vst.msk [vmem:[#allocation3 + $0x58] sm:$0xff] %vm4876_vm10, %v7468_v17  ;;  %v7466_v27 = vpop.permute.xlu0 %7465 }
 0x830   : > { %7551 = vst.msk [vmem:[#allocation3 + $0x50] sm:$0xff] %vm4876_vm10, %v7466_v27  ;;  %7677 = vrot.lane.b32.xlu1 %v7593_v28, %s12791_s29 }
 0x831   : > { %7867 = vrot.lane.b32.xlu0 %v7784_v30, %s18393_s27 }
 0x832   : > { %v7472_v21 = vpop.permute.xlu1 %7471 }
 0x833   : > { %7554 = vst.msk [vmem:[#allocation3 + $0x68] sm:$0xff] %vm4876_vm10, %v7472_v21  ;;  %v7470_v20 = vpop.permute.xlu0 %7469 }
 0x834   : > { %7553 = vst.msk [vmem:[#allocation3 + $0x60] sm:$0xff] %vm4876_vm10, %v7470_v20  ;;  %7869 = vrot.lane.b32.xlu1 %v7785_v35, %s18393_s27 }
 0x835   : > { %7679 = vrot.lane.b32.xlu0 %v7594_v26, %s12791_s29 }
 0x836   : > { %v7476_v4 = vpop.permute.xlu1 %7475 }
 0x837   : > { %7556 = vst.msk [vmem:[#allocation3 + $0x78] sm:$0xff] %vm4876_vm10, %v7476_v4  ;;  %v7474_v40 = vpop.permute.xlu0 %7473 }
 0x838   : > { %7555 = vst.msk [vmem:[#allocation3 + $0x70] sm:$0xff] %vm4876_vm10, %v7474_v40  ;;  %7681 = vrot.lane.b32.xlu1 %v7595_v1, %s12791_s29 }
 0x839   : > { %7871 = vrot.lane.b32.xlu0 %v7786_v45, %s18393_s27 }
 0x83a   : > { %v7480_v37 = vpop.permute.xlu1 %7479 }
 0x83b   : > { %7558 = vst.msk [vmem:[#allocation3 + $0x88] sm:$0xff] %vm4876_vm10, %v7480_v37  ;;  %v7478_v31 = vpop.permute.xlu0 %7477 }
 0x83c   : > { %7557 = vst.msk [vmem:[#allocation3 + $0x80] sm:$0xff] %vm4876_vm10, %v7478_v31  ;;  %7873 = vrot.lane.b32.xlu1 %v7787_v44, %s18393_s27 }
 0x83d   : > { %7683 = vrot.lane.b32.xlu0 %v7596_v47, %s12791_s29 }
 0x83e   : > { %v7484_v38 = vpop.permute.xlu1 %7483 }
 0x83f   : > { %7560 = vst.msk [vmem:[#allocation3 + $0x98] sm:$0xff] %vm4876_vm10, %v7484_v38  ;;  %v7482_v53 = vpop.permute.xlu0 %7481 }
 0x840   : > { %7559 = vst.msk [vmem:[#allocation3 + $0x90] sm:$0xff] %vm4876_vm10, %v7482_v53  ;;  %7685 = vrot.lane.b32.xlu1 %v7597_v41, %s12791_s29 }
 0x841   : > { %7875 = vrot.lane.b32.xlu0 %v7788_v15, %s18393_s27 }
 0x842   : > { %v7488_v55 = vpop.permute.xlu1 %7487 }
 0x843   : > { %7562 = vst.msk [vmem:[#allocation3 + $0xa8] sm:$0xff] %vm4876_vm10, %v7488_v55  ;;  %v7486_v24 = vpop.permute.xlu0 %7485 }
 0x844   : > { %7561 = vst.msk [vmem:[#allocation3 + $0xa0] sm:$0xff] %vm4876_vm10, %v7486_v24  ;;  %7877 = vrot.lane.b32.xlu1 %v7789_v14, %s18393_s27 }
 0x845   : > { %7687 = vrot.lane.b32.xlu0 %v7598_v2, %s12791_s29 }
 0x846   : > { %v7492_v56 = vpop.permute.xlu1 %7491 }
 0x847   : > { %7564 = vst.msk [vmem:[#allocation3 + $0xb8] sm:$0xff] %vm4876_vm10, %v7492_v56  ;;  %v7490_v46 = vpop.permute.xlu0 %7489 }
 0x848   : > { %7563 = vst.msk [vmem:[#allocation3 + $0xb0] sm:$0xff] %vm4876_vm10, %v7490_v46  ;;  %7689 = vrot.lane.b32.xlu1 %v7599_v0, %s12791_s29 }
 0x849   : > { %7879 = vrot.lane.b32.xlu0 %v7790_v3, %s18393_s27 }
 0x84a   : > { %v7496_v59 = vpop.permute.xlu1 %7495 }
 0x84b   : > { %7566 = vst.msk [vmem:[#allocation3 + $0xc8] sm:$0xff] %vm4876_vm10, %v7496_v59  ;;  %v7494_v13 = vpop.permute.xlu0 %7493 }
 0x84c   : > { %7565 = vst.msk [vmem:[#allocation3 + $0xc0] sm:$0xff] %vm4876_vm10, %v7494_v13  ;;  %7881 = vrot.lane.b32.xlu1 %v7791_v50, %s18393_s27 }
 0x84d   : > { %7691 = vrot.lane.b32.xlu0 %v7600_v22, %s12791_s29 }
 0x84e   : > { %v7500_v12 = vpop.permute.xlu1 %7499 }
 0x84f   : > { %7568 = vst.msk [vmem:[#allocation3 + $0xd8] sm:$0xff] %vm4876_vm10, %v7500_v12  ;;  %v7498_v11 = vpop.permute.xlu0 %7497 }
 0x850   : > { %7567 = vst.msk [vmem:[#allocation3 + $0xd0] sm:$0xff] %vm4876_vm10, %v7498_v11  ;;  %7503 = vrot.lane.b32.xlu1 %v7410_v7, %s18676_s1 }
 0x851   : > { %7883 = vrot.lane.b32.xlu0 %v7792_v23, %s18393_s27 }
 0x852   : > { %v7638_v61 = vpop.permute.xlu1 %7637 }
 0x853   : > { %7733 = vst.msk [vmem:[#allocation3] sm:$0xff] %vm5069_vm11, %v7638_v61  ;;  %v7502_v25 = vpop.permute.xlu0 %7501 }
 0x854   : > { %7569 = vst.msk [vmem:[#allocation3 + $0xe0] sm:$0xff] %vm4876_vm10, %v7502_v25  ;;  %7695 = vrot.lane.b32.xlu1 %v16599_v6, %s12791_s29 }
 0x855   : > { %7693 = vrot.lane.b32.xlu0 %v16604_v29, %s12791_s29  ;;  %v7604_v29 = vld [vmem:[#allocation2 + $0x1a1] sm:$0xff] }
 0x856   : > { %v7830_v32 = vpop.permute.xlu1 %7829 }
 0x857   : > { %7925 = vst.msk [vmem:[#allocation3] sm:$0xff] %vm5262_vm12, %v7830_v32  ;;  %v7640_v60 = vpop.permute.xlu0 %7639 }
 0x858   : > { %7734 = vst.msk [vmem:[#allocation3 + $0x8] sm:$0xff] %vm5069_vm11, %v7640_v60  ;;  %7887 = vrot.lane.b32.xlu1 %v16699_v58, %s18393_s27 }
 0x859   : > { %7885 = vrot.lane.b32.xlu0 %v16704_v43, %s18393_s27 }
 0x85a   : > { %v7642_v42 = vpop.permute.xlu1 %7641 }
 0x85b   : > { %7735 = vst.msk [vmem:[#allocation3 + $0x10] sm:$0xff] %vm5069_vm11, %v7642_v42  ;;  %v7832_v6 = vpop.permute.xlu0 %7831 }
 0x85c   : > { %7926 = vst.msk [vmem:[#allocation3 + $0x8] sm:$0xff] %vm5262_vm12, %v7832_v6  ;;  %7507 = vrot.lane.b32.xlu1 %v7412_v62, %s18676_s1 }
 0x85d   : > { %7505 = vrot.lane.b32.xlu0 %v7411_v57, %s18676_s1 }
 0x85e   : > { %v7834_v36 = vpop.permute.xlu1 %7833  ;;  %v7957_v49 = vld [vmem:[#allocation3] sm:$0xff] }
 0x85f   : > { %7927 = vst.msk [vmem:[#allocation3 + $0x10] sm:$0xff] %vm5262_vm12, %v7834_v36  ;;  %12155 = vmatprep.mubr.msk.f32.mxu0 %vm5336_vm14, %v7957_v49  ;;  %12221 = vmatprep.mubr.msk.f32.mxu1 %vm5336_vm14, %v7957_v49  ;;  %v7644_v58 = vpop.permute.xlu0 %7643 }
 0x860   : > { %7736 = vst.msk [vmem:[#allocation3 + $0x18] sm:$0xff] %vm5069_vm11, %v7644_v58  ;;  %7699 = vrot.lane.b32.xlu1 %v7604_v29, %s12791_s29 }
 0x861   : > { %7697 = vrot.lane.b32.xlu0 %v7603_v10, %s12791_s29 }
 0x862   : > { %v7646_v43 = vpop.permute.xlu1 %7645 }
 0x863   : > { %7737 = vst.msk [vmem:[#allocation3 + $0x20] sm:$0xff] %vm5069_vm11, %v7646_v43  ;;  %v7836_v19 = vpop.permute.xlu0 %7835  ;;  %v7958_v33 = vld [vmem:[#allocation3 + $0x8] sm:$0xff] }
 0x864   : > { %7928 = vst.msk [vmem:[#allocation3 + $0x18] sm:$0xff] %vm5262_vm12, %v7836_v19  ;;  %12156 = vmatmul.mubr.msk.f32.vlgmr.msra.gmra.mrb[64].mxu0 %vm5336_vm14, %v7958_v33  ;;  %12222 = vmatmul.mubr.msk.f32.vlgmr.msra.gmra.mrb[0].mxu1 %vm5336_vm14, %v7958_v33 }
 0x865   : > { %7889 = vrot.lane.b32.xlu0 %v7795_v52, %s18393_s27  ;;  %7891 = vrot.lane.b32.xlu1 %v7796_v63, %s18393_s27 }
 0x866   : > { %v7838_v51 = vpop.permute.xlu1 %7837  ;;  %v7959_v34 = vld [vmem:[#allocation3 + $0x10] sm:$0xff] }
 0x867   : > { %7929 = vst.msk [vmem:[#allocation3 + $0x20] sm:$0xff] %vm5262_vm12, %v7838_v51  ;;  %12158 = vmatprep.mubr.msk.f32.mxu0 %vm5336_vm14, %v7959_v34  ;;  %12224 = vmatprep.mubr.msk.f32.mxu1 %vm5336_vm14, %v7959_v34  ;;  %v7648_v48 = vpop.permute.xlu0 %7647 }
 0x868   : > { %7738 = vst.msk [vmem:[#allocation3 + $0x28] sm:$0xff] %vm5069_vm11, %v7648_v48 }
 0x86a   : > { %v7650_v5 = vpop.permute.xlu1 %7649 }
 0x86b   : > { %7739 = vst.msk [vmem:[#allocation3 + $0x30] sm:$0xff] %vm5069_vm11, %v7650_v5  ;;  %v7840_v18 = vpop.permute.xlu0 %7839  ;;  %v7960_v9 = vld [vmem:[#allocation3 + $0x18] sm:$0xff] }
 0x86c   : > { %7930 = vst.msk [vmem:[#allocation3 + $0x28] sm:$0xff] %vm5262_vm12, %v7840_v18  ;;  %12159 = vmatmul.mubr.msk.f32.gmra.mrb[66].mxu0 %vm5336_vm14, %v7960_v9  ;;  %12225 = vmatmul.mubr.msk.f32.gmra.mrb[2].mxu1 %vm5336_vm14, %v7960_v9 }
 0x86e   : > { %v7842_v54 = vpop.permute.xlu1 %7841  ;;  %v7961_v16 = vld [vmem:[#allocation3 + $0x20] sm:$0xff] }
 0x86f   : > { %7931 = vst.msk [vmem:[#allocation3 + $0x30] sm:$0xff] %vm5262_vm12, %v7842_v54  ;;  %12161 = vmatprep.mubr.msk.f32.mxu0 %vm5336_vm14, %v7961_v16  ;;  %12227 = vmatprep.mubr.msk.f32.mxu1 %vm5336_vm14, %v7961_v16  ;;  %v7652_v8 = vpop.permute.xlu0 %7651 }
 0x870   : > { %7740 = vst.msk [vmem:[#allocation3 + $0x38] sm:$0xff] %vm5069_vm11, %v7652_v8  ;;  %v8817_v8 = vld [vmem:[#allocation2 + $0x9] sm:$0xff] }
 0x871   : > { %8882 = vrot.lane.b32.xlu1 %v8817_v8, %s12782_s25 }
 0x872   : > { %v7654_v39 = vpop.permute.xlu1 %7653 }
 0x873   : > { %7741 = vst.msk [vmem:[#allocation3 + $0x40] sm:$0xff] %vm5069_vm11, %v7654_v39  ;;  %v7844_v17 = vpop.permute.xlu0 %7843  ;;  %v7962_v27 = vld [vmem:[#allocation3 + $0x28] sm:$0xff]  ;;  %v8816_v39 = vld [vmem:[#allocation2 + $0x1] sm:$0xff] }
 0x874   : > { %7932 = vst.msk [vmem:[#allocation3 + $0x38] sm:$0xff] %vm5262_vm12, %v7844_v17  ;;  %12162 = vmatmul.mubr.msk.f32.gmra.mrb[68].mxu0 %vm5336_vm14, %v7962_v27  ;;  %12228 = vmatmul.mubr.msk.f32.gmra.mrb[4].mxu1 %vm5336_vm14, %v7962_v27 }
 0x875   : > { %8880 = vrot.lane.b32.xlu0 %v8816_v39, %s12782_s25 }
 0x876   : > { %v7846_v28 = vpop.permute.xlu1 %7845  ;;  %v7963_v30 = vld [vmem:[#allocation3 + $0x30] sm:$0xff] }
 0x877   : > { %7933 = vst.msk [vmem:[#allocation3 + $0x40] sm:$0xff] %vm5262_vm12, %v7846_v28  ;;  %12164 = vmatprep.mubr.msk.f32.mxu0 %vm5336_vm14, %v7963_v30  ;;  %12230 = vmatprep.mubr.msk.f32.mxu1 %vm5336_vm14, %v7963_v30  ;;  %v7656_v21 = vpop.permute.xlu0 %7655 }
 0x878   : > { %7742 = vst.msk [vmem:[#allocation3 + $0x48] sm:$0xff] %vm5069_vm11, %v7656_v21 }
 0x87a   : > { %v7658_v20 = vpop.permute.xlu1 %7657 }
 0x87b   : > { %7743 = vst.msk [vmem:[#allocation3 + $0x50] sm:$0xff] %vm5069_vm11, %v7658_v20  ;;  %v7848_v35 = vpop.permute.xlu0 %7847  ;;  %v7964_v26 = vld [vmem:[#allocation3 + $0x38] sm:$0xff] }
 0x87c   : > { %7934 = vst.msk [vmem:[#allocation3 + $0x48] sm:$0xff] %vm5262_vm12, %v7848_v35  ;;  %12165 = vmatmul.mubr.msk.f32.gmra.mrb[70].mxu0 %vm5336_vm14, %v7964_v26  ;;  %12231 = vmatmul.mubr.msk.f32.gmra.mrb[6].mxu1 %vm5336_vm14, %v7964_v26 }
 0x87e   : > { %v7850_v4 = vpop.permute.xlu1 %7849  ;;  %v7965_v40 = vld [vmem:[#allocation3 + $0x40] sm:$0xff] }
 0x87f   : > { %7935 = vst.msk [vmem:[#allocation3 + $0x50] sm:$0xff] %vm5262_vm12, %v7850_v4  ;;  %12167 = vmatprep.mubr.msk.f32.mxu0 %vm5336_vm14, %v7965_v40  ;;  %12233 = vmatprep.mubr.msk.f32.mxu1 %vm5336_vm14, %v7965_v40  ;;  %v7660_v1 = vpop.permute.xlu0 %7659 }
 0x880   : > { %7744 = vst.msk [vmem:[#allocation3 + $0x58] sm:$0xff] %vm5069_vm11, %v7660_v1 }
 0x882   : > { %v7662_v45 = vpop.permute.xlu1 %7661 }
 0x883   : > { %7745 = vst.msk [vmem:[#allocation3 + $0x60] sm:$0xff] %vm5069_vm11, %v7662_v45  ;;  %v7852_v37 = vpop.permute.xlu0 %7851  ;;  %v7966_v31 = vld [vmem:[#allocation3 + $0x48] sm:$0xff] }
 0x884   : > { %7936 = vst.msk [vmem:[#allocation3 + $0x58] sm:$0xff] %vm5262_vm12, %v7852_v37  ;;  %12168 = vmatmul.mubr.msk.f32.gmra.mrb[72].mxu0 %vm5336_vm14, %v7966_v31  ;;  %12234 = vmatmul.mubr.msk.f32.gmra.mrb[8].mxu1 %vm5336_vm14, %v7966_v31 }
 0x886   : > { %v7854_v44 = vpop.permute.xlu1 %7853  ;;  %v7967_v47 = vld [vmem:[#allocation3 + $0x50] sm:$0xff] }
 0x887   : > { %7937 = vst.msk [vmem:[#allocation3 + $0x60] sm:$0xff] %vm5262_vm12, %v7854_v44  ;;  %12170 = vmatprep.mubr.msk.f32.mxu0 %vm5336_vm14, %v7967_v47  ;;  %12236 = vmatprep.mubr.msk.f32.mxu1 %vm5336_vm14, %v7967_v47  ;;  %v7664_v38 = vpop.permute.xlu0 %7663 }
 0x888   : > { %7746 = vst.msk [vmem:[#allocation3 + $0x68] sm:$0xff] %vm5069_vm11, %v7664_v38  ;;  %v8753_v38 = vld [vmem:[#allocation2 + $0x8] sm:$0xff] }
 0x889   : > { %8785 = vst.msk [vmem:[#allocation3 + $0x8] sm:$0xff] %vm603_vm0, %v8753_v38 }
 0x88a   : > { %v7666_v53 = vpop.permute.xlu1 %7665 }
 0x88b   : > { %7747 = vst.msk [vmem:[#allocation3 + $0x70] sm:$0xff] %vm5069_vm11, %v7666_v53  ;;  %v7856_v41 = vpop.permute.xlu0 %7855  ;;  %v7968_v15 = vld [vmem:[#allocation3 + $0x58] sm:$0xff]  ;;  %v17115_v53 = vld [vmem:[%s18249_s8] ss:$0 sm:$0xff] }
 0x88c   : > { %7938 = vst.msk [vmem:[#allocation3 + $0x68] sm:$0xff] %vm5262_vm12, %v7856_v41  ;;  %12171 = vmatmul.mubr.msk.f32.gmra.mrb[74].mxu0 %vm5336_vm14, %v7968_v15  ;;  %12237 = vmatmul.mubr.msk.f32.gmra.mrb[10].mxu1 %vm5336_vm14, %v7968_v15  ;;  %v17120_v15 = vld [vmem:[%s18250_s9] ss:$0 sm:$0xff] }
 0x88e   : > { %v7858_v55 = vpop.permute.xlu1 %7857  ;;  %v7969_v24 = vld [vmem:[#allocation3 + $0x60] sm:$0xff] }
 0x88f   : > { %7939 = vst.msk [vmem:[#allocation3 + $0x70] sm:$0xff] %vm5262_vm12, %v7858_v55  ;;  %12173 = vmatprep.mubr.msk.f32.mxu0 %vm5336_vm14, %v7969_v24  ;;  %12239 = vmatprep.mubr.msk.f32.mxu1 %vm5336_vm14, %v7969_v24  ;;  %v7668_v14 = vpop.permute.xlu0 %7667 }
 0x890   : > { %7748 = vst.msk [vmem:[#allocation3 + $0x78] sm:$0xff] %vm5069_vm11, %v7668_v14 }
 0x892   : > { %v7670_v2 = vpop.permute.xlu1 %7669 }
 0x893   : > { %7749 = vst.msk [vmem:[#allocation3 + $0x80] sm:$0xff] %vm5069_vm11, %v7670_v2  ;;  %v7860_v56 = vpop.permute.xlu0 %7859  ;;  %v7970_v46 = vld [vmem:[#allocation3 + $0x68] sm:$0xff] }
 0x894   : > { %7940 = vst.msk [vmem:[#allocation3 + $0x78] sm:$0xff] %vm5262_vm12, %v7860_v56  ;;  %12174 = vmatmul.mubr.msk.f32.gmra.mrb[76].mxu0 %vm5336_vm14, %v7970_v46  ;;  %12240 = vmatmul.mubr.msk.f32.gmra.mrb[12].mxu1 %vm5336_vm14, %v7970_v46  ;;  %v8752_v46 = vld [vmem:[#allocation2] sm:$0xff] }
 0x895   : > { %8784 = vst.msk [vmem:[#allocation3] sm:$0xff] %vm603_vm0, %v8752_v46 }
 0x896   : > { %v7862_v0 = vpop.permute.xlu1 %7861  ;;  %v7971_v3 = vld [vmem:[#allocation3 + $0x70] sm:$0xff] }
 0x897   : > { %7941 = vst.msk [vmem:[#allocation3 + $0x80] sm:$0xff] %vm5262_vm12, %v7862_v0  ;;  %12176 = vmatprep.mubr.msk.f32.mxu0 %vm5336_vm14, %v7971_v3  ;;  %12242 = vmatprep.mubr.msk.f32.mxu1 %vm5336_vm14, %v7971_v3  ;;  %v7672_v59 = vpop.permute.xlu0 %7671 }
 0x898   : > { %7750 = vst.msk [vmem:[#allocation3 + $0x88] sm:$0xff] %vm5069_vm11, %v7672_v59 }
 0x89a   : > { %v7674_v13 = vpop.permute.xlu1 %7673 }
 0x89b   : > { %7751 = vst.msk [vmem:[#allocation3 + $0x90] sm:$0xff] %vm5069_vm11, %v7674_v13  ;;  %v7864_v50 = vpop.permute.xlu0 %7863  ;;  %v7972_v22 = vld [vmem:[#allocation3 + $0x78] sm:$0xff] }
 0x89c   : > { %7942 = vst.msk [vmem:[#allocation3 + $0x88] sm:$0xff] %vm5262_vm12, %v7864_v50  ;;  %12177 = vmatmul.mubr.msk.f32.gmra.mrb[78].mxu0 %vm5336_vm14, %v7972_v22  ;;  %12243 = vmatmul.mubr.msk.f32.gmra.mrb[14].mxu1 %vm5336_vm14, %v7972_v22 }
 0x89e   : > { %v7866_v12 = vpop.permute.xlu1 %7865  ;;  %v7973_v11 = vld [vmem:[#allocation3 + $0x80] sm:$0xff] }
 0x89f   : > { %7943 = vst.msk [vmem:[#allocation3 + $0x90] sm:$0xff] %vm5262_vm12, %v7866_v12  ;;  %12179 = vmatprep.mubr.msk.f32.mxu0 %vm5336_vm14, %v7973_v11  ;;  %12245 = vmatprep.mubr.msk.f32.mxu1 %vm5336_vm14, %v7973_v11  ;;  %v7676_v7 = vpop.permute.xlu0 %7675 }
 0x8a0   : > { %7752 = vst.msk [vmem:[#allocation3 + $0x98] sm:$0xff] %vm5069_vm11, %v7676_v7 }
 0x8a2   : > { %v7678_v23 = vpop.permute.xlu1 %7677 }
 0x8a3   : > { %7753 = vst.msk [vmem:[#allocation3 + $0xa0] sm:$0xff] %vm5069_vm11, %v7678_v23  ;;  %v7868_v61 = vpop.permute.xlu0 %7867  ;;  %v7974_v25 = vld [vmem:[#allocation3 + $0x88] sm:$0xff] }
 0x8a4   : > { %7944 = vst.msk [vmem:[#allocation3 + $0x98] sm:$0xff] %vm5262_vm12, %v7868_v61  ;;  %12180 = vmatmul.mubr.msk.f32.gmra.mrb[80].mxu0 %vm5336_vm14, %v7974_v25  ;;  %12246 = vmatmul.mubr.msk.f32.gmra.mrb[16].mxu1 %vm5336_vm14, %v7974_v25 }
 0x8a6   : > { %v7870_v32 = vpop.permute.xlu1 %7869  ;;  %v7975_v60 = vld [vmem:[#allocation3 + $0x90] sm:$0xff] }
 0x8a7   : > { %7945 = vst.msk [vmem:[#allocation3 + $0xa0] sm:$0xff] %vm5262_vm12, %v7870_v32  ;;  %12182 = vmatprep.mubr.msk.f32.mxu0 %vm5336_vm14, %v7975_v60  ;;  %12248 = vmatprep.mubr.msk.f32.mxu1 %vm5336_vm14, %v7975_v60  ;;  %v7680_v62 = vpop.permute.xlu0 %7679 }
 0x8a8   : > { %7754 = vst.msk [vmem:[#allocation3 + $0xa8] sm:$0xff] %vm5069_vm11, %v7680_v62 }
 0x8aa   : > { %v7682_v42 = vpop.permute.xlu1 %7681 }
 0x8ab   : > { %7755 = vst.msk [vmem:[#allocation3 + $0xb0] sm:$0xff] %vm5069_vm11, %v7682_v42  ;;  %v7872_v57 = vpop.permute.xlu0 %7871  ;;  %v7976_v6 = vld [vmem:[#allocation3 + $0x98] sm:$0xff] }
 0x8ac   : > { %7946 = vst.msk [vmem:[#allocation3 + $0xa8] sm:$0xff] %vm5262_vm12, %v7872_v57  ;;  %12183 = vmatmul.mubr.msk.f32.gmra.mrb[82].mxu0 %vm5336_vm14, %v7976_v6  ;;  %12249 = vmatmul.mubr.msk.f32.gmra.mrb[18].mxu1 %vm5336_vm14, %v7976_v6 }
 0x8ae   : > { %v7874_v29 = vpop.permute.xlu1 %7873  ;;  %v7977_v36 = vld [vmem:[#allocation3 + $0xa0] sm:$0xff] }
 0x8af   : > { %7947 = vst.msk [vmem:[#allocation3 + $0xb0] sm:$0xff] %vm5262_vm12, %v7874_v29  ;;  %12185 = vmatprep.mubr.msk.f32.mxu0 %vm5336_vm14, %v7977_v36  ;;  %12251 = vmatprep.mubr.msk.f32.mxu1 %vm5336_vm14, %v7977_v36  ;;  %v7684_v49 = vpop.permute.xlu0 %7683 }
 0x8b0   : > { %7756 = vst.msk [vmem:[#allocation3 + $0xb8] sm:$0xff] %vm5069_vm11, %v7684_v49 }
 0x8b2   : > { %v7686_v10 = vpop.permute.xlu1 %7685 }
 0x8b3   : > { %7757 = vst.msk [vmem:[#allocation3 + $0xc0] sm:$0xff] %vm5069_vm11, %v7686_v10  ;;  %v7876_v58 = vpop.permute.xlu0 %7875  ;;  %v7978_v43 = vld [vmem:[#allocation3 + $0xa8] sm:$0xff] }
 0x8b4   : > { %7948 = vst.msk [vmem:[#allocation3 + $0xb8] sm:$0xff] %vm5262_vm12, %v7876_v58  ;;  %12186 = vmatmul.mubr.msk.f32.gmra.mrb[84].mxu0 %vm5336_vm14, %v7978_v43  ;;  %12252 = vmatmul.mubr.msk.f32.gmra.mrb[20].mxu1 %vm5336_vm14, %v7978_v43 }
 0x8b6   : > { %v7878_v52 = vpop.permute.xlu1 %7877  ;;  %v7979_v63 = vld [vmem:[#allocation3 + $0xb0] sm:$0xff] }
 0x8b7   : > { %7949 = vst.msk [vmem:[#allocation3 + $0xc0] sm:$0xff] %vm5262_vm12, %v7878_v52  ;;  %12188 = vmatprep.mubr.msk.f32.mxu0 %vm5336_vm14, %v7979_v63  ;;  %12254 = vmatprep.mubr.msk.f32.mxu1 %vm5336_vm14, %v7979_v63  ;;  %v7688_v19 = vpop.permute.xlu0 %7687 }
 0x8b8   : > { %7758 = vst.msk [vmem:[#allocation3 + $0xc8] sm:$0xff] %vm5069_vm11, %v7688_v19 }
 0x8ba   : > { %v7690_v33 = vpop.permute.xlu1 %7689 }
 0x8bb   : > { %7759 = vst.msk [vmem:[#allocation3 + $0xd0] sm:$0xff] %vm5069_vm11, %v7690_v33  ;;  %v7880_v51 = vpop.permute.xlu0 %7879  ;;  %v7980_v34 = vld [vmem:[#allocation3 + $0xb8] sm:$0xff] }
 0x8bc   : > { %7950 = vst.msk [vmem:[#allocation3 + $0xc8] sm:$0xff] %vm5262_vm12, %v7880_v51  ;;  %12189 = vmatmul.mubr.msk.f32.gmra.mrb[86].mxu0 %vm5336_vm14, %v7980_v34  ;;  %12255 = vmatmul.mubr.msk.f32.gmra.mrb[22].mxu1 %vm5336_vm14, %v7980_v34 }
 0x8be   : > { %v7882_v48 = vpop.permute.xlu1 %7881  ;;  %v7981_v5 = vld [vmem:[#allocation3 + $0xc0] sm:$0xff] }
 0x8bf   : > { %7951 = vst.msk [vmem:[#allocation3 + $0xd0] sm:$0xff] %vm5262_vm12, %v7882_v48  ;;  %12191 = vmatprep.mubr.msk.f32.mxu0 %vm5336_vm14, %v7981_v5  ;;  %12257 = vmatprep.mubr.msk.f32.mxu1 %vm5336_vm14, %v7981_v5  ;;  %v7692_v18 = vpop.permute.xlu0 %7691 }
 0x8c0   : > { %7760 = vst.msk [vmem:[#allocation3 + $0xd8] sm:$0xff] %vm5069_vm11, %v7692_v18 }
 0x8c2   : > { %v7504_v9 = vpop.permute.xlu1 %7503 }
 0x8c3   : > { %7570 = vst.msk [vmem:[#allocation3 + $0xe8] sm:$0xff] %vm4876_vm10, %v7504_v9  ;;  %v7884_v54 = vpop.permute.xlu0 %7883  ;;  %v7982_v16 = vld [vmem:[#allocation3 + $0xc8] sm:$0xff] }
 0x8c4   : > { %7952 = vst.msk [vmem:[#allocation3 + $0xd8] sm:$0xff] %vm5262_vm12, %v7884_v54  ;;  %12192 = vmatmul.mubr.msk.f32.gmra.mrb[88].mxu0 %vm5336_vm14, %v7982_v16  ;;  %12258 = vmatmul.mubr.msk.f32.gmra.mrb[24].mxu1 %vm5336_vm14, %v7982_v16 }
 0x8c6   : > { %v7696_v17 = vpop.permute.xlu1 %7695  ;;  %v7983_v27 = vld [vmem:[#allocation3 + $0xd0] sm:$0xff] }
 0x8c7   : > { %7762 = vst.msk [vmem:[#allocation3 + $0xe8] sm:$0xff] %vm5069_vm11, %v7696_v17  ;;  %12194 = vmatprep.mubr.msk.f32.mxu0 %vm5336_vm14, %v7983_v27  ;;  %12260 = vmatprep.mubr.msk.f32.mxu1 %vm5336_vm14, %v7983_v27  ;;  %v7694_v28 = vpop.permute.xlu0 %7693 }
 0x8c8   : > { %7761 = vst.msk [vmem:[#allocation3 + $0xe0] sm:$0xff] %vm5069_vm11, %v7694_v28 }
 0x8ca   : > { %v7888_v30 = vpop.permute.xlu1 %7887 }
 0x8cb   : > { %7954 = vst.msk [vmem:[#allocation3 + $0xe8] sm:$0xff] %vm5262_vm12, %v7888_v30  ;;  %v7886_v21 = vpop.permute.xlu0 %7885  ;;  %v7984_v20 = vld [vmem:[#allocation3 + $0xd8] sm:$0xff] }
 0x8cc   : > { %7953 = vst.msk [vmem:[#allocation3 + $0xe0] sm:$0xff] %vm5262_vm12, %v7886_v21  ;;  %12195 = vmatmul.mubr.msk.f32.gmra.mrb[90].mxu0 %vm5336_vm14, %v7984_v20  ;;  %12261 = vmatmul.mubr.msk.f32.gmra.mrb[26].mxu1 %vm5336_vm14, %v7984_v20 }
 0x8ce   : > { %v7508_v35 = vpop.permute.xlu1 %7507 }
 0x8cf   : > { %v7506_v26 = vpop.permute.xlu0 %7505  ;;  %7572 = vst.msk [vmem:[#allocation3 + $0xf8] sm:$0xff] %vm4876_vm10, %v7508_v35 }
 0x8d0   : > { %7571 = vst.msk [vmem:[#allocation3 + $0xf0] sm:$0xff] %vm4876_vm10, %v7506_v26 }
 0x8d2   : > { %v7700_v4 = vpop.permute.xlu1 %7699  ;;  %v7986_v45 = vld [vmem:[#allocation3 + $0xe8] sm:$0xff] }
 0x8d3   : > { %v7698_v40 = vpop.permute.xlu0 %7697  ;;  %7764 = vst.msk [vmem:[#allocation3 + $0xf8] sm:$0xff] %vm5069_vm11, %v7700_v4  ;;  %v7985_v1 = vld [vmem:[#allocation3 + $0xe0] sm:$0xff] }
 0x8d4   : > { %7763 = vst.msk [vmem:[#allocation3 + $0xf0] sm:$0xff] %vm5069_vm11, %v7698_v40  ;;  %12197 = vmatprep.mubr.msk.f32.mxu0 %vm5336_vm14, %v7985_v1  ;;  %12263 = vmatprep.mubr.msk.f32.mxu1 %vm5336_vm14, %v7985_v1 }
 0x8d5   : > { %12198 = vmatmul.mubr.msk.f32.gmra.mrb[92].mxu0 %vm5336_vm14, %v7986_v45  ;;  %12264 = vmatmul.mubr.msk.f32.gmra.mrb[28].mxu1 %vm5336_vm14, %v7986_v45 }
 0x8d7   : > { %v7890_v37 = vpop.permute.xlu0 %7889  ;;  %v7892_v31 = vpop.permute.xlu1 %7891 }
 0x8d8   : > { %7955 = vst.msk [vmem:[#allocation3 + $0xf0] sm:$0xff] %vm5262_vm12, %v7890_v37  ;;  %7956 = vst.msk [vmem:[#allocation3 + $0xf8] sm:$0xff] %vm5262_vm12, %v7892_v31 }
 0x8df   : > { %v7987_v44 = vld [vmem:[#allocation3 + $0xf0] sm:$0xff]  ;;  %v7988_v47 = vld [vmem:[#allocation3 + $0xf8] sm:$0xff] }
 0x8e0   : > { %12200 = vmatprep.mubr.msk.f32.mxu0 %vm5336_vm14, %v7987_v44  ;;  %12266 = vmatprep.mubr.msk.f32.mxu1 %vm5336_vm14, %v7987_v44 }
 0x8e1   : > { %12201 = vmatmul.mubr.msk.f32.gmra.mrb[94].mxu0 %vm5336_vm14, %v7988_v47  ;;  %12267 = vmatmul.mubr.msk.f32.gmra.mrb[30].mxu1 %vm5336_vm14, %v7988_v47 }
 0x8e3   : > { %v8883_v55 = vpop.permute.xlu1 %8882 }
 0x8e4   : > { %8977 = vst.msk [vmem:[#allocation3 + $0x8] sm:$0xff] %vm3911_vm13, %v8883_v55 }
 0x8e7   : > { %v8881_v3 = vpop.permute.xlu0 %8880 }
 0x8e8   : > { %8976 = vst.msk [vmem:[#allocation3] sm:$0xff] %vm3911_vm13, %v8881_v3 }
 0x937   : > { %v12157_v41 = vpop.f32.mrb[64].mxu0 }
 0x938   : > { %v12527_v24 = vadd.f32 %v12157_v41, %v17115_v53  ;;  %v8160_v14 = vpop.f32.mrb[65].mxu0 }
 0x939   : > { %v12528_v2 = vadd.f32 %v17115_v53, %v8160_v14 }
 0x93a   : > { %vm8618_vm3 = vcmp.ge.f32.partialorder %v12527_v24, 0.0  ;;  %v8657_v56 = vmul.f32 %v12527_v24, %v17120_v15 }
 0x93b   : > { %vm8617_vm4 = vcmp.ge.f32.partialorder %v12528_v2, 0.0  ;;  %v8656_v0 = vmul.f32 %v12528_v2, %v17120_v15 }
 0x93c   : > { %v8689_v59 = vsel %vm8618_vm3, %v12527_v24, %v8657_v56 }
 0x93d   : > { %8721 = vst.msk [vmem:[#allocation2 + $0x21] sm:$0xff] %vm603_vm0, %v8689_v59  ;;  %v8688_v13 = vsel %vm8617_vm4, %v12528_v2, %v8656_v0 }
 0x93e   : > { %8720 = vst.msk [vmem:[#allocation2 + $0x19] sm:$0xff] %vm603_vm0, %v8688_v13 }
 0x93f   : > { %v12160_v50 = vpop.f32.mrb[66].mxu0 }
 0x940   : > { %v12529_v22 = vadd.f32 %v12160_v50, %v17115_v53  ;;  %v8170_v12 = vpop.f32.mrb[67].mxu0 }
 0x941   : > { %v12530_v11 = vadd.f32 %v17115_v53, %v8170_v12 }
 0x942   : > { %vm8620_vm5 = vcmp.ge.f32.partialorder %v12529_v22, 0.0  ;;  %v8659_v7 = vmul.f32 %v12529_v22, %v17120_v15 }
 0x943   : > { %vm8619_vm15 = vcmp.ge.f32.partialorder %v12530_v11, 0.0  ;;  %v8658_v23 = vmul.f32 %v12530_v11, %v17120_v15 }
 0x944   : > { %v8691_v61 = vsel %vm8620_vm5, %v12529_v22, %v8659_v7  ;;  %v17135_v25 = vld [vmem:[#allocation2 + $0x21] sm:$0xff] }
 0x945   : > { %8723 = vst.msk [vmem:[#allocation2 + $0x39] sm:$0xff] %vm603_vm0, %v8691_v61  ;;  %v8690_v32 = vsel %vm8619_vm15, %v12530_v11, %v8658_v23  ;;  %8886 = vrot.lane.b32.xlu1 %v17135_v25, %s12782_s25  ;;  %v17140_v60 = vld [vmem:[#allocation2 + $0x19] sm:$0xff] }
 0x946   : > { %v17142_v62 = vld [vmem:[#allocation2 + $0x20] sm:$0xff]  ;;  %v17144_v42 = vld [vmem:[#allocation2 + $0x18] sm:$0xff]  ;;  %8722 = vst.msk [vmem:[#allocation2 + $0x31] sm:$0xff] %vm603_vm0, %v8690_v32  ;;  %8884 = vrot.lane.b32.xlu0 %v17140_v60, %s12782_s25 }
 0x947   : > { %8787 = vst.msk [vmem:[#allocation3 + $0x18] sm:$0xff] %vm603_vm0, %v17142_v62  ;;  %8786 = vst.msk [vmem:[#allocation3 + $0x10] sm:$0xff] %vm603_vm0, %v17144_v42  ;;  %v12163_v57 = vpop.f32.mrb[68].mxu0 }
 0x948   : > { %v12531_v6 = vadd.f32 %v12163_v57, %v17115_v53  ;;  %v8180_v29 = vpop.f32.mrb[69].mxu0 }
 0x949   : > { %v12532_v36 = vadd.f32 %v17115_v53, %v8180_v29 }
 0x94a   : > { %vm8622_vm1 = vcmp.ge.f32.partialorder %v12531_v6, 0.0  ;;  %v8661_v49 = vmul.f32 %v12531_v6, %v17120_v15 }
 0x94b   : > { %vm8621_vm3 = vcmp.ge.f32.partialorder %v12532_v36, 0.0  ;;  %v8660_v10 = vmul.f32 %v12532_v36, %v17120_v15 }
 0x94c   : > { %v8693_v58 = vsel %vm8622_vm1, %v12531_v6, %v8661_v49  ;;  %v17157_v43 = vld [vmem:[#allocation2 + $0x39] sm:$0xff] }
 0x94d   : > { %8725 = vst.msk [vmem:[#allocation2 + $0x51] sm:$0xff] %vm603_vm0, %v8693_v58  ;;  %v8692_v52 = vsel %vm8621_vm3, %v12532_v36, %v8660_v10  ;;  %8890 = vrot.lane.b32.xlu1 %v17157_v43, %s12782_s25  ;;  %v17162_v63 = vld [vmem:[#allocation2 + $0x31] sm:$0xff] }
 0x94e   : > { %v17164_v19 = vld [vmem:[#allocation2 + $0x38] sm:$0xff]  ;;  %v17166_v33 = vld [vmem:[#allocation2 + $0x30] sm:$0xff]  ;;  %8724 = vst.msk [vmem:[#allocation2 + $0x49] sm:$0xff] %vm603_vm0, %v8692_v52  ;;  %8888 = vrot.lane.b32.xlu0 %v17162_v63, %s12782_s25 }
 0x94f   : > { %8789 = vst.msk [vmem:[#allocation3 + $0x28] sm:$0xff] %vm603_vm0, %v17164_v19  ;;  %8788 = vst.msk [vmem:[#allocation3 + $0x20] sm:$0xff] %vm603_vm0, %v17166_v33  ;;  %v12166_v51 = vpop.f32.mrb[70].mxu0 }
 0x950   : > { %v12533_v34 = vadd.f32 %v12166_v51, %v17115_v53  ;;  %v8190_v48 = vpop.f32.mrb[71].mxu0 }
 0x951   : > { %v12534_v5 = vadd.f32 %v17115_v53, %v8190_v48 }
 0x952   : > { %vm8624_vm4 = vcmp.ge.f32.partialorder %v12533_v34, 0.0  ;;  %v8663_v18 = vmul.f32 %v12533_v34, %v17120_v15 }
 0x953   : > { %vm8623_vm5 = vcmp.ge.f32.partialorder %v12534_v5, 0.0  ;;  %v8662_v9 = vmul.f32 %v12534_v5, %v17120_v15 }
 0x954   : > { %v8695_v54 = vsel %vm8624_vm4, %v12533_v34, %v8663_v18  ;;  %v17179_v16 = vld [vmem:[#allocation2 + $0x51] sm:$0xff] }
 0x955   : > { %8727 = vst.msk [vmem:[#allocation2 + $0x69] sm:$0xff] %vm603_vm0, %v8695_v54  ;;  %v8694_v8 = vsel %vm8623_vm5, %v12534_v5, %v8662_v9  ;;  %8894 = vrot.lane.b32.xlu1 %v17179_v16, %s12782_s25  ;;  %v17184_v39 = vld [vmem:[#allocation2 + $0x49] sm:$0xff] }
 0x956   : > { %v17186_v17 = vld [vmem:[#allocation2 + $0x50] sm:$0xff]  ;;  %8726 = vst.msk [vmem:[#allocation2 + $0x61] sm:$0xff] %vm603_vm0, %v8694_v8  ;;  %8892 = vrot.lane.b32.xlu0 %v17184_v39, %s12782_s25  ;;  %v17193_v27 = vld [vmem:[#allocation2 + $0x48] sm:$0xff] }
 0x957   : > { %8791 = vst.msk [vmem:[#allocation3 + $0x38] sm:$0xff] %vm603_vm0, %v17186_v17  ;;  %v12169_v28 = vpop.f32.mrb[72].mxu0  ;;  %8790 = vst.msk [vmem:[#allocation3 + $0x30] sm:$0xff] %vm603_vm0, %v17193_v27 }
 0x958   : > { %v12535_v30 = vadd.f32 %v12169_v28, %v17115_v53  ;;  %v8200_v21 = vpop.f32.mrb[73].mxu0 }
 0x959   : > { %v12536_v20 = vadd.f32 %v17115_v53, %v8200_v21 }
 0x95a   : > { %vm8626_vm15 = vcmp.ge.f32.partialorder %v12535_v30, 0.0  ;;  %v8665_v35 = vmul.f32 %v12535_v30, %v17120_v15 }
 0x95b   : > { %vm8625_vm1 = vcmp.ge.f32.partialorder %v12536_v20, 0.0  ;;  %v8664_v26 = vmul.f32 %v12536_v20, %v17120_v15 }
 0x95c   : > { %v8697_v4 = vsel %vm8626_vm15, %v12535_v30, %v8665_v35  ;;  %v17201_v40 = vld [vmem:[#allocation2 + $0x69] sm:$0xff] }
 0x95d   : > { %8729 = vst.msk [vmem:[#allocation2 + $0x81] sm:$0xff] %vm603_vm0, %v8697_v4  ;;  %v8696_v1 = vsel %vm8625_vm1, %v12536_v20, %v8664_v26  ;;  %8898 = vrot.lane.b32.xlu1 %v17201_v40, %s12782_s25  ;;  %v17206_v45 = vld [vmem:[#allocation2 + $0x61] sm:$0xff] }
 0x95e   : > { %v17208_v37 = vld [vmem:[#allocation2 + $0x68] sm:$0xff]  ;;  %8728 = vst.msk [vmem:[#allocation2 + $0x79] sm:$0xff] %vm603_vm0, %v8696_v1  ;;  %8896 = vrot.lane.b32.xlu0 %v17206_v45, %s12782_s25  ;;  %v17215_v31 = vld [vmem:[#allocation2 + $0x60] sm:$0xff] }
 0x95f   : > { %8793 = vst.msk [vmem:[#allocation3 + $0x48] sm:$0xff] %vm603_vm0, %v17208_v37  ;;  %v12172_v44 = vpop.f32.mrb[74].mxu0  ;;  %8792 = vst.msk [vmem:[#allocation3 + $0x40] sm:$0xff] %vm603_vm0, %v17215_v31 }
 0x960   : > { %v12537_v47 = vadd.f32 %v12172_v44, %v17115_v53  ;;  %v8210_v38 = vpop.f32.mrb[75].mxu0 }
 0x961   : > { %v12538_v41 = vadd.f32 %v17115_v53, %v8210_v38 }
 0x962   : > { %vm8628_vm3 = vcmp.ge.f32.partialorder %v12537_v47, 0.0  ;;  %v8667_v55 = vmul.f32 %v12537_v47, %v17120_v15 }
 0x963   : > { %vm8627_vm4 = vcmp.ge.f32.partialorder %v12538_v41, 0.0  ;;  %v8666_v24 = vmul.f32 %v12538_v41, %v17120_v15 }
 0x964   : > { %v8699_v14 = vsel %vm8628_vm3, %v12537_v47, %v8667_v55  ;;  %v8827_v2 = vld [vmem:[#allocation2 + $0x81] sm:$0xff] }
 0x965   : > { %8731 = vst.msk [vmem:[#allocation2 + $0x99] sm:$0xff] %vm603_vm0, %v8699_v14  ;;  %v8698_v56 = vsel %vm8627_vm4, %v12538_v41, %v8666_v24  ;;  %8902 = vrot.lane.b32.xlu1 %v8827_v2, %s12782_s25  ;;  %v8826_v46 = vld [vmem:[#allocation2 + $0x79] sm:$0xff] }
 0x966   : > { %v17225_v0 = vld [vmem:[#allocation2 + $0x80] sm:$0xff]  ;;  %8730 = vst.msk [vmem:[#allocation2 + $0x91] sm:$0xff] %vm603_vm0, %v8698_v56  ;;  %8900 = vrot.lane.b32.xlu0 %v8826_v46, %s12782_s25  ;;  %v17231_v3 = vld [vmem:[#allocation2 + $0x78] sm:$0xff] }
 0x967   : > { %8795 = vst.msk [vmem:[#allocation3 + $0x58] sm:$0xff] %vm603_vm0, %v17225_v0  ;;  %v12175_v59 = vpop.f32.mrb[76].mxu0  ;;  %8794 = vst.msk [vmem:[#allocation3 + $0x50] sm:$0xff] %vm603_vm0, %v17231_v3 }
 0x968   : > { %v12539_v13 = vadd.f32 %v12175_v59, %v17115_v53  ;;  %v8220_v50 = vpop.f32.mrb[77].mxu0 }
 0x969   : > { %v12540_v22 = vadd.f32 %v17115_v53, %v8220_v50 }
 0x96a   : > { %vm8630_vm5 = vcmp.ge.f32.partialorder %v12539_v13, 0.0  ;;  %v8669_v12 = vmul.f32 %v12539_v13, %v17120_v15 }
 0x96b   : > { %vm8629_vm15 = vcmp.ge.f32.partialorder %v12540_v22, 0.0  ;;  %v8668_v11 = vmul.f32 %v12540_v22, %v17120_v15 }
 0x96c   : > { %v8701_v7 = vsel %vm8630_vm5, %v12539_v13, %v8669_v12  ;;  %v8829_v23 = vld [vmem:[#allocation2 + $0x99] sm:$0xff] }
 0x96d   : > { %8733 = vst.msk [vmem:[#allocation2 + $0xb1] sm:$0xff] %vm603_vm0, %v8701_v7  ;;  %v8700_v61 = vsel %vm8629_vm15, %v12540_v22, %v8668_v11  ;;  %8906 = vrot.lane.b32.xlu1 %v8829_v23, %s12782_s25  ;;  %v8828_v32 = vld [vmem:[#allocation2 + $0x91] sm:$0xff] }
 0x96e   : > { %v17241_v57 = vld [vmem:[#allocation2 + $0x98] sm:$0xff]  ;;  %8732 = vst.msk [vmem:[#allocation2 + $0xa9] sm:$0xff] %vm603_vm0, %v8700_v61  ;;  %8904 = vrot.lane.b32.xlu0 %v8828_v32, %s12782_s25  ;;  %v17247_v6 = vld [vmem:[#allocation2 + $0x90] sm:$0xff] }
 0x96f   : > { %8797 = vst.msk [vmem:[#allocation3 + $0x68] sm:$0xff] %vm603_vm0, %v17241_v57  ;;  %v12178_v29 = vpop.f32.mrb[78].mxu0  ;;  %8796 = vst.msk [vmem:[#allocation3 + $0x60] sm:$0xff] %vm603_vm0, %v17247_v6 }
 0x970   : > { %v12541_v36 = vadd.f32 %v12178_v29, %v17115_v53  ;;  %v8230_v49 = vpop.f32.mrb[79].mxu0 }
 0x971   : > { %v12542_v10 = vadd.f32 %v17115_v53, %v8230_v49 }
 0x972   : > { %vm8632_vm1 = vcmp.ge.f32.partialorder %v12541_v36, 0.0  ;;  %v8671_v58 = vmul.f32 %v12541_v36, %v17120_v15 }
 0x973   : > { %vm8631_vm3 = vcmp.ge.f32.partialorder %v12542_v10, 0.0  ;;  %v8670_v52 = vmul.f32 %v12542_v10, %v17120_v15 }
 0x974   : > { %v8703_v51 = vsel %vm8632_vm1, %v12541_v36, %v8671_v58  ;;  %v8831_v34 = vld [vmem:[#allocation2 + $0xb1] sm:$0xff] }
 0x975   : > { %8735 = vst.msk [vmem:[#allocation2 + $0xc9] sm:$0xff] %vm603_vm0, %v8703_v51  ;;  %v8702_v48 = vsel %vm8631_vm3, %v12542_v10, %v8670_v52  ;;  %8910 = vrot.lane.b32.xlu1 %v8831_v34, %s12782_s25  ;;  %v8830_v5 = vld [vmem:[#allocation2 + $0xa9] sm:$0xff] }
 0x976   : > { %v17257_v18 = vld [vmem:[#allocation2 + $0xb0] sm:$0xff]  ;;  %8734 = vst.msk [vmem:[#allocation2 + $0xc1] sm:$0xff] %vm603_vm0, %v8702_v48  ;;  %8908 = vrot.lane.b32.xlu0 %v8830_v5, %s12782_s25  ;;  %v17263_v9 = vld [vmem:[#allocation2 + $0xa8] sm:$0xff] }
 0x977   : > { %8799 = vst.msk [vmem:[#allocation3 + $0x78] sm:$0xff] %vm603_vm0, %v17257_v18  ;;  %v12181_v54 = vpop.f32.mrb[80].mxu0  ;;  %8798 = vst.msk [vmem:[#allocation3 + $0x70] sm:$0xff] %vm603_vm0, %v17263_v9 }
 0x978   : > { %v12543_v8 = vadd.f32 %v12181_v54, %v17115_v53  ;;  %v8240_v28 = vpop.f32.mrb[81].mxu0 }
 0x979   : > { %v12544_v30 = vadd.f32 %v17115_v53, %v8240_v28 }
 0x97a   : > { %vm8634_vm4 = vcmp.ge.f32.partialorder %v12543_v8, 0.0  ;;  %v8673_v21 = vmul.f32 %v12543_v8, %v17120_v15 }
 0x97b   : > { %vm8633_vm5 = vcmp.ge.f32.partialorder %v12544_v30, 0.0  ;;  %v8672_v20 = vmul.f32 %v12544_v30, %v17120_v15 }
 0x97c   : > { %v8705_v35 = vsel %vm8634_vm4, %v12543_v8, %v8673_v21  ;;  %v8833_v26 = vld [vmem:[#allocation2 + $0xc9] sm:$0xff] }
 0x97d   : > { %8737 = vst.msk [vmem:[#allocation2 + $0xe1] sm:$0xff] %vm603_vm0, %v8705_v35  ;;  %v8704_v4 = vsel %vm8633_vm5, %v12544_v30, %v8672_v20  ;;  %8914 = vrot.lane.b32.xlu1 %v8833_v26, %s12782_s25  ;;  %v8832_v1 = vld [vmem:[#allocation2 + $0xc1] sm:$0xff] }
 0x97e   : > { %v17273_v44 = vld [vmem:[#allocation2 + $0xc8] sm:$0xff]  ;;  %8736 = vst.msk [vmem:[#allocation2 + $0xd9] sm:$0xff] %vm603_vm0, %v8704_v4  ;;  %8912 = vrot.lane.b32.xlu0 %v8832_v1, %s12782_s25  ;;  %v17279_v47 = vld [vmem:[#allocation2 + $0xc0] sm:$0xff] }
 0x97f   : > { %8801 = vst.msk [vmem:[#allocation3 + $0x88] sm:$0xff] %vm603_vm0, %v17273_v44  ;;  %v12184_v38 = vpop.f32.mrb[82].mxu0  ;;  %8800 = vst.msk [vmem:[#allocation3 + $0x80] sm:$0xff] %vm603_vm0, %v17279_v47 }
 0x980   : > { %v12545_v41 = vadd.f32 %v12184_v38, %v17115_v53  ;;  %v8250_v55 = vpop.f32.mrb[83].mxu0 }
 0x981   : > { %v12546_v24 = vadd.f32 %v17115_v53, %v8250_v55 }
 0x982   : > { %vm8636_vm15 = vcmp.ge.f32.partialorder %v12545_v41, 0.0  ;;  %v8675_v14 = vmul.f32 %v12545_v41, %v17120_v15 }
 0x983   : > { %vm8635_vm1 = vcmp.ge.f32.partialorder %v12546_v24, 0.0  ;;  %v8674_v2 = vmul.f32 %v12546_v24, %v17120_v15 }
 0x984   : > { %v8707_v56 = vsel %vm8636_vm15, %v12545_v41, %v8675_v14  ;;  %v8835_v46 = vld [vmem:[#allocation2 + $0xe1] sm:$0xff] }
 0x985   : > { %8739 = vst.msk [vmem:[#allocation2 + $0xf9] sm:$0xff] %vm603_vm0, %v8707_v56  ;;  %v8706_v59 = vsel %vm8635_vm1, %v12546_v24, %v8674_v2  ;;  %8918 = vrot.lane.b32.xlu1 %v8835_v46, %s12782_s25  ;;  %v8834_v13 = vld [vmem:[#allocation2 + $0xd9] sm:$0xff] }
 0x986   : > { %v17289_v50 = vld [vmem:[#allocation2 + $0xe0] sm:$0xff]  ;;  %8738 = vst.msk [vmem:[#allocation2 + $0xf1] sm:$0xff] %vm603_vm0, %v8706_v59  ;;  %8916 = vrot.lane.b32.xlu0 %v8834_v13, %s12782_s25  ;;  %v17295_v22 = vld [vmem:[#allocation2 + $0xd8] sm:$0xff] }
 0x987   : > { %8803 = vst.msk [vmem:[#allocation3 + $0x98] sm:$0xff] %vm603_vm0, %v17289_v50  ;;  %v12187_v12 = vpop.f32.mrb[84].mxu0  ;;  %8802 = vst.msk [vmem:[#allocation3 + $0x90] sm:$0xff] %vm603_vm0, %v17295_v22 }
 0x988   : > { %v12547_v11 = vadd.f32 %v12187_v12, %v17115_v53  ;;  %v8260_v7 = vpop.f32.mrb[85].mxu0 }
 0x989   : > { %v12548_v23 = vadd.f32 %v17115_v53, %v8260_v7 }
 0x98a   : > { %vm8638_vm3 = vcmp.ge.f32.partialorder %v12547_v11, 0.0  ;;  %v8677_v61 = vmul.f32 %v12547_v11, %v17120_v15 }
 0x98b   : > { %vm8637_vm4 = vcmp.ge.f32.partialorder %v12548_v23, 0.0  ;;  %v8676_v32 = vmul.f32 %v12548_v23, %v17120_v15 }
 0x98c   : > { %v8709_v29 = vsel %vm8638_vm3, %v12547_v11, %v8677_v61  ;;  %v8837_v36 = vld [vmem:[#allocation2 + $0xf9] sm:$0xff] }
 0x98d   : > { %8741 = vst.msk [vmem:[#allocation2 + $0x111] sm:$0xff] %vm603_vm0, %v8709_v29  ;;  %v8708_v49 = vsel %vm8637_vm4, %v12548_v23, %v8676_v32  ;;  %8922 = vrot.lane.b32.xlu1 %v8837_v36, %s12782_s25  ;;  %v8836_v10 = vld [vmem:[#allocation2 + $0xf1] sm:$0xff] }
 0x98e   : > { %v17305_v58 = vld [vmem:[#allocation2 + $0xf8] sm:$0xff]  ;;  %8740 = vst.msk [vmem:[#allocation2 + $0x109] sm:$0xff] %vm603_vm0, %v8708_v49  ;;  %8920 = vrot.lane.b32.xlu0 %v8836_v10, %s12782_s25  ;;  %v17311_v52 = vld [vmem:[#allocation2 + $0xf0] sm:$0xff] }
 0x98f   : > { %8805 = vst.msk [vmem:[#allocation3 + $0xa8] sm:$0xff] %vm603_vm0, %v17305_v58  ;;  %v12190_v51 = vpop.f32.mrb[86].mxu0  ;;  %8804 = vst.msk [vmem:[#allocation3 + $0xa0] sm:$0xff] %vm603_vm0, %v17311_v52 }
 0x990   : > { %v12549_v34 = vadd.f32 %v12190_v51, %v17115_v53  ;;  %v8270_v48 = vpop.f32.mrb[87].mxu0 }
 0x991   : > { %v12550_v5 = vadd.f32 %v17115_v53, %v8270_v48 }
 0x992   : > { %vm8640_vm5 = vcmp.ge.f32.partialorder %v12549_v34, 0.0  ;;  %v8679_v54 = vmul.f32 %v12549_v34, %v17120_v15 }
 0x993   : > { %vm8639_vm15 = vcmp.ge.f32.partialorder %v12550_v5, 0.0  ;;  %v8678_v8 = vmul.f32 %v12550_v5, %v17120_v15 }
 0x994   : > { %v8711_v28 = vsel %vm8640_vm5, %v12549_v34, %v8679_v54  ;;  %v8839_v30 = vld [vmem:[#allocation2 + $0x111] sm:$0xff] }
 0x995   : > { %8743 = vst.msk [vmem:[#allocation2 + $0x129] sm:$0xff] %vm603_vm0, %v8711_v28  ;;  %v8710_v21 = vsel %vm8639_vm15, %v12550_v5, %v8678_v8  ;;  %8926 = vrot.lane.b32.xlu1 %v8839_v30, %s12782_s25  ;;  %v8838_v20 = vld [vmem:[#allocation2 + $0x109] sm:$0xff] }
 0x996   : > { %v17321_v35 = vld [vmem:[#allocation2 + $0x110] sm:$0xff]  ;;  %8742 = vst.msk [vmem:[#allocation2 + $0x121] sm:$0xff] %vm603_vm0, %v8710_v21  ;;  %8924 = vrot.lane.b32.xlu0 %v8838_v20, %s12782_s25  ;;  %v17327_v26 = vld [vmem:[#allocation2 + $0x108] sm:$0xff] }
 0x997   : > { %8807 = vst.msk [vmem:[#allocation3 + $0xb8] sm:$0xff] %vm603_vm0, %v17321_v35  ;;  %v12193_v4 = vpop.f32.mrb[88].mxu0  ;;  %8806 = vst.msk [vmem:[#allocation3 + $0xb0] sm:$0xff] %vm603_vm0, %v17327_v26 }
 0x998   : > { %v12551_v1 = vadd.f32 %v12193_v4, %v17115_v53  ;;  %v8280_v38 = vpop.f32.mrb[89].mxu0 }
 0x999   : > { %v12552_v41 = vadd.f32 %v17115_v53, %v8280_v38 }
 0x99a   : > { %vm8642_vm1 = vcmp.ge.f32.partialorder %v12551_v1, 0.0  ;;  %v8681_v55 = vmul.f32 %v12551_v1, %v17120_v15 }
 0x99b   : > { %vm8641_vm3 = vcmp.ge.f32.partialorder %v12552_v41, 0.0  ;;  %v8680_v24 = vmul.f32 %v12552_v41, %v17120_v15 }
 0x99c   : > { %v8713_v14 = vsel %vm8642_vm1, %v12551_v1, %v8681_v55  ;;  %v8841_v2 = vld [vmem:[#allocation2 + $0x129] sm:$0xff] }
 0x99d   : > { %8745 = vst.msk [vmem:[#allocation2 + $0x141] sm:$0xff] %vm603_vm0, %v8713_v14  ;;  %v8712_v56 = vsel %vm8641_vm3, %v12552_v41, %v8680_v24  ;;  %8930 = vrot.lane.b32.xlu1 %v8841_v2, %s12782_s25  ;;  %v8840_v46 = vld [vmem:[#allocation2 + $0x121] sm:$0xff] }
 0x99e   : > { %v8777_v59 = vld [vmem:[#allocation2 + $0x128] sm:$0xff]  ;;  %8744 = vst.msk [vmem:[#allocation2 + $0x139] sm:$0xff] %vm603_vm0, %v8712_v56  ;;  %8928 = vrot.lane.b32.xlu0 %v8840_v46, %s12782_s25  ;;  %v17340_v13 = vld [vmem:[#allocation2 + $0x120] sm:$0xff] }
 0x99f   : > { %8809 = vst.msk [vmem:[#allocation3 + $0xc8] sm:$0xff] %vm603_vm0, %v8777_v59  ;;  %v12196_v12 = vpop.f32.mrb[90].mxu0  ;;  %8808 = vst.msk [vmem:[#allocation3 + $0xc0] sm:$0xff] %vm603_vm0, %v17340_v13 }
 0x9a0   : > { %v12553_v11 = vadd.f32 %v12196_v12, %v17115_v53  ;;  %v8290_v7 = vpop.f32.mrb[91].mxu0 }
 0x9a1   : > { %v12554_v23 = vadd.f32 %v17115_v53, %v8290_v7  ;;  %v9009_v7 = vld [vmem:[#allocation2 + $0xa] sm:$0xff] }
 0x9a2   : > { %vm8644_vm4 = vcmp.ge.f32.partialorder %v12553_v11, 0.0  ;;  %v8683_v61 = vmul.f32 %v12553_v11, %v17120_v15 }
 0x9a3   : > { %vm8643_vm5 = vcmp.ge.f32.partialorder %v12554_v23, 0.0  ;;  %v8682_v32 = vmul.f32 %v12554_v23, %v17120_v15 }
 0x9a4   : > { %v8715_v29 = vsel %vm8644_vm4, %v12553_v11, %v8683_v61  ;;  %v8843_v36 = vld [vmem:[#allocation2 + $0x141] sm:$0xff] }
 0x9a5   : > { %8747 = vst.msk [vmem:[#allocation2 + $0x159] sm:$0xff] %vm603_vm0, %v8715_v29  ;;  %v8714_v49 = vsel %vm8643_vm5, %v12554_v23, %v8682_v32  ;;  %8934 = vrot.lane.b32.xlu1 %v8843_v36, %s12782_s25  ;;  %v8842_v10 = vld [vmem:[#allocation2 + $0x139] sm:$0xff]  ;;  %v9008_v32 = vld [vmem:[#allocation2 + $0x2] sm:$0xff] }
 0x9a6   : > { %v8779_v51 = vld [vmem:[#allocation2 + $0x140] sm:$0xff]  ;;  %8746 = vst.msk [vmem:[#allocation2 + $0x151] sm:$0xff] %vm603_vm0, %v8714_v49  ;;  %8932 = vrot.lane.b32.xlu0 %v8842_v10, %s12782_s25  ;;  %v8778_v34 = vld [vmem:[#allocation2 + $0x138] sm:$0xff] }
 0x9a7   : > { %8811 = vst.msk [vmem:[#allocation3 + $0xd8] sm:$0xff] %vm603_vm0, %v8779_v51  ;;  %8810 = vst.msk [vmem:[#allocation3 + $0xd0] sm:$0xff] %vm603_vm0, %v8778_v34  ;;  %v17378_v49 = vld [vmem:[#allocation2 + $0x22] sm:$0xff]  ;;  %v17388_v34 = vld [vmem:[#allocation2 + $0x3a] sm:$0xff] }
 0x9a8   : > { %v12199_v48 = vpop.f32.mrb[92].mxu0 }
 0x9a9   : > { %v12555_v5 = vadd.f32 %v12199_v48, %v17115_v53  ;;  %v8300_v54 = vpop.f32.mrb[93].mxu0  ;;  %v17392_v48 = vld [vmem:[#allocation2 + $0x32] sm:$0xff] }
 0x9aa   : > { %v12556_v8 = vadd.f32 %v17115_v53, %v8300_v54  ;;  %v17400_v54 = vld [vmem:[#allocation2 + $0x4a] sm:$0xff] }
 0x9ab   : > { %vm8646_vm15 = vcmp.ge.f32.partialorder %v12555_v5, 0.0  ;;  %v8685_v28 = vmul.f32 %v12555_v5, %v17120_v15 }
 0x9ac   : > { %vm8645_vm1 = vcmp.ge.f32.partialorder %v12556_v8, 0.0  ;;  %v8684_v30 = vmul.f32 %v12556_v8, %v17120_v15  ;;  %v8845_v21 = vld [vmem:[#allocation2 + $0x159] sm:$0xff] }
 0x9ad   : > { %v8717_v20 = vsel %vm8646_vm15, %v12555_v5, %v8685_v28  ;;  %8938 = vrot.lane.b32.xlu1 %v8845_v21, %s12782_s25  ;;  %v8844_v4 = vld [vmem:[#allocation2 + $0x151] sm:$0xff]  ;;  %v17410_v21 = vld [vmem:[#allocation2 + $0x62] sm:$0xff] }
 0x9ae   : > { %v8781_v1 = vld [vmem:[#allocation2 + $0x158] sm:$0xff]  ;;  %8749 = vst.msk [vmem:[#allocation2 + $0x171] sm:$0xff] %vm603_vm0, %v8717_v20  ;;  %v8716_v38 = vsel %vm8645_vm1, %v12556_v8, %v8684_v30  ;;  %8936 = vrot.lane.b32.xlu0 %v8844_v4, %s12782_s25  ;;  %v8780_v41 = vld [vmem:[#allocation2 + $0x150] sm:$0xff]  ;;  %v17414_v20 = vld [vmem:[#allocation2 + $0x82] sm:$0xff] }
 0x9af   : > { %8813 = vst.msk [vmem:[#allocation3 + $0xe8] sm:$0xff] %vm603_vm0, %v8781_v1  ;;  %8748 = vst.msk [vmem:[#allocation2 + $0x169] sm:$0xff] %vm603_vm0, %v8716_v38  ;;  %v17396_v5 = vld [vmem:[#allocation2 + $0x52] sm:$0xff]  ;;  %v17406_v30 = vld [vmem:[#allocation2 + $0x6a] sm:$0xff] }
 0x9b0   : > { %8812 = vst.msk [vmem:[#allocation3 + $0xe0] sm:$0xff] %vm603_vm0, %v8780_v41  ;;  %v17418_v4 = vld [vmem:[#allocation2 + $0x7a] sm:$0xff] }
 0x9b1   : > { %v17424_v41 = vld [vmem:[#allocation2 + $0x9a] sm:$0xff] }
 0x9b4   : > { %v12202_v55 = vpop.f32.mrb[94].mxu0 }
 0x9b5   : > { %v12557_v24 = vadd.f32 %v12202_v55, %v17115_v53  ;;  %v8310_v14 = vpop.f32.mrb[95].mxu0  ;;  %v8847_v2 = vld [vmem:[#allocation2 + $0x171] sm:$0xff] }
 0x9b6   : > { %v12558_v56 = vadd.f32 %v17115_v53, %v8310_v14  ;;  %8942 = vrot.lane.b32.xlu1 %v8847_v2, %s12782_s25  ;;  %v8846_v46 = vld [vmem:[#allocation2 + $0x169] sm:$0xff]  ;;  %v17428_v55 = vld [vmem:[#allocation2 + $0x92] sm:$0xff] }
 0x9b7   : > { %v8783_v59 = vld [vmem:[#allocation2 + $0x170] sm:$0xff]  ;;  %vm8648_vm3 = vcmp.ge.f32.partialorder %v12557_v24, 0.0  ;;  %v8687_v12 = vmul.f32 %v12557_v24, %v17120_v15  ;;  %v8887_v11 = vpop.permute.xlu1 %8886  ;;  %8940 = vrot.lane.b32.xlu0 %v8846_v46, %s12782_s25  ;;  %v8782_v23 = vld [vmem:[#allocation2 + $0x168] sm:$0xff]  ;;  %s18677_s25 = smov 16  }
 0x9b8   : > { %8815 = vst.msk [vmem:[#allocation3 + $0xf8] sm:$0xff] %vm603_vm0, %v8783_v59  ;;  %vm8647_vm4 = vcmp.ge.f32.partialorder %v12558_v56, 0.0  ;;  %v8686_v61 = vmul.f32 %v12558_v56, %v17120_v15  ;;  %v8885_v53 = vpop.permute.xlu0 %8884  ;;  %8814 = vst.msk [vmem:[#allocation3 + $0xf0] sm:$0xff] %vm603_vm0, %v8782_v23  ;;  %v17382_v15 = vld [vmem:[#allocation2 + $0x1a] sm:$0xff]  ;;  %v17436_v14 = vld [vmem:[#allocation2 + $0xaa] sm:$0xff] }
 0x9b9   : > { %8979 = vst.msk [vmem:[#allocation3 + $0x18] sm:$0xff] %vm3911_vm13, %v8887_v11  ;;  %v8719_v29 = vsel %vm8648_vm3, %v12557_v24, %v8687_v12  ;;  %8978 = vst.msk [vmem:[#allocation3 + $0x10] sm:$0xff] %vm3911_vm13, %v8885_v53  ;;  %v17432_v24 = vld [vmem:[#allocation2 + $0xb2] sm:$0xff]  ;;  %v17442_v46 = vld [vmem:[#allocation2 + $0xca] sm:$0xff] }
 0x9ba   : > { %8751 = vst.msk [vmem:[#allocation2 + $0x189] sm:$0xff] %vm603_vm0, %v8719_v29  ;;  %v8718_v36 = vsel %vm8647_vm4, %v12558_v56, %v8686_v61  ;;  %9074 = vrot.lane.b32.xlu1 %v9009_v7, %s18677_s25  ;;  %v17446_v59 = vld [vmem:[#allocation2 + $0xc2] sm:$0xff]  ;;  %v17454_v11 = vld [vmem:[#allocation2 + $0xda] sm:$0xff]  ;;  %v17461_v53 = vld [vmem:[#allocation2 + $0xf2] sm:$0xff] }
 0x9bb   : > { %8750 = vst.msk [vmem:[#allocation2 + $0x181] sm:$0xff] %vm603_vm0, %v8718_v36  ;;  %9072 = vrot.lane.b32.xlu0 %v9008_v32, %s18677_s25  ;;  %v17450_v12 = vld [vmem:[#allocation2 + $0xe2] sm:$0xff]  ;;  %v9029_v61 = vld [vmem:[#allocation2 + $0xfa] sm:$0xff]  ;;  %v9031_v32 = vld [vmem:[#allocation2 + $0x112] sm:$0xff] }
 0x9bc   : > { %v9030_v29 = vld [vmem:[#allocation2 + $0x10a] sm:$0xff] }
 0x9be   : > { %9078 = vrot.lane.b32.xlu1 %v17378_v49, %s18677_s25 }
 0x9bf   : > { %v8891_v10 = vpop.permute.xlu1 %8890  ;;  %9076 = vrot.lane.b32.xlu0 %v17382_v15, %s18677_s25 }
 0x9c0   : > { %8981 = vst.msk [vmem:[#allocation3 + $0x28] sm:$0xff] %vm3911_vm13, %v8891_v10  ;;  %v8889_v51 = vpop.permute.xlu0 %8888 }
 0x9c1   : > { %8980 = vst.msk [vmem:[#allocation3 + $0x20] sm:$0xff] %vm3911_vm13, %v8889_v51  ;;  %v9033_v51 = vld [vmem:[#allocation2 + $0x12a] sm:$0xff] }
 0x9c2   : > { %9082 = vrot.lane.b32.xlu1 %v17388_v34, %s18677_s25 }
 0x9c3   : > { %9080 = vrot.lane.b32.xlu0 %v17392_v48, %s18677_s25 }
 0x9c6   : > { %9086 = vrot.lane.b32.xlu1 %v17396_v5, %s18677_s25 }
 0x9c7   : > { %v8895_v8 = vpop.permute.xlu1 %8894  ;;  %9084 = vrot.lane.b32.xlu0 %v17400_v54, %s18677_s25 }
 0x9c8   : > { %8983 = vst.msk [vmem:[#allocation3 + $0x38] sm:$0xff] %vm3911_vm13, %v8895_v8  ;;  %v8893_v28 = vpop.permute.xlu0 %8892  ;;  %v9032_v8 = vld [vmem:[#allocation2 + $0x122] sm:$0xff] }
 0x9c9   : > { %8982 = vst.msk [vmem:[#allocation3 + $0x30] sm:$0xff] %vm3911_vm13, %v8893_v28  ;;  %v9035_v28 = vld [vmem:[#allocation2 + $0x142] sm:$0xff] }
 0x9ca   : > { %9090 = vrot.lane.b32.xlu1 %v17406_v30, %s18677_s25 }
 0x9cb   : > { %9088 = vrot.lane.b32.xlu0 %v17410_v21, %s18677_s25 }
 0x9ce   : > { %9094 = vrot.lane.b32.xlu1 %v17414_v20, %s18677_s25 }
 0x9cf   : > { %v8899_v1 = vpop.permute.xlu1 %8898  ;;  %9092 = vrot.lane.b32.xlu0 %v17418_v4, %s18677_s25 }
 0x9d0   : > { %8985 = vst.msk [vmem:[#allocation3 + $0x48] sm:$0xff] %vm3911_vm13, %v8899_v1  ;;  %v8897_v38 = vpop.permute.xlu0 %8896  ;;  %v9034_v1 = vld [vmem:[#allocation2 + $0x13a] sm:$0xff] }
 0x9d1   : > { %8984 = vst.msk [vmem:[#allocation3 + $0x40] sm:$0xff] %vm3911_vm13, %v8897_v38 }
 0x9d2   : > { %9098 = vrot.lane.b32.xlu1 %v17424_v41, %s18677_s25 }
 0x9d3   : > { %9096 = vrot.lane.b32.xlu0 %v17428_v55, %s18677_s25 }
 0x9d6   : > { %9102 = vrot.lane.b32.xlu1 %v17432_v24, %s18677_s25 }
 0x9d7   : > { %v8903_v2 = vpop.permute.xlu1 %8902  ;;  %9100 = vrot.lane.b32.xlu0 %v17436_v14, %s18677_s25 }
 0x9d8   : > { %8987 = vst.msk [vmem:[#allocation3 + $0x58] sm:$0xff] %vm3911_vm13, %v8903_v2  ;;  %v8901_v56 = vpop.permute.xlu0 %8900 }
 0x9d9   : > { %8986 = vst.msk [vmem:[#allocation3 + $0x50] sm:$0xff] %vm3911_vm13, %v8901_v56  ;;  %v9037_v56 = vld [vmem:[#allocation2 + $0x15a] sm:$0xff] }
 0x9da   : > { %9106 = vrot.lane.b32.xlu1 %v17442_v46, %s18677_s25 }
 0x9db   : > { %9104 = vrot.lane.b32.xlu0 %v17446_v59, %s18677_s25 }
 0x9de   : > { %9110 = vrot.lane.b32.xlu1 %v17450_v12, %s18677_s25 }
 0x9df   : > { %v8907_v7 = vpop.permute.xlu1 %8906  ;;  %9108 = vrot.lane.b32.xlu0 %v17454_v11, %s18677_s25 }
 0x9e0   : > { %8989 = vst.msk [vmem:[#allocation3 + $0x68] sm:$0xff] %vm3911_vm13, %v8907_v7  ;;  %v8905_v23 = vpop.permute.xlu0 %8904  ;;  %v9036_v7 = vld [vmem:[#allocation2 + $0x152] sm:$0xff] }
 0x9e1   : > { %8988 = vst.msk [vmem:[#allocation3 + $0x60] sm:$0xff] %vm3911_vm13, %v8905_v23  ;;  %v9039_v23 = vld [vmem:[#allocation2 + $0x172] sm:$0xff] }
 0x9e2   : > { %9114 = vrot.lane.b32.xlu1 %v9029_v61, %s18677_s25  ;;  %v9038_v61 = vld [vmem:[#allocation2 + $0x16a] sm:$0xff] }
 0x9e3   : > { %9112 = vrot.lane.b32.xlu0 %v17461_v53, %s18677_s25 }
 0x9e6   : > { %9118 = vrot.lane.b32.xlu1 %v9031_v32, %s18677_s25 }
 0x9e7   : > { %v8911_v36 = vpop.permute.xlu1 %8910  ;;  %9116 = vrot.lane.b32.xlu0 %v9030_v29, %s18677_s25 }
 0x9e8   : > { %8991 = vst.msk [vmem:[#allocation3 + $0x78] sm:$0xff] %vm3911_vm13, %v8911_v36  ;;  %v8909_v10 = vpop.permute.xlu0 %8908 }
 0x9e9   : > { %8990 = vst.msk [vmem:[#allocation3 + $0x70] sm:$0xff] %vm3911_vm13, %v8909_v10 }
 0x9ea   : > { %9122 = vrot.lane.b32.xlu1 %v9033_v51, %s18677_s25 }
 0x9eb   : > { %9120 = vrot.lane.b32.xlu0 %v9032_v8, %s18677_s25 }
 0x9ee   : > { %9126 = vrot.lane.b32.xlu1 %v9035_v28, %s18677_s25 }
 0x9ef   : > { %v8915_v38 = vpop.permute.xlu1 %8914  ;;  %9124 = vrot.lane.b32.xlu0 %v9034_v1, %s18677_s25 }
 0x9f0   : > { %8993 = vst.msk [vmem:[#allocation3 + $0x88] sm:$0xff] %vm3911_vm13, %v8915_v38  ;;  %v8913_v2 = vpop.permute.xlu0 %8912  ;;  %v10384_v38 = vld [vmem:[%s18259_s18] sm:$0xff] }
 0x9f1   : > { %8992 = vst.msk [vmem:[#allocation3 + $0x80] sm:$0xff] %vm3911_vm13, %v8913_v2  ;;  %v10385_v2 = vld [vmem:[%s18259_s18 + $0x8] sm:$0xff] }
 0x9f2   : > { %9130 = vrot.lane.b32.xlu1 %v9037_v56, %s18677_s25  ;;  %v12447_v56 = vpack.c.bf16 %v10385_v2, %v10384_v38 }
 0x9f3   : > { %9128 = vrot.lane.b32.xlu0 %v9036_v7, %s18677_s25  ;;  %v10387_v7 = vld [vmem:[%s18259_s18 + $0x18] sm:$0xff] }
 0x9f4   : > { %12448 = vmatprep.subr.bf16.mxu1 %v12447_v56 }
 0x9f5   : > { %12450 = vmatpush3.bf16.msra.mxu1 %v12447_v56 }
 0x9f6   : > { %9134 = vrot.lane.b32.xlu1 %v9039_v23, %s18677_s25 }
 0x9f7   : > { %v8919_v32 = vpop.permute.xlu1 %8918  ;;  %9132 = vrot.lane.b32.xlu0 %v9038_v61, %s18677_s25 }
 0x9f8   : > { %8995 = vst.msk [vmem:[#allocation3 + $0x98] sm:$0xff] %vm3911_vm13, %v8919_v32  ;;  %v8917_v29 = vpop.permute.xlu0 %8916 }
 0x9f9   : > { %8994 = vst.msk [vmem:[#allocation3 + $0x90] sm:$0xff] %vm3911_vm13, %v8917_v29  ;;  %v10389_v29 = vld [vmem:[%s18259_s18 + $0x28] sm:$0xff] }
 0x9fa   : > { %9266 = vrot.lane.b32.xlu1 %v17142_v62, %s18678_s23 }
 0x9fb   : > { %9264 = vrot.lane.b32.xlu0 %v17144_v42, %s18678_s23 }
 0x9fe   : > { %9270 = vrot.lane.b32.xlu1 %v17164_v19, %s18678_s23 }
 0x9ff   : > { %v8923_v36 = vpop.permute.xlu1 %8922  ;;  %9268 = vrot.lane.b32.xlu0 %v17166_v33, %s18678_s23 }
 0xa00   : > { %8997 = vst.msk [vmem:[#allocation3 + $0xa8] sm:$0xff] %vm3911_vm13, %v8923_v36  ;;  %v8921_v10 = vpop.permute.xlu0 %8920  ;;  %v10391_v36 = vld [vmem:[%s18259_s18 + $0x38] sm:$0xff] }
 0xa01   : > { %8996 = vst.msk [vmem:[#allocation3 + $0xa0] sm:$0xff] %vm3911_vm13, %v8921_v10 }
 0xa02   : > { %9274 = vrot.lane.b32.xlu1 %v17186_v17, %s18678_s23 }
 0xa03   : > { %9272 = vrot.lane.b32.xlu0 %v17193_v27, %s18678_s23 }
 0xa06   : > { %9278 = vrot.lane.b32.xlu1 %v17208_v37, %s18678_s23 }
 0xa07   : > { %v8927_v62 = vpop.permute.xlu1 %8926  ;;  %9276 = vrot.lane.b32.xlu0 %v17215_v31, %s18678_s23 }
 0xa08   : > { %8999 = vst.msk [vmem:[#allocation3 + $0xb8] sm:$0xff] %vm3911_vm13, %v8927_v62  ;;  %v8925_v42 = vpop.permute.xlu0 %8924 }
 0xa09   : > { %8998 = vst.msk [vmem:[#allocation3 + $0xb0] sm:$0xff] %vm3911_vm13, %v8925_v42  ;;  %v10392_v42 = vld [vmem:[%s18259_s18 + $0x40] sm:$0xff] }
 0xa0a   : > { %9282 = vrot.lane.b32.xlu1 %v17225_v0, %s18678_s23 }
 0xa0b   : > { %9280 = vrot.lane.b32.xlu0 %v17231_v3, %s18678_s23 }
 0xa0e   : > { %9286 = vrot.lane.b32.xlu1 %v17241_v57, %s18678_s23 }
 0xa0f   : > { %v8931_v51 = vpop.permute.xlu1 %8930  ;;  %9284 = vrot.lane.b32.xlu0 %v17247_v6, %s18678_s23 }
 0xa10   : > { %9001 = vst.msk [vmem:[#allocation3 + $0xc8] sm:$0xff] %vm3911_vm13, %v8931_v51  ;;  %v8929_v8 = vpop.permute.xlu0 %8928 }
 0xa11   : > { %9000 = vst.msk [vmem:[#allocation3 + $0xc0] sm:$0xff] %vm3911_vm13, %v8929_v8 }
 0xa12   : > { %9290 = vrot.lane.b32.xlu1 %v17257_v18, %s18678_s23 }
 0xa13   : > { %9288 = vrot.lane.b32.xlu0 %v17263_v9, %s18678_s23 }
 0xa16   : > { %9294 = vrot.lane.b32.xlu1 %v17273_v44, %s18678_s23 }
 0xa17   : > { %v8935_v28 = vpop.permute.xlu1 %8934  ;;  %9292 = vrot.lane.b32.xlu0 %v17279_v47, %s18678_s23 }
 0xa18   : > { %9003 = vst.msk [vmem:[#allocation3 + $0xd8] sm:$0xff] %vm3911_vm13, %v8935_v28  ;;  %v8933_v1 = vpop.permute.xlu0 %8932 }
 0xa19   : > { %9002 = vst.msk [vmem:[#allocation3 + $0xd0] sm:$0xff] %vm3911_vm13, %v8933_v1 }
 0xa1a   : > { %9456 = vrot.lane.b32.xlu1 %v17140_v60, %s18679_s3  ;;  %v10386_v60 = vld [vmem:[%s18259_s18 + $0x10] sm:$0xff] }
 0xa1b   : > { %9296 = vrot.lane.b32.xlu0 %v17295_v22, %s18678_s23  ;;  %v12451_v61 = vpack.c.bf16 %v10387_v7, %v10386_v60 }
 0xa1d   : > { %12452 = vmatprep.subr.bf16.mxu1 %v12451_v61 }
 0xa1e   : > { %9648 = vrot.lane.b32.xlu1 %v17382_v15, %s18680_s24  ;;  %12454 = vmatpush3.bf16.msra.mxu1 %v12451_v61  ;;  %v10388_v15 = vld [vmem:[%s18259_s18 + $0x20] sm:$0xff] }
 0xa1f   : > { %v8939_v23 = vpop.permute.xlu1 %8938  ;;  %9458 = vrot.lane.b32.xlu0 %v17135_v25, %s18679_s3  ;;  %v12455_v25 = vpack.c.bf16 %v10389_v29, %v10388_v15  ;;  %v9974_v29 = vld [vmem:[#allocation2 + $0x79] sm:$0xff] }
 0xa20   : > { %9005 = vst.msk [vmem:[#allocation3 + $0xe8] sm:$0xff] %vm3911_vm13, %v8939_v23  ;;  %v8937_v32 = vpop.permute.xlu0 %8936 }
 0xa21   : > { %9004 = vst.msk [vmem:[#allocation3 + $0xe0] sm:$0xff] %vm3911_vm13, %v8937_v32  ;;  %12456 = vmatprep.subr.bf16.mxu1 %v12455_v25 }
 0xa22   : > { %9840 = vrot.lane.b32.xlu1 %v17166_v33, %s18676_s1  ;;  %12458 = vmatpush3.bf16.msra.mxu1 %v12455_v25  ;;  %v10390_v33 = vld [vmem:[%s18259_s18 + $0x30] sm:$0xff] }
 0xa23   : > { %9650 = vrot.lane.b32.xlu0 %v17378_v49, %s18680_s24  ;;  %v12459_v10 = vpack.c.bf16 %v10391_v36, %v10390_v33 }
 0xa25   : > { %12460 = vmatprep.subr.bf16.mxu1 %v12459_v10 }
 0xa26   : > { %10032 = vrot.lane.b32.xlu1 %v17162_v63, %s12791_s29  ;;  %12462 = vmatpush3.bf16.msra.mxu1 %v12459_v10 }
 0xa27   : > { %9842 = vrot.lane.b32.xlu0 %v17164_v19, %s18676_s1  ;;  %12285 = vmatprep.subr.mxu1 %v10392_v42 }
 0xa28   : > { %v8943_v62 = vpop.permute.xlu1 %8942 }
 0xa29   : > { %9007 = vst.msk [vmem:[#allocation3 + $0xf8] sm:$0xff] %vm3911_vm13, %v8943_v62  ;;  %v8941_v49 = vpop.permute.xlu0 %8940 }
 0xa2a   : > { %9006 = vst.msk [vmem:[#allocation3 + $0xf0] sm:$0xff] %vm3911_vm13, %v8941_v49  ;;  %10034 = vrot.lane.b32.xlu1 %v17157_v43, %s12791_s29  ;;  %12286 = vmatpush3.msra.mxu1 %v10392_v42 }
 0xa2b   : > { %9460 = vrot.lane.b32.xlu0 %v17162_v63, %s18679_s3 }
 0xa2c   : > { %v9075_v19 = vpop.permute.xlu1 %9074 }
 0xa2d   : > { %9169 = vst.msk [vmem:[#allocation3 + $0x8] sm:$0xff] %vm4104_vm6, %v9075_v19  ;;  %v9073_v51 = vpop.permute.xlu0 %9072  ;;  %v9976_v19 = vld [vmem:[#allocation2 + $0x91] sm:$0xff] }
 0xa2e   : > { %9168 = vst.msk [vmem:[#allocation3] sm:$0xff] %vm4104_vm6, %v9073_v51  ;;  %9462 = vrot.lane.b32.xlu1 %v17157_v43, %s18679_s3 }
 0xa2f   : > { %10224 = vrot.lane.b32.xlu0 %v17392_v48, %s18681_s21 }
 0xa30   : > { %v9079_v8 = vpop.permute.xlu1 %9078 }
 0xa31   : > { %9171 = vst.msk [vmem:[#allocation3 + $0x18] sm:$0xff] %vm4104_vm6, %v9079_v8  ;;  %v9077_v28 = vpop.permute.xlu0 %9076 }
 0xa32   : > { %9170 = vst.msk [vmem:[#allocation3 + $0x10] sm:$0xff] %vm4104_vm6, %v9077_v28  ;;  %10226 = vrot.lane.b32.xlu1 %v17388_v34, %s18681_s21 }
 0xa33   : > { %9652 = vrot.lane.b32.xlu0 %v17392_v48, %s18680_s24 }
 0xa34   : > { %v9083_v63 = vpop.permute.xlu1 %9082 }
 0xa35   : > { %9173 = vst.msk [vmem:[#allocation3 + $0x28] sm:$0xff] %vm4104_vm6, %v9083_v63  ;;  %v9081_v43 = vpop.permute.xlu0 %9080 }
 0xa36   : > { %9172 = vst.msk [vmem:[#allocation3 + $0x20] sm:$0xff] %vm4104_vm6, %v9081_v43  ;;  %9844 = vrot.lane.b32.xlu1 %v17193_v27, %s18676_s1 }
 0xa37   : > { %9654 = vrot.lane.b32.xlu0 %v17388_v34, %s18680_s24 }
 0xa38   : > { %v9087_v1 = vpop.permute.xlu1 %9086 }
 0xa39   : > { %9175 = vst.msk [vmem:[#allocation3 + $0x38] sm:$0xff] %vm4104_vm6, %v9087_v1  ;;  %v9085_v38 = vpop.permute.xlu0 %9084 }
 0xa3a   : > { %9174 = vst.msk [vmem:[#allocation3 + $0x30] sm:$0xff] %vm4104_vm6, %v9085_v38  ;;  %10036 = vrot.lane.b32.xlu1 %v17184_v39, %s12791_s29 }
 0xa3b   : > { %9846 = vrot.lane.b32.xlu0 %v17186_v17, %s18676_s1 }
 0xa3c   : > { %v9091_v48 = vpop.permute.xlu1 %9090 }
 0xa3d   : > { %9177 = vst.msk [vmem:[#allocation3 + $0x48] sm:$0xff] %vm4104_vm6, %v9091_v48  ;;  %v9089_v2 = vpop.permute.xlu0 %9088  ;;  %v9978_v48 = vld [vmem:[#allocation2 + $0xa9] sm:$0xff] }
 0xa3e   : > { %9176 = vst.msk [vmem:[#allocation3 + $0x40] sm:$0xff] %vm4104_vm6, %v9089_v2  ;;  %10038 = vrot.lane.b32.xlu1 %v17179_v16, %s12791_s29 }
 0xa3f   : > { %9464 = vrot.lane.b32.xlu0 %v17184_v39, %s18679_s3 }
 0xa40   : > { %v9095_v27 = vpop.permute.xlu1 %9094 }
 0xa41   : > { %9179 = vst.msk [vmem:[#allocation3 + $0x58] sm:$0xff] %vm4104_vm6, %v9095_v27  ;;  %v9093_v34 = vpop.permute.xlu0 %9092 }
 0xa42   : > { %9178 = vst.msk [vmem:[#allocation3 + $0x50] sm:$0xff] %vm4104_vm6, %v9093_v34  ;;  %9466 = vrot.lane.b32.xlu1 %v17179_v16, %s18679_s3 }
 0xa43   : > { %10228 = vrot.lane.b32.xlu0 %v17400_v54, %s18681_s21 }
 0xa44   : > { %v9099_v17 = vpop.permute.xlu1 %9098 }
 0xa45   : > { %9181 = vst.msk [vmem:[#allocation3 + $0x68] sm:$0xff] %vm4104_vm6, %v9099_v17  ;;  %v9097_v56 = vpop.permute.xlu0 %9096 }
 0xa46   : > { %9180 = vst.msk [vmem:[#allocation3 + $0x60] sm:$0xff] %vm4104_vm6, %v9097_v56  ;;  %10230 = vrot.lane.b32.xlu1 %v17396_v5, %s18681_s21 }
 0xa47   : > { %9656 = vrot.lane.b32.xlu0 %v17400_v54, %s18680_s24 }
 0xa48   : > { %v9103_v39 = vpop.permute.xlu1 %9102 }
 0xa49   : > { %9183 = vst.msk [vmem:[#allocation3 + $0x78] sm:$0xff] %vm4104_vm6, %v9103_v39  ;;  %v9101_v60 = vpop.permute.xlu0 %9100 }
 0xa4a   : > { %9182 = vst.msk [vmem:[#allocation3 + $0x70] sm:$0xff] %vm4104_vm6, %v9101_v60  ;;  %9848 = vrot.lane.b32.xlu1 %v17215_v31, %s18676_s1 }
 0xa4b   : > { %9658 = vrot.lane.b32.xlu0 %v17396_v5, %s18680_s24 }
 0xa4c   : > { %v9107_v16 = vpop.permute.xlu1 %9106 }
 0xa4d   : > { %9185 = vst.msk [vmem:[#allocation3 + $0x88] sm:$0xff] %vm4104_vm6, %v9107_v16  ;;  %v9105_v7 = vpop.permute.xlu0 %9104  ;;  %v9980_v16 = vld [vmem:[#allocation2 + $0xc1] sm:$0xff] }
 0xa4e   : > { %9184 = vst.msk [vmem:[#allocation3 + $0x80] sm:$0xff] %vm4104_vm6, %v9105_v7  ;;  %10040 = vrot.lane.b32.xlu1 %v17206_v45, %s12791_s29 }
 0xa4f   : > { %9850 = vrot.lane.b32.xlu0 %v17208_v37, %s18676_s1 }
 0xa50   : > { %v9111_v54 = vpop.permute.xlu1 %9110 }
 0xa51   : > { %9187 = vst.msk [vmem:[#allocation3 + $0x98] sm:$0xff] %vm4104_vm6, %v9111_v54  ;;  %v9109_v23 = vpop.permute.xlu0 %9108 }
 0xa52   : > { %9186 = vst.msk [vmem:[#allocation3 + $0x90] sm:$0xff] %vm4104_vm6, %v9109_v23  ;;  %10042 = vrot.lane.b32.xlu1 %v17201_v40, %s12791_s29 }
 0xa53   : > { %9468 = vrot.lane.b32.xlu0 %v17206_v45, %s18679_s3 }
 0xa54   : > { %v9115_v31 = vpop.permute.xlu1 %9114 }
 0xa55   : > { %9189 = vst.msk [vmem:[#allocation3 + $0xa8] sm:$0xff] %vm4104_vm6, %v9115_v31  ;;  %v9113_v5 = vpop.permute.xlu0 %9112 }
 0xa56   : > { %9188 = vst.msk [vmem:[#allocation3 + $0xa0] sm:$0xff] %vm4104_vm6, %v9113_v5  ;;  %9470 = vrot.lane.b32.xlu1 %v17201_v40, %s18679_s3 }
 0xa57   : > { %10232 = vrot.lane.b32.xlu0 %v17410_v21, %s18681_s21 }
 0xa58   : > { %v9119_v37 = vpop.permute.xlu1 %9118 }
 0xa59   : > { %9191 = vst.msk [vmem:[#allocation3 + $0xb8] sm:$0xff] %vm4104_vm6, %v9119_v37  ;;  %v9117_v61 = vpop.permute.xlu0 %9116 }
 0xa5a   : > { %9190 = vst.msk [vmem:[#allocation3 + $0xb0] sm:$0xff] %vm4104_vm6, %v9117_v61  ;;  %10234 = vrot.lane.b32.xlu1 %v17406_v30, %s18681_s21 }
 0xa5b   : > { %9660 = vrot.lane.b32.xlu0 %v17410_v21, %s18680_s24 }
 0xa5c   : > { %v9123_v45 = vpop.permute.xlu1 %9122 }
 0xa5d   : > { %9193 = vst.msk [vmem:[#allocation3 + $0xc8] sm:$0xff] %vm4104_vm6, %v9123_v45  ;;  %v9121_v32 = vpop.permute.xlu0 %9120 }
 0xa5e   : > { %9192 = vst.msk [vmem:[#allocation3 + $0xc0] sm:$0xff] %vm4104_vm6, %v9121_v32  ;;  %9852 = vrot.lane.b32.xlu1 %v17231_v3, %s18676_s1  ;;  %v9975_v3 = vld [vmem:[#allocation2 + $0x81] sm:$0xff] }
 0xa5f   : > { %9662 = vrot.lane.b32.xlu0 %v17406_v30, %s18680_s24 }
 0xa60   : > { %v9127_v40 = vpop.permute.xlu1 %9126 }
 0xa61   : > { %9195 = vst.msk [vmem:[#allocation3 + $0xd8] sm:$0xff] %vm4104_vm6, %v9127_v40  ;;  %v9125_v15 = vpop.permute.xlu0 %9124 }
 0xa62   : > { %9194 = vst.msk [vmem:[#allocation3 + $0xd0] sm:$0xff] %vm4104_vm6, %v9125_v15  ;;  %10044 = vrot.lane.b32.xlu1 %v9974_v29, %s12791_s29 }
 0xa63   : > { %9854 = vrot.lane.b32.xlu0 %v17225_v0, %s18676_s1 }
 0xa64   : > { %v9131_v21 = vpop.permute.xlu1 %9130 }
 0xa65   : > { %9197 = vst.msk [vmem:[#allocation3 + $0xe8] sm:$0xff] %vm4104_vm6, %v9131_v21  ;;  %v9129_v25 = vpop.permute.xlu0 %9128 }
 0xa66   : > { %9196 = vst.msk [vmem:[#allocation3 + $0xe0] sm:$0xff] %vm4104_vm6, %v9129_v25  ;;  %10046 = vrot.lane.b32.xlu1 %v9975_v3, %s12791_s29 }
 0xa67   : > { %9472 = vrot.lane.b32.xlu0 %v9974_v29, %s18679_s3  ;;  %v9983_v29 = vld [vmem:[#allocation2 + $0xe1] sm:$0xff] }
 0xa68   : > { %v9135_v30 = vpop.permute.xlu1 %9134 }
 0xa69   : > { %9199 = vst.msk [vmem:[#allocation3 + $0xf8] sm:$0xff] %vm4104_vm6, %v9135_v30  ;;  %v9133_v33 = vpop.permute.xlu0 %9132 }
 0xa6a   : > { %9198 = vst.msk [vmem:[#allocation3 + $0xf0] sm:$0xff] %vm4104_vm6, %v9133_v33  ;;  %9474 = vrot.lane.b32.xlu1 %v9975_v3, %s18679_s3 }
 0xa6b   : > { %10236 = vrot.lane.b32.xlu0 %v17418_v4, %s18681_s21 }
 0xa6c   : > { %v9267_v0 = vpop.permute.xlu1 %9266 }
 0xa6d   : > { %9361 = vst.msk [vmem:[#allocation3 + $0x8] sm:$0xff] %vm4297_vm7, %v9267_v0  ;;  %v9265_v36 = vpop.permute.xlu0 %9264 }
 0xa6e   : > { %9360 = vst.msk [vmem:[#allocation3] sm:$0xff] %vm4297_vm7, %v9265_v36  ;;  %10238 = vrot.lane.b32.xlu1 %v17414_v20, %s18681_s21 }
 0xa6f   : > { %9664 = vrot.lane.b32.xlu0 %v17418_v4, %s18680_s24 }
 0xa70   : > { %v9271_v10 = vpop.permute.xlu1 %9270 }
 0xa71   : > { %9363 = vst.msk [vmem:[#allocation3 + $0x18] sm:$0xff] %vm4297_vm7, %v9271_v10  ;;  %v9269_v62 = vpop.permute.xlu0 %9268 }
 0xa72   : > { %9362 = vst.msk [vmem:[#allocation3 + $0x10] sm:$0xff] %vm4297_vm7, %v9269_v62  ;;  %9856 = vrot.lane.b32.xlu1 %v17247_v6, %s18676_s1  ;;  %v9977_v6 = vld [vmem:[#allocation2 + $0x99] sm:$0xff]  ;;  %v9984_v62 = vld [vmem:[#allocation2 + $0xf1] sm:$0xff] }
 0xa73   : > { %9666 = vrot.lane.b32.xlu0 %v17414_v20, %s18680_s24 }
 0xa74   : > { %v9275_v49 = vpop.permute.xlu1 %9274 }
 0xa75   : > { %9365 = vst.msk [vmem:[#allocation3 + $0x28] sm:$0xff] %vm4297_vm7, %v9275_v49  ;;  %v9273_v42 = vpop.permute.xlu0 %9272 }
 0xa76   : > { %9364 = vst.msk [vmem:[#allocation3 + $0x20] sm:$0xff] %vm4297_vm7, %v9273_v42  ;;  %10048 = vrot.lane.b32.xlu1 %v9976_v19, %s12791_s29 }
 0xa77   : > { %9858 = vrot.lane.b32.xlu0 %v17241_v57, %s18676_s1 }
 0xa78   : > { %v9279_v4 = vpop.permute.xlu1 %9278 }
 0xa79   : > { %9367 = vst.msk [vmem:[#allocation3 + $0x38] sm:$0xff] %vm4297_vm7, %v9279_v4  ;;  %v9277_v51 = vpop.permute.xlu0 %9276  ;;  %v9985_v4 = vld [vmem:[#allocation2 + $0xf9] sm:$0xff] }
 0xa7a   : > { %9366 = vst.msk [vmem:[#allocation3 + $0x30] sm:$0xff] %vm4297_vm7, %v9277_v51  ;;  %10050 = vrot.lane.b32.xlu1 %v9977_v6, %s12791_s29 }
 0xa7b   : > { %9476 = vrot.lane.b32.xlu0 %v9976_v19, %s18679_s3 }
 0xa7c   : > { %v9283_v20 = vpop.permute.xlu1 %9282 }
 0xa7d   : > { %9369 = vst.msk [vmem:[#allocation3 + $0x48] sm:$0xff] %vm4297_vm7, %v9283_v20  ;;  %v9281_v8 = vpop.permute.xlu0 %9280  ;;  %v9602_v20 = vld [vmem:[#allocation2 + $0xf2] sm:$0xff] }
 0xa7e   : > { %9368 = vst.msk [vmem:[#allocation3 + $0x40] sm:$0xff] %vm4297_vm7, %v9281_v8  ;;  %9478 = vrot.lane.b32.xlu1 %v9977_v6, %s18679_s3 }
 0xa7f   : > { %10240 = vrot.lane.b32.xlu0 %v17428_v55, %s18681_s21 }
 0xa80   : > { %v9287_v57 = vpop.permute.xlu1 %9286 }
 0xa81   : > { %9371 = vst.msk [vmem:[#allocation3 + $0x58] sm:$0xff] %vm4297_vm7, %v9287_v57  ;;  %v9285_v28 = vpop.permute.xlu0 %9284  ;;  %v9603_v57 = vld [vmem:[#allocation2 + $0xfa] sm:$0xff] }
 0xa82   : > { %9370 = vst.msk [vmem:[#allocation3 + $0x50] sm:$0xff] %vm4297_vm7, %v9285_v28  ;;  %10242 = vrot.lane.b32.xlu1 %v17424_v41, %s18681_s21 }
 0xa83   : > { %9668 = vrot.lane.b32.xlu0 %v17428_v55, %s18680_s24 }
 0xa84   : > { %v9291_v63 = vpop.permute.xlu1 %9290 }
 0xa85   : > { %9373 = vst.msk [vmem:[#allocation3 + $0x68] sm:$0xff] %vm4297_vm7, %v9291_v63  ;;  %v9289_v43 = vpop.permute.xlu0 %9288 }
 0xa86   : > { %9372 = vst.msk [vmem:[#allocation3 + $0x60] sm:$0xff] %vm4297_vm7, %v9289_v43  ;;  %9860 = vrot.lane.b32.xlu1 %v17263_v9, %s18676_s1  ;;  %v9979_v9 = vld [vmem:[#allocation2 + $0xb1] sm:$0xff] }
 0xa87   : > { %9670 = vrot.lane.b32.xlu0 %v17424_v41, %s18680_s24 }
 0xa88   : > { %v9295_v1 = vpop.permute.xlu1 %9294 }
 0xa89   : > { %9375 = vst.msk [vmem:[#allocation3 + $0x78] sm:$0xff] %vm4297_vm7, %v9295_v1  ;;  %v9293_v38 = vpop.permute.xlu0 %9292 }
 0xa8a   : > { %9374 = vst.msk [vmem:[#allocation3 + $0x70] sm:$0xff] %vm4297_vm7, %v9293_v38  ;;  %10052 = vrot.lane.b32.xlu1 %v9978_v48, %s12791_s29  ;;  %v9986_v38 = vld [vmem:[#allocation2 + $0x109] sm:$0xff] }
 0xa8b   : > { %9862 = vrot.lane.b32.xlu0 %v17257_v18, %s18676_s1 }
 0xa8c   : > { %v9457_v55 = vpop.permute.xlu1 %9456 }
 0xa8d   : > { %9552 = vst.msk [vmem:[#allocation3] sm:$0xff] %vm4490_vm8, %v9457_v55  ;;  %v9297_v2 = vpop.permute.xlu0 %9296 }
 0xa8e   : > { %9376 = vst.msk [vmem:[#allocation3 + $0x80] sm:$0xff] %vm4297_vm7, %v9297_v2  ;;  %10054 = vrot.lane.b32.xlu1 %v9979_v9, %s12791_s29 }
 0xa8f   : > { %9480 = vrot.lane.b32.xlu0 %v9978_v48, %s18679_s3 }
 0xa90   : > { %v9649_v41 = vpop.permute.xlu1 %9648 }
 0xa91   : > { %9744 = vst.msk [vmem:[#allocation3] sm:$0xff] %vm4683_vm9, %v9649_v41  ;;  %v9459_v27 = vpop.permute.xlu0 %9458 }
 0xa92   : > { %9553 = vst.msk [vmem:[#allocation3 + $0x8] sm:$0xff] %vm4490_vm8, %v9459_v27  ;;  %9482 = vrot.lane.b32.xlu1 %v9979_v9, %s18679_s3  ;;  %v10178_v27 = vld [vmem:[#allocation2 + $0x10a] sm:$0xff] }
 0xa93   : > { %10244 = vrot.lane.b32.xlu0 %v17436_v14, %s18681_s21 }
 0xa94   : > { %v9841_v18 = vpop.permute.xlu1 %9840 }
 0xa95   : > { %9936 = vst.msk [vmem:[#allocation3] sm:$0xff] %vm4876_vm10, %v9841_v18  ;;  %v9651_v34 = vpop.permute.xlu0 %9650  ;;  %v9987_v18 = vld [vmem:[#allocation2 + $0x111] sm:$0xff] }
 0xa96   : > { %9745 = vst.msk [vmem:[#allocation3 + $0x8] sm:$0xff] %vm4683_vm9, %v9651_v34  ;;  %10246 = vrot.lane.b32.xlu1 %v17432_v24, %s18681_s21 }
 0xa97   : > { %9672 = vrot.lane.b32.xlu0 %v17436_v14, %s18680_s24 }
 0xa98   : > { %v10033_v17 = vpop.permute.xlu1 %10032 }
 0xa99   : > { %10128 = vst.msk [vmem:[#allocation3] sm:$0xff] %vm5069_vm11, %v10033_v17  ;;  %v9843_v56 = vpop.permute.xlu0 %9842 }
 0xa9a   : > { %9937 = vst.msk [vmem:[#allocation3 + $0x8] sm:$0xff] %vm4876_vm10, %v9843_v56  ;;  %9864 = vrot.lane.b32.xlu1 %v17279_v47, %s18676_s1  ;;  %v9981_v47 = vld [vmem:[#allocation2 + $0xc9] sm:$0xff] }
 0xa9b   : > { %9674 = vrot.lane.b32.xlu0 %v17432_v24, %s18680_s24 }
 0xa9c   : > { %v10035_v39 = vpop.permute.xlu1 %10034 }
 0xa9d   : > { %10129 = vst.msk [vmem:[#allocation3 + $0x8] sm:$0xff] %vm5069_vm11, %v10035_v39  ;;  %v9461_v60 = vpop.permute.xlu0 %9460  ;;  %v9605_v39 = vld [vmem:[#allocation2 + $0x112] sm:$0xff] }
 0xa9e   : > { %9554 = vst.msk [vmem:[#allocation3 + $0x10] sm:$0xff] %vm4490_vm8, %v9461_v60  ;;  %10056 = vrot.lane.b32.xlu1 %v9980_v16, %s12791_s29 }
 0xa9f   : > { %9866 = vrot.lane.b32.xlu0 %v17273_v44, %s18676_s1 }
 0xaa0   : > { %v9463_v14 = vpop.permute.xlu1 %9462 }
 0xaa1   : > { %9555 = vst.msk [vmem:[#allocation3 + $0x18] sm:$0xff] %vm4490_vm8, %v9463_v14  ;;  %v10225_v7 = vpop.permute.xlu0 %10224 }
 0xaa2   : > { %10320 = vst.msk [vmem:[#allocation3] sm:$0xff] %vm5262_vm12, %v10225_v7  ;;  %10058 = vrot.lane.b32.xlu1 %v9981_v47, %s12791_s29 }
 0xaa3   : > { %9484 = vrot.lane.b32.xlu0 %v9980_v16, %s18679_s3 }
 0xaa4   : > { %v10227_v24 = vpop.permute.xlu1 %10226 }
 0xaa5   : > { %10321 = vst.msk [vmem:[#allocation3 + $0x8] sm:$0xff] %vm5262_vm12, %v10227_v24  ;;  %v9653_v54 = vpop.permute.xlu0 %9652 }
 0xaa6   : > { %9746 = vst.msk [vmem:[#allocation3 + $0x10] sm:$0xff] %vm4683_vm9, %v9653_v54  ;;  %9486 = vrot.lane.b32.xlu1 %v9981_v47, %s18679_s3  ;;  %v9988_v47 = vld [vmem:[#allocation2 + $0x121] sm:$0xff] }
 0xaa7   : > { %10248 = vrot.lane.b32.xlu0 %v17446_v59, %s18681_s21  ;;  %v9797_v54 = vld [vmem:[#allocation2 + $0x128] sm:$0xff] }
 0xaa8   : > { %v9845_v44 = vpop.permute.xlu1 %9844 }
 0xaa9   : > { %9938 = vst.msk [vmem:[#allocation3 + $0x10] sm:$0xff] %vm4876_vm10, %v9845_v44  ;;  %v9655_v23 = vpop.permute.xlu0 %9654  ;;  %v10352_v31 = vld [vmem:[#allocation3] sm:$0xff] }
 0xaaa   : > { %9747 = vst.msk [vmem:[#allocation3 + $0x18] sm:$0xff] %vm4683_vm9, %v9655_v23  ;;  %10250 = vrot.lane.b32.xlu1 %v17442_v46, %s18681_s21  ;;  %12287 = vmatprep.mubr.msk.f32.mxu1 %vm5336_vm14, %v10352_v31 }
 0xaab   : > { %9676 = vrot.lane.b32.xlu0 %v17446_v59, %s18680_s24  ;;  %v9982_v59 = vld [vmem:[#allocation2 + $0xd9] sm:$0xff] }
 0xaac   : > { %v10037_v5 = vpop.permute.xlu1 %10036  ;;  %v10353_v37 = vld [vmem:[#allocation3 + $0x8] sm:$0xff] }
 0xaad   : > { %10130 = vst.msk [vmem:[#allocation3 + $0x10] sm:$0xff] %vm5069_vm11, %v10037_v5  ;;  %12288 = vmatmul.mubr.msk.f32.vlgmr.msra.gmra.mrb[0].mxu1 %vm5336_vm14, %v10353_v37  ;;  %v9847_v61 = vpop.permute.xlu0 %9846  ;;  %v10180_v37 = vld [vmem:[#allocation2 + $0x122] sm:$0xff] }
 0xaae   : > { %9939 = vst.msk [vmem:[#allocation3 + $0x18] sm:$0xff] %vm4876_vm10, %v9847_v61  ;;  %9868 = vrot.lane.b32.xlu1 %v17295_v22, %s18676_s1  ;;  %v9989_v61 = vld [vmem:[#allocation2 + $0x129] sm:$0xff] }
 0xaaf   : > { %9678 = vrot.lane.b32.xlu0 %v17442_v46, %s18680_s24 }
 0xab0   : > { %v10039_v45 = vpop.permute.xlu1 %10038 }
 0xab1   : > { %10131 = vst.msk [vmem:[#allocation3 + $0x18] sm:$0xff] %vm5069_vm11, %v10039_v45  ;;  %v9465_v32 = vpop.permute.xlu0 %9464 }
 0xab2   : > { %9556 = vst.msk [vmem:[#allocation3 + $0x20] sm:$0xff] %vm4490_vm8, %v9465_v32  ;;  %10060 = vrot.lane.b32.xlu1 %v9982_v59, %s12791_s29 }
 0xab3   : > { %9870 = vrot.lane.b32.xlu0 %v17289_v50, %s18676_s1 }
 0xab4   : > { %v9467_v40 = vpop.permute.xlu1 %9466 }
 0xab5   : > { %9557 = vst.msk [vmem:[#allocation3 + $0x28] sm:$0xff] %vm4490_vm8, %v9467_v40  ;;  %v10229_v15 = vpop.permute.xlu0 %10228 }
 0xab6   : > { %10322 = vst.msk [vmem:[#allocation3 + $0x10] sm:$0xff] %vm5262_vm12, %v10229_v15  ;;  %9488 = vrot.lane.b32.xlu1 %v9982_v59, %s18679_s3  ;;  %v9607_v15 = vld [vmem:[#allocation2 + $0x12a] sm:$0xff] }
 0xab7   : > { %9298 = vrot.lane.b32.xlu0 %v17289_v50, %s18678_s23 }
 0xab8   : > { %v10231_v22 = vpop.permute.xlu1 %10230 }
 0xab9   : > { %10323 = vst.msk [vmem:[#allocation3 + $0x18] sm:$0xff] %vm5262_vm12, %v10231_v22  ;;  %v9657_v46 = vpop.permute.xlu0 %9656 }
 0xaba   : > { %9748 = vst.msk [vmem:[#allocation3 + $0x20] sm:$0xff] %vm4683_vm9, %v9657_v46  ;;  %10252 = vrot.lane.b32.xlu1 %v17454_v11, %s18681_s21 }
 0xabb   : > { %10062 = vrot.lane.b32.xlu0 %v9983_v29, %s12791_s29 }
 0xabc   : > { %v9849_v21 = vpop.permute.xlu1 %9848 }
 0xabd   : > { %9940 = vst.msk [vmem:[#allocation3 + $0x20] sm:$0xff] %vm4876_vm10, %v9849_v21  ;;  %v9659_v25 = vpop.permute.xlu0 %9658  ;;  %v10354_v3 = vld [vmem:[#allocation3 + $0x10] sm:$0xff] }
 0xabe   : > { %9749 = vst.msk [vmem:[#allocation3 + $0x28] sm:$0xff] %vm4683_vm9, %v9659_v25  ;;  %9680 = vrot.lane.b32.xlu1 %v17454_v11, %s18680_s24  ;;  %12290 = vmatprep.mubr.msk.f32.mxu1 %vm5336_vm14, %v10354_v3 }
 0xabf   : > { %9490 = vrot.lane.b32.xlu0 %v9983_v29, %s18679_s3  ;;  %v9224_v29 = vld [vmem:[#allocation2 + $0x138] sm:$0xff] }
 0xac0   : > { %v10041_v50 = vpop.permute.xlu1 %10040  ;;  %v10355_v30 = vld [vmem:[#allocation3 + $0x18] sm:$0xff] }
 0xac1   : > { %10132 = vst.msk [vmem:[#allocation3 + $0x20] sm:$0xff] %vm5069_vm11, %v10041_v50  ;;  %12291 = vmatmul.mubr.msk.f32.gmra.mrb[2].mxu1 %vm5336_vm14, %v10355_v30  ;;  %v9851_v33 = vpop.permute.xlu0 %9850  ;;  %v9990_v30 = vld [vmem:[#allocation2 + $0x139] sm:$0xff] }
 0xac2   : > { %9941 = vst.msk [vmem:[#allocation3 + $0x28] sm:$0xff] %vm4876_vm10, %v9851_v33  ;;  %9682 = vrot.lane.b32.xlu1 %v17450_v12, %s18680_s24  ;;  %v9799_v33 = vld [vmem:[#allocation2 + $0x140] sm:$0xff] }
 0xac3   : > { %10254 = vrot.lane.b32.xlu0 %v17450_v12, %s18681_s21 }
 0xac4   : > { %v10043_v11 = vpop.permute.xlu1 %10042 }
 0xac5   : > { %10133 = vst.msk [vmem:[#allocation3 + $0x28] sm:$0xff] %vm5069_vm11, %v10043_v11  ;;  %v9469_v0 = vpop.permute.xlu0 %9468 }
 0xac6   : > { %9558 = vst.msk [vmem:[#allocation3 + $0x30] sm:$0xff] %vm4490_vm8, %v9469_v0  ;;  %9300 = vrot.lane.b32.xlu1 %v17311_v52, %s18678_s23 }
 0xac7   : > { %9872 = vrot.lane.b32.xlu0 %v17311_v52, %s18676_s1 }
 0xac8   : > { %v9471_v36 = vpop.permute.xlu1 %9470 }
 0xac9   : > { %9559 = vst.msk [vmem:[#allocation3 + $0x38] sm:$0xff] %vm4490_vm8, %v9471_v36  ;;  %v10233_v10 = vpop.permute.xlu0 %10232 }
 0xaca   : > { %10324 = vst.msk [vmem:[#allocation3 + $0x20] sm:$0xff] %vm5262_vm12, %v10233_v10  ;;  %10064 = vrot.lane.b32.xlu1 %v9984_v62, %s12791_s29 }
 0xacb   : > { %9874 = vrot.lane.b32.xlu0 %v17305_v58, %s18676_s1 }
 0xacc   : > { %v10235_v12 = vpop.permute.xlu1 %10234 }
 0xacd   : > { %10325 = vst.msk [vmem:[#allocation3 + $0x28] sm:$0xff] %vm5262_vm12, %v10235_v12  ;;  %v9661_v49 = vpop.permute.xlu0 %9660  ;;  %v9991_v12 = vld [vmem:[#allocation2 + $0x141] sm:$0xff] }
 0xace   : > { %9750 = vst.msk [vmem:[#allocation3 + $0x30] sm:$0xff] %vm4683_vm9, %v9661_v49  ;;  %9492 = vrot.lane.b32.xlu1 %v9984_v62, %s18679_s3  ;;  %v10182_v62 = vld [vmem:[#allocation2 + $0x13a] sm:$0xff] }
 0xacf   : > { %9302 = vrot.lane.b32.xlu0 %v17305_v58, %s18678_s23 }
 0xad0   : > { %v9853_v52 = vpop.permute.xlu1 %9852 }
 0xad1   : > { %9942 = vst.msk [vmem:[#allocation3 + $0x30] sm:$0xff] %vm4876_vm10, %v9853_v52  ;;  %v9663_v42 = vpop.permute.xlu0 %9662  ;;  %v10356_v19 = vld [vmem:[#allocation3 + $0x20] sm:$0xff] }
 0xad2   : > { %9751 = vst.msk [vmem:[#allocation3 + $0x38] sm:$0xff] %vm4683_vm9, %v9663_v42  ;;  %10256 = vrot.lane.b32.xlu1 %v17461_v53, %s18681_s21  ;;  %12293 = vmatprep.mubr.msk.f32.mxu1 %vm5336_vm14, %v10356_v19 }
 0xad3   : > { %10066 = vrot.lane.b32.xlu0 %v9985_v4, %s12791_s29 }
 0xad4   : > { %v10045_v51 = vpop.permute.xlu1 %10044  ;;  %v10357_v6 = vld [vmem:[#allocation3 + $0x28] sm:$0xff] }
 0xad5   : > { %10134 = vst.msk [vmem:[#allocation3 + $0x30] sm:$0xff] %vm5069_vm11, %v10045_v51  ;;  %12294 = vmatmul.mubr.msk.f32.gmra.mrb[4].mxu1 %vm5336_vm14, %v10357_v6  ;;  %v9855_v58 = vpop.permute.xlu0 %9854 }
 0xad6   : > { %9943 = vst.msk [vmem:[#allocation3 + $0x38] sm:$0xff] %vm4876_vm10, %v9855_v58  ;;  %9684 = vrot.lane.b32.xlu1 %v9602_v20, %s18680_s24 }
 0xad7   : > { %9494 = vrot.lane.b32.xlu0 %v9985_v4, %s18679_s3  ;;  %v9609_v4 = vld [vmem:[#allocation2 + $0x142] sm:$0xff] }
 0xad8   : > { %v10047_v53 = vpop.permute.xlu1 %10046 }
 0xad9   : > { %10135 = vst.msk [vmem:[#allocation3 + $0x38] sm:$0xff] %vm5069_vm11, %v10047_v53  ;;  %v9473_v8 = vpop.permute.xlu0 %9472  ;;  %v9226_v53 = vld [vmem:[#allocation2 + $0x150] sm:$0xff] }
 0xada   : > { %9560 = vst.msk [vmem:[#allocation3 + $0x40] sm:$0xff] %vm4490_vm8, %v9473_v8  ;;  %9686 = vrot.lane.b32.xlu1 %v9603_v57, %s18680_s24 }
 0xadb   : > { %10258 = vrot.lane.b32.xlu0 %v9603_v57, %s18681_s21 }
 0xadc   : > { %v9475_v28 = vpop.permute.xlu1 %9474 }
 0xadd   : > { %9561 = vst.msk [vmem:[#allocation3 + $0x48] sm:$0xff] %vm4490_vm8, %v9475_v28  ;;  %v10237_v63 = vpop.permute.xlu0 %10236  ;;  %v9992_v28 = vld [vmem:[#allocation2 + $0x151] sm:$0xff] }
 0xade   : > { %10326 = vst.msk [vmem:[#allocation3 + $0x30] sm:$0xff] %vm5262_vm12, %v10237_v63  ;;  %9304 = vrot.lane.b32.xlu1 %v17327_v26, %s18678_s23  ;;  %v9801_v63 = vld [vmem:[#allocation2 + $0x158] sm:$0xff] }
 0xadf   : > { %9876 = vrot.lane.b32.xlu0 %v17327_v26, %s18676_s1 }
 0xae0   : > { %v10239_v43 = vpop.permute.xlu1 %10238 }
 0xae1   : > { %10327 = vst.msk [vmem:[#allocation3 + $0x38] sm:$0xff] %vm5262_vm12, %v10239_v43  ;;  %v9665_v1 = vpop.permute.xlu0 %9664 }
 0xae2   : > { %9752 = vst.msk [vmem:[#allocation3 + $0x40] sm:$0xff] %vm4683_vm9, %v9665_v1  ;;  %10068 = vrot.lane.b32.xlu1 %v9986_v38, %s12791_s29 }
 0xae3   : > { %9878 = vrot.lane.b32.xlu0 %v17321_v35, %s18676_s1 }
 0xae4   : > { %v9857_v48 = vpop.permute.xlu1 %9856 }
 0xae5   : > { %9944 = vst.msk [vmem:[#allocation3 + $0x40] sm:$0xff] %vm4876_vm10, %v9857_v48  ;;  %v9667_v55 = vpop.permute.xlu0 %9666  ;;  %v10358_v2 = vld [vmem:[#allocation3 + $0x30] sm:$0xff] }
 0xae6   : > { %9753 = vst.msk [vmem:[#allocation3 + $0x48] sm:$0xff] %vm4683_vm9, %v9667_v55  ;;  %9496 = vrot.lane.b32.xlu1 %v9986_v38, %s18679_s3  ;;  %12296 = vmatprep.mubr.msk.f32.mxu1 %vm5336_vm14, %v10358_v2  ;;  %v10184_v55 = vld [vmem:[#allocation2 + $0x152] sm:$0xff] }
 0xae7   : > { %9306 = vrot.lane.b32.xlu0 %v17321_v35, %s18678_s23  ;;  %v9993_v2 = vld [vmem:[#allocation2 + $0x159] sm:$0xff] }
 0xae8   : > { %v10049_v26 = vpop.permute.xlu1 %10048  ;;  %v10359_v9 = vld [vmem:[#allocation3 + $0x38] sm:$0xff] }
 0xae9   : > { %10136 = vst.msk [vmem:[#allocation3 + $0x40] sm:$0xff] %vm5069_vm11, %v10049_v26  ;;  %12297 = vmatmul.mubr.msk.f32.gmra.mrb[6].mxu1 %vm5336_vm14, %v10359_v9  ;;  %v9859_v41 = vpop.permute.xlu0 %9858 }
 0xaea   : > { %9945 = vst.msk [vmem:[#allocation3 + $0x48] sm:$0xff] %vm4876_vm10, %v9859_v41  ;;  %10260 = vrot.lane.b32.xlu1 %v10178_v27, %s18681_s21 }
 0xaeb   : > { %10070 = vrot.lane.b32.xlu0 %v9987_v18, %s12791_s29 }
 0xaec   : > { %v10051_v34 = vpop.permute.xlu1 %10050 }
 0xaed   : > { %10137 = vst.msk [vmem:[#allocation3 + $0x48] sm:$0xff] %vm5069_vm11, %v10051_v34  ;;  %v9477_v17 = vpop.permute.xlu0 %9476  ;;  %v9611_v34 = vld [vmem:[#allocation2 + $0x15a] sm:$0xff] }
 0xaee   : > { %9562 = vst.msk [vmem:[#allocation3 + $0x50] sm:$0xff] %vm4490_vm8, %v9477_v17  ;;  %9688 = vrot.lane.b32.xlu1 %v10178_v27, %s18680_s24 }
 0xaef   : > { %9498 = vrot.lane.b32.xlu0 %v9987_v18, %s18679_s3 }
 0xaf0   : > { %v9479_v35 = vpop.permute.xlu1 %9478 }
 0xaf1   : > { %9563 = vst.msk [vmem:[#allocation3 + $0x58] sm:$0xff] %vm4490_vm8, %v9479_v35  ;;  %v10241_v56 = vpop.permute.xlu0 %10240 }
 0xaf2   : > { %10328 = vst.msk [vmem:[#allocation3 + $0x40] sm:$0xff] %vm5262_vm12, %v10241_v56  ;;  %9690 = vrot.lane.b32.xlu1 %v9605_v39, %s18680_s24  ;;  %v9228_v56 = vld [vmem:[#allocation2 + $0x168] sm:$0xff] }
 0xaf3   : > { %10262 = vrot.lane.b32.xlu0 %v9605_v39, %s18681_s21 }
 0xaf4   : > { %v10243_v60 = vpop.permute.xlu1 %10242 }
 0xaf5   : > { %10329 = vst.msk [vmem:[#allocation3 + $0x48] sm:$0xff] %vm5262_vm12, %v10243_v60  ;;  %v9669_v16 = vpop.permute.xlu0 %9668 }
 0xaf6   : > { %9754 = vst.msk [vmem:[#allocation3 + $0x50] sm:$0xff] %vm4683_vm9, %v9669_v16  ;;  %9308 = vrot.lane.b32.xlu1 %v17340_v13, %s18678_s23 }
 0xaf7   : > { %9880 = vrot.lane.b32.xlu0 %v17340_v13, %s18676_s1 }
 0xaf8   : > { %v9861_v14 = vpop.permute.xlu1 %9860 }
 0xaf9   : > { %9946 = vst.msk [vmem:[#allocation3 + $0x50] sm:$0xff] %vm4876_vm10, %v9861_v14  ;;  %v9671_v7 = vpop.permute.xlu0 %9670  ;;  %v10360_v24 = vld [vmem:[#allocation3 + $0x40] sm:$0xff] }
 0xafa   : > { %9755 = vst.msk [vmem:[#allocation3 + $0x58] sm:$0xff] %vm4683_vm9, %v9671_v7  ;;  %10072 = vrot.lane.b32.xlu1 %v9988_v47, %s12791_s29  ;;  %12299 = vmatprep.mubr.msk.f32.mxu1 %vm5336_vm14, %v10360_v24  ;;  %v9994_v14 = vld [vmem:[#allocation2 + $0x169] sm:$0xff] }
 0xafb   : > { %9882 = vrot.lane.b32.xlu0 %v9797_v54, %s18676_s1  ;;  %v9803_v7 = vld [vmem:[#allocation2 + $0x170] sm:$0xff] }
 0xafc   : > { %v10053_v44 = vpop.permute.xlu1 %10052  ;;  %v10361_v23 = vld [vmem:[#allocation3 + $0x48] sm:$0xff] }
 0xafd   : > { %10138 = vst.msk [vmem:[#allocation3 + $0x50] sm:$0xff] %vm5069_vm11, %v10053_v44  ;;  %12300 = vmatmul.mubr.msk.f32.gmra.mrb[8].mxu1 %vm5336_vm14, %v10361_v23  ;;  %v9863_v13 = vpop.permute.xlu0 %9862  ;;  %v10186_v23 = vld [vmem:[#allocation2 + $0x16a] sm:$0xff] }
 0xafe   : > { %9947 = vst.msk [vmem:[#allocation3 + $0x58] sm:$0xff] %vm4876_vm10, %v9863_v13  ;;  %9500 = vrot.lane.b32.xlu1 %v9988_v47, %s18679_s3  ;;  %v9995_v13 = vld [vmem:[#allocation2 + $0x171] sm:$0xff] }
 0xaff   : > { %9310 = vrot.lane.b32.xlu0 %v9797_v54, %s18678_s23 }
 0xb00   : > { %v10055_v31 = vpop.permute.xlu1 %10054 }
 0xb01   : > { %10139 = vst.msk [vmem:[#allocation3 + $0x58] sm:$0xff] %vm5069_vm11, %v10055_v31  ;;  %v9481_v5 = vpop.permute.xlu0 %9480 }
 0xb02   : > { %9564 = vst.msk [vmem:[#allocation3 + $0x60] sm:$0xff] %vm4490_vm8, %v9481_v5  ;;  %10264 = vrot.lane.b32.xlu1 %v10180_v37, %s18681_s21 }
 0xb03   : > { %10074 = vrot.lane.b32.xlu0 %v9989_v61, %s12791_s29 }
 0xb04   : > { %v9483_v45 = vpop.permute.xlu1 %9482 }
 0xb05   : > { %9565 = vst.msk [vmem:[#allocation3 + $0x68] sm:$0xff] %vm4490_vm8, %v9483_v45  ;;  %v10245_v32 = vpop.permute.xlu0 %10244 }
 0xb06   : > { %10330 = vst.msk [vmem:[#allocation3 + $0x50] sm:$0xff] %vm5262_vm12, %v10245_v32  ;;  %9692 = vrot.lane.b32.xlu1 %v10180_v37, %s18680_s24  ;;  %v9613_v32 = vld [vmem:[#allocation2 + $0x172] sm:$0xff] }
 0xb07   : > { %9502 = vrot.lane.b32.xlu0 %v9989_v61, %s18679_s3 }
 0xb08   : > { %v10247_v59 = vpop.permute.xlu1 %10246 }
 0xb09   : > { %10331 = vst.msk [vmem:[#allocation3 + $0x58] sm:$0xff] %vm5262_vm12, %v10247_v59  ;;  %v9673_v40 = vpop.permute.xlu0 %9672 }
 0xb0a   : > { %9756 = vst.msk [vmem:[#allocation3 + $0x60] sm:$0xff] %vm4683_vm9, %v9673_v40  ;;  %9694 = vrot.lane.b32.xlu1 %v9607_v15, %s18680_s24 }
 0xb0b   : > { %10266 = vrot.lane.b32.xlu0 %v9607_v15, %s18681_s21  ;;  %v9230_v15 = vld [vmem:[#allocation2 + $0x180] sm:$0xff] }
 0xb0c   : > { %v9865_v22 = vpop.permute.xlu1 %9864 }
 0xb0d   : > { %9948 = vst.msk [vmem:[#allocation3 + $0x60] sm:$0xff] %vm4876_vm10, %v9865_v22  ;;  %v9675_v46 = vpop.permute.xlu0 %9674  ;;  %v10362_v21 = vld [vmem:[#allocation3 + $0x50] sm:$0xff] }
 0xb0e   : > { %9757 = vst.msk [vmem:[#allocation3 + $0x68] sm:$0xff] %vm4683_vm9, %v9675_v46  ;;  %9312 = vrot.lane.b32.xlu1 %v9224_v29, %s18678_s23  ;;  %12302 = vmatprep.mubr.msk.f32.mxu1 %vm5336_vm14, %v10362_v21  ;;  %v9996_v21 = vld [vmem:[#allocation2 + $0x181] sm:$0xff] }
 0xb0f   : > { %9884 = vrot.lane.b32.xlu0 %v9224_v29, %s18676_s1 }
 0xb10   : > { %v10057_v25 = vpop.permute.xlu1 %10056  ;;  %v10363_v3 = vld [vmem:[#allocation3 + $0x58] sm:$0xff] }
 0xb11   : > { %10140 = vst.msk [vmem:[#allocation3 + $0x60] sm:$0xff] %vm5069_vm11, %v10057_v25  ;;  %12303 = vmatmul.mubr.msk.f32.gmra.mrb[10].mxu1 %vm5336_vm14, %v10363_v3  ;;  %v9867_v50 = vpop.permute.xlu0 %9866  ;;  %v9805_v25 = vld [vmem:[#allocation2 + $0x188] sm:$0xff] }
 0xb12   : > { %9949 = vst.msk [vmem:[#allocation3 + $0x68] sm:$0xff] %vm4876_vm10, %v9867_v50  ;;  %10076 = vrot.lane.b32.xlu1 %v9990_v30, %s12791_s29 }
 0xb13   : > { %9886 = vrot.lane.b32.xlu0 %v9799_v33, %s18676_s1 }
 0xb14   : > { %v10059_v11 = vpop.permute.xlu1 %10058 }
 0xb15   : > { %10141 = vst.msk [vmem:[#allocation3 + $0x68] sm:$0xff] %vm5069_vm11, %v10059_v11  ;;  %v9485_v0 = vpop.permute.xlu0 %9484  ;;  %v10188_v11 = vld [vmem:[#allocation2 + $0x182] sm:$0xff] }
 0xb16   : > { %9566 = vst.msk [vmem:[#allocation3 + $0x70] sm:$0xff] %vm4490_vm8, %v9485_v0  ;;  %9504 = vrot.lane.b32.xlu1 %v9990_v30, %s18679_s3  ;;  %v9997_v0 = vld [vmem:[#allocation2 + $0x189] sm:$0xff] }
 0xb17   : > { %9314 = vrot.lane.b32.xlu0 %v9799_v33, %s18678_s23 }
 0xb18   : > { %v9487_v36 = vpop.permute.xlu1 %9486 }
 0xb19   : > { %9567 = vst.msk [vmem:[#allocation3 + $0x78] sm:$0xff] %vm4490_vm8, %v9487_v36  ;;  %v10249_v10 = vpop.permute.xlu0 %10248 }
 0xb1a   : > { %10332 = vst.msk [vmem:[#allocation3 + $0x60] sm:$0xff] %vm5262_vm12, %v10249_v10  ;;  %10268 = vrot.lane.b32.xlu1 %v10182_v62, %s18681_s21 }
 0xb1b   : > { %10078 = vrot.lane.b32.xlu0 %v9991_v12, %s12791_s29 }
 0xb1c   : > { %v10251_v49 = vpop.permute.xlu1 %10250 }
 0xb1d   : > { %10333 = vst.msk [vmem:[#allocation3 + $0x68] sm:$0xff] %vm5262_vm12, %v10251_v49  ;;  %v9677_v52 = vpop.permute.xlu0 %9676 }
 0xb1e   : > { %9758 = vst.msk [vmem:[#allocation3 + $0x70] sm:$0xff] %vm4683_vm9, %v9677_v52  ;;  %9696 = vrot.lane.b32.xlu1 %v10182_v62, %s18680_s24  ;;  %v9615_v52 = vld [vmem:[#allocation2 + $0x18a] sm:$0xff] }
 0xb1f   : > { %9506 = vrot.lane.b32.xlu0 %v9991_v12, %s18679_s3 }
 0xb20   : > { %v9869_v42 = vpop.permute.xlu1 %9868 }
 0xb21   : > { %9950 = vst.msk [vmem:[#allocation3 + $0x70] sm:$0xff] %vm4876_vm10, %v9869_v42  ;;  %v9679_v19 = vpop.permute.xlu0 %9678  ;;  %v10364_v51 = vld [vmem:[#allocation3 + $0x60] sm:$0xff]  ;;  %v9807_v42 = vld [vmem:[#allocation2 + $0x1a0] sm:$0xff] }
 0xb22   : > { %9759 = vst.msk [vmem:[#allocation3 + $0x78] sm:$0xff] %vm4683_vm9, %v9679_v19  ;;  %9698 = vrot.lane.b32.xlu1 %v9609_v4, %s18680_s24  ;;  %12305 = vmatprep.mubr.msk.f32.mxu1 %vm5336_vm14, %v10364_v51 }
 0xb23   : > { %10270 = vrot.lane.b32.xlu0 %v9609_v4, %s18681_s21  ;;  %v9806_v4 = vld [vmem:[#allocation2 + $0x198] sm:$0xff] }
 0xb24   : > { %v10061_v6 = vpop.permute.xlu1 %10060  ;;  %v10365_v58 = vld [vmem:[#allocation3 + $0x68] sm:$0xff] }
 0xb25   : > { %10142 = vst.msk [vmem:[#allocation3 + $0x70] sm:$0xff] %vm5069_vm11, %v10061_v6  ;;  %12306 = vmatmul.mubr.msk.f32.gmra.mrb[12].mxu1 %vm5336_vm14, %v10365_v58  ;;  %v9871_v20 = vpop.permute.xlu0 %9870  ;;  %v9999_v58 = vld [vmem:[#allocation2 + $0x1a1] sm:$0xff] }
 0xb26   : > { %9951 = vst.msk [vmem:[#allocation3 + $0x78] sm:$0xff] %vm4876_vm10, %v9871_v20  ;;  %9316 = vrot.lane.b32.xlu1 %v9226_v53, %s18678_s23 }
 0xb27   : > { %9888 = vrot.lane.b32.xlu0 %v9226_v53, %s18676_s1  ;;  %v9998_v53 = vld [vmem:[#allocation2 + $0x199] sm:$0xff] }
 0xb28   : > { %v9489_v8 = vpop.permute.xlu1 %9488 }
 0xb29   : > { %9568 = vst.msk [vmem:[#allocation3 + $0x80] sm:$0xff] %vm4490_vm8, %v9489_v8  ;;  %v9299_v57 = vpop.permute.xlu0 %9298 }
 0xb2a   : > { %9377 = vst.msk [vmem:[#allocation3 + $0x88] sm:$0xff] %vm4297_vm7, %v9299_v57  ;;  %10080 = vrot.lane.b32.xlu1 %v9992_v28, %s12791_s29  ;;  %v10191_v57 = vld [vmem:[#allocation2 + $0x1a2] sm:$0xff] }
 0xb2b   : > { %9890 = vrot.lane.b32.xlu0 %v9801_v63, %s18676_s1 }
 0xb2c   : > { %v10253_v43 = vpop.permute.xlu1 %10252 }
 0xb2d   : > { %10334 = vst.msk [vmem:[#allocation3 + $0x70] sm:$0xff] %vm5262_vm12, %v10253_v43  ;;  %v10063_v1 = vpop.permute.xlu0 %10062 }
 0xb2e   : > { %10143 = vst.msk [vmem:[#allocation3 + $0x78] sm:$0xff] %vm5069_vm11, %v10063_v1  ;;  %9508 = vrot.lane.b32.xlu1 %v9992_v28, %s18679_s3 }
 0xb2f   : > { %9318 = vrot.lane.b32.xlu0 %v9801_v63, %s18678_s23  ;;  %v10190_v63 = vld [vmem:[#allocation2 + $0x19a] sm:$0xff] }
 0xb30   : > { %v9681_v38 = vpop.permute.xlu1 %9680 }
 0xb31   : > { %9760 = vst.msk [vmem:[#allocation3 + $0x80] sm:$0xff] %vm4683_vm9, %v9681_v38  ;;  %v9491_v48 = vpop.permute.xlu0 %9490 }
 0xb32   : > { %9569 = vst.msk [vmem:[#allocation3 + $0x88] sm:$0xff] %vm4490_vm8, %v9491_v48  ;;  %10272 = vrot.lane.b32.xlu1 %v10184_v55, %s18681_s21 }
 0xb33   : > { %10082 = vrot.lane.b32.xlu0 %v9993_v2, %s12791_s29 }
 0xb34   : > { %v9683_v26 = vpop.permute.xlu1 %9682  ;;  %v10366_v9 = vld [vmem:[#allocation3 + $0x70] sm:$0xff] }
 0xb35   : > { %9761 = vst.msk [vmem:[#allocation3 + $0x88] sm:$0xff] %vm4683_vm9, %v9683_v26  ;;  %12308 = vmatprep.mubr.msk.f32.mxu1 %vm5336_vm14, %v10366_v9  ;;  %v10255_v41 = vpop.permute.xlu0 %10254  ;;  %v17999_v26 = vld [vmem:[%s18254_s13] ss:$0 sm:$0xff] }
 0xb36   : > { %10335 = vst.msk [vmem:[#allocation3 + $0x78] sm:$0xff] %vm5262_vm12, %v10255_v41  ;;  %9700 = vrot.lane.b32.xlu1 %v10184_v55, %s18680_s24 }
 0xb37   : > { %9510 = vrot.lane.b32.xlu0 %v9993_v2, %s18679_s3 }
 0xb38   : > { %v9301_v27 = vpop.permute.xlu1 %9300 }
 0xb39   : > { %9378 = vst.msk [vmem:[#allocation3 + $0x90] sm:$0xff] %vm4297_vm7, %v9301_v27  ;;  %v9873_v18 = vpop.permute.xlu0 %9872  ;;  %v18004_v27 = vld [vmem:[%s18255_s14] ss:$0 sm:$0xff] }
 0xb3a   : > { %9952 = vst.msk [vmem:[#allocation3 + $0x80] sm:$0xff] %vm4876_vm10, %v9873_v18  ;;  %9702 = vrot.lane.b32.xlu1 %v9611_v34, %s18680_s24 }
 0xb3b   : > { %10274 = vrot.lane.b32.xlu0 %v9611_v34, %s18681_s21 }
 0xb3c   : > { %v10065_v17 = vpop.permute.xlu1 %10064 }
 0xb3d   : > { %10144 = vst.msk [vmem:[#allocation3 + $0x80] sm:$0xff] %vm5069_vm11, %v10065_v17  ;;  %v9875_v35 = vpop.permute.xlu0 %9874  ;;  %v10367_v39 = vld [vmem:[#allocation3 + $0x78] sm:$0xff] }
 0xb3e   : > { %9953 = vst.msk [vmem:[#allocation3 + $0x88] sm:$0xff] %vm4876_vm10, %v9875_v35  ;;  %9320 = vrot.lane.b32.xlu1 %v9228_v56, %s18678_s23  ;;  %12309 = vmatmul.mubr.msk.f32.gmra.mrb[14].mxu1 %vm5336_vm14, %v10367_v39 }
 0xb3f   : > { %9892 = vrot.lane.b32.xlu0 %v9228_v56, %s18676_s1 }
 0xb40   : > { %v9493_v60 = vpop.permute.xlu1 %9492 }
 0xb41   : > { %9570 = vst.msk [vmem:[#allocation3 + $0x90] sm:$0xff] %vm4490_vm8, %v9493_v60  ;;  %v9303_v16 = vpop.permute.xlu0 %9302 }
 0xb42   : > { %9379 = vst.msk [vmem:[#allocation3 + $0x98] sm:$0xff] %vm4297_vm7, %v9303_v16  ;;  %10084 = vrot.lane.b32.xlu1 %v9994_v14, %s12791_s29 }
 0xb43   : > { %9894 = vrot.lane.b32.xlu0 %v9803_v7, %s18676_s1 }
 0xb44   : > { %v10257_v47 = vpop.permute.xlu1 %10256 }
 0xb45   : > { %10336 = vst.msk [vmem:[#allocation3 + $0x80] sm:$0xff] %vm5262_vm12, %v10257_v47  ;;  %v10067_v24 = vpop.permute.xlu0 %10066  ;;  %v18683_v47 = vld [vmem:[#allocation5_spill] sm:$0xff] }
 0xb46   : > { %10145 = vst.msk [vmem:[#allocation3 + $0x88] sm:$0xff] %vm5069_vm11, %v10067_v24  ;;  %9512 = vrot.lane.b32.xlu1 %v9994_v14, %s18679_s3 }
 0xb47   : > { %9322 = vrot.lane.b32.xlu0 %v9803_v7, %s18678_s23 }
 0xb48   : > { %v9685_v54 = vpop.permute.xlu1 %9684 }
 0xb49   : > { %9762 = vst.msk [vmem:[#allocation3 + $0x90] sm:$0xff] %vm4683_vm9, %v9685_v54  ;;  %v9495_v44 = vpop.permute.xlu0 %9494 }
 0xb4a   : > { %9571 = vst.msk [vmem:[#allocation3 + $0x98] sm:$0xff] %vm4490_vm8, %v9495_v44  ;;  %10276 = vrot.lane.b32.xlu1 %v10186_v23, %s18681_s21  ;;  %v18684_v44 = vld [vmem:[#allocation4_spill] sm:$0xff] }
 0xb4b   : > { %10086 = vrot.lane.b32.xlu0 %v9995_v13, %s12791_s29 }
 0xb4c   : > { %v9687_v31 = vpop.permute.xlu1 %9686  ;;  %v10368_v5 = vld [vmem:[#allocation3 + $0x80] sm:$0xff] }
 0xb4d   : > { %9763 = vst.msk [vmem:[#allocation3 + $0x98] sm:$0xff] %vm4683_vm9, %v9687_v31  ;;  %12311 = vmatprep.mubr.msk.f32.mxu1 %vm5336_vm14, %v10368_v5  ;;  %v10259_v37 = vpop.permute.xlu0 %10258 }
 0xb4e   : > { %10337 = vst.msk [vmem:[#allocation3 + $0x88] sm:$0xff] %vm5262_vm12, %v10259_v37  ;;  %9704 = vrot.lane.b32.xlu1 %v10186_v23, %s18680_s24 }
 0xb4f   : > { %9514 = vrot.lane.b32.xlu0 %v9995_v13, %s18679_s3 }
 0xb50   : > { %v9305_v61 = vpop.permute.xlu1 %9304 }
 0xb51   : > { %9380 = vst.msk [vmem:[#allocation3 + $0xa0] sm:$0xff] %vm4297_vm7, %v9305_v61  ;;  %v9877_v45 = vpop.permute.xlu0 %9876 }
 0xb52   : > { %9954 = vst.msk [vmem:[#allocation3 + $0x90] sm:$0xff] %vm4876_vm10, %v9877_v45  ;;  %9706 = vrot.lane.b32.xlu1 %v9613_v32, %s18680_s24 }
 0xb53   : > { %10278 = vrot.lane.b32.xlu0 %v9613_v32, %s18681_s21 }
 0xb54   : > { %v10069_v59 = vpop.permute.xlu1 %10068 }
 0xb55   : > { %10146 = vst.msk [vmem:[#allocation3 + $0x90] sm:$0xff] %vm5069_vm11, %v10069_v59  ;;  %v9879_v40 = vpop.permute.xlu0 %9878  ;;  %v10369_v22 = vld [vmem:[#allocation3 + $0x88] sm:$0xff] }
 0xb56   : > { %9955 = vst.msk [vmem:[#allocation3 + $0x98] sm:$0xff] %vm4876_vm10, %v9879_v40  ;;  %9324 = vrot.lane.b32.xlu1 %v9230_v15, %s18678_s23  ;;  %12312 = vmatmul.mubr.msk.f32.gmra.mrb[16].mxu1 %vm5336_vm14, %v10369_v22 }
 0xb57   : > { %9896 = vrot.lane.b32.xlu0 %v9230_v15, %s18676_s1 }
 0xb58   : > { %v9497_v46 = vpop.permute.xlu1 %9496 }
 0xb59   : > { %9572 = vst.msk [vmem:[#allocation3 + $0xa0] sm:$0xff] %vm4490_vm8, %v9497_v46  ;;  %v9307_v29 = vpop.permute.xlu0 %9306 }
 0xb5a   : > { %9381 = vst.msk [vmem:[#allocation3 + $0xa8] sm:$0xff] %vm4297_vm7, %v9307_v29  ;;  %10088 = vrot.lane.b32.xlu1 %v9996_v21, %s12791_s29 }
 0xb5b   : > { %9898 = vrot.lane.b32.xlu0 %v9805_v25, %s18676_s1 }
 0xb5c   : > { %v10261_v3 = vpop.permute.xlu1 %10260 }
 0xb5d   : > { %10338 = vst.msk [vmem:[#allocation3 + $0x90] sm:$0xff] %vm5262_vm12, %v10261_v3  ;;  %v10071_v50 = vpop.permute.xlu0 %10070 }
 0xb5e   : > { %10147 = vst.msk [vmem:[#allocation3 + $0x98] sm:$0xff] %vm5069_vm11, %v10071_v50  ;;  %9516 = vrot.lane.b32.xlu1 %v9996_v21, %s18679_s3 }
 0xb5f   : > { %9326 = vrot.lane.b32.xlu0 %v9805_v25, %s18678_s23 }
 0xb60   : > { %v9689_v30 = vpop.permute.xlu1 %9688 }
 0xb61   : > { %9764 = vst.msk [vmem:[#allocation3 + $0xa0] sm:$0xff] %vm4683_vm9, %v9689_v30  ;;  %v9499_v33 = vpop.permute.xlu0 %9498 }
 0xb62   : > { %9573 = vst.msk [vmem:[#allocation3 + $0xa8] sm:$0xff] %vm4490_vm8, %v9499_v33  ;;  %10280 = vrot.lane.b32.xlu1 %v10188_v11, %s18681_s21  ;;  %v18685_v33 = vld [vmem:[#allocation7_spill] sm:$0xff] }
 0xb63   : > { %10090 = vrot.lane.b32.xlu0 %v9997_v0, %s12791_s29 }
 0xb64   : > { %v9691_v36 = vpop.permute.xlu1 %9690  ;;  %v10370_v10 = vld [vmem:[#allocation3 + $0x90] sm:$0xff] }
 0xb65   : > { %9765 = vst.msk [vmem:[#allocation3 + $0xa8] sm:$0xff] %vm4683_vm9, %v9691_v36  ;;  %12314 = vmatprep.mubr.msk.f32.mxu1 %vm5336_vm14, %v10370_v10  ;;  %v10263_v62 = vpop.permute.xlu0 %10262  ;;  %v18686_v36 = vld [vmem:[#allocation6_spill] sm:$0xff] }
 0xb66   : > { %10339 = vst.msk [vmem:[#allocation3 + $0x98] sm:$0xff] %vm5262_vm12, %v10263_v62  ;;  %9708 = vrot.lane.b32.xlu1 %v10188_v11, %s18680_s24 }
 0xb67   : > { %9518 = vrot.lane.b32.xlu0 %v9997_v0, %s18679_s3 }
 0xb68   : > { %v9309_v12 = vpop.permute.xlu1 %9308 }
 0xb69   : > { %9382 = vst.msk [vmem:[#allocation3 + $0xb0] sm:$0xff] %vm4297_vm7, %v9309_v12  ;;  %v9881_v49 = vpop.permute.xlu0 %9880 }
 0xb6a   : > { %9956 = vst.msk [vmem:[#allocation3 + $0xa0] sm:$0xff] %vm4876_vm10, %v9881_v49  ;;  %9710 = vrot.lane.b32.xlu1 %v9615_v52, %s18680_s24  ;;  %s18682_s24 = sshll.u32 %s18716_s30, 8 }
 0xb6b   : > { %10282 = vrot.lane.b32.xlu0 %v9615_v52, %s18681_s21  ;;  %s18017_s26 = scalar_lea.vmem %s18260_s19, %s18682_s24 }
 0xb6c   : > { %v10073_v19 = vpop.permute.xlu1 %10072 }
 0xb6d   : > { %10148 = vst.msk [vmem:[#allocation3 + $0xa0] sm:$0xff] %vm5069_vm11, %v10073_v19  ;;  %v9883_v51 = vpop.permute.xlu0 %9882  ;;  %v10371_v6 = vld [vmem:[#allocation3 + $0x98] sm:$0xff] }
 0xb6e   : > { %9957 = vst.msk [vmem:[#allocation3 + $0xa8] sm:$0xff] %vm4876_vm10, %v9883_v51  ;;  %12315 = vmatmul.mubr.msk.f32.gmra.mrb[18].mxu1 %vm5336_vm14, %v10371_v6  ;;  %9902 = vrot.lane.b32.xlu1 %v9807_v42, %s18676_s1 }
 0xb6f   : > { %9900 = vrot.lane.b32.xlu0 %v9806_v4, %s18676_s1 }
 0xb70   : > { %v9501_v20 = vpop.permute.xlu1 %9500 }
 0xb71   : > { %9574 = vst.msk [vmem:[#allocation3 + $0xb0] sm:$0xff] %vm4490_vm8, %v9501_v20  ;;  %v9311_v8 = vpop.permute.xlu0 %9310 }
 0xb72   : > { %9383 = vst.msk [vmem:[#allocation3 + $0xb8] sm:$0xff] %vm4297_vm7, %v9311_v8  ;;  %10094 = vrot.lane.b32.xlu1 %v9999_v58, %s12791_s29 }
 0xb73   : > { %10092 = vrot.lane.b32.xlu0 %v9998_v53, %s12791_s29 }
 0xb74   : > { %v10265_v28 = vpop.permute.xlu1 %10264 }
 0xb75   : > { %10340 = vst.msk [vmem:[#allocation3 + $0xa0] sm:$0xff] %vm5262_vm12, %v10265_v28  ;;  %v10075_v43 = vpop.permute.xlu0 %10074 }
 0xb76   : > { %10149 = vst.msk [vmem:[#allocation3 + $0xa8] sm:$0xff] %vm5069_vm11, %v10075_v43  ;;  %10286 = vrot.lane.b32.xlu1 %v10191_v57, %s18681_s21 }
 0xb77   : > { %10284 = vrot.lane.b32.xlu0 %v10190_v63, %s18681_s21 }
 0xb78   : > { %v9693_v1 = vpop.permute.xlu1 %9692 }
 0xb79   : > { %9766 = vst.msk [vmem:[#allocation3 + $0xb0] sm:$0xff] %vm4683_vm9, %v9693_v1  ;;  %v9503_v38 = vpop.permute.xlu0 %9502 }
 0xb7a   : > { %9575 = vst.msk [vmem:[#allocation3 + $0xb8] sm:$0xff] %vm4490_vm8, %v9503_v38 }
 0xb7c   : > { %v9695_v48 = vpop.permute.xlu1 %9694  ;;  %v10372_v55 = vld [vmem:[#allocation3 + $0xa0] sm:$0xff] }
 0xb7d   : > { %9767 = vst.msk [vmem:[#allocation3 + $0xb8] sm:$0xff] %vm4683_vm9, %v9695_v48  ;;  %12317 = vmatprep.mubr.msk.f32.mxu1 %vm5336_vm14, %v10372_v55  ;;  %v10267_v2 = vpop.permute.xlu0 %10266  ;;  %v18687_v48 = vld [vmem:[#allocation9_spill] sm:$0xff] }
 0xb7e   : > { %10341 = vst.msk [vmem:[#allocation3 + $0xa8] sm:$0xff] %vm5262_vm12, %v10267_v2 }
 0xb80   : > { %v9313_v9 = vpop.permute.xlu1 %9312  ;;  %v12289_v41 = vpop.f32.mrb[0].mxu1 }
 0xb81   : > { %9384 = vst.msk [vmem:[#allocation3 + $0xc0] sm:$0xff] %vm4297_vm7, %v9313_v9  ;;  %v12559_v18 = vadd.f32 %v12289_v41, %v17999_v26  ;;  %v10555_v34 = vpop.f32.mrb[1].mxu1  ;;  %v9885_v17 = vpop.permute.xlu0 %9884  ;;  %v18688_v9 = vld [vmem:[#allocation8_spill] sm:$0xff] }
 0xb82   : > { %v12560_v35 = vadd.f32 %v17999_v26, %v10555_v34  ;;  %9958 = vst.msk [vmem:[#allocation3 + $0xb0] sm:$0xff] %vm4876_vm10, %v9885_v17 }
 0xb83   : > { %vm10747_vm0 = vcmp.ge.f32.partialorder %v12559_v18, 0.0  ;;  %v10786_v56 = vmul.f32 %v12559_v18, %v18004_v27 }
 0xb84   : > { %vm10746_vm13 = vcmp.ge.f32.partialorder %v12560_v35, 0.0  ;;  %v10785_v39 = vmul.f32 %v12560_v35, %v18004_v27  ;;  %v10077_v60 = vpop.permute.xlu1 %10076 }
 0xb85   : > { %v10818_v16 = vsel %vm10747_vm0, %v12559_v18, %v10786_v56  ;;  %10150 = vst.msk [vmem:[#allocation3 + $0xb0] sm:$0xff] %vm5069_vm11, %v10077_v60  ;;  %v9887_v14 = vpop.permute.xlu0 %9886  ;;  %v10373_v7 = vld [vmem:[#allocation3 + $0xa8] sm:$0xff] }
 0xb86   : > { %v10850_v24 = vadd.f32 %v10818_v16, %v18683_v47  ;;  %v10817_v54 = vsel %vm10746_vm13, %v12560_v35, %v10785_v39  ;;  %9959 = vst.msk [vmem:[#allocation3 + $0xb8] sm:$0xff] %vm4876_vm10, %v9887_v14  ;;  %12318 = vmatmul.mubr.msk.f32.gmra.mrb[20].mxu1 %vm5336_vm14, %v10373_v7 }
 0xb87   : > { %v10849_v23 = vadd.f32 %v10817_v54, %v18684_v44 }
 0xb88   : > { %10882 = vst.msk [vmem:[%s18017_s26 + $0x8] sm:$0xff] %vm692_vm2, %v10850_v24  ;;  %v9505_v13 = vpop.permute.xlu1 %9504 }
 0xb89   : > { %10881 = vst.msk [vmem:[%s18017_s26] sm:$0xff] %vm692_vm2, %v10849_v23  ;;  %v9315_v31 = vpop.permute.xlu0 %9314 }
 0xb8a   : > { %9576 = vst.msk [vmem:[#allocation3 + $0xc0] sm:$0xff] %vm4490_vm8, %v9505_v13 }
 0xb8b   : > { %9385 = vst.msk [vmem:[#allocation3 + $0xc8] sm:$0xff] %vm4297_vm7, %v9315_v31 }
 0xb8c   : > { %v10269_v5 = vpop.permute.xlu1 %10268 }
 0xb8d   : > { %10342 = vst.msk [vmem:[#allocation3 + $0xb0] sm:$0xff] %vm5262_vm12, %v10269_v5  ;;  %v10079_v37 = vpop.permute.xlu0 %10078 }
 0xb8e   : > { %10151 = vst.msk [vmem:[#allocation3 + $0xb8] sm:$0xff] %vm5069_vm11, %v10079_v37  ;;  %v18689_v37 = vld [vmem:[#allocation11_spill] sm:$0xff] }
 0xb90   : > { %v9697_v61 = vpop.permute.xlu1 %9696 }
 0xb91   : > { %9768 = vst.msk [vmem:[#allocation3 + $0xc0] sm:$0xff] %vm4683_vm9, %v9697_v61  ;;  %v9507_v45 = vpop.permute.xlu0 %9506 }
 0xb92   : > { %9577 = vst.msk [vmem:[#allocation3 + $0xc8] sm:$0xff] %vm4490_vm8, %v9507_v45 }
 0xb94   : > { %v9699_v32 = vpop.permute.xlu1 %9698  ;;  %v12292_v59 = vpop.f32.mrb[2].mxu1  ;;  %v10374_v40 = vld [vmem:[#allocation3 + $0xb0] sm:$0xff] }
 0xb95   : > { %9769 = vst.msk [vmem:[#allocation3 + $0xc8] sm:$0xff] %vm4683_vm9, %v9699_v32  ;;  %v12561_v15 = vadd.f32 %v12292_v59, %v17999_v26  ;;  %v10565_v22 = vpop.f32.mrb[3].mxu1  ;;  %12320 = vmatprep.mubr.msk.f32.mxu1 %vm5336_vm14, %v10374_v40  ;;  %v10271_v46 = vpop.permute.xlu0 %10270  ;;  %v18690_v32 = vld [vmem:[#allocation10_spill] sm:$0xff] }
 0xb96   : > { %v12562_v29 = vadd.f32 %v17999_v26, %v10565_v22  ;;  %10343 = vst.msk [vmem:[#allocation3 + $0xb8] sm:$0xff] %vm5262_vm12, %v10271_v46 }
 0xb97   : > { %vm10749_vm6 = vcmp.ge.f32.partialorder %v12561_v15, 0.0  ;;  %v10788_v21 = vmul.f32 %v12561_v15, %v18004_v27 }
 0xb98   : > { %vm10748_vm5 = vcmp.ge.f32.partialorder %v12562_v29, 0.0  ;;  %v10787_v25 = vmul.f32 %v12562_v29, %v18004_v27  ;;  %v9317_v3 = vpop.permute.xlu1 %9316 }
 0xb99   : > { %v10820_v50 = vsel %vm10749_vm6, %v12561_v15, %v10788_v21  ;;  %9386 = vst.msk [vmem:[#allocation3 + $0xd0] sm:$0xff] %vm4297_vm7, %v9317_v3  ;;  %v9889_v30 = vpop.permute.xlu0 %9888 }
 0xb9a   : > { %v10852_v11 = vadd.f32 %v10820_v50, %v18685_v33  ;;  %v10819_v0 = vsel %vm10748_vm5, %v12562_v29, %v10787_v25  ;;  %9960 = vst.msk [vmem:[#allocation3 + $0xc0] sm:$0xff] %vm4876_vm10, %v9889_v30 }
 0xb9b   : > { %v10851_v10 = vadd.f32 %v10819_v0, %v18686_v36 }
 0xb9c   : > { %10884 = vst.msk [vmem:[%s18017_s26 + $0x18] sm:$0xff] %vm692_vm2, %v10852_v11  ;;  %v10081_v62 = vpop.permute.xlu1 %10080 }
 0xb9d   : > { %10883 = vst.msk [vmem:[%s18017_s26 + $0x10] sm:$0xff] %vm692_vm2, %v10851_v10  ;;  %v9891_v12 = vpop.permute.xlu0 %9890  ;;  %v10375_v49 = vld [vmem:[#allocation3 + $0xb8] sm:$0xff] }
 0xb9e   : > { %10152 = vst.msk [vmem:[#allocation3 + $0xc0] sm:$0xff] %vm5069_vm11, %v10081_v62  ;;  %12321 = vmatmul.mubr.msk.f32.gmra.mrb[22].mxu1 %vm5336_vm14, %v10375_v49 }
 0xb9f   : > { %9961 = vst.msk [vmem:[#allocation3 + $0xc8] sm:$0xff] %vm4876_vm10, %v9891_v12 }
 0xba0   : > { %v9509_v52 = vpop.permute.xlu1 %9508 }
 0xba1   : > { %9578 = vst.msk [vmem:[#allocation3 + $0xd0] sm:$0xff] %vm4490_vm8, %v9509_v52  ;;  %v9319_v42 = vpop.permute.xlu0 %9318 }
 0xba2   : > { %9387 = vst.msk [vmem:[#allocation3 + $0xd8] sm:$0xff] %vm4297_vm7, %v9319_v42  ;;  %v18691_v42 = vld [vmem:[#allocation13_spill] sm:$0xff] }
 0xba4   : > { %v10273_v19 = vpop.permute.xlu1 %10272 }
 0xba5   : > { %10344 = vst.msk [vmem:[#allocation3 + $0xc0] sm:$0xff] %vm5262_vm12, %v10273_v19  ;;  %v10083_v4 = vpop.permute.xlu0 %10082 }
 0xba6   : > { %10153 = vst.msk [vmem:[#allocation3 + $0xc8] sm:$0xff] %vm5069_vm11, %v10083_v4 }
 0xba8   : > { %v9701_v51 = vpop.permute.xlu1 %9700  ;;  %v12295_v6 = vpop.f32.mrb[4].mxu1 }
 0xba9   : > { %9770 = vst.msk [vmem:[#allocation3 + $0xd0] sm:$0xff] %vm4683_vm9, %v9701_v51  ;;  %v12563_v58 = vadd.f32 %v12295_v6, %v17999_v26  ;;  %v10575_v20 = vpop.f32.mrb[5].mxu1  ;;  %v9511_v53 = vpop.permute.xlu0 %9510  ;;  %v18692_v51 = vld [vmem:[#allocation12_spill] sm:$0xff] }
 0xbaa   : > { %v12564_v8 = vadd.f32 %v17999_v26, %v10575_v20  ;;  %9579 = vst.msk [vmem:[#allocation3 + $0xd8] sm:$0xff] %vm4490_vm8, %v9511_v53 }
 0xbab   : > { %vm10751_vm15 = vcmp.ge.f32.partialorder %v12563_v58, 0.0  ;;  %v10790_v57 = vmul.f32 %v12563_v58, %v18004_v27 }
 0xbac   : > { %vm10750_vm1 = vcmp.ge.f32.partialorder %v12564_v8, 0.0  ;;  %v10789_v28 = vmul.f32 %v12564_v8, %v18004_v27  ;;  %v9703_v63 = vpop.permute.xlu1 %9702  ;;  %v10376_v43 = vld [vmem:[#allocation3 + $0xc0] sm:$0xff] }
 0xbad   : > { %v10822_v1 = vsel %vm10751_vm15, %v12563_v58, %v10790_v57  ;;  %9771 = vst.msk [vmem:[#allocation3 + $0xd8] sm:$0xff] %vm4683_vm9, %v9703_v63  ;;  %12323 = vmatprep.mubr.msk.f32.mxu1 %vm5336_vm14, %v10376_v43  ;;  %v10275_v38 = vpop.permute.xlu0 %10274 }
 0xbae   : > { %v10854_v55 = vadd.f32 %v10822_v1, %v18687_v48  ;;  %v10821_v2 = vsel %vm10750_vm1, %v12564_v8, %v10789_v28  ;;  %10345 = vst.msk [vmem:[#allocation3 + $0xc8] sm:$0xff] %vm5262_vm12, %v10275_v38 }
 0xbaf   : > { %v10853_v41 = vadd.f32 %v10821_v2, %v18688_v9 }
 0xbb0   : > { %10886 = vst.msk [vmem:[%s18017_s26 + $0x28] sm:$0xff] %vm692_vm2, %v10854_v55  ;;  %v9321_v18 = vpop.permute.xlu1 %9320 }
 0xbb1   : > { %10885 = vst.msk [vmem:[%s18017_s26 + $0x20] sm:$0xff] %vm692_vm2, %v10853_v41  ;;  %v9893_v34 = vpop.permute.xlu0 %9892 }
 0xbb2   : > { %9388 = vst.msk [vmem:[#allocation3 + $0xe0] sm:$0xff] %vm4297_vm7, %v9321_v18 }
 0xbb3   : > { %9962 = vst.msk [vmem:[#allocation3 + $0xd0] sm:$0xff] %vm4876_vm10, %v9893_v34 }
 0xbb4   : > { %v10085_v17 = vpop.permute.xlu1 %10084 }
 0xbb5   : > { %10154 = vst.msk [vmem:[#allocation3 + $0xd0] sm:$0xff] %vm5069_vm11, %v10085_v17  ;;  %v9895_v35 = vpop.permute.xlu0 %9894  ;;  %v10377_v56 = vld [vmem:[#allocation3 + $0xc8] sm:$0xff] }
 0xbb6   : > { %9963 = vst.msk [vmem:[#allocation3 + $0xd8] sm:$0xff] %vm4876_vm10, %v9895_v35  ;;  %12324 = vmatmul.mubr.msk.f32.gmra.mrb[24].mxu1 %vm5336_vm14, %v10377_v56  ;;  %v18693_v56 = vld [vmem:[#allocation15_spill] sm:$0xff] }
 0xbb8   : > { %v9513_v39 = vpop.permute.xlu1 %9512 }
 0xbb9   : > { %9580 = vst.msk [vmem:[#allocation3 + $0xe0] sm:$0xff] %vm4490_vm8, %v9513_v39  ;;  %v9323_v60 = vpop.permute.xlu0 %9322 }
 0xbba   : > { %9389 = vst.msk [vmem:[#allocation3 + $0xe8] sm:$0xff] %vm4297_vm7, %v9323_v60 }
 0xbbc   : > { %v10277_v16 = vpop.permute.xlu1 %10276  ;;  %v12298_v14 = vpop.f32.mrb[6].mxu1 }
 0xbbd   : > { %10346 = vst.msk [vmem:[#allocation3 + $0xd0] sm:$0xff] %vm5262_vm12, %v10277_v16  ;;  %v12565_v7 = vadd.f32 %v12298_v14, %v17999_v26  ;;  %v10585_v47 = vpop.f32.mrb[7].mxu1  ;;  %v10087_v24 = vpop.permute.xlu0 %10086  ;;  %v18694_v16 = vld [vmem:[#allocation14_spill] sm:$0xff] }
 0xbbe   : > { %v12566_v54 = vadd.f32 %v17999_v26, %v10585_v47  ;;  %10155 = vst.msk [vmem:[#allocation3 + $0xd8] sm:$0xff] %vm5069_vm11, %v10087_v24 }
 0xbbf   : > { %vm10753_vm3 = vcmp.ge.f32.partialorder %v12565_v7, 0.0  ;;  %v10792_v44 = vmul.f32 %v12565_v7, %v18004_v27 }
 0xbc0   : > { %vm10752_vm4 = vcmp.ge.f32.partialorder %v12566_v54, 0.0  ;;  %v10791_v23 = vmul.f32 %v12566_v54, %v18004_v27  ;;  %v9705_v13 = vpop.permute.xlu1 %9704 }
 0xbc1   : > { %v10824_v31 = vsel %vm10753_vm3, %v12565_v7, %v10792_v44  ;;  %9772 = vst.msk [vmem:[#allocation3 + $0xe0] sm:$0xff] %vm4683_vm9, %v9705_v13  ;;  %v9515_v5 = vpop.permute.xlu0 %9514 }
 0xbc2   : > { %v10856_v61 = vadd.f32 %v10824_v31, %v18689_v37  ;;  %v10823_v45 = vsel %vm10752_vm4, %v12566_v54, %v10791_v23  ;;  %9581 = vst.msk [vmem:[#allocation3 + $0xe8] sm:$0xff] %vm4490_vm8, %v9515_v5  ;;  %v18695_v37 = vld [vmem:[#allocation17_spill] sm:$0xff] }
 0xbc3   : > { %v10855_v59 = vadd.f32 %v10823_v45, %v18690_v32  ;;  %v18696_v32 = vld [vmem:[#allocation16_spill] sm:$0xff] }
 0xbc4   : > { %10888 = vst.msk [vmem:[%s18017_s26 + $0x38] sm:$0xff] %vm692_vm2, %v10856_v61  ;;  %v9707_v40 = vpop.permute.xlu1 %9706  ;;  %v10378_v15 = vld [vmem:[#allocation3 + $0xd0] sm:$0xff] }
 0xbc5   : > { %10887 = vst.msk [vmem:[%s18017_s26 + $0x30] sm:$0xff] %vm692_vm2, %v10855_v59  ;;  %12326 = vmatprep.mubr.msk.f32.mxu1 %vm5336_vm14, %v10378_v15  ;;  %v10279_v22 = vpop.permute.xlu0 %10278 }
 0xbc6   : > { %9773 = vst.msk [vmem:[#allocation3 + $0xe8] sm:$0xff] %vm4683_vm9, %v9707_v40 }
 0xbc7   : > { %10347 = vst.msk [vmem:[#allocation3 + $0xd8] sm:$0xff] %vm5262_vm12, %v10279_v22 }
 0xbc8   : > { %v9325_v46 = vpop.permute.xlu1 %9324 }
 0xbc9   : > { %9390 = vst.msk [vmem:[#allocation3 + $0xf0] sm:$0xff] %vm4297_vm7, %v9325_v46  ;;  %v9897_v29 = vpop.permute.xlu0 %9896 }
 0xbca   : > { %9964 = vst.msk [vmem:[#allocation3 + $0xe0] sm:$0xff] %vm4876_vm10, %v9897_v29 }
 0xbcc   : > { %v10089_v21 = vpop.permute.xlu1 %10088 }
 0xbcd   : > { %10156 = vst.msk [vmem:[#allocation3 + $0xe0] sm:$0xff] %vm5069_vm11, %v10089_v21  ;;  %v9899_v25 = vpop.permute.xlu0 %9898 }
 0xbce   : > { %v10379_v3 = vld [vmem:[#allocation3 + $0xd8] sm:$0xff]  ;;  %9965 = vst.msk [vmem:[#allocation3 + $0xe8] sm:$0xff] %vm4876_vm10, %v9899_v25 }
 0xbcf   : > { %12327 = vmatmul.mubr.msk.f32.gmra.mrb[26].mxu1 %vm5336_vm14, %v10379_v3  ;;  %v18697_v3 = vld [vmem:[#allocation19_spill] sm:$0xff] }
 0xbd0   : > { %v9517_v50 = vpop.permute.xlu1 %9516  ;;  %v12301_v30 = vpop.f32.mrb[8].mxu1 }
 0xbd1   : > { %9582 = vst.msk [vmem:[#allocation3 + $0xf0] sm:$0xff] %vm4490_vm8, %v9517_v50  ;;  %v12567_v33 = vadd.f32 %v12301_v30, %v17999_v26  ;;  %v10595_v11 = vpop.f32.mrb[9].mxu1  ;;  %v9327_v0 = vpop.permute.xlu0 %9326 }
 0xbd2   : > { %v12568_v36 = vadd.f32 %v17999_v26, %v10595_v11  ;;  %9391 = vst.msk [vmem:[#allocation3 + $0xf8] sm:$0xff] %vm4297_vm7, %v9327_v0 }
 0xbd3   : > { %vm10755_vm0 = vcmp.ge.f32.partialorder %v12567_v33, 0.0  ;;  %v10794_v10 = vmul.f32 %v12567_v33, %v18004_v27 }
 0xbd4   : > { %vm10754_vm13 = vcmp.ge.f32.partialorder %v12568_v36, 0.0  ;;  %v10793_v62 = vmul.f32 %v12568_v36, %v18004_v27  ;;  %v10281_v12 = vpop.permute.xlu1 %10280 }
 0xbd5   : > { %v10826_v49 = vsel %vm10755_vm0, %v12567_v33, %v10794_v10  ;;  %10348 = vst.msk [vmem:[#allocation3 + $0xe0] sm:$0xff] %vm5262_vm12, %v10281_v12  ;;  %v10091_v52 = vpop.permute.xlu0 %10090  ;;  %v18698_v33 = vld [vmem:[#allocation18_spill] sm:$0xff] }
 0xbd6   : > { %v10858_v19 = vadd.f32 %v10826_v49, %v18691_v42  ;;  %v10825_v4 = vsel %vm10754_vm13, %v12568_v36, %v10793_v62  ;;  %10157 = vst.msk [vmem:[#allocation3 + $0xe8] sm:$0xff] %vm5069_vm11, %v10091_v52  ;;  %v18699_v42 = vld [vmem:[#allocation21_spill] sm:$0xff] }
 0xbd7   : > { %v10857_v6 = vadd.f32 %v10825_v4, %v18692_v51  ;;  %v18700_v51 = vld [vmem:[#allocation20_spill] sm:$0xff] }
 0xbd8   : > { %10890 = vst.msk [vmem:[%s18017_s26 + $0x48] sm:$0xff] %vm692_vm2, %v10858_v19  ;;  %v9709_v58 = vpop.permute.xlu1 %9708 }
 0xbd9   : > { %10889 = vst.msk [vmem:[%s18017_s26 + $0x40] sm:$0xff] %vm692_vm2, %v10857_v6  ;;  %v9519_v20 = vpop.permute.xlu0 %9518 }
 0xbda   : > { %9774 = vst.msk [vmem:[#allocation3 + $0xf0] sm:$0xff] %vm4683_vm9, %v9709_v58 }
 0xbdb   : > { %9583 = vst.msk [vmem:[#allocation3 + $0xf8] sm:$0xff] %vm4490_vm8, %v9519_v20 }
 0xbdc   : > { %v9711_v53 = vpop.permute.xlu1 %9710  ;;  %v10380_v8 = vld [vmem:[#allocation3 + $0xe0] sm:$0xff] }
 0xbdd   : > { %9775 = vst.msk [vmem:[#allocation3 + $0xf8] sm:$0xff] %vm4683_vm9, %v9711_v53  ;;  %12329 = vmatprep.mubr.msk.f32.mxu1 %vm5336_vm14, %v10380_v8  ;;  %v10283_v57 = vpop.permute.xlu0 %10282 }
 0xbde   : > { %10349 = vst.msk [vmem:[#allocation3 + $0xe8] sm:$0xff] %vm5262_vm12, %v10283_v57 }
 0xbe0   : > { %v9903_v28 = vpop.permute.xlu1 %9902 }
 0xbe1   : > { %v9901_v63 = vpop.permute.xlu0 %9900  ;;  %9967 = vst.msk [vmem:[#allocation3 + $0xf8] sm:$0xff] %vm4876_vm10, %v9903_v28 }
 0xbe2   : > { %9966 = vst.msk [vmem:[#allocation3 + $0xf0] sm:$0xff] %vm4876_vm10, %v9901_v63 }
 0xbe4   : > { %v12304_v43 = vpop.f32.mrb[10].mxu1  ;;  %v10095_v1 = vpop.permute.xlu1 %10094 }
 0xbe5   : > { %v12569_v38 = vadd.f32 %v12304_v43, %v17999_v26  ;;  %v10605_v48 = vpop.f32.mrb[11].mxu1  ;;  %v10093_v55 = vpop.permute.xlu0 %10092  ;;  %10159 = vst.msk [vmem:[#allocation3 + $0xf8] sm:$0xff] %vm5069_vm11, %v10095_v1  ;;  %v10381_v2 = vld [vmem:[#allocation3 + $0xe8] sm:$0xff]  ;;  %v18701_v43 = vld [vmem:[#allocation23_spill] sm:$0xff] }
 0xbe6   : > { %v12570_v9 = vadd.f32 %v17999_v26, %v10605_v48  ;;  %10158 = vst.msk [vmem:[#allocation3 + $0xf0] sm:$0xff] %vm5069_vm11, %v10093_v55  ;;  %12330 = vmatmul.mubr.msk.f32.gmra.mrb[28].mxu1 %vm5336_vm14, %v10381_v2  ;;  %v18702_v48 = vld [vmem:[#allocation22_spill] sm:$0xff] }
 0xbe7   : > { %vm10757_vm7 = vcmp.ge.f32.partialorder %v12569_v38, 0.0  ;;  %v10796_v41 = vmul.f32 %v12569_v38, %v18004_v27 }
 0xbe8   : > { %vm10756_vm8 = vcmp.ge.f32.partialorder %v12570_v9, 0.0  ;;  %v10795_v18 = vmul.f32 %v12570_v9, %v18004_v27  ;;  %v10287_v34 = vpop.permute.xlu1 %10286 }
 0xbe9   : > { %v10828_v17 = vsel %vm10757_vm7, %v12569_v38, %v10796_v41  ;;  %v10285_v35 = vpop.permute.xlu0 %10284  ;;  %10351 = vst.msk [vmem:[#allocation3 + $0xf8] sm:$0xff] %vm5262_vm12, %v10287_v34 }
 0xbea   : > { %v10860_v39 = vadd.f32 %v10828_v17, %v18693_v56  ;;  %v10827_v60 = vsel %vm10756_vm8, %v12570_v9, %v10795_v18  ;;  %10350 = vst.msk [vmem:[#allocation3 + $0xf0] sm:$0xff] %vm5262_vm12, %v10285_v35  ;;  %v18703_v56 = vld [vmem:[#allocation25_spill] sm:$0xff] }
 0xbeb   : > { %v10859_v14 = vadd.f32 %v10827_v60, %v18694_v16  ;;  %v18704_v16 = vld [vmem:[#allocation24_spill] sm:$0xff] }
 0xbec   : > { %10892 = vst.msk [vmem:[%s18017_s26 + $0x58] sm:$0xff] %vm692_vm2, %v10860_v39 }
 0xbed   : > { %10891 = vst.msk [vmem:[%s18017_s26 + $0x50] sm:$0xff] %vm692_vm2, %v10859_v14 }
 0xbf0   : > { %v10383_v7 = vld [vmem:[#allocation3 + $0xf8] sm:$0xff] }
 0xbf1   : > { %v10382_v47 = vld [vmem:[#allocation3 + $0xf0] sm:$0xff] }
 0xbf2   : > { %12332 = vmatprep.mubr.msk.f32.mxu1 %vm5336_vm14, %v10382_v47 }
 0xbf3   : > { %12333 = vmatmul.mubr.msk.f32.gmra.mrb[30].mxu1 %vm5336_vm14, %v10383_v7 }
 0xbf8   : > { %v12307_v24 = vpop.f32.mrb[12].mxu1 }
 0xbf9   : > { %v12571_v54 = vadd.f32 %v12307_v24, %v17999_v26  ;;  %v10615_v44 = vpop.f32.mrb[13].mxu1 }
 0xbfa   : > { %v12572_v23 = vadd.f32 %v17999_v26, %v10615_v44 }
 0xbfb   : > { %vm10759_vm9 = vcmp.ge.f32.partialorder %v12571_v54, 0.0  ;;  %v10798_v13 = vmul.f32 %v12571_v54, %v18004_v27 }
 0xbfc   : > { %vm10758_vm10 = vcmp.ge.f32.partialorder %v12572_v23, 0.0  ;;  %v10797_v31 = vmul.f32 %v12572_v23, %v18004_v27 }
 0xbfd   : > { %v10830_v5 = vsel %vm10759_vm9, %v12571_v54, %v10798_v13 }
 0xbfe   : > { %v10862_v61 = vadd.f32 %v10830_v5, %v18695_v37  ;;  %v10829_v45 = vsel %vm10758_vm10, %v12572_v23, %v10797_v31  ;;  %v18705_v31 = vld [vmem:[#allocation27_spill] sm:$0xff] }
 0xbff   : > { %v10861_v59 = vadd.f32 %v10829_v45, %v18696_v32 }
 0xc00   : > { %10894 = vst.msk [vmem:[%s18017_s26 + $0x68] sm:$0xff] %vm692_vm2, %v10862_v61  ;;  %v18706_v61 = vld [vmem:[#allocation26_spill] sm:$0xff] }
 0xc01   : > { %10893 = vst.msk [vmem:[%s18017_s26 + $0x60] sm:$0xff] %vm692_vm2, %v10861_v59 }
 0xc11   : > { %v12310_v40 = vpop.f32.mrb[14].mxu1 }
 0xc12   : > { %v12573_v15 = vadd.f32 %v12310_v40, %v17999_v26  ;;  %v10625_v22 = vpop.f32.mrb[15].mxu1 }
 0xc13   : > { %v12574_v46 = vadd.f32 %v17999_v26, %v10625_v22 }
 0xc14   : > { %vm10761_vm11 = vcmp.ge.f32.partialorder %v12573_v15, 0.0  ;;  %v10800_v29 = vmul.f32 %v12573_v15, %v18004_v27 }
 0xc15   : > { %vm10760_vm12 = vcmp.ge.f32.partialorder %v12574_v46, 0.0  ;;  %v10799_v21 = vmul.f32 %v12574_v46, %v18004_v27 }
 0xc16   : > { %v10832_v25 = vsel %vm10761_vm11, %v12573_v15, %v10800_v29 }
 0xc17   : > { %v10864_v50 = vadd.f32 %v10832_v25, %v18697_v3  ;;  %v10831_v30 = vsel %vm10760_vm12, %v12574_v46, %v10799_v21  ;;  %v18707_v21 = vld [vmem:[#allocation29_spill] sm:$0xff] }
 0xc18   : > { %v10863_v11 = vadd.f32 %v10831_v30, %v18698_v33 }
 0xc19   : > { %10896 = vst.msk [vmem:[%s18017_s26 + $0x78] sm:$0xff] %vm692_vm2, %v10864_v50  ;;  %v18708_v50 = vld [vmem:[#allocation28_spill] sm:$0xff] }
 0xc1a   : > { %10895 = vst.msk [vmem:[%s18017_s26 + $0x70] sm:$0xff] %vm692_vm2, %v10863_v11 }
 0xc29   : > { %v12313_v0 = vpop.f32.mrb[16].mxu1 }
 0xc2a   : > { %v12575_v36 = vadd.f32 %v12313_v0, %v17999_v26  ;;  %v10635_v10 = vpop.f32.mrb[17].mxu1 }
 0xc2b   : > { %v12576_v62 = vadd.f32 %v17999_v26, %v10635_v10 }
 0xc2c   : > { %vm10763_vm14 = vcmp.ge.f32.partialorder %v12575_v36, 0.0  ;;  %v10802_v12 = vmul.f32 %v12575_v36, %v18004_v27 }
 0xc2d   : > { %vm10762_vm6 = vcmp.ge.f32.partialorder %v12576_v62, 0.0  ;;  %v10801_v49 = vmul.f32 %v12576_v62, %v18004_v27 }
 0xc2e   : > { %v10834_v52 = vsel %vm10763_vm14, %v12575_v36, %v10802_v12 }
 0xc2f   : > { %v10866_v19 = vadd.f32 %v10834_v52, %v18699_v42  ;;  %v10833_v4 = vsel %vm10762_vm6, %v12576_v62, %v10801_v49  ;;  %v18709_v49 = vld [vmem:[#allocation31_spill] sm:$0xff] }
 0xc30   : > { %v10865_v6 = vadd.f32 %v10833_v4, %v18700_v51 }
 0xc31   : > { %10898 = vst.msk [vmem:[%s18017_s26 + $0x88] sm:$0xff] %vm692_vm2, %v10866_v19  ;;  %v18710_v19 = vld [vmem:[#allocation30_spill] sm:$0xff] }
 0xc32   : > { %10897 = vst.msk [vmem:[%s18017_s26 + $0x80] sm:$0xff] %vm692_vm2, %v10865_v6 }
 0xc41   : > { %v12316_v58 = vpop.f32.mrb[18].mxu1 }
 0xc42   : > { %v12577_v20 = vadd.f32 %v12316_v58, %v17999_v26  ;;  %v10645_v53 = vpop.f32.mrb[19].mxu1 }
 0xc43   : > { %v12578_v8 = vadd.f32 %v17999_v26, %v10645_v53 }
 0xc44   : > { %vm10765_vm5 = vcmp.ge.f32.partialorder %v12577_v20, 0.0  ;;  %v10804_v57 = vmul.f32 %v12577_v20, %v18004_v27 }
 0xc45   : > { %vm10764_vm15 = vcmp.ge.f32.partialorder %v12578_v8, 0.0  ;;  %v10803_v28 = vmul.f32 %v12578_v8, %v18004_v27 }
 0xc46   : > { %v10836_v63 = vsel %vm10765_vm5, %v12577_v20, %v10804_v57 }
 0xc47   : > { %v10868_v1 = vadd.f32 %v10836_v63, %v18701_v43  ;;  %v10835_v38 = vsel %vm10764_vm15, %v12578_v8, %v10803_v28  ;;  %v18711_v28 = vld [vmem:[#allocation33_spill] sm:$0xff] }
 0xc48   : > { %v10867_v55 = vadd.f32 %v10835_v38, %v18702_v48 }
 0xc49   : > { %10900 = vst.msk [vmem:[%s18017_s26 + $0x98] sm:$0xff] %vm692_vm2, %v10868_v1  ;;  %v18712_v1 = vld [vmem:[#allocation32_spill] sm:$0xff] }
 0xc4a   : > { %10899 = vst.msk [vmem:[%s18017_s26 + $0x90] sm:$0xff] %vm692_vm2, %v10867_v55 }
 0xc59   : > { %v12319_v2 = vpop.f32.mrb[20].mxu1 }
 0xc5a   : > { %v12579_v9 = vadd.f32 %v12319_v2, %v17999_v26  ;;  %v10655_v41 = vpop.f32.mrb[21].mxu1 }
 0xc5b   : > { %v12580_v18 = vadd.f32 %v17999_v26, %v10655_v41 }
 0xc5c   : > { %vm10767_vm1 = vcmp.ge.f32.partialorder %v12579_v9, 0.0  ;;  %v10806_v34 = vmul.f32 %v12579_v9, %v18004_v27 }
 0xc5d   : > { %vm10766_vm3 = vcmp.ge.f32.partialorder %v12580_v18, 0.0  ;;  %v10805_v17 = vmul.f32 %v12580_v18, %v18004_v27 }
 0xc5e   : > { %v10838_v35 = vsel %vm10767_vm1, %v12579_v9, %v10806_v34 }
 0xc5f   : > { %v10870_v39 = vadd.f32 %v10838_v35, %v18703_v56  ;;  %v10837_v60 = vsel %vm10766_vm3, %v12580_v18, %v10805_v17  ;;  %v18713_v17 = vld [vmem:[#allocation37_spill] sm:$0xff] }
 0xc60   : > { %v10869_v14 = vadd.f32 %v10837_v60, %v18704_v16 }
 0xc61   : > { %10902 = vst.msk [vmem:[%s18017_s26 + $0xa8] sm:$0xff] %vm692_vm2, %v10870_v39  ;;  %v18714_v39 = vld [vmem:[#allocation35_spill] sm:$0xff] }
 0xc62   : > { %10901 = vst.msk [vmem:[%s18017_s26 + $0xa0] sm:$0xff] %vm692_vm2, %v10869_v14 }
 0xc71   : > { %v12322_v7 = vpop.f32.mrb[22].mxu1 }
 0xc72   : > { %v12581_v47 = vadd.f32 %v12322_v7, %v17999_v26  ;;  %v10665_v24 = vpop.f32.mrb[23].mxu1 }
 0xc73   : > { %v12582_v54 = vadd.f32 %v17999_v26, %v10665_v24 }
 0xc74   : > { %vm10769_vm4 = vcmp.ge.f32.partialorder %v12581_v47, 0.0  ;;  %v10808_v44 = vmul.f32 %v12581_v47, %v18004_v27 }
 0xc75   : > { %vm10768_vm0 = vcmp.ge.f32.partialorder %v12582_v54, 0.0  ;;  %v10807_v23 = vmul.f32 %v12582_v54, %v18004_v27 }
 0xc76   : > { %v10840_v13 = vsel %vm10769_vm4, %v12581_v47, %v10808_v44 }
 0xc77   : > { %v10872_v5 = vadd.f32 %v10840_v13, %v18705_v31  ;;  %v10839_v37 = vsel %vm10768_vm0, %v12582_v54, %v10807_v23 }
 0xc78   : > { %v10871_v45 = vadd.f32 %v10839_v37, %v18706_v61 }
 0xc79   : > { %10904 = vst.msk [vmem:[%s18017_s26 + $0xb8] sm:$0xff] %vm692_vm2, %v10872_v5 }
 0xc7a   : > { %10903 = vst.msk [vmem:[%s18017_s26 + $0xb0] sm:$0xff] %vm692_vm2, %v10871_v45 }
 0xc89   : > { %v12325_v32 = vpop.f32.mrb[24].mxu1 }
 0xc8a   : > { %v12583_v59 = vadd.f32 %v12325_v32, %v17999_v26  ;;  %v10675_v40 = vpop.f32.mrb[25].mxu1 }
 0xc8b   : > { %v12584_v15 = vadd.f32 %v17999_v26, %v10675_v40 }
 0xc8c   : > { %vm10771_vm13 = vcmp.ge.f32.partialorder %v12583_v59, 0.0  ;;  %v10810_v22 = vmul.f32 %v12583_v59, %v18004_v27 }
 0xc8d   : > { %vm10770_vm7 = vcmp.ge.f32.partialorder %v12584_v15, 0.0  ;;  %v10809_v46 = vmul.f32 %v12584_v15, %v18004_v27 }
 0xc8e   : > { %v10842_v29 = vsel %vm10771_vm13, %v12583_v59, %v10810_v22 }
 0xc8f   : > { %v10874_v25 = vadd.f32 %v10842_v29, %v18707_v21  ;;  %v10841_v3 = vsel %vm10770_vm7, %v12584_v15, %v10809_v46 }
 0xc90   : > { %v10873_v30 = vadd.f32 %v10841_v3, %v18708_v50 }
 0xc91   : > { %10906 = vst.msk [vmem:[%s18017_s26 + $0xc8] sm:$0xff] %vm692_vm2, %v10874_v25 }
 0xc92   : > { %10905 = vst.msk [vmem:[%s18017_s26 + $0xc0] sm:$0xff] %vm692_vm2, %v10873_v30 }
 0xca2   : > { %v12328_v33 = vpop.f32.mrb[26].mxu1 }
 0xca3   : > { %v12585_v11 = vadd.f32 %v12328_v33, %v17999_v26  ;;  %v10685_v0 = vpop.f32.mrb[27].mxu1 }
 0xca4   : > { %v12586_v36 = vadd.f32 %v17999_v26, %v10685_v0 }
 0xca5   : > { %vm10773_vm8 = vcmp.ge.f32.partialorder %v12585_v11, 0.0  ;;  %v10812_v10 = vmul.f32 %v12585_v11, %v18004_v27 }
 0xca6   : > { %vm10772_vm9 = vcmp.ge.f32.partialorder %v12586_v36, 0.0  ;;  %v10811_v62 = vmul.f32 %v12586_v36, %v18004_v27 }
 0xca7   : > { %v10844_v12 = vsel %vm10773_vm8, %v12585_v11, %v10812_v10 }
 0xca8   : > { %v10876_v52 = vadd.f32 %v10844_v12, %v18709_v49  ;;  %v10843_v42 = vsel %vm10772_vm9, %v12586_v36, %v10811_v62 }
 0xca9   : > { %v10875_v4 = vadd.f32 %v10843_v42, %v18710_v19 }
 0xcaa   : > { %10908 = vst.msk [vmem:[%s18017_s26 + $0xd8] sm:$0xff] %vm692_vm2, %v10876_v52 }
 0xcab   : > { %10907 = vst.msk [vmem:[%s18017_s26 + $0xd0] sm:$0xff] %vm692_vm2, %v10875_v4 }
 0xcb9   : > { %v12331_v51 = vpop.f32.mrb[28].mxu1 }
 0xcba   : > { %v12587_v6 = vadd.f32 %v12331_v51, %v17999_v26  ;;  %v10695_v58 = vpop.f32.mrb[29].mxu1 }
 0xcbb   : > { %v12588_v20 = vadd.f32 %v17999_v26, %v10695_v58 }
 0xcbc   : > { %vm10775_vm10 = vcmp.ge.f32.partialorder %v12587_v6, 0.0  ;;  %v10814_v53 = vmul.f32 %v12587_v6, %v18004_v27 }
 0xcbd   : > { %vm10774_vm11 = vcmp.ge.f32.partialorder %v12588_v20, 0.0  ;;  %v10813_v8 = vmul.f32 %v12588_v20, %v18004_v27 }
 0xcbe   : > { %v10846_v57 = vsel %vm10775_vm10, %v12587_v6, %v10814_v53 }
 0xcbf   : > { %v10878_v63 = vadd.f32 %v10846_v57, %v18711_v28  ;;  %v10845_v43 = vsel %vm10774_vm11, %v12588_v20, %v10813_v8 }
 0xcc0   : > { %v10877_v38 = vadd.f32 %v10845_v43, %v18712_v1 }
 0xcc1   : > { %10910 = vst.msk [vmem:[%s18017_s26 + $0xe8] sm:$0xff] %vm692_vm2, %v10878_v63 }
 0xcc2   : > { %10909 = vst.msk [vmem:[%s18017_s26 + $0xe0] sm:$0xff] %vm692_vm2, %v10877_v38 }
 0xcc6   : > { %v12334_v48 = vpop.f32.mrb[30].mxu1 }
 0xcc7   : > { %v12589_v55 = vadd.f32 %v12334_v48, %v17999_v26  ;;  %v10705_v2 = vpop.f32.mrb[31].mxu1 }
 0xcc8   : > { %v12590_v9 = vadd.f32 %v17999_v26, %v10705_v2 }
 0xcc9   : > { %vm10777_vm12 = vcmp.ge.f32.partialorder %v12589_v55, 0.0  ;;  %v10816_v41 = vmul.f32 %v12589_v55, %v18004_v27 }
 0xcca   : > { %vm10776_vm14 = vcmp.ge.f32.partialorder %v12590_v9, 0.0  ;;  %v10815_v18 = vmul.f32 %v12590_v9, %v18004_v27 }
 0xccb   : > { %v10848_v34 = vsel %vm10777_vm12, %v12589_v55, %v10816_v41 }
 0xccc   : > { %v10880_v35 = vadd.f32 %v10848_v34, %v18713_v17  ;;  %v10847_v56 = vsel %vm10776_vm14, %v12590_v9, %v10815_v18 }
 0xccd   : > { %v10879_v60 = vadd.f32 %v10847_v56, %v18714_v39 }
 0xcce   : > { %10912 = vst.msk [vmem:[%s18017_s26 + $0xf8] sm:$0xff] %vm692_vm2, %v10880_v35 }
 0xccf   : > { %10911 = vst.msk [vmem:[%s18017_s26 + $0xf0] sm:$0xff] %vm692_vm2, %v10879_v60 }
 0xcd0 PF: > { %s29_s0 = sadd.s32 1, %s12778_s0  }
 0xcd1   : > { %p26_p4 = scmp.ge.s32.totalorder %s29_s0, 4  }
 0xcd3   :  { %28 = sbr.rel (!%p26_p4) target bundleno = 5 (0x5), region = 128 }

</bundles_post_ra>
